<compile_context>
chip_gen: v6e
topology: v6e:2x2x1
jax: 0.10.0
libtpu: 0.0.40
codegen_flags: <defaults>
</compile_context>

<pallas_src>
import jax
import jax.numpy as jnp
from jax.experimental import pallas as pl
from jax.experimental.pallas import tpu as pltpu

EPS = 1e-5  # PyTorch default eps for InstanceNorm2d and LayerNorm
MAX_TK = 1152  # K tile for the conv matmul (multiple of 128, divides 2304/4608)


# ----------------------------- Pallas kernels ------------------------------

def _conv_in_relu_kernel(p_ref, w_ref, g_ref, b_ref, o_ref, acc_ref):
    """One image: bf16 (HW, tk) @ (tk, Cout) accumulated over K tiles, then
    fused InstanceNorm (stats over HW rows, per-channel lane) + affine + ReLU."""
    k = pl.program_id(1)

    @pl.when(k == 0)
    def _():
        acc_ref[...] = jnp.zeros_like(acc_ref)

    acc_ref[...] += jnp.dot(p_ref[0], w_ref[...],
                            preferred_element_type=jnp.float32)

    @pl.when(k == pl.num_programs(1) - 1)
    def _():
        y = acc_ref[...]                                   # (HW, Cout) f32
        mean = jnp.mean(y, axis=0, keepdims=True)          # per-channel over H*W
        yc = y - mean
        var = jnp.mean(yc * yc, axis=0, keepdims=True)     # biased (PyTorch)
        yn = yc * jax.lax.rsqrt(var + EPS) * g_ref[...] + b_ref[...]
        o_ref[...] = jnp.maximum(yn, 0.0)[None]


def _avg4_kernel(a_ref, b_ref, c_ref, d_ref, o_ref):
    o_ref[...] = (a_ref[...] + b_ref[...] + c_ref[...] + d_ref[...]) * 0.25


def _head_kernel(x_ref, w_ref, g_ref, b_ref, o_ref):
    """AdaptiveAvgPool2d(1) + Linear(512,10,bias=False) + LayerNorm(10)."""
    feat = jnp.mean(x_ref[0], axis=0, keepdims=True)        # (1, 512) f32
    logits = jnp.dot(feat.astype(jnp.bfloat16), w_ref[...],
                     preferred_element_type=jnp.float32)    # (1, 10)
    mean = jnp.mean(logits, axis=-1, keepdims=True)
    lc = logits - mean
    var = jnp.mean(lc * lc, axis=-1, keepdims=True)          # biased (PyTorch)
    o_ref[...] = (lc * jax.lax.rsqrt(var + EPS) * g_ref[...] + b_ref[...])[None]


# ----------------------------- layer wrappers -------------------------------

def conv3x3_in_relu(x_nhwc, w_oihw, gamma, beta):
    """Fused Conv2d(3x3, pad 1, no bias) + InstanceNorm2d(affine) + ReLU."""
    N, H, W, C = x_nhwc.shape
    Cout = w_oihw.shape[0]
    K = 9 * C
    HW = H * W

    # im2col (XLA glue), cast to bf16 for the MXU.
    xp = jnp.pad(x_nhwc, ((0, 0), (1, 1), (1, 1), (0, 0)))
    patches = [xp[:, dy:dy + H, dx:dx + W, :] for dy in range(3) for dx in range(3)]
    pat = jnp.concatenate(patches, axis=-1).reshape(N, HW, K).astype(jnp.bfloat16)
    # (Cout, Cin, 3, 3) -> (kh, kw, cin, cout) -> (9*Cin, Cout), bf16.
    w2d = jnp.transpose(w_oihw, (2, 3, 1, 0)).reshape(K, Cout).astype(jnp.bfloat16)

    tk = K if K <= MAX_TK else MAX_TK
    assert K % tk == 0

    out = pl.pallas_call(
        _conv_in_relu_kernel,
        out_shape=jax.ShapeDtypeStruct((N, HW, Cout), jnp.float32),
        grid_spec=pltpu.PrefetchScalarGridSpec(
            num_scalar_prefetch=0,
            grid=(N, K // tk),
            in_specs=[
                pl.BlockSpec((1, HW, tk), lambda n, k: (n, 0, k)),
                pl.BlockSpec((tk, Cout), lambda n, k: (k, 0)),
                pl.BlockSpec((1, Cout), lambda n, k: (0, 0)),
                pl.BlockSpec((1, Cout), lambda n, k: (0, 0)),
            ],
            out_specs=pl.BlockSpec((1, HW, Cout), lambda n, k: (n, 0, 0)),
            scratch_shapes=[pltpu.VMEM((HW, Cout), jnp.float32)]),
        compiler_params=pltpu.CompilerParams(
            dimension_semantics=("parallel", "arbitrary")),
    )(pat, w2d, gamma.reshape(1, Cout), beta.reshape(1, Cout))
    return out.reshape(N, H, W, Cout)


def avgpool2(x_nhwc):
    """AvgPool2d(kernel=2, stride=2), lane-dense (C on lanes), grid over batch."""
    N, H, W, C = x_nhwc.shape
    Ho, Wo = H // 2, W // 2
    a = x_nhwc[:, 0::2, 0::2, :].reshape(N, Ho * Wo, C)
    b = x_nhwc[:, 0::2, 1::2, :].reshape(N, Ho * Wo, C)
    c = x_nhwc[:, 1::2, 0::2, :].reshape(N, Ho * Wo, C)
    d = x_nhwc[:, 1::2, 1::2, :].reshape(N, Ho * Wo, C)
    spec = pl.BlockSpec((1, Ho * Wo, C), lambda n: (n, 0, 0))
    out = pl.pallas_call(
        _avg4_kernel,
        out_shape=jax.ShapeDtypeStruct((N, Ho * Wo, C), jnp.float32),
        grid_spec=pltpu.PrefetchScalarGridSpec(
            num_scalar_prefetch=0, grid=(N,),
            in_specs=[spec, spec, spec, spec],
            out_specs=spec),
        compiler_params=pltpu.CompilerParams(dimension_semantics=("parallel",)),
    )(a, b, c, d)
    return out.reshape(N, Ho, Wo, C)


def head(x_flat, fc_w, ln_g, ln_b):
    """Fused AdaptiveAvgPool2d(1) + Flatten + Linear(512,10) + LayerNorm(10)."""
    N, HW, C = x_flat.shape
    F = fc_w.shape[0]                       # 10
    w = fc_w.T.astype(jnp.bfloat16)         # (512, 10)
    out = pl.pallas_call(
        _head_kernel,
        out_shape=jax.ShapeDtypeStruct((N, 1, F), jnp.float32),
        grid_spec=pltpu.PrefetchScalarGridSpec(
            num_scalar_prefetch=0, grid=(N,),
            in_specs=[
                pl.BlockSpec((1, HW, C), lambda n: (n, 0, 0)),
                pl.BlockSpec((C, F), lambda n: (0, 0)),
                pl.BlockSpec((1, F), lambda n: (0, 0)),
                pl.BlockSpec((1, F), lambda n: (0, 0)),
            ],
            out_specs=pl.BlockSpec((1, 1, F), lambda n: (n, 0, 0))),
        compiler_params=pltpu.CompilerParams(dimension_semantics=("parallel",)),
    )(x_flat, w, ln_g.reshape(1, F), ln_b.reshape(1, F))
    return out.reshape(N, F)


# ----------------------------- model ---------------------------------------

CONV_CFG = [(3, 64), (64, 64),                          # pool after idx 1
            (64, 128), (128, 128),                      # pool after idx 3
            (128, 256), (256, 256), (256, 256),         # pool after idx 6
            (256, 512), (512, 512), (512, 512)]         # adaptive pool after
POOL_AFTER = {1, 3, 6}


def build_params(key):
    params = {"convs": []}
    for (cin, cout) in CONV_CFG:
        key, k1, k2, k3 = jax.random.split(key, 4)
        w = jax.random.normal(k1, (cout, cin, 3, 3), jnp.float32) * (2.0 / (cin * 9)) ** 0.5
        gamma = 1.0 + 0.1 * jax.random.normal(k2, (cout,), jnp.float32)
        beta = 0.1 * jax.random.normal(k3, (cout,), jnp.float32)
        params["convs"].append((w, gamma, beta))
    key, k1, k2, k3 = jax.random.split(key, 4)
    params["fc_w"] = jax.random.normal(k1, (10, 512), jnp.float32) * (1.0 / 512.0) ** 0.5
    params["ln_g"] = 1.0 + 0.1 * jax.random.normal(k2, (10,), jnp.float32)
    params["ln_b"] = 0.1 * jax.random.normal(k3, (10,), jnp.float32)
    return params


def forward(params, x_nchw):
    x = jnp.transpose(x_nchw.astype(jnp.float32), (0, 2, 3, 1))  # NCHW -> NHWC, once
    for i, (w, g, b) in enumerate(params["convs"]):
        x = conv3x3_in_relu(x, w, g, b)
        if i in POOL_AFTER:
            x = avgpool2(x)
    N, H, W, C = x.shape
    return head(x.reshape(N, H * W, C), params["fc_w"], params["ln_g"], params["ln_b"])


if __name__ == "__main__":
    key = jax.random.PRNGKey(0)
    kx, kp = jax.random.split(key)
    # Small-but-consistent input: batch=2, 3 channels, 16x16 spatial (NCHW like PyTorch).
    x = jax.random.normal(kx, (2, 3, 16, 16), jnp.float32)
    params = build_params(kp)

    fwd = jax.jit(forward)
    out = jax.block_until_ready(fwd(params, x))
    assert out.shape == (2, 10) and out.dtype == jnp.float32
    print("KERNEL_OK")
</pallas_src>

<mosaic_0001>
module attributes {stable_mosaic.version = 11 : i64} {
  func.func @_conv_in_relu_kernel(%arg0: i32, %arg1: i32, %arg2: memref<1x256x27xbf16, #tpu.memory_space<vmem>>, %arg3: memref<27x64xbf16, #tpu.memory_space<vmem>>, %arg4: memref<1x64xf32, #tpu.memory_space<vmem>>, %arg5: memref<1x64xf32, #tpu.memory_space<vmem>>, %arg6: memref<1x256x64xf32, #tpu.memory_space<vmem>>, %arg7: memref<256x64xf32, #tpu.memory_space<vmem>>) attributes {dimension_semantics = [#tpu.dimension_semantics<parallel>, #tpu.dimension_semantics<arbitrary>], iteration_bounds = array<i64: 2, 1>, scalar_prefetch = 0 : i64, scratch_operands = 1 : i64, tpu.core_type = #tpu.core_type<tc>, window_params = [{transform_indices = @transform_0, window_bounds = array<i64: 1, 256, 27>}, {transform_indices = @transform_1, window_bounds = array<i64: 27, 64>}, {pipeline_mode = #tpu.pipeline_mode<synchronous>, transform_indices = @transform_2, window_bounds = array<i64: 1, 64>}, {pipeline_mode = #tpu.pipeline_mode<synchronous>, transform_indices = @transform_3, window_bounds = array<i64: 1, 64>}, {transform_indices = @transform_4, window_bounds = array<i64: 1, 256, 64>}]} {
    %c0_i32 = arith.constant 0 : i32
    %0 = arith.cmpi eq, %arg1, %c0_i32 : i32
    %1 = arith.extui %0 : i1 to i32
    %c0_i32_0 = arith.constant 0 : i32
    %2 = arith.cmpi ne, %1, %c0_i32_0 : i32
    scf.if %2 {
      %cst_11 = arith.constant 0.000000e+00 : f32
      %13 = vector.broadcast %cst_11 : f32 to vector<256x64xf32>
      %c0_12 = arith.constant 0 : index
      %c0_13 = arith.constant 0 : index
      %14 = vector.load %arg7[%c0_12, %c0_13] : memref<256x64xf32, #tpu.memory_space<vmem>>, vector<256x64xf32>
      tpu.vector_store %arg7[%c0_12, %c0_13], %13 {strides = array<i32>} : memref<256x64xf32, #tpu.memory_space<vmem>>, vector<256x64xf32>,
    } else {
    }
    %c0 = arith.constant 0 : index
    %c0_1 = arith.constant 0 : index
    %3 = vector.load %arg7[%c0, %c0_1] : memref<256x64xf32, #tpu.memory_space<vmem>>, vector<256x64xf32>
    %c0_2 = arith.constant 0 : index
    %c0_3 = arith.constant 0 : index
    %c0_4 = arith.constant 0 : index
    %4 = vector.load %arg2[%c0_2, %c0_3, %c0_4] : memref<1x256x27xbf16, #tpu.memory_space<vmem>>, vector<1x256x27xbf16>
    %5 = vector.shape_cast %4 : vector<1x256x27xbf16> to vector<256x27xbf16>
    %c0_5 = arith.constant 0 : index
    %c0_6 = arith.constant 0 : index
    %6 = vector.load %arg3[%c0_5, %c0_6] : memref<27x64xbf16, #tpu.memory_space<vmem>>, vector<27x64xbf16>
    %cst = arith.constant dense<0.000000e+00> : vector<256x64xf32>
    %7 = tpu.matmul %5, %6, %cst {dimension_numbers = #tpu.dot_dimension_numbers<[1], [0], [0], [1], [0, 0, 1, 1], [], []>} : vector<256x27xbf16>, vector<27x64xbf16>, vector<256x64xf32> -> vector<256x64xf32>
    %8 = arith.addf %3, %7 : vector<256x64xf32>
    %c0_7 = arith.constant 0 : index
    %c0_8 = arith.constant 0 : index
    %9 = vector.load %arg7[%c0_7, %c0_8] : memref<256x64xf32, #tpu.memory_space<vmem>>, vector<256x64xf32>
    tpu.vector_store %arg7[%c0_7, %c0_8], %8 {strides = array<i32>} : memref<256x64xf32, #tpu.memory_space<vmem>>, vector<256x64xf32>,
    %c0_i32_9 = arith.constant 0 : i32
    %10 = arith.cmpi eq, %arg1, %c0_i32_9 : i32
    %11 = arith.extui %10 : i1 to i32
    %c0_i32_10 = arith.constant 0 : i32
    %12 = arith.cmpi ne, %11, %c0_i32_10 : i32
    scf.if %12 {
      %c0_11 = arith.constant 0 : index
      %c0_12 = arith.constant 0 : index
      %13 = vector.load %arg7[%c0_11, %c0_12] : memref<256x64xf32, #tpu.memory_space<vmem>>, vector<256x64xf32>
      %cst_13 = arith.constant dense<0.000000e+00> : vector<64xf32>
      %14 = vector.multi_reduction <add>, %13, %cst_13 [0] : vector<256x64xf32> to vector<64xf32>
      %15 = vector.shape_cast %14 : vector<64xf32> to vector<1x64xf32>
      %cst_14 = arith.constant 2.560000e+02 : f32
      %16 = vector.broadcast %cst_14 : f32 to vector<1x64xf32>
      %17 = arith.divf %15, %16 : vector<1x64xf32>
      %18 = vector.broadcast %17 : vector<1x64xf32> to vector<256x64xf32>
      %19 = arith.subf %13, %18 : vector<256x64xf32>
      %20 = arith.mulf %19, %19 : vector<256x64xf32>
      %cst_15 = arith.constant dense<0.000000e+00> : vector<64xf32>
      %21 = vector.multi_reduction <add>, %20, %cst_15 [0] : vector<256x64xf32> to vector<64xf32>
      %22 = vector.shape_cast %21 : vector<64xf32> to vector<1x64xf32>
      %cst_16 = arith.constant 2.560000e+02 : f32
      %23 = vector.broadcast %cst_16 : f32 to vector<1x64xf32>
      %24 = arith.divf %22, %23 : vector<1x64xf32>
      %cst_17 = arith.constant 9.99999974E-6 : f32
      %25 = vector.broadcast %cst_17 : f32 to vector<1x64xf32>
      %26 = arith.addf %24, %25 : vector<1x64xf32>
      %27 = math.rsqrt %26 : vector<1x64xf32>
      %28 = vector.broadcast %27 : vector<1x64xf32> to vector<256x64xf32>
      %29 = arith.mulf %19, %28 : vector<256x64xf32>
      %c0_18 = arith.constant 0 : index
      %c0_19 = arith.constant 0 : index
      %30 = vector.load %arg4[%c0_18, %c0_19] : memref<1x64xf32, #tpu.memory_space<vmem>>, vector<1x64xf32>
      %31 = vector.broadcast %30 : vector<1x64xf32> to vector<256x64xf32>
      %32 = arith.mulf %29, %31 : vector<256x64xf32>
      %c0_20 = arith.constant 0 : index
      %c0_21 = arith.constant 0 : index
      %33 = vector.load %arg5[%c0_20, %c0_21] : memref<1x64xf32, #tpu.memory_space<vmem>>, vector<1x64xf32>
      %34 = vector.broadcast %33 : vector<1x64xf32> to vector<256x64xf32>
      %35 = arith.addf %32, %34 : vector<256x64xf32>
      %cst_22 = arith.constant 0.000000e+00 : f32
      %36 = vector.broadcast %cst_22 : f32 to vector<256x64xf32>
      %37 = arith.maximumf %35, %36 : vector<256x64xf32>
      %38 = vector.shape_cast %37 : vector<256x64xf32> to vector<1x256x64xf32>
      %c0_23 = arith.constant 0 : index
      %c0_24 = arith.constant 0 : index
      %c0_25 = arith.constant 0 : index
      %39 = vector.load %arg6[%c0_23, %c0_24, %c0_25] : memref<1x256x64xf32, #tpu.memory_space<vmem>>, vector<1x256x64xf32>
      tpu.vector_store %arg6[%c0_23, %c0_24, %c0_25], %38 {strides = array<i32>} : memref<1x256x64xf32, #tpu.memory_space<vmem>>, vector<1x256x64xf32>,
    } else {
    }
    return
  }
  func.func @transform_0(%arg0: i32, %arg1: i32) -> (i32, i32, i32) {
    %c0_i32 = arith.constant 0 : i32
    %c0_i32_0 = arith.constant 0 : i32
    return %arg0, %c0_i32, %arg1 : i32, i32, i32
  }
  func.func @transform_1(%arg0: i32, %arg1: i32) -> (i32, i32) {
    %c0_i32 = arith.constant 0 : i32
    %c0_i32_0 = arith.constant 0 : i32
    return %arg1, %c0_i32 : i32, i32
  }
  func.func @transform_2(%arg0: i32, %arg1: i32) -> (i32, i32) {
    %c0_i32 = arith.constant 0 : i32
    %c0_i32_0 = arith.constant 0 : i32
    %c0_i32_1 = arith.constant 0 : i32
    return %c0_i32, %c0_i32_0 : i32, i32
  }
  func.func @transform_3(%arg0: i32, %arg1: i32) -> (i32, i32) {
    %c0_i32 = arith.constant 0 : i32
    %c0_i32_0 = arith.constant 0 : i32
    %c0_i32_1 = arith.constant 0 : i32
    return %c0_i32, %c0_i32_0 : i32, i32
  }
  func.func @transform_4(%arg0: i32, %arg1: i32) -> (i32, i32, i32) {
    %c0_i32 = arith.constant 0 : i32
    %c0_i32_0 = arith.constant 0 : i32
    %c0_i32_1 = arith.constant 0 : i32
    return %arg0, %c0_i32, %c0_i32_0 : i32, i32, i32
  }
}

module attributes {stable_mosaic.version = 11 : i64} {
  func.func @_conv_in_relu_kernel(%arg0: i32, %arg1: i32, %arg2: memref<1x256x576xbf16, #tpu.memory_space<vmem>>, %arg3: memref<576x64xbf16, #tpu.memory_space<vmem>>, %arg4: memref<1x64xf32, #tpu.memory_space<vmem>>, %arg5: memref<1x64xf32, #tpu.memory_space<vmem>>, %arg6: memref<1x256x64xf32, #tpu.memory_space<vmem>>, %arg7: memref<256x64xf32, #tpu.memory_space<vmem>>) attributes {dimension_semantics = [#tpu.dimension_semantics<parallel>, #tpu.dimension_semantics<arbitrary>], iteration_bounds = array<i64: 2, 1>, scalar_prefetch = 0 : i64, scratch_operands = 1 : i64, tpu.core_type = #tpu.core_type<tc>, window_params = [{transform_indices = @transform_0, window_bounds = array<i64: 1, 256, 576>}, {transform_indices = @transform_1, window_bounds = array<i64: 576, 64>}, {pipeline_mode = #tpu.pipeline_mode<synchronous>, transform_indices = @transform_2, window_bounds = array<i64: 1, 64>}, {pipeline_mode = #tpu.pipeline_mode<synchronous>, transform_indices = @transform_3, window_bounds = array<i64: 1, 64>}, {transform_indices = @transform_4, window_bounds = array<i64: 1, 256, 64>}]} {
    %c0_i32 = arith.constant 0 : i32
    %0 = arith.cmpi eq, %arg1, %c0_i32 : i32
    %1 = arith.extui %0 : i1 to i32
    %c0_i32_0 = arith.constant 0 : i32
    %2 = arith.cmpi ne, %1, %c0_i32_0 : i32
    scf.if %2 {
      %cst_11 = arith.constant 0.000000e+00 : f32
      %13 = vector.broadcast %cst_11 : f32 to vector<256x64xf32>
      %c0_12 = arith.constant 0 : index
      %c0_13 = arith.constant 0 : index
      %14 = vector.load %arg7[%c0_12, %c0_13] : memref<256x64xf32, #tpu.memory_space<vmem>>, vector<256x64xf32>
      tpu.vector_store %arg7[%c0_12, %c0_13], %13 {strides = array<i32>} : memref<256x64xf32, #tpu.memory_space<vmem>>, vector<256x64xf32>,
    } else {
    }
    %c0 = arith.constant 0 : index
    %c0_1 = arith.constant 0 : index
    %3 = vector.load %arg7[%c0, %c0_1] : memref<256x64xf32, #tpu.memory_space<vmem>>, vector<256x64xf32>
    %c0_2 = arith.constant 0 : index
    %c0_3 = arith.constant 0 : index
    %c0_4 = arith.constant 0 : index
    %4 = vector.load %arg2[%c0_2, %c0_3, %c0_4] : memref<1x256x576xbf16, #tpu.memory_space<vmem>>, vector<1x256x576xbf16>
    %5 = vector.shape_cast %4 : vector<1x256x576xbf16> to vector<256x576xbf16>
    %c0_5 = arith.constant 0 : index
    %c0_6 = arith.constant 0 : index
    %6 = vector.load %arg3[%c0_5, %c0_6] : memref<576x64xbf16, #tpu.memory_space<vmem>>, vector<576x64xbf16>
    %cst = arith.constant dense<0.000000e+00> : vector<256x64xf32>
    %7 = tpu.matmul %5, %6, %cst {dimension_numbers = #tpu.dot_dimension_numbers<[1], [0], [0], [1], [0, 0, 1, 1], [], []>} : vector<256x576xbf16>, vector<576x64xbf16>, vector<256x64xf32> -> vector<256x64xf32>
    %8 = arith.addf %3, %7 : vector<256x64xf32>
    %c0_7 = arith.constant 0 : index
    %c0_8 = arith.constant 0 : index
    %9 = vector.load %arg7[%c0_7, %c0_8] : memref<256x64xf32, #tpu.memory_space<vmem>>, vector<256x64xf32>
    tpu.vector_store %arg7[%c0_7, %c0_8], %8 {strides = array<i32>} : memref<256x64xf32, #tpu.memory_space<vmem>>, vector<256x64xf32>,
    %c0_i32_9 = arith.constant 0 : i32
    %10 = arith.cmpi eq, %arg1, %c0_i32_9 : i32
    %11 = arith.extui %10 : i1 to i32
    %c0_i32_10 = arith.constant 0 : i32
    %12 = arith.cmpi ne, %11, %c0_i32_10 : i32
    scf.if %12 {
      %c0_11 = arith.constant 0 : index
      %c0_12 = arith.constant 0 : index
      %13 = vector.load %arg7[%c0_11, %c0_12] : memref<256x64xf32, #tpu.memory_space<vmem>>, vector<256x64xf32>
      %cst_13 = arith.constant dense<0.000000e+00> : vector<64xf32>
      %14 = vector.multi_reduction <add>, %13, %cst_13 [0] : vector<256x64xf32> to vector<64xf32>
      %15 = vector.shape_cast %14 : vector<64xf32> to vector<1x64xf32>
      %cst_14 = arith.constant 2.560000e+02 : f32
      %16 = vector.broadcast %cst_14 : f32 to vector<1x64xf32>
      %17 = arith.divf %15, %16 : vector<1x64xf32>
      %18 = vector.broadcast %17 : vector<1x64xf32> to vector<256x64xf32>
      %19 = arith.subf %13, %18 : vector<256x64xf32>
      %20 = arith.mulf %19, %19 : vector<256x64xf32>
      %cst_15 = arith.constant dense<0.000000e+00> : vector<64xf32>
      %21 = vector.multi_reduction <add>, %20, %cst_15 [0] : vector<256x64xf32> to vector<64xf32>
      %22 = vector.shape_cast %21 : vector<64xf32> to vector<1x64xf32>
      %cst_16 = arith.constant 2.560000e+02 : f32
      %23 = vector.broadcast %cst_16 : f32 to vector<1x64xf32>
      %24 = arith.divf %22, %23 : vector<1x64xf32>
      %cst_17 = arith.constant 9.99999974E-6 : f32
      %25 = vector.broadcast %cst_17 : f32 to vector<1x64xf32>
      %26 = arith.addf %24, %25 : vector<1x64xf32>
      %27 = math.rsqrt %26 : vector<1x64xf32>
      %28 = vector.broadcast %27 : vector<1x64xf32> to vector<256x64xf32>
      %29 = arith.mulf %19, %28 : vector<256x64xf32>
      %c0_18 = arith.constant 0 : index
      %c0_19 = arith.constant 0 : index
      %30 = vector.load %arg4[%c0_18, %c0_19] : memref<1x64xf32, #tpu.memory_space<vmem>>, vector<1x64xf32>
      %31 = vector.broadcast %30 : vector<1x64xf32> to vector<256x64xf32>
      %32 = arith.mulf %29, %31 : vector<256x64xf32>
      %c0_20 = arith.constant 0 : index
      %c0_21 = arith.constant 0 : index
      %33 = vector.load %arg5[%c0_20, %c0_21] : memref<1x64xf32, #tpu.memory_space<vmem>>, vector<1x64xf32>
      %34 = vector.broadcast %33 : vector<1x64xf32> to vector<256x64xf32>
      %35 = arith.addf %32, %34 : vector<256x64xf32>
      %cst_22 = arith.constant 0.000000e+00 : f32
      %36 = vector.broadcast %cst_22 : f32 to vector<256x64xf32>
      %37 = arith.maximumf %35, %36 : vector<256x64xf32>
      %38 = vector.shape_cast %37 : vector<256x64xf32> to vector<1x256x64xf32>
      %c0_23 = arith.constant 0 : index
      %c0_24 = arith.constant 0 : index
      %c0_25 = arith.constant 0 : index
      %39 = vector.load %arg6[%c0_23, %c0_24, %c0_25] : memref<1x256x64xf32, #tpu.memory_space<vmem>>, vector<1x256x64xf32>
      tpu.vector_store %arg6[%c0_23, %c0_24, %c0_25], %38 {strides = array<i32>} : memref<1x256x64xf32, #tpu.memory_space<vmem>>, vector<1x256x64xf32>,
    } else {
    }
    return
  }
  func.func @transform_0(%arg0: i32, %arg1: i32) -> (i32, i32, i32) {
    %c0_i32 = arith.constant 0 : i32
    %c0_i32_0 = arith.constant 0 : i32
    return %arg0, %c0_i32, %arg1 : i32, i32, i32
  }
  func.func @transform_1(%arg0: i32, %arg1: i32) -> (i32, i32) {
    %c0_i32 = arith.constant 0 : i32
    %c0_i32_0 = arith.constant 0 : i32
    return %arg1, %c0_i32 : i32, i32
  }
  func.func @transform_2(%arg0: i32, %arg1: i32) -> (i32, i32) {
    %c0_i32 = arith.constant 0 : i32
    %c0_i32_0 = arith.constant 0 : i32
    %c0_i32_1 = arith.constant 0 : i32
    return %c0_i32, %c0_i32_0 : i32, i32
  }
  func.func @transform_3(%arg0: i32, %arg1: i32) -> (i32, i32) {
    %c0_i32 = arith.constant 0 : i32
    %c0_i32_0 = arith.constant 0 : i32
    %c0_i32_1 = arith.constant 0 : i32
    return %c0_i32, %c0_i32_0 : i32, i32
  }
  func.func @transform_4(%arg0: i32, %arg1: i32) -> (i32, i32, i32) {
    %c0_i32 = arith.constant 0 : i32
    %c0_i32_0 = arith.constant 0 : i32
    %c0_i32_1 = arith.constant 0 : i32
    return %arg0, %c0_i32, %c0_i32_0 : i32, i32, i32
  }
}

module attributes {stable_mosaic.version = 11 : i64} {
  func.func @_avg4_kernel(%arg0: i32, %arg1: memref<1x64x64xf32, #tpu.memory_space<vmem>>, %arg2: memref<1x64x64xf32, #tpu.memory_space<vmem>>, %arg3: memref<1x64x64xf32, #tpu.memory_space<vmem>>, %arg4: memref<1x64x64xf32, #tpu.memory_space<vmem>>, %arg5: memref<1x64x64xf32, #tpu.memory_space<vmem>>) attributes {dimension_semantics = [#tpu.dimension_semantics<parallel>], iteration_bounds = array<i64: 2>, scalar_prefetch = 0 : i64, scratch_operands = 0 : i64, tpu.core_type = #tpu.core_type<tc>, window_params = [{transform_indices = @transform_0, window_bounds = array<i64: 1, 64, 64>}, {transform_indices = @transform_1, window_bounds = array<i64: 1, 64, 64>}, {transform_indices = @transform_2, window_bounds = array<i64: 1, 64, 64>}, {transform_indices = @transform_3, window_bounds = array<i64: 1, 64, 64>}, {transform_indices = @transform_4, window_bounds = array<i64: 1, 64, 64>}]} {
    %c0 = arith.constant 0 : index
    %c0_0 = arith.constant 0 : index
    %c0_1 = arith.constant 0 : index
    %0 = vector.load %arg1[%c0, %c0_0, %c0_1] : memref<1x64x64xf32, #tpu.memory_space<vmem>>, vector<1x64x64xf32>
    %c0_2 = arith.constant 0 : index
    %c0_3 = arith.constant 0 : index
    %c0_4 = arith.constant 0 : index
    %1 = vector.load %arg2[%c0_2, %c0_3, %c0_4] : memref<1x64x64xf32, #tpu.memory_space<vmem>>, vector<1x64x64xf32>
    %2 = arith.addf %0, %1 : vector<1x64x64xf32>
    %c0_5 = arith.constant 0 : index
    %c0_6 = arith.constant 0 : index
    %c0_7 = arith.constant 0 : index
    %3 = vector.load %arg3[%c0_5, %c0_6, %c0_7] : memref<1x64x64xf32, #tpu.memory_space<vmem>>, vector<1x64x64xf32>
    %4 = arith.addf %2, %3 : vector<1x64x64xf32>
    %c0_8 = arith.constant 0 : index
    %c0_9 = arith.constant 0 : index
    %c0_10 = arith.constant 0 : index
    %5 = vector.load %arg4[%c0_8, %c0_9, %c0_10] : memref<1x64x64xf32, #tpu.memory_space<vmem>>, vector<1x64x64xf32>
    %6 = arith.addf %4, %5 : vector<1x64x64xf32>
    %cst = arith.constant 2.500000e-01 : f32
    %7 = vector.broadcast %cst : f32 to vector<1x64x64xf32>
    %8 = arith.mulf %6, %7 : vector<1x64x64xf32>
    %c0_11 = arith.constant 0 : index
    %c0_12 = arith.constant 0 : index
    %c0_13 = arith.constant 0 : index
    %9 = vector.load %arg5[%c0_11, %c0_12, %c0_13] : memref<1x64x64xf32, #tpu.memory_space<vmem>>, vector<1x64x64xf32>
    tpu.vector_store %arg5[%c0_11, %c0_12, %c0_13], %8 {strides = array<i32>} : memref<1x64x64xf32, #tpu.memory_space<vmem>>, vector<1x64x64xf32>,
    return
  }
  func.func @transform_0(%arg0: i32) -> (i32, i32, i32) {
    %c0_i32 = arith.constant 0 : i32
    %c0_i32_0 = arith.constant 0 : i32
    %c0_i32_1 = arith.constant 0 : i32
    return %arg0, %c0_i32, %c0_i32_0 : i32, i32, i32
  }
  func.func @transform_1(%arg0: i32) -> (i32, i32, i32) {
    %c0_i32 = arith.constant 0 : i32
    %c0_i32_0 = arith.constant 0 : i32
    %c0_i32_1 = arith.constant 0 : i32
    return %arg0, %c0_i32, %c0_i32_0 : i32, i32, i32
  }
  func.func @transform_2(%arg0: i32) -> (i32, i32, i32) {
    %c0_i32 = arith.constant 0 : i32
    %c0_i32_0 = arith.constant 0 : i32
    %c0_i32_1 = arith.constant 0 : i32
    return %arg0, %c0_i32, %c0_i32_0 : i32, i32, i32
  }
  func.func @transform_3(%arg0: i32) -> (i32, i32, i32) {
    %c0_i32 = arith.constant 0 : i32
    %c0_i32_0 = arith.constant 0 : i32
    %c0_i32_1 = arith.constant 0 : i32
    return %arg0, %c0_i32, %c0_i32_0 : i32, i32, i32
  }
  func.func @transform_4(%arg0: i32) -> (i32, i32, i32) {
    %c0_i32 = arith.constant 0 : i32
    %c0_i32_0 = arith.constant 0 : i32
    %c0_i32_1 = arith.constant 0 : i32
    return %arg0, %c0_i32, %c0_i32_0 : i32, i32, i32
  }
}

module attributes {stable_mosaic.version = 11 : i64} {
  func.func @_conv_in_relu_kernel(%arg0: i32, %arg1: i32, %arg2: memref<1x64x576xbf16, #tpu.memory_space<vmem>>, %arg3: memref<576x128xbf16, #tpu.memory_space<vmem>>, %arg4: memref<1x128xf32, #tpu.memory_space<vmem>>, %arg5: memref<1x128xf32, #tpu.memory_space<vmem>>, %arg6: memref<1x64x128xf32, #tpu.memory_space<vmem>>, %arg7: memref<64x128xf32, #tpu.memory_space<vmem>>) attributes {dimension_semantics = [#tpu.dimension_semantics<parallel>, #tpu.dimension_semantics<arbitrary>], iteration_bounds = array<i64: 2, 1>, scalar_prefetch = 0 : i64, scratch_operands = 1 : i64, tpu.core_type = #tpu.core_type<tc>, window_params = [{transform_indices = @transform_0, window_bounds = array<i64: 1, 64, 576>}, {transform_indices = @transform_1, window_bounds = array<i64: 576, 128>}, {pipeline_mode = #tpu.pipeline_mode<synchronous>, transform_indices = @transform_2, window_bounds = array<i64: 1, 128>}, {pipeline_mode = #tpu.pipeline_mode<synchronous>, transform_indices = @transform_3, window_bounds = array<i64: 1, 128>}, {transform_indices = @transform_4, window_bounds = array<i64: 1, 64, 128>}]} {
    %c0_i32 = arith.constant 0 : i32
    %0 = arith.cmpi eq, %arg1, %c0_i32 : i32
    %1 = arith.extui %0 : i1 to i32
    %c0_i32_0 = arith.constant 0 : i32
    %2 = arith.cmpi ne, %1, %c0_i32_0 : i32
    scf.if %2 {
      %cst_11 = arith.constant 0.000000e+00 : f32
      %13 = vector.broadcast %cst_11 : f32 to vector<64x128xf32>
      %c0_12 = arith.constant 0 : index
      %c0_13 = arith.constant 0 : index
      %14 = vector.load %arg7[%c0_12, %c0_13] : memref<64x128xf32, #tpu.memory_space<vmem>>, vector<64x128xf32>
      tpu.vector_store %arg7[%c0_12, %c0_13], %13 {strides = array<i32>} : memref<64x128xf32, #tpu.memory_space<vmem>>, vector<64x128xf32>,
    } else {
    }
    %c0 = arith.constant 0 : index
    %c0_1 = arith.constant 0 : index
    %3 = vector.load %arg7[%c0, %c0_1] : memref<64x128xf32, #tpu.memory_space<vmem>>, vector<64x128xf32>
    %c0_2 = arith.constant 0 : index
    %c0_3 = arith.constant 0 : index
    %c0_4 = arith.constant 0 : index
    %4 = vector.load %arg2[%c0_2, %c0_3, %c0_4] : memref<1x64x576xbf16, #tpu.memory_space<vmem>>, vector<1x64x576xbf16>
    %5 = vector.shape_cast %4 : vector<1x64x576xbf16> to vector<64x576xbf16>
    %c0_5 = arith.constant 0 : index
    %c0_6 = arith.constant 0 : index
    %6 = vector.load %arg3[%c0_5, %c0_6] : memref<576x128xbf16, #tpu.memory_space<vmem>>, vector<576x128xbf16>
    %cst = arith.constant dense<0.000000e+00> : vector<64x128xf32>
    %7 = tpu.matmul %5, %6, %cst {dimension_numbers = #tpu.dot_dimension_numbers<[1], [0], [0], [1], [0, 0, 1, 1], [], []>} : vector<64x576xbf16>, vector<576x128xbf16>, vector<64x128xf32> -> vector<64x128xf32>
    %8 = arith.addf %3, %7 : vector<64x128xf32>
    %c0_7 = arith.constant 0 : index
    %c0_8 = arith.constant 0 : index
    %9 = vector.load %arg7[%c0_7, %c0_8] : memref<64x128xf32, #tpu.memory_space<vmem>>, vector<64x128xf32>
    tpu.vector_store %arg7[%c0_7, %c0_8], %8 {strides = array<i32>} : memref<64x128xf32, #tpu.memory_space<vmem>>, vector<64x128xf32>,
    %c0_i32_9 = arith.constant 0 : i32
    %10 = arith.cmpi eq, %arg1, %c0_i32_9 : i32
    %11 = arith.extui %10 : i1 to i32
    %c0_i32_10 = arith.constant 0 : i32
    %12 = arith.cmpi ne, %11, %c0_i32_10 : i32
    scf.if %12 {
      %c0_11 = arith.constant 0 : index
      %c0_12 = arith.constant 0 : index
      %13 = vector.load %arg7[%c0_11, %c0_12] : memref<64x128xf32, #tpu.memory_space<vmem>>, vector<64x128xf32>
      %cst_13 = arith.constant dense<0.000000e+00> : vector<128xf32>
      %14 = vector.multi_reduction <add>, %13, %cst_13 [0] : vector<64x128xf32> to vector<128xf32>
      %15 = vector.shape_cast %14 : vector<128xf32> to vector<1x128xf32>
      %cst_14 = arith.constant 6.400000e+01 : f32
      %16 = vector.broadcast %cst_14 : f32 to vector<1x128xf32>
      %17 = arith.divf %15, %16 : vector<1x128xf32>
      %18 = vector.broadcast %17 : vector<1x128xf32> to vector<64x128xf32>
      %19 = arith.subf %13, %18 : vector<64x128xf32>
      %20 = arith.mulf %19, %19 : vector<64x128xf32>
      %cst_15 = arith.constant dense<0.000000e+00> : vector<128xf32>
      %21 = vector.multi_reduction <add>, %20, %cst_15 [0] : vector<64x128xf32> to vector<128xf32>
      %22 = vector.shape_cast %21 : vector<128xf32> to vector<1x128xf32>
      %cst_16 = arith.constant 6.400000e+01 : f32
      %23 = vector.broadcast %cst_16 : f32 to vector<1x128xf32>
      %24 = arith.divf %22, %23 : vector<1x128xf32>
      %cst_17 = arith.constant 9.99999974E-6 : f32
      %25 = vector.broadcast %cst_17 : f32 to vector<1x128xf32>
      %26 = arith.addf %24, %25 : vector<1x128xf32>
      %27 = math.rsqrt %26 : vector<1x128xf32>
      %28 = vector.broadcast %27 : vector<1x128xf32> to vector<64x128xf32>
      %29 = arith.mulf %19, %28 : vector<64x128xf32>
      %c0_18 = arith.constant 0 : index
      %c0_19 = arith.constant 0 : index
      %30 = vector.load %arg4[%c0_18, %c0_19] : memref<1x128xf32, #tpu.memory_space<vmem>>, vector<1x128xf32>
      %31 = vector.broadcast %30 : vector<1x128xf32> to vector<64x128xf32>
      %32 = arith.mulf %29, %31 : vector<64x128xf32>
      %c0_20 = arith.constant 0 : index
      %c0_21 = arith.constant 0 : index
      %33 = vector.load %arg5[%c0_20, %c0_21] : memref<1x128xf32, #tpu.memory_space<vmem>>, vector<1x128xf32>
      %34 = vector.broadcast %33 : vector<1x128xf32> to vector<64x128xf32>
      %35 = arith.addf %32, %34 : vector<64x128xf32>
      %cst_22 = arith.constant 0.000000e+00 : f32
      %36 = vector.broadcast %cst_22 : f32 to vector<64x128xf32>
      %37 = arith.maximumf %35, %36 : vector<64x128xf32>
      %38 = vector.shape_cast %37 : vector<64x128xf32> to vector<1x64x128xf32>
      %c0_23 = arith.constant 0 : index
      %c0_24 = arith.constant 0 : index
      %c0_25 = arith.constant 0 : index
      %39 = vector.load %arg6[%c0_23, %c0_24, %c0_25] : memref<1x64x128xf32, #tpu.memory_space<vmem>>, vector<1x64x128xf32>
      tpu.vector_store %arg6[%c0_23, %c0_24, %c0_25], %38 {strides = array<i32>} : memref<1x64x128xf32, #tpu.memory_space<vmem>>, vector<1x64x128xf32>,
    } else {
    }
    return
  }
  func.func @transform_0(%arg0: i32, %arg1: i32) -> (i32, i32, i32) {
    %c0_i32 = arith.constant 0 : i32
    %c0_i32_0 = arith.constant 0 : i32
    return %arg0, %c0_i32, %arg1 : i32, i32, i32
  }
  func.func @transform_1(%arg0: i32, %arg1: i32) -> (i32, i32) {
    %c0_i32 = arith.constant 0 : i32
    %c0_i32_0 = arith.constant 0 : i32
    return %arg1, %c0_i32 : i32, i32
  }
  func.func @transform_2(%arg0: i32, %arg1: i32) -> (i32, i32) {
    %c0_i32 = arith.constant 0 : i32
    %c0_i32_0 = arith.constant 0 : i32
    %c0_i32_1 = arith.constant 0 : i32
    return %c0_i32, %c0_i32_0 : i32, i32
  }
  func.func @transform_3(%arg0: i32, %arg1: i32) -> (i32, i32) {
    %c0_i32 = arith.constant 0 : i32
    %c0_i32_0 = arith.constant 0 : i32
    %c0_i32_1 = arith.constant 0 : i32
    return %c0_i32, %c0_i32_0 : i32, i32
  }
  func.func @transform_4(%arg0: i32, %arg1: i32) -> (i32, i32, i32) {
    %c0_i32 = arith.constant 0 : i32
    %c0_i32_0 = arith.constant 0 : i32
    %c0_i32_1 = arith.constant 0 : i32
    return %arg0, %c0_i32, %c0_i32_0 : i32, i32, i32
  }
}

module attributes {stable_mosaic.version = 11 : i64} {
  func.func @_conv_in_relu_kernel(%arg0: i32, %arg1: i32, %arg2: memref<1x64x1152xbf16, #tpu.memory_space<vmem>>, %arg3: memref<1152x128xbf16, #tpu.memory_space<vmem>>, %arg4: memref<1x128xf32, #tpu.memory_space<vmem>>, %arg5: memref<1x128xf32, #tpu.memory_space<vmem>>, %arg6: memref<1x64x128xf32, #tpu.memory_space<vmem>>, %arg7: memref<64x128xf32, #tpu.memory_space<vmem>>) attributes {dimension_semantics = [#tpu.dimension_semantics<parallel>, #tpu.dimension_semantics<arbitrary>], iteration_bounds = array<i64: 2, 1>, scalar_prefetch = 0 : i64, scratch_operands = 1 : i64, tpu.core_type = #tpu.core_type<tc>, window_params = [{transform_indices = @transform_0, window_bounds = array<i64: 1, 64, 1152>}, {transform_indices = @transform_1, window_bounds = array<i64: 1152, 128>}, {pipeline_mode = #tpu.pipeline_mode<synchronous>, transform_indices = @transform_2, window_bounds = array<i64: 1, 128>}, {pipeline_mode = #tpu.pipeline_mode<synchronous>, transform_indices = @transform_3, window_bounds = array<i64: 1, 128>}, {transform_indices = @transform_4, window_bounds = array<i64: 1, 64, 128>}]} {
    %c0_i32 = arith.constant 0 : i32
    %0 = arith.cmpi eq, %arg1, %c0_i32 : i32
    %1 = arith.extui %0 : i1 to i32
    %c0_i32_0 = arith.constant 0 : i32
    %2 = arith.cmpi ne, %1, %c0_i32_0 : i32
    scf.if %2 {
      %cst_11 = arith.constant 0.000000e+00 : f32
      %13 = vector.broadcast %cst_11 : f32 to vector<64x128xf32>
      %c0_12 = arith.constant 0 : index
      %c0_13 = arith.constant 0 : index
      %14 = vector.load %arg7[%c0_12, %c0_13] : memref<64x128xf32, #tpu.memory_space<vmem>>, vector<64x128xf32>
      tpu.vector_store %arg7[%c0_12, %c0_13], %13 {strides = array<i32>} : memref<64x128xf32, #tpu.memory_space<vmem>>, vector<64x128xf32>,
    } else {
    }
    %c0 = arith.constant 0 : index
    %c0_1 = arith.constant 0 : index
    %3 = vector.load %arg7[%c0, %c0_1] : memref<64x128xf32, #tpu.memory_space<vmem>>, vector<64x128xf32>
    %c0_2 = arith.constant 0 : index
    %c0_3 = arith.constant 0 : index
    %c0_4 = arith.constant 0 : index
    %4 = vector.load %arg2[%c0_2, %c0_3, %c0_4] : memref<1x64x1152xbf16, #tpu.memory_space<vmem>>, vector<1x64x1152xbf16>
    %5 = vector.shape_cast %4 : vector<1x64x1152xbf16> to vector<64x1152xbf16>
    %c0_5 = arith.constant 0 : index
    %c0_6 = arith.constant 0 : index
    %6 = vector.load %arg3[%c0_5, %c0_6] : memref<1152x128xbf16, #tpu.memory_space<vmem>>, vector<1152x128xbf16>
    %cst = arith.constant dense<0.000000e+00> : vector<64x128xf32>
    %7 = tpu.matmul %5, %6, %cst {dimension_numbers = #tpu.dot_dimension_numbers<[1], [0], [0], [1], [0, 0, 1, 1], [], []>} : vector<64x1152xbf16>, vector<1152x128xbf16>, vector<64x128xf32> -> vector<64x128xf32>
    %8 = arith.addf %3, %7 : vector<64x128xf32>
    %c0_7 = arith.constant 0 : index
    %c0_8 = arith.constant 0 : index
    %9 = vector.load %arg7[%c0_7, %c0_8] : memref<64x128xf32, #tpu.memory_space<vmem>>, vector<64x128xf32>
    tpu.vector_store %arg7[%c0_7, %c0_8], %8 {strides = array<i32>} : memref<64x128xf32, #tpu.memory_space<vmem>>, vector<64x128xf32>,
    %c0_i32_9 = arith.constant 0 : i32
    %10 = arith.cmpi eq, %arg1, %c0_i32_9 : i32
    %11 = arith.extui %10 : i1 to i32
    %c0_i32_10 = arith.constant 0 : i32
    %12 = arith.cmpi ne, %11, %c0_i32_10 : i32
    scf.if %12 {
      %c0_11 = arith.constant 0 : index
      %c0_12 = arith.constant 0 : index
      %13 = vector.load %arg7[%c0_11, %c0_12] : memref<64x128xf32, #tpu.memory_space<vmem>>, vector<64x128xf32>
      %cst_13 = arith.constant dense<0.000000e+00> : vector<128xf32>
      %14 = vector.multi_reduction <add>, %13, %cst_13 [0] : vector<64x128xf32> to vector<128xf32>
      %15 = vector.shape_cast %14 : vector<128xf32> to vector<1x128xf32>
      %cst_14 = arith.constant 6.400000e+01 : f32
      %16 = vector.broadcast %cst_14 : f32 to vector<1x128xf32>
      %17 = arith.divf %15, %16 : vector<1x128xf32>
      %18 = vector.broadcast %17 : vector<1x128xf32> to vector<64x128xf32>
      %19 = arith.subf %13, %18 : vector<64x128xf32>
      %20 = arith.mulf %19, %19 : vector<64x128xf32>
      %cst_15 = arith.constant dense<0.000000e+00> : vector<128xf32>
      %21 = vector.multi_reduction <add>, %20, %cst_15 [0] : vector<64x128xf32> to vector<128xf32>
      %22 = vector.shape_cast %21 : vector<128xf32> to vector<1x128xf32>
      %cst_16 = arith.constant 6.400000e+01 : f32
      %23 = vector.broadcast %cst_16 : f32 to vector<1x128xf32>
      %24 = arith.divf %22, %23 : vector<1x128xf32>
      %cst_17 = arith.constant 9.99999974E-6 : f32
      %25 = vector.broadcast %cst_17 : f32 to vector<1x128xf32>
      %26 = arith.addf %24, %25 : vector<1x128xf32>
      %27 = math.rsqrt %26 : vector<1x128xf32>
      %28 = vector.broadcast %27 : vector<1x128xf32> to vector<64x128xf32>
      %29 = arith.mulf %19, %28 : vector<64x128xf32>
      %c0_18 = arith.constant 0 : index
      %c0_19 = arith.constant 0 : index
      %30 = vector.load %arg4[%c0_18, %c0_19] : memref<1x128xf32, #tpu.memory_space<vmem>>, vector<1x128xf32>
      %31 = vector.broadcast %30 : vector<1x128xf32> to vector<64x128xf32>
      %32 = arith.mulf %29, %31 : vector<64x128xf32>
      %c0_20 = arith.constant 0 : index
      %c0_21 = arith.constant 0 : index
      %33 = vector.load %arg5[%c0_20, %c0_21] : memref<1x128xf32, #tpu.memory_space<vmem>>, vector<1x128xf32>
      %34 = vector.broadcast %33 : vector<1x128xf32> to vector<64x128xf32>
      %35 = arith.addf %32, %34 : vector<64x128xf32>
      %cst_22 = arith.constant 0.000000e+00 : f32
      %36 = vector.broadcast %cst_22 : f32 to vector<64x128xf32>
      %37 = arith.maximumf %35, %36 : vector<64x128xf32>
      %38 = vector.shape_cast %37 : vector<64x128xf32> to vector<1x64x128xf32>
      %c0_23 = arith.constant 0 : index
      %c0_24 = arith.constant 0 : index
      %c0_25 = arith.constant 0 : index
      %39 = vector.load %arg6[%c0_23, %c0_24, %c0_25] : memref<1x64x128xf32, #tpu.memory_space<vmem>>, vector<1x64x128xf32>
      tpu.vector_store %arg6[%c0_23, %c0_24, %c0_25], %38 {strides = array<i32>} : memref<1x64x128xf32, #tpu.memory_space<vmem>>, vector<1x64x128xf32>,
    } else {
    }
    return
  }
  func.func @transform_0(%arg0: i32, %arg1: i32) -> (i32, i32, i32) {
    %c0_i32 = arith.constant 0 : i32
    %c0_i32_0 = arith.constant 0 : i32
    return %arg0, %c0_i32, %arg1 : i32, i32, i32
  }
  func.func @transform_1(%arg0: i32, %arg1: i32) -> (i32, i32) {
    %c0_i32 = arith.constant 0 : i32
    %c0_i32_0 = arith.constant 0 : i32
    return %arg1, %c0_i32 : i32, i32
  }
  func.func @transform_2(%arg0: i32, %arg1: i32) -> (i32, i32) {
    %c0_i32 = arith.constant 0 : i32
    %c0_i32_0 = arith.constant 0 : i32
    %c0_i32_1 = arith.constant 0 : i32
    return %c0_i32, %c0_i32_0 : i32, i32
  }
  func.func @transform_3(%arg0: i32, %arg1: i32) -> (i32, i32) {
    %c0_i32 = arith.constant 0 : i32
    %c0_i32_0 = arith.constant 0 : i32
    %c0_i32_1 = arith.constant 0 : i32
    return %c0_i32, %c0_i32_0 : i32, i32
  }
  func.func @transform_4(%arg0: i32, %arg1: i32) -> (i32, i32, i32) {
    %c0_i32 = arith.constant 0 : i32
    %c0_i32_0 = arith.constant 0 : i32
    %c0_i32_1 = arith.constant 0 : i32
    return %arg0, %c0_i32, %c0_i32_0 : i32, i32, i32
  }
}

module attributes {stable_mosaic.version = 11 : i64} {
  func.func @_avg4_kernel(%arg0: i32, %arg1: memref<1x16x128xf32, #tpu.memory_space<vmem>>, %arg2: memref<1x16x128xf32, #tpu.memory_space<vmem>>, %arg3: memref<1x16x128xf32, #tpu.memory_space<vmem>>, %arg4: memref<1x16x128xf32, #tpu.memory_space<vmem>>, %arg5: memref<1x16x128xf32, #tpu.memory_space<vmem>>) attributes {dimension_semantics = [#tpu.dimension_semantics<parallel>], iteration_bounds = array<i64: 2>, scalar_prefetch = 0 : i64, scratch_operands = 0 : i64, tpu.core_type = #tpu.core_type<tc>, window_params = [{transform_indices = @transform_0, window_bounds = array<i64: 1, 16, 128>}, {transform_indices = @transform_1, window_bounds = array<i64: 1, 16, 128>}, {transform_indices = @transform_2, window_bounds = array<i64: 1, 16, 128>}, {transform_indices = @transform_3, window_bounds = array<i64: 1, 16, 128>}, {transform_indices = @transform_4, window_bounds = array<i64: 1, 16, 128>}]} {
    %c0 = arith.constant 0 : index
    %c0_0 = arith.constant 0 : index
    %c0_1 = arith.constant 0 : index
    %0 = vector.load %arg1[%c0, %c0_0, %c0_1] : memref<1x16x128xf32, #tpu.memory_space<vmem>>, vector<1x16x128xf32>
    %c0_2 = arith.constant 0 : index
    %c0_3 = arith.constant 0 : index
    %c0_4 = arith.constant 0 : index
    %1 = vector.load %arg2[%c0_2, %c0_3, %c0_4] : memref<1x16x128xf32, #tpu.memory_space<vmem>>, vector<1x16x128xf32>
    %2 = arith.addf %0, %1 : vector<1x16x128xf32>
    %c0_5 = arith.constant 0 : index
    %c0_6 = arith.constant 0 : index
    %c0_7 = arith.constant 0 : index
    %3 = vector.load %arg3[%c0_5, %c0_6, %c0_7] : memref<1x16x128xf32, #tpu.memory_space<vmem>>, vector<1x16x128xf32>
    %4 = arith.addf %2, %3 : vector<1x16x128xf32>
    %c0_8 = arith.constant 0 : index
    %c0_9 = arith.constant 0 : index
    %c0_10 = arith.constant 0 : index
    %5 = vector.load %arg4[%c0_8, %c0_9, %c0_10] : memref<1x16x128xf32, #tpu.memory_space<vmem>>, vector<1x16x128xf32>
    %6 = arith.addf %4, %5 : vector<1x16x128xf32>
    %cst = arith.constant 2.500000e-01 : f32
    %7 = vector.broadcast %cst : f32 to vector<1x16x128xf32>
    %8 = arith.mulf %6, %7 : vector<1x16x128xf32>
    %c0_11 = arith.constant 0 : index
    %c0_12 = arith.constant 0 : index
    %c0_13 = arith.constant 0 : index
    %9 = vector.load %arg5[%c0_11, %c0_12, %c0_13] : memref<1x16x128xf32, #tpu.memory_space<vmem>>, vector<1x16x128xf32>
    tpu.vector_store %arg5[%c0_11, %c0_12, %c0_13], %8 {strides = array<i32>} : memref<1x16x128xf32, #tpu.memory_space<vmem>>, vector<1x16x128xf32>,
    return
  }
  func.func @transform_0(%arg0: i32) -> (i32, i32, i32) {
    %c0_i32 = arith.constant 0 : i32
    %c0_i32_0 = arith.constant 0 : i32
    %c0_i32_1 = arith.constant 0 : i32
    return %arg0, %c0_i32, %c0_i32_0 : i32, i32, i32
  }
  func.func @transform_1(%arg0: i32) -> (i32, i32, i32) {
    %c0_i32 = arith.constant 0 : i32
    %c0_i32_0 = arith.constant 0 : i32
    %c0_i32_1 = arith.constant 0 : i32
    return %arg0, %c0_i32, %c0_i32_0 : i32, i32, i32
  }
  func.func @transform_2(%arg0: i32) -> (i32, i32, i32) {
    %c0_i32 = arith.constant 0 : i32
    %c0_i32_0 = arith.constant 0 : i32
    %c0_i32_1 = arith.constant 0 : i32
    return %arg0, %c0_i32, %c0_i32_0 : i32, i32, i32
  }
  func.func @transform_3(%arg0: i32) -> (i32, i32, i32) {
    %c0_i32 = arith.constant 0 : i32
    %c0_i32_0 = arith.constant 0 : i32
    %c0_i32_1 = arith.constant 0 : i32
    return %arg0, %c0_i32, %c0_i32_0 : i32, i32, i32
  }
  func.func @transform_4(%arg0: i32) -> (i32, i32, i32) {
    %c0_i32 = arith.constant 0 : i32
    %c0_i32_0 = arith.constant 0 : i32
    %c0_i32_1 = arith.constant 0 : i32
    return %arg0, %c0_i32, %c0_i32_0 : i32, i32, i32
  }
}

module attributes {stable_mosaic.version = 11 : i64} {
  func.func @_conv_in_relu_kernel(%arg0: i32, %arg1: i32, %arg2: memref<1x16x1152xbf16, #tpu.memory_space<vmem>>, %arg3: memref<1152x256xbf16, #tpu.memory_space<vmem>>, %arg4: memref<1x256xf32, #tpu.memory_space<vmem>>, %arg5: memref<1x256xf32, #tpu.memory_space<vmem>>, %arg6: memref<1x16x256xf32, #tpu.memory_space<vmem>>, %arg7: memref<16x256xf32, #tpu.memory_space<vmem>>) attributes {dimension_semantics = [#tpu.dimension_semantics<parallel>, #tpu.dimension_semantics<arbitrary>], iteration_bounds = array<i64: 2, 1>, scalar_prefetch = 0 : i64, scratch_operands = 1 : i64, tpu.core_type = #tpu.core_type<tc>, window_params = [{transform_indices = @transform_0, window_bounds = array<i64: 1, 16, 1152>}, {transform_indices = @transform_1, window_bounds = array<i64: 1152, 256>}, {pipeline_mode = #tpu.pipeline_mode<synchronous>, transform_indices = @transform_2, window_bounds = array<i64: 1, 256>}, {pipeline_mode = #tpu.pipeline_mode<synchronous>, transform_indices = @transform_3, window_bounds = array<i64: 1, 256>}, {transform_indices = @transform_4, window_bounds = array<i64: 1, 16, 256>}]} {
    %c0_i32 = arith.constant 0 : i32
    %0 = arith.cmpi eq, %arg1, %c0_i32 : i32
    %1 = arith.extui %0 : i1 to i32
    %c0_i32_0 = arith.constant 0 : i32
    %2 = arith.cmpi ne, %1, %c0_i32_0 : i32
    scf.if %2 {
      %cst_11 = arith.constant 0.000000e+00 : f32
      %13 = vector.broadcast %cst_11 : f32 to vector<16x256xf32>
      %c0_12 = arith.constant 0 : index
      %c0_13 = arith.constant 0 : index
      %14 = vector.load %arg7[%c0_12, %c0_13] : memref<16x256xf32, #tpu.memory_space<vmem>>, vector<16x256xf32>
      tpu.vector_store %arg7[%c0_12, %c0_13], %13 {strides = array<i32>} : memref<16x256xf32, #tpu.memory_space<vmem>>, vector<16x256xf32>,
    } else {
    }
    %c0 = arith.constant 0 : index
    %c0_1 = arith.constant 0 : index
    %3 = vector.load %arg7[%c0, %c0_1] : memref<16x256xf32, #tpu.memory_space<vmem>>, vector<16x256xf32>
    %c0_2 = arith.constant 0 : index
    %c0_3 = arith.constant 0 : index
    %c0_4 = arith.constant 0 : index
    %4 = vector.load %arg2[%c0_2, %c0_3, %c0_4] : memref<1x16x1152xbf16, #tpu.memory_space<vmem>>, vector<1x16x1152xbf16>
    %5 = vector.shape_cast %4 : vector<1x16x1152xbf16> to vector<16x1152xbf16>
    %c0_5 = arith.constant 0 : index
    %c0_6 = arith.constant 0 : index
    %6 = vector.load %arg3[%c0_5, %c0_6] : memref<1152x256xbf16, #tpu.memory_space<vmem>>, vector<1152x256xbf16>
    %cst = arith.constant dense<0.000000e+00> : vector<16x256xf32>
    %7 = tpu.matmul %5, %6, %cst {dimension_numbers = #tpu.dot_dimension_numbers<[1], [0], [0], [1], [0, 0, 1, 1], [], []>} : vector<16x1152xbf16>, vector<1152x256xbf16>, vector<16x256xf32> -> vector<16x256xf32>
    %8 = arith.addf %3, %7 : vector<16x256xf32>
    %c0_7 = arith.constant 0 : index
    %c0_8 = arith.constant 0 : index
    %9 = vector.load %arg7[%c0_7, %c0_8] : memref<16x256xf32, #tpu.memory_space<vmem>>, vector<16x256xf32>
    tpu.vector_store %arg7[%c0_7, %c0_8], %8 {strides = array<i32>} : memref<16x256xf32, #tpu.memory_space<vmem>>, vector<16x256xf32>,
    %c0_i32_9 = arith.constant 0 : i32
    %10 = arith.cmpi eq, %arg1, %c0_i32_9 : i32
    %11 = arith.extui %10 : i1 to i32
    %c0_i32_10 = arith.constant 0 : i32
    %12 = arith.cmpi ne, %11, %c0_i32_10 : i32
    scf.if %12 {
      %c0_11 = arith.constant 0 : index
      %c0_12 = arith.constant 0 : index
      %13 = vector.load %arg7[%c0_11, %c0_12] : memref<16x256xf32, #tpu.memory_space<vmem>>, vector<16x256xf32>
      %cst_13 = arith.constant dense<0.000000e+00> : vector<256xf32>
      %14 = vector.multi_reduction <add>, %13, %cst_13 [0] : vector<16x256xf32> to vector<256xf32>
      %15 = vector.shape_cast %14 : vector<256xf32> to vector<1x256xf32>
      %cst_14 = arith.constant 1.600000e+01 : f32
      %16 = vector.broadcast %cst_14 : f32 to vector<1x256xf32>
      %17 = arith.divf %15, %16 : vector<1x256xf32>
      %18 = vector.broadcast %17 : vector<1x256xf32> to vector<16x256xf32>
      %19 = arith.subf %13, %18 : vector<16x256xf32>
      %20 = arith.mulf %19, %19 : vector<16x256xf32>
      %cst_15 = arith.constant dense<0.000000e+00> : vector<256xf32>
      %21 = vector.multi_reduction <add>, %20, %cst_15 [0] : vector<16x256xf32> to vector<256xf32>
      %22 = vector.shape_cast %21 : vector<256xf32> to vector<1x256xf32>
      %cst_16 = arith.constant 1.600000e+01 : f32
      %23 = vector.broadcast %cst_16 : f32 to vector<1x256xf32>
      %24 = arith.divf %22, %23 : vector<1x256xf32>
      %cst_17 = arith.constant 9.99999974E-6 : f32
      %25 = vector.broadcast %cst_17 : f32 to vector<1x256xf32>
      %26 = arith.addf %24, %25 : vector<1x256xf32>
      %27 = math.rsqrt %26 : vector<1x256xf32>
      %28 = vector.broadcast %27 : vector<1x256xf32> to vector<16x256xf32>
      %29 = arith.mulf %19, %28 : vector<16x256xf32>
      %c0_18 = arith.constant 0 : index
      %c0_19 = arith.constant 0 : index
      %30 = vector.load %arg4[%c0_18, %c0_19] : memref<1x256xf32, #tpu.memory_space<vmem>>, vector<1x256xf32>
      %31 = vector.broadcast %30 : vector<1x256xf32> to vector<16x256xf32>
      %32 = arith.mulf %29, %31 : vector<16x256xf32>
      %c0_20 = arith.constant 0 : index
      %c0_21 = arith.constant 0 : index
      %33 = vector.load %arg5[%c0_20, %c0_21] : memref<1x256xf32, #tpu.memory_space<vmem>>, vector<1x256xf32>
      %34 = vector.broadcast %33 : vector<1x256xf32> to vector<16x256xf32>
      %35 = arith.addf %32, %34 : vector<16x256xf32>
      %cst_22 = arith.constant 0.000000e+00 : f32
      %36 = vector.broadcast %cst_22 : f32 to vector<16x256xf32>
      %37 = arith.maximumf %35, %36 : vector<16x256xf32>
      %38 = vector.shape_cast %37 : vector<16x256xf32> to vector<1x16x256xf32>
      %c0_23 = arith.constant 0 : index
      %c0_24 = arith.constant 0 : index
      %c0_25 = arith.constant 0 : index
      %39 = vector.load %arg6[%c0_23, %c0_24, %c0_25] : memref<1x16x256xf32, #tpu.memory_space<vmem>>, vector<1x16x256xf32>
      tpu.vector_store %arg6[%c0_23, %c0_24, %c0_25], %38 {strides = array<i32>} : memref<1x16x256xf32, #tpu.memory_space<vmem>>, vector<1x16x256xf32>,
    } else {
    }
    return
  }
  func.func @transform_0(%arg0: i32, %arg1: i32) -> (i32, i32, i32) {
    %c0_i32 = arith.constant 0 : i32
    %c0_i32_0 = arith.constant 0 : i32
    return %arg0, %c0_i32, %arg1 : i32, i32, i32
  }
  func.func @transform_1(%arg0: i32, %arg1: i32) -> (i32, i32) {
    %c0_i32 = arith.constant 0 : i32
    %c0_i32_0 = arith.constant 0 : i32
    return %arg1, %c0_i32 : i32, i32
  }
  func.func @transform_2(%arg0: i32, %arg1: i32) -> (i32, i32) {
    %c0_i32 = arith.constant 0 : i32
    %c0_i32_0 = arith.constant 0 : i32
    %c0_i32_1 = arith.constant 0 : i32
    return %c0_i32, %c0_i32_0 : i32, i32
  }
  func.func @transform_3(%arg0: i32, %arg1: i32) -> (i32, i32) {
    %c0_i32 = arith.constant 0 : i32
    %c0_i32_0 = arith.constant 0 : i32
    %c0_i32_1 = arith.constant 0 : i32
    return %c0_i32, %c0_i32_0 : i32, i32
  }
  func.func @transform_4(%arg0: i32, %arg1: i32) -> (i32, i32, i32) {
    %c0_i32 = arith.constant 0 : i32
    %c0_i32_0 = arith.constant 0 : i32
    %c0_i32_1 = arith.constant 0 : i32
    return %arg0, %c0_i32, %c0_i32_0 : i32, i32, i32
  }
}

module attributes {stable_mosaic.version = 11 : i64} {
  func.func @_conv_in_relu_kernel(%arg0: i32, %arg1: i32, %arg2: memref<1x16x1152xbf16, #tpu.memory_space<vmem>>, %arg3: memref<1152x256xbf16, #tpu.memory_space<vmem>>, %arg4: memref<1x256xf32, #tpu.memory_space<vmem>>, %arg5: memref<1x256xf32, #tpu.memory_space<vmem>>, %arg6: memref<1x16x256xf32, #tpu.memory_space<vmem>>, %arg7: memref<16x256xf32, #tpu.memory_space<vmem>>) attributes {dimension_semantics = [#tpu.dimension_semantics<parallel>, #tpu.dimension_semantics<arbitrary>], iteration_bounds = array<i64: 2, 2>, scalar_prefetch = 0 : i64, scratch_operands = 1 : i64, tpu.core_type = #tpu.core_type<tc>, window_params = [{transform_indices = @transform_0, window_bounds = array<i64: 1, 16, 1152>}, {transform_indices = @transform_1, window_bounds = array<i64: 1152, 256>}, {pipeline_mode = #tpu.pipeline_mode<synchronous>, transform_indices = @transform_2, window_bounds = array<i64: 1, 256>}, {pipeline_mode = #tpu.pipeline_mode<synchronous>, transform_indices = @transform_3, window_bounds = array<i64: 1, 256>}, {transform_indices = @transform_4, window_bounds = array<i64: 1, 16, 256>}]} {
    %c0_i32 = arith.constant 0 : i32
    %0 = arith.cmpi eq, %arg1, %c0_i32 : i32
    %1 = arith.extui %0 : i1 to i32
    %c0_i32_0 = arith.constant 0 : i32
    %2 = arith.cmpi ne, %1, %c0_i32_0 : i32
    scf.if %2 {
      %cst_10 = arith.constant 0.000000e+00 : f32
      %13 = vector.broadcast %cst_10 : f32 to vector<16x256xf32>
      %c0_11 = arith.constant 0 : index
      %c0_12 = arith.constant 0 : index
      %14 = vector.load %arg7[%c0_11, %c0_12] : memref<16x256xf32, #tpu.memory_space<vmem>>, vector<16x256xf32>
      tpu.vector_store %arg7[%c0_11, %c0_12], %13 {strides = array<i32>} : memref<16x256xf32, #tpu.memory_space<vmem>>, vector<16x256xf32>,
    } else {
    }
    %c0 = arith.constant 0 : index
    %c0_1 = arith.constant 0 : index
    %3 = vector.load %arg7[%c0, %c0_1] : memref<16x256xf32, #tpu.memory_space<vmem>>, vector<16x256xf32>
    %c0_2 = arith.constant 0 : index
    %c0_3 = arith.constant 0 : index
    %c0_4 = arith.constant 0 : index
    %4 = vector.load %arg2[%c0_2, %c0_3, %c0_4] : memref<1x16x1152xbf16, #tpu.memory_space<vmem>>, vector<1x16x1152xbf16>
    %5 = vector.shape_cast %4 : vector<1x16x1152xbf16> to vector<16x1152xbf16>
    %c0_5 = arith.constant 0 : index
    %c0_6 = arith.constant 0 : index
    %6 = vector.load %arg3[%c0_5, %c0_6] : memref<1152x256xbf16, #tpu.memory_space<vmem>>, vector<1152x256xbf16>
    %cst = arith.constant dense<0.000000e+00> : vector<16x256xf32>
    %7 = tpu.matmul %5, %6, %cst {dimension_numbers = #tpu.dot_dimension_numbers<[1], [0], [0], [1], [0, 0, 1, 1], [], []>} : vector<16x1152xbf16>, vector<1152x256xbf16>, vector<16x256xf32> -> vector<16x256xf32>
    %8 = arith.addf %3, %7 : vector<16x256xf32>
    %c0_7 = arith.constant 0 : index
    %c0_8 = arith.constant 0 : index
    %9 = vector.load %arg7[%c0_7, %c0_8] : memref<16x256xf32, #tpu.memory_space<vmem>>, vector<16x256xf32>
    tpu.vector_store %arg7[%c0_7, %c0_8], %8 {strides = array<i32>} : memref<16x256xf32, #tpu.memory_space<vmem>>, vector<16x256xf32>,
    %c1_i32 = arith.constant 1 : i32
    %10 = arith.cmpi eq, %arg1, %c1_i32 : i32
    %11 = arith.extui %10 : i1 to i32
    %c0_i32_9 = arith.constant 0 : i32
    %12 = arith.cmpi ne, %11, %c0_i32_9 : i32
    scf.if %12 {
      %c0_10 = arith.constant 0 : index
      %c0_11 = arith.constant 0 : index
      %13 = vector.load %arg7[%c0_10, %c0_11] : memref<16x256xf32, #tpu.memory_space<vmem>>, vector<16x256xf32>
      %cst_12 = arith.constant dense<0.000000e+00> : vector<256xf32>
      %14 = vector.multi_reduction <add>, %13, %cst_12 [0] : vector<16x256xf32> to vector<256xf32>
      %15 = vector.shape_cast %14 : vector<256xf32> to vector<1x256xf32>
      %cst_13 = arith.constant 1.600000e+01 : f32
      %16 = vector.broadcast %cst_13 : f32 to vector<1x256xf32>
      %17 = arith.divf %15, %16 : vector<1x256xf32>
      %18 = vector.broadcast %17 : vector<1x256xf32> to vector<16x256xf32>
      %19 = arith.subf %13, %18 : vector<16x256xf32>
      %20 = arith.mulf %19, %19 : vector<16x256xf32>
      %cst_14 = arith.constant dense<0.000000e+00> : vector<256xf32>
      %21 = vector.multi_reduction <add>, %20, %cst_14 [0] : vector<16x256xf32> to vector<256xf32>
      %22 = vector.shape_cast %21 : vector<256xf32> to vector<1x256xf32>
      %cst_15 = arith.constant 1.600000e+01 : f32
      %23 = vector.broadcast %cst_15 : f32 to vector<1x256xf32>
      %24 = arith.divf %22, %23 : vector<1x256xf32>
      %cst_16 = arith.constant 9.99999974E-6 : f32
      %25 = vector.broadcast %cst_16 : f32 to vector<1x256xf32>
      %26 = arith.addf %24, %25 : vector<1x256xf32>
      %27 = math.rsqrt %26 : vector<1x256xf32>
      %28 = vector.broadcast %27 : vector<1x256xf32> to vector<16x256xf32>
      %29 = arith.mulf %19, %28 : vector<16x256xf32>
      %c0_17 = arith.constant 0 : index
      %c0_18 = arith.constant 0 : index
      %30 = vector.load %arg4[%c0_17, %c0_18] : memref<1x256xf32, #tpu.memory_space<vmem>>, vector<1x256xf32>
      %31 = vector.broadcast %30 : vector<1x256xf32> to vector<16x256xf32>
      %32 = arith.mulf %29, %31 : vector<16x256xf32>
      %c0_19 = arith.constant 0 : index
      %c0_20 = arith.constant 0 : index
      %33 = vector.load %arg5[%c0_19, %c0_20] : memref<1x256xf32, #tpu.memory_space<vmem>>, vector<1x256xf32>
      %34 = vector.broadcast %33 : vector<1x256xf32> to vector<16x256xf32>
      %35 = arith.addf %32, %34 : vector<16x256xf32>
      %cst_21 = arith.constant 0.000000e+00 : f32
      %36 = vector.broadcast %cst_21 : f32 to vector<16x256xf32>
      %37 = arith.maximumf %35, %36 : vector<16x256xf32>
      %38 = vector.shape_cast %37 : vector<16x256xf32> to vector<1x16x256xf32>
      %c0_22 = arith.constant 0 : index
      %c0_23 = arith.constant 0 : index
      %c0_24 = arith.constant 0 : index
      %39 = vector.load %arg6[%c0_22, %c0_23, %c0_24] : memref<1x16x256xf32, #tpu.memory_space<vmem>>, vector<1x16x256xf32>
      tpu.vector_store %arg6[%c0_22, %c0_23, %c0_24], %38 {strides = array<i32>} : memref<1x16x256xf32, #tpu.memory_space<vmem>>, vector<1x16x256xf32>,
    } else {
    }
    return
  }
  func.func @transform_0(%arg0: i32, %arg1: i32) -> (i32, i32, i32) {
    %c0_i32 = arith.constant 0 : i32
    %c0_i32_0 = arith.constant 0 : i32
    return %arg0, %c0_i32, %arg1 : i32, i32, i32
  }
  func.func @transform_1(%arg0: i32, %arg1: i32) -> (i32, i32) {
    %c0_i32 = arith.constant 0 : i32
    %c0_i32_0 = arith.constant 0 : i32
    return %arg1, %c0_i32 : i32, i32
  }
  func.func @transform_2(%arg0: i32, %arg1: i32) -> (i32, i32) {
    %c0_i32 = arith.constant 0 : i32
    %c0_i32_0 = arith.constant 0 : i32
    %c0_i32_1 = arith.constant 0 : i32
    return %c0_i32, %c0_i32_0 : i32, i32
  }
  func.func @transform_3(%arg0: i32, %arg1: i32) -> (i32, i32) {
    %c0_i32 = arith.constant 0 : i32
    %c0_i32_0 = arith.constant 0 : i32
    %c0_i32_1 = arith.constant 0 : i32
    return %c0_i32, %c0_i32_0 : i32, i32
  }
  func.func @transform_4(%arg0: i32, %arg1: i32) -> (i32, i32, i32) {
    %c0_i32 = arith.constant 0 : i32
    %c0_i32_0 = arith.constant 0 : i32
    %c0_i32_1 = arith.constant 0 : i32
    return %arg0, %c0_i32, %c0_i32_0 : i32, i32, i32
  }
}

module attributes {stable_mosaic.version = 11 : i64} {
  func.func @_avg4_kernel(%arg0: i32, %arg1: memref<1x4x256xf32, #tpu.memory_space<vmem>>, %arg2: memref<1x4x256xf32, #tpu.memory_space<vmem>>, %arg3: memref<1x4x256xf32, #tpu.memory_space<vmem>>, %arg4: memref<1x4x256xf32, #tpu.memory_space<vmem>>, %arg5: memref<1x4x256xf32, #tpu.memory_space<vmem>>) attributes {dimension_semantics = [#tpu.dimension_semantics<parallel>], iteration_bounds = array<i64: 2>, scalar_prefetch = 0 : i64, scratch_operands = 0 : i64, tpu.core_type = #tpu.core_type<tc>, window_params = [{transform_indices = @transform_0, window_bounds = array<i64: 1, 4, 256>}, {transform_indices = @transform_1, window_bounds = array<i64: 1, 4, 256>}, {transform_indices = @transform_2, window_bounds = array<i64: 1, 4, 256>}, {transform_indices = @transform_3, window_bounds = array<i64: 1, 4, 256>}, {transform_indices = @transform_4, window_bounds = array<i64: 1, 4, 256>}]} {
    %c0 = arith.constant 0 : index
    %c0_0 = arith.constant 0 : index
    %c0_1 = arith.constant 0 : index
    %0 = vector.load %arg1[%c0, %c0_0, %c0_1] : memref<1x4x256xf32, #tpu.memory_space<vmem>>, vector<1x4x256xf32>
    %c0_2 = arith.constant 0 : index
    %c0_3 = arith.constant 0 : index
    %c0_4 = arith.constant 0 : index
    %1 = vector.load %arg2[%c0_2, %c0_3, %c0_4] : memref<1x4x256xf32, #tpu.memory_space<vmem>>, vector<1x4x256xf32>
    %2 = arith.addf %0, %1 : vector<1x4x256xf32>
    %c0_5 = arith.constant 0 : index
    %c0_6 = arith.constant 0 : index
    %c0_7 = arith.constant 0 : index
    %3 = vector.load %arg3[%c0_5, %c0_6, %c0_7] : memref<1x4x256xf32, #tpu.memory_space<vmem>>, vector<1x4x256xf32>
    %4 = arith.addf %2, %3 : vector<1x4x256xf32>
    %c0_8 = arith.constant 0 : index
    %c0_9 = arith.constant 0 : index
    %c0_10 = arith.constant 0 : index
    %5 = vector.load %arg4[%c0_8, %c0_9, %c0_10] : memref<1x4x256xf32, #tpu.memory_space<vmem>>, vector<1x4x256xf32>
    %6 = arith.addf %4, %5 : vector<1x4x256xf32>
    %cst = arith.constant 2.500000e-01 : f32
    %7 = vector.broadcast %cst : f32 to vector<1x4x256xf32>
    %8 = arith.mulf %6, %7 : vector<1x4x256xf32>
    %c0_11 = arith.constant 0 : index
    %c0_12 = arith.constant 0 : index
    %c0_13 = arith.constant 0 : index
    %9 = vector.load %arg5[%c0_11, %c0_12, %c0_13] : memref<1x4x256xf32, #tpu.memory_space<vmem>>, vector<1x4x256xf32>
    tpu.vector_store %arg5[%c0_11, %c0_12, %c0_13], %8 {strides = array<i32>} : memref<1x4x256xf32, #tpu.memory_space<vmem>>, vector<1x4x256xf32>,
    return
  }
  func.func @transform_0(%arg0: i32) -> (i32, i32, i32) {
    %c0_i32 = arith.constant 0 : i32
    %c0_i32_0 = arith.constant 0 : i32
    %c0_i32_1 = arith.constant 0 : i32
    return %arg0, %c0_i32, %c0_i32_0 : i32, i32, i32
  }
  func.func @transform_1(%arg0: i32) -> (i32, i32, i32) {
    %c0_i32 = arith.constant 0 : i32
    %c0_i32_0 = arith.constant 0 : i32
    %c0_i32_1 = arith.constant 0 : i32
    return %arg0, %c0_i32, %c0_i32_0 : i32, i32, i32
  }
  func.func @transform_2(%arg0: i32) -> (i32, i32, i32) {
    %c0_i32 = arith.constant 0 : i32
    %c0_i32_0 = arith.constant 0 : i32
    %c0_i32_1 = arith.constant 0 : i32
    return %arg0, %c0_i32, %c0_i32_0 : i32, i32, i32
  }
  func.func @transform_3(%arg0: i32) -> (i32, i32, i32) {
    %c0_i32 = arith.constant 0 : i32
    %c0_i32_0 = arith.constant 0 : i32
    %c0_i32_1 = arith.constant 0 : i32
    return %arg0, %c0_i32, %c0_i32_0 : i32, i32, i32
  }
  func.func @transform_4(%arg0: i32) -> (i32, i32, i32) {
    %c0_i32 = arith.constant 0 : i32
    %c0_i32_0 = arith.constant 0 : i32
    %c0_i32_1 = arith.constant 0 : i32
    return %arg0, %c0_i32, %c0_i32_0 : i32, i32, i32
  }
}

module attributes {stable_mosaic.version = 11 : i64} {
  func.func @_conv_in_relu_kernel(%arg0: i32, %arg1: i32, %arg2: memref<1x4x1152xbf16, #tpu.memory_space<vmem>>, %arg3: memref<1152x512xbf16, #tpu.memory_space<vmem>>, %arg4: memref<1x512xf32, #tpu.memory_space<vmem>>, %arg5: memref<1x512xf32, #tpu.memory_space<vmem>>, %arg6: memref<1x4x512xf32, #tpu.memory_space<vmem>>, %arg7: memref<4x512xf32, #tpu.memory_space<vmem>>) attributes {dimension_semantics = [#tpu.dimension_semantics<parallel>, #tpu.dimension_semantics<arbitrary>], iteration_bounds = array<i64: 2, 2>, scalar_prefetch = 0 : i64, scratch_operands = 1 : i64, tpu.core_type = #tpu.core_type<tc>, window_params = [{transform_indices = @transform_0, window_bounds = array<i64: 1, 4, 1152>}, {transform_indices = @transform_1, window_bounds = array<i64: 1152, 512>}, {pipeline_mode = #tpu.pipeline_mode<synchronous>, transform_indices = @transform_2, window_bounds = array<i64: 1, 512>}, {pipeline_mode = #tpu.pipeline_mode<synchronous>, transform_indices = @transform_3, window_bounds = array<i64: 1, 512>}, {transform_indices = @transform_4, window_bounds = array<i64: 1, 4, 512>}]} {
    %c0_i32 = arith.constant 0 : i32
    %0 = arith.cmpi eq, %arg1, %c0_i32 : i32
    %1 = arith.extui %0 : i1 to i32
    %c0_i32_0 = arith.constant 0 : i32
    %2 = arith.cmpi ne, %1, %c0_i32_0 : i32
    scf.if %2 {
      %cst_10 = arith.constant 0.000000e+00 : f32
      %13 = vector.broadcast %cst_10 : f32 to vector<4x512xf32>
      %c0_11 = arith.constant 0 : index
      %c0_12 = arith.constant 0 : index
      %14 = vector.load %arg7[%c0_11, %c0_12] : memref<4x512xf32, #tpu.memory_space<vmem>>, vector<4x512xf32>
      tpu.vector_store %arg7[%c0_11, %c0_12], %13 {strides = array<i32>} : memref<4x512xf32, #tpu.memory_space<vmem>>, vector<4x512xf32>,
    } else {
    }
    %c0 = arith.constant 0 : index
    %c0_1 = arith.constant 0 : index
    %3 = vector.load %arg7[%c0, %c0_1] : memref<4x512xf32, #tpu.memory_space<vmem>>, vector<4x512xf32>
    %c0_2 = arith.constant 0 : index
    %c0_3 = arith.constant 0 : index
    %c0_4 = arith.constant 0 : index
    %4 = vector.load %arg2[%c0_2, %c0_3, %c0_4] : memref<1x4x1152xbf16, #tpu.memory_space<vmem>>, vector<1x4x1152xbf16>
    %5 = vector.shape_cast %4 : vector<1x4x1152xbf16> to vector<4x1152xbf16>
    %c0_5 = arith.constant 0 : index
    %c0_6 = arith.constant 0 : index
    %6 = vector.load %arg3[%c0_5, %c0_6] : memref<1152x512xbf16, #tpu.memory_space<vmem>>, vector<1152x512xbf16>
    %cst = arith.constant dense<0.000000e+00> : vector<4x512xf32>
    %7 = tpu.matmul %5, %6, %cst {dimension_numbers = #tpu.dot_dimension_numbers<[1], [0], [0], [1], [0, 0, 1, 1], [], []>} : vector<4x1152xbf16>, vector<1152x512xbf16>, vector<4x512xf32> -> vector<4x512xf32>
    %8 = arith.addf %3, %7 : vector<4x512xf32>
    %c0_7 = arith.constant 0 : index
    %c0_8 = arith.constant 0 : index
    %9 = vector.load %arg7[%c0_7, %c0_8] : memref<4x512xf32, #tpu.memory_space<vmem>>, vector<4x512xf32>
    tpu.vector_store %arg7[%c0_7, %c0_8], %8 {strides = array<i32>} : memref<4x512xf32, #tpu.memory_space<vmem>>, vector<4x512xf32>,
    %c1_i32 = arith.constant 1 : i32
    %10 = arith.cmpi eq, %arg1, %c1_i32 : i32
    %11 = arith.extui %10 : i1 to i32
    %c0_i32_9 = arith.constant 0 : i32
    %12 = arith.cmpi ne, %11, %c0_i32_9 : i32
    scf.if %12 {
      %c0_10 = arith.constant 0 : index
      %c0_11 = arith.constant 0 : index
      %13 = vector.load %arg7[%c0_10, %c0_11] : memref<4x512xf32, #tpu.memory_space<vmem>>, vector<4x512xf32>
      %cst_12 = arith.constant dense<0.000000e+00> : vector<512xf32>
      %14 = vector.multi_reduction <add>, %13, %cst_12 [0] : vector<4x512xf32> to vector<512xf32>
      %15 = vector.shape_cast %14 : vector<512xf32> to vector<1x512xf32>
      %cst_13 = arith.constant 4.000000e+00 : f32
      %16 = vector.broadcast %cst_13 : f32 to vector<1x512xf32>
      %17 = arith.divf %15, %16 : vector<1x512xf32>
      %18 = vector.broadcast %17 : vector<1x512xf32> to vector<4x512xf32>
      %19 = arith.subf %13, %18 : vector<4x512xf32>
      %20 = arith.mulf %19, %19 : vector<4x512xf32>
      %cst_14 = arith.constant dense<0.000000e+00> : vector<512xf32>
      %21 = vector.multi_reduction <add>, %20, %cst_14 [0] : vector<4x512xf32> to vector<512xf32>
      %22 = vector.shape_cast %21 : vector<512xf32> to vector<1x512xf32>
      %cst_15 = arith.constant 4.000000e+00 : f32
      %23 = vector.broadcast %cst_15 : f32 to vector<1x512xf32>
      %24 = arith.divf %22, %23 : vector<1x512xf32>
      %cst_16 = arith.constant 9.99999974E-6 : f32
      %25 = vector.broadcast %cst_16 : f32 to vector<1x512xf32>
      %26 = arith.addf %24, %25 : vector<1x512xf32>
      %27 = math.rsqrt %26 : vector<1x512xf32>
      %28 = vector.broadcast %27 : vector<1x512xf32> to vector<4x512xf32>
      %29 = arith.mulf %19, %28 : vector<4x512xf32>
      %c0_17 = arith.constant 0 : index
      %c0_18 = arith.constant 0 : index
      %30 = vector.load %arg4[%c0_17, %c0_18] : memref<1x512xf32, #tpu.memory_space<vmem>>, vector<1x512xf32>
      %31 = vector.broadcast %30 : vector<1x512xf32> to vector<4x512xf32>
      %32 = arith.mulf %29, %31 : vector<4x512xf32>
      %c0_19 = arith.constant 0 : index
      %c0_20 = arith.constant 0 : index
      %33 = vector.load %arg5[%c0_19, %c0_20] : memref<1x512xf32, #tpu.memory_space<vmem>>, vector<1x512xf32>
      %34 = vector.broadcast %33 : vector<1x512xf32> to vector<4x512xf32>
      %35 = arith.addf %32, %34 : vector<4x512xf32>
      %cst_21 = arith.constant 0.000000e+00 : f32
      %36 = vector.broadcast %cst_21 : f32 to vector<4x512xf32>
      %37 = arith.maximumf %35, %36 : vector<4x512xf32>
      %38 = vector.shape_cast %37 : vector<4x512xf32> to vector<1x4x512xf32>
      %c0_22 = arith.constant 0 : index
      %c0_23 = arith.constant 0 : index
      %c0_24 = arith.constant 0 : index
      %39 = vector.load %arg6[%c0_22, %c0_23, %c0_24] : memref<1x4x512xf32, #tpu.memory_space<vmem>>, vector<1x4x512xf32>
      tpu.vector_store %arg6[%c0_22, %c0_23, %c0_24], %38 {strides = array<i32>} : memref<1x4x512xf32, #tpu.memory_space<vmem>>, vector<1x4x512xf32>,
    } else {
    }
    return
  }
  func.func @transform_0(%arg0: i32, %arg1: i32) -> (i32, i32, i32) {
    %c0_i32 = arith.constant 0 : i32
    %c0_i32_0 = arith.constant 0 : i32
    return %arg0, %c0_i32, %arg1 : i32, i32, i32
  }
  func.func @transform_1(%arg0: i32, %arg1: i32) -> (i32, i32) {
    %c0_i32 = arith.constant 0 : i32
    %c0_i32_0 = arith.constant 0 : i32
    return %arg1, %c0_i32 : i32, i32
  }
  func.func @transform_2(%arg0: i32, %arg1: i32) -> (i32, i32) {
    %c0_i32 = arith.constant 0 : i32
    %c0_i32_0 = arith.constant 0 : i32
    %c0_i32_1 = arith.constant 0 : i32
    return %c0_i32, %c0_i32_0 : i32, i32
  }
  func.func @transform_3(%arg0: i32, %arg1: i32) -> (i32, i32) {
    %c0_i32 = arith.constant 0 : i32
    %c0_i32_0 = arith.constant 0 : i32
    %c0_i32_1 = arith.constant 0 : i32
    return %c0_i32, %c0_i32_0 : i32, i32
  }
  func.func @transform_4(%arg0: i32, %arg1: i32) -> (i32, i32, i32) {
    %c0_i32 = arith.constant 0 : i32
    %c0_i32_0 = arith.constant 0 : i32
    %c0_i32_1 = arith.constant 0 : i32
    return %arg0, %c0_i32, %c0_i32_0 : i32, i32, i32
  }
}

module attributes {stable_mosaic.version = 11 : i64} {
  func.func @_conv_in_relu_kernel(%arg0: i32, %arg1: i32, %arg2: memref<1x4x1152xbf16, #tpu.memory_space<vmem>>, %arg3: memref<1152x512xbf16, #tpu.memory_space<vmem>>, %arg4: memref<1x512xf32, #tpu.memory_space<vmem>>, %arg5: memref<1x512xf32, #tpu.memory_space<vmem>>, %arg6: memref<1x4x512xf32, #tpu.memory_space<vmem>>, %arg7: memref<4x512xf32, #tpu.memory_space<vmem>>) attributes {dimension_semantics = [#tpu.dimension_semantics<parallel>, #tpu.dimension_semantics<arbitrary>], iteration_bounds = array<i64: 2, 4>, scalar_prefetch = 0 : i64, scratch_operands = 1 : i64, tpu.core_type = #tpu.core_type<tc>, window_params = [{transform_indices = @transform_0, window_bounds = array<i64: 1, 4, 1152>}, {transform_indices = @transform_1, window_bounds = array<i64: 1152, 512>}, {pipeline_mode = #tpu.pipeline_mode<synchronous>, transform_indices = @transform_2, window_bounds = array<i64: 1, 512>}, {pipeline_mode = #tpu.pipeline_mode<synchronous>, transform_indices = @transform_3, window_bounds = array<i64: 1, 512>}, {transform_indices = @transform_4, window_bounds = array<i64: 1, 4, 512>}]} {
    %c0_i32 = arith.constant 0 : i32
    %0 = arith.cmpi eq, %arg1, %c0_i32 : i32
    %1 = arith.extui %0 : i1 to i32
    %c0_i32_0 = arith.constant 0 : i32
    %2 = arith.cmpi ne, %1, %c0_i32_0 : i32
    scf.if %2 {
      %cst_10 = arith.constant 0.000000e+00 : f32
      %13 = vector.broadcast %cst_10 : f32 to vector<4x512xf32>
      %c0_11 = arith.constant 0 : index
      %c0_12 = arith.constant 0 : index
      %14 = vector.load %arg7[%c0_11, %c0_12] : memref<4x512xf32, #tpu.memory_space<vmem>>, vector<4x512xf32>
      tpu.vector_store %arg7[%c0_11, %c0_12], %13 {strides = array<i32>} : memref<4x512xf32, #tpu.memory_space<vmem>>, vector<4x512xf32>,
    } else {
    }
    %c0 = arith.constant 0 : index
    %c0_1 = arith.constant 0 : index
    %3 = vector.load %arg7[%c0, %c0_1] : memref<4x512xf32, #tpu.memory_space<vmem>>, vector<4x512xf32>
    %c0_2 = arith.constant 0 : index
    %c0_3 = arith.constant 0 : index
    %c0_4 = arith.constant 0 : index
    %4 = vector.load %arg2[%c0_2, %c0_3, %c0_4] : memref<1x4x1152xbf16, #tpu.memory_space<vmem>>, vector<1x4x1152xbf16>
    %5 = vector.shape_cast %4 : vector<1x4x1152xbf16> to vector<4x1152xbf16>
    %c0_5 = arith.constant 0 : index
    %c0_6 = arith.constant 0 : index
    %6 = vector.load %arg3[%c0_5, %c0_6] : memref<1152x512xbf16, #tpu.memory_space<vmem>>, vector<1152x512xbf16>
    %cst = arith.constant dense<0.000000e+00> : vector<4x512xf32>
    %7 = tpu.matmul %5, %6, %cst {dimension_numbers = #tpu.dot_dimension_numbers<[1], [0], [0], [1], [0, 0, 1, 1], [], []>} : vector<4x1152xbf16>, vector<1152x512xbf16>, vector<4x512xf32> -> vector<4x512xf32>
    %8 = arith.addf %3, %7 : vector<4x512xf32>
    %c0_7 = arith.constant 0 : index
    %c0_8 = arith.constant 0 : index
    %9 = vector.load %arg7[%c0_7, %c0_8] : memref<4x512xf32, #tpu.memory_space<vmem>>, vector<4x512xf32>
    tpu.vector_store %arg7[%c0_7, %c0_8], %8 {strides = array<i32>} : memref<4x512xf32, #tpu.memory_space<vmem>>, vector<4x512xf32>,
    %c3_i32 = arith.constant 3 : i32
    %10 = arith.cmpi eq, %arg1, %c3_i32 : i32
    %11 = arith.extui %10 : i1 to i32
    %c0_i32_9 = arith.constant 0 : i32
    %12 = arith.cmpi ne, %11, %c0_i32_9 : i32
    scf.if %12 {
      %c0_10 = arith.constant 0 : index
      %c0_11 = arith.constant 0 : index
      %13 = vector.load %arg7[%c0_10, %c0_11] : memref<4x512xf32, #tpu.memory_space<vmem>>, vector<4x512xf32>
      %cst_12 = arith.constant dense<0.000000e+00> : vector<512xf32>
      %14 = vector.multi_reduction <add>, %13, %cst_12 [0] : vector<4x512xf32> to vector<512xf32>
      %15 = vector.shape_cast %14 : vector<512xf32> to vector<1x512xf32>
      %cst_13 = arith.constant 4.000000e+00 : f32
      %16 = vector.broadcast %cst_13 : f32 to vector<1x512xf32>
      %17 = arith.divf %15, %16 : vector<1x512xf32>
      %18 = vector.broadcast %17 : vector<1x512xf32> to vector<4x512xf32>
      %19 = arith.subf %13, %18 : vector<4x512xf32>
      %20 = arith.mulf %19, %19 : vector<4x512xf32>
      %cst_14 = arith.constant dense<0.000000e+00> : vector<512xf32>
      %21 = vector.multi_reduction <add>, %20, %cst_14 [0] : vector<4x512xf32> to vector<512xf32>
      %22 = vector.shape_cast %21 : vector<512xf32> to vector<1x512xf32>
      %cst_15 = arith.constant 4.000000e+00 : f32
      %23 = vector.broadcast %cst_15 : f32 to vector<1x512xf32>
      %24 = arith.divf %22, %23 : vector<1x512xf32>
      %cst_16 = arith.constant 9.99999974E-6 : f32
      %25 = vector.broadcast %cst_16 : f32 to vector<1x512xf32>
      %26 = arith.addf %24, %25 : vector<1x512xf32>
      %27 = math.rsqrt %26 : vector<1x512xf32>
      %28 = vector.broadcast %27 : vector<1x512xf32> to vector<4x512xf32>
      %29 = arith.mulf %19, %28 : vector<4x512xf32>
      %c0_17 = arith.constant 0 : index
      %c0_18 = arith.constant 0 : index
      %30 = vector.load %arg4[%c0_17, %c0_18] : memref<1x512xf32, #tpu.memory_space<vmem>>, vector<1x512xf32>
      %31 = vector.broadcast %30 : vector<1x512xf32> to vector<4x512xf32>
      %32 = arith.mulf %29, %31 : vector<4x512xf32>
      %c0_19 = arith.constant 0 : index
      %c0_20 = arith.constant 0 : index
      %33 = vector.load %arg5[%c0_19, %c0_20] : memref<1x512xf32, #tpu.memory_space<vmem>>, vector<1x512xf32>
      %34 = vector.broadcast %33 : vector<1x512xf32> to vector<4x512xf32>
      %35 = arith.addf %32, %34 : vector<4x512xf32>
      %cst_21 = arith.constant 0.000000e+00 : f32
      %36 = vector.broadcast %cst_21 : f32 to vector<4x512xf32>
      %37 = arith.maximumf %35, %36 : vector<4x512xf32>
      %38 = vector.shape_cast %37 : vector<4x512xf32> to vector<1x4x512xf32>
      %c0_22 = arith.constant 0 : index
      %c0_23 = arith.constant 0 : index
      %c0_24 = arith.constant 0 : index
      %39 = vector.load %arg6[%c0_22, %c0_23, %c0_24] : memref<1x4x512xf32, #tpu.memory_space<vmem>>, vector<1x4x512xf32>
      tpu.vector_store %arg6[%c0_22, %c0_23, %c0_24], %38 {strides = array<i32>} : memref<1x4x512xf32, #tpu.memory_space<vmem>>, vector<1x4x512xf32>,
    } else {
    }
    return
  }
  func.func @transform_0(%arg0: i32, %arg1: i32) -> (i32, i32, i32) {
    %c0_i32 = arith.constant 0 : i32
    %c0_i32_0 = arith.constant 0 : i32
    return %arg0, %c0_i32, %arg1 : i32, i32, i32
  }
  func.func @transform_1(%arg0: i32, %arg1: i32) -> (i32, i32) {
    %c0_i32 = arith.constant 0 : i32
    %c0_i32_0 = arith.constant 0 : i32
    return %arg1, %c0_i32 : i32, i32
  }
  func.func @transform_2(%arg0: i32, %arg1: i32) -> (i32, i32) {
    %c0_i32 = arith.constant 0 : i32
    %c0_i32_0 = arith.constant 0 : i32
    %c0_i32_1 = arith.constant 0 : i32
    return %c0_i32, %c0_i32_0 : i32, i32
  }
  func.func @transform_3(%arg0: i32, %arg1: i32) -> (i32, i32) {
    %c0_i32 = arith.constant 0 : i32
    %c0_i32_0 = arith.constant 0 : i32
    %c0_i32_1 = arith.constant 0 : i32
    return %c0_i32, %c0_i32_0 : i32, i32
  }
  func.func @transform_4(%arg0: i32, %arg1: i32) -> (i32, i32, i32) {
    %c0_i32 = arith.constant 0 : i32
    %c0_i32_0 = arith.constant 0 : i32
    %c0_i32_1 = arith.constant 0 : i32
    return %arg0, %c0_i32, %c0_i32_0 : i32, i32, i32
  }
}

module attributes {stable_mosaic.version = 11 : i64} {
  func.func @_head_kernel(%arg0: i32, %arg1: memref<1x4x512xf32, #tpu.memory_space<vmem>>, %arg2: memref<512x10xbf16, #tpu.memory_space<vmem>>, %arg3: memref<1x10xf32, #tpu.memory_space<vmem>>, %arg4: memref<1x10xf32, #tpu.memory_space<vmem>>, %arg5: memref<1x1x10xf32, #tpu.memory_space<vmem>>) attributes {dimension_semantics = [#tpu.dimension_semantics<parallel>], iteration_bounds = array<i64: 2>, scalar_prefetch = 0 : i64, scratch_operands = 0 : i64, tpu.core_type = #tpu.core_type<tc>, window_params = [{transform_indices = @transform_0, window_bounds = array<i64: 1, 4, 512>}, {pipeline_mode = #tpu.pipeline_mode<synchronous>, transform_indices = @transform_1, window_bounds = array<i64: 512, 10>}, {pipeline_mode = #tpu.pipeline_mode<synchronous>, transform_indices = @transform_2, window_bounds = array<i64: 1, 10>}, {pipeline_mode = #tpu.pipeline_mode<synchronous>, transform_indices = @transform_3, window_bounds = array<i64: 1, 10>}, {transform_indices = @transform_4, window_bounds = array<i64: 1, 1, 10>}]} {
    %c0 = arith.constant 0 : index
    %c0_0 = arith.constant 0 : index
    %c0_1 = arith.constant 0 : index
    %0 = vector.load %arg1[%c0, %c0_0, %c0_1] : memref<1x4x512xf32, #tpu.memory_space<vmem>>, vector<1x4x512xf32>
    %1 = vector.shape_cast %0 : vector<1x4x512xf32> to vector<4x512xf32>
    %cst = arith.constant dense<0.000000e+00> : vector<512xf32>
    %2 = vector.multi_reduction <add>, %1, %cst [0] : vector<4x512xf32> to vector<512xf32>
    %3 = vector.shape_cast %2 : vector<512xf32> to vector<1x512xf32>
    %cst_2 = arith.constant 4.000000e+00 : f32
    %4 = vector.broadcast %cst_2 : f32 to vector<1x512xf32>
    %5 = arith.divf %3, %4 : vector<1x512xf32>
    %6 = arith.truncf %5 : vector<1x512xf32> to vector<1x512xbf16>
    %c0_3 = arith.constant 0 : index
    %c0_4 = arith.constant 0 : index
    %7 = vector.load %arg2[%c0_3, %c0_4] : memref<512x10xbf16, #tpu.memory_space<vmem>>, vector<512x10xbf16>
    %cst_5 = arith.constant dense<0.000000e+00> : vector<1x10xf32>
    %8 = tpu.matmul %6, %7, %cst_5 {dimension_numbers = #tpu.dot_dimension_numbers<[1], [0], [0], [1], [0, 0, 1, 1], [], []>} : vector<1x512xbf16>, vector<512x10xbf16>, vector<1x10xf32> -> vector<1x10xf32>
    %cst_6 = arith.constant dense<0.000000e+00> : vector<1xf32>
    %9 = vector.multi_reduction <add>, %8, %cst_6 [1] : vector<1x10xf32> to vector<1xf32>
    %10 = vector.shape_cast %9 : vector<1xf32> to vector<1x1xf32>
    %cst_7 = arith.constant 1.000000e+01 : f32
    %11 = vector.broadcast %cst_7 : f32 to vector<1x1xf32>
    %12 = arith.divf %10, %11 : vector<1x1xf32>
    %13 = vector.broadcast %12 : vector<1x1xf32> to vector<1x10xf32>
    %14 = arith.subf %8, %13 : vector<1x10xf32>
    %15 = arith.mulf %14, %14 : vector<1x10xf32>
    %cst_8 = arith.constant dense<0.000000e+00> : vector<1xf32>
    %16 = vector.multi_reduction <add>, %15, %cst_8 [1] : vector<1x10xf32> to vector<1xf32>
    %17 = vector.shape_cast %16 : vector<1xf32> to vector<1x1xf32>
    %cst_9 = arith.constant 1.000000e+01 : f32
    %18 = vector.broadcast %cst_9 : f32 to vector<1x1xf32>
    %19 = arith.divf %17, %18 : vector<1x1xf32>
    %cst_10 = arith.constant 9.99999974E-6 : f32
    %20 = vector.broadcast %cst_10 : f32 to vector<1x1xf32>
    %21 = arith.addf %19, %20 : vector<1x1xf32>
    %22 = math.rsqrt %21 : vector<1x1xf32>
    %23 = vector.broadcast %22 : vector<1x1xf32> to vector<1x10xf32>
    %24 = arith.mulf %14, %23 : vector<1x10xf32>
    %c0_11 = arith.constant 0 : index
    %c0_12 = arith.constant 0 : index
    %25 = vector.load %arg3[%c0_11, %c0_12] : memref<1x10xf32, #tpu.memory_space<vmem>>, vector<1x10xf32>
    %26 = arith.mulf %24, %25 : vector<1x10xf32>
    %c0_13 = arith.constant 0 : index
    %c0_14 = arith.constant 0 : index
    %27 = vector.load %arg4[%c0_13, %c0_14] : memref<1x10xf32, #tpu.memory_space<vmem>>, vector<1x10xf32>
    %28 = arith.addf %26, %27 : vector<1x10xf32>
    %29 = vector.shape_cast %28 : vector<1x10xf32> to vector<1x1x10xf32>
    %c0_15 = arith.constant 0 : index
    %c0_16 = arith.constant 0 : index
    %c0_17 = arith.constant 0 : index
    %30 = vector.load %arg5[%c0_15, %c0_16, %c0_17] : memref<1x1x10xf32, #tpu.memory_space<vmem>>, vector<1x1x10xf32>
    tpu.vector_store %arg5[%c0_15, %c0_16, %c0_17], %29 {strides = array<i32>} : memref<1x1x10xf32, #tpu.memory_space<vmem>>, vector<1x1x10xf32>,
    return
  }
  func.func @transform_0(%arg0: i32) -> (i32, i32, i32) {
    %c0_i32 = arith.constant 0 : i32
    %c0_i32_0 = arith.constant 0 : i32
    %c0_i32_1 = arith.constant 0 : i32
    return %arg0, %c0_i32, %c0_i32_0 : i32, i32, i32
  }
  func.func @transform_1(%arg0: i32) -> (i32, i32) {
    %c0_i32 = arith.constant 0 : i32
    %c0_i32_0 = arith.constant 0 : i32
    %c0_i32_1 = arith.constant 0 : i32
    return %c0_i32, %c0_i32_0 : i32, i32
  }
  func.func @transform_2(%arg0: i32) -> (i32, i32) {
    %c0_i32 = arith.constant 0 : i32
    %c0_i32_0 = arith.constant 0 : i32
    %c0_i32_1 = arith.constant 0 : i32
    return %c0_i32, %c0_i32_0 : i32, i32
  }
  func.func @transform_3(%arg0: i32) -> (i32, i32) {
    %c0_i32 = arith.constant 0 : i32
    %c0_i32_0 = arith.constant 0 : i32
    %c0_i32_1 = arith.constant 0 : i32
    return %c0_i32, %c0_i32_0 : i32, i32
  }
  func.func @transform_4(%arg0: i32) -> (i32, i32, i32) {
    %c0_i32 = arith.constant 0 : i32
    %c0_i32_0 = arith.constant 0 : i32
    %c0_i32_1 = arith.constant 0 : i32
    return %arg0, %c0_i32, %c0_i32_0 : i32, i32, i32
  }
}

</mosaic_0001>

<bundles_post_ra>
// kernel: forward.14
= control target key start
LH: loop header
LB: loop body
LE: loop exit
PB: predicated region body
PF: predicated region fallthrough
CT: control target
= control target key end

     0   :  { %9 = vsyncpa [#allocation4], 0  ;;  %s2227_s0 = inlined_call_operand.vmem [shape: bf16[2,256,27], index: 0, kind: input, shape index: {}]   ;;  %s2228_s1 = inlined_call_operand.vmem [shape: bf16[27,64], index: 1, kind: input, shape index: {}]   ;;  %s2229_s2 = inlined_call_operand.hbm [shape: f32[1,64], index: 2, kind: input, shape index: {}]   ;;  %s2230_s3 = inlined_call_operand.hbm [shape: f32[1,64], index: 3, kind: input, shape index: {}]   ;;  %s2231_s4 = inlined_call_operand.vmem [shape: f32[2,256,64], index: 4, kind: output, shape index: {}]  }
   0x1   :  { %10 = vsyncpa [#allocation6], 0  ;;  %s1563_s15 = smov 0   ;;  %s1565_s16 = smov 0  }
   0x2   :  { %s1567_s17 = smov 0  }
   0x3 LB: > { %s1271_s18 = sadd.s32 4294967295, %s1532_s17   ;;  %s28_s19 = sadd.s32 1, %s1528_s16  ;;  %s1532_s17 = sphi %s1567_s17, %s16_s17   ;;  %s1528_s16 = sphi %s1565_s16, %s2239_s16   ;;  %s1524_s15 = sphi %s1563_s15, %s2238_s15  }
   0x4   : > { %p30_p0 = scmp.ge.s32.totalorder %s28_s19, 2  ;;  %p1273_p1 = scmp.ge.s32.totalorder %s1532_s17, 1 }
   0x5   : > { %p155_p2 = scmp.lt.s32.totalorder %s1532_s17, 3  ;;  %p1588_p4 = scmp.eq.s32.totalorder %s1271_s18, 0 }
   0x6   : > { %s2241_s19 = smov (%p30_p0, %s28_s19), 0  ;;  %s1534_s22 = smov [#allocation3]  }
   0x7   : > { %p1584_p3 = pnand %p1273_p1, %p155_p2  ;;  %s177_s23 = sshll.u32 %s1534_s22, 4  ;;  %s178_s23 = int_to_ptr.vmem [resolvable:$true] %s177_s23 }
   0x8   : > { %s2235_s21 = scalar_select %p1588_p4, 1, 0 }
   0x9   : > { %p1391_p5 = pneg %p1584_p3  ;;  %s1535_s24 = smov [#allocation5]  }
   0xa   : > { %s188_s25 = sshll.u32 %s1535_s24, 4  ;;  %s1461_s27 = scalar_lea.vmem %s178_s23, 16  ;;  %s189_s25 = int_to_ptr.vmem [resolvable:$true] %s188_s25 }
   0xb   : > { %p1596_p6 = pnand %p1588_p4, %p1391_p5  ;;  %p1462_p8 = scmp.ne.s32.totalorder %s178_s23, %s1461_s27 }
   0xc   : > { %s1468_s28 = scalar_lea.vmem %s178_s23, 32  ;;  %p1469_p11 = scmp.lt.s32.totalorder %s178_s23, %s178_s23 }
   0xd   : > { %p1452_p7 = pneg %p1596_p6  ;;  %p1470_p12 = scmp.lt.s32.totalorder %s1468_s28, %s1461_s27 }
   0xf   : > { %p1464_p9 = pnand %p1462_p8, %p1452_p7  ;;  %p1471_p13 = por %p1470_p12, %p1469_p11 }
  0x11   : > { %p1465_p10 = pneg %p1464_p9 }
  0x13   : > { %p1472_p0 = pnand %p1471_p13, %p1465_p10 }
  0x15   : > { %1475 = shalt.err (!%p1472_p0)
}
  0x16   : > { %1394 = dma.hbm_to_vmem [thread:$0]  (!%p1596_p6), %s2229_s2, 16, %s178_s23, [#allocation4]  }
  0x17   : > { %s1487_s5 = scalar_lea.vmem %s189_s25, 16  ;;  %s1494_s6 = scalar_lea.vmem %s189_s25, 32 }
  0x18   : > { %p1488_p1 = scmp.ne.s32.totalorder %s189_s25, %s1487_s5  ;;  %p1495_p8 = scmp.lt.s32.totalorder %s189_s25, %s189_s25 }
  0x19   : > { %p1496_p9 = scmp.lt.s32.totalorder %s1494_s6, %s1487_s5 }
  0x1a   : > { %p1490_p2 = pnand %p1488_p1, %p1452_p7 }
  0x1b   : > { %p1497_p4 = por %p1496_p9, %p1495_p8 }
  0x1c   : > { %p1491_p5 = pneg %p1490_p2 }
  0x1e   : > { %p1498_p11 = pnand %p1497_p4, %p1491_p5 }
  0x20   : > { %1501 = shalt.err (!%p1498_p11)
}
  0x21   : > { %1397 = dma.hbm_to_vmem [thread:$0]  (!%p1596_p6), %s2230_s3, 16, %s189_s25, [#allocation6]  }
  0x22   : > { %212 = sbr.rel (%p1584_p3) target bundleno = 481 (0x1e1), region = 36  ;;  %p2237_p10 = scmp.ne.s32.totalorder (!%p1584_p3), %s2235_s21, 0 }
  0x27   : > { %1515 = dma.done.wait (%p2237_p10), [#allocation4], 16  }
  0x28   : > { %1517 = vsyncadd (%p2237_p10), [#allocation4], 4294967280 }
  0x29   : > { %1519 = dma.done.wait (%p2237_p10), [#allocation6], 16  }
  0x2a   : > { %1521 = vsyncadd (%p2237_p10), [#allocation6], 4294967280  ;;  %vm515_vm0 = vcmask 1044480   ;;  %p250_p4 = scmp.lt.s32.totalorder %s1524_s15, 1  ;;  %vm274_vm1 = vcmask 523264   ;;  %v1536_v0 = vmov 0.0  }
  0x2b   : > { %277 = vst.msk [vmem:[#allocation2 + $0x10] sm:$0xff] %vm274_vm1, %v1536_v0  ;;  %275 = vst.msk [vmem:[#allocation2] sm:$0xff] %vm274_vm1, %v1536_v0  ;;  %vm516_vm2 = vcmask 1045504   ;;  %v1537_v1 = vmov 65535   ;;  %v1430_v4 = vld [vmem:[%s2228_s1 + $0x8] sm:$0x3f]  }
  0x2c   : > { %s2243_s15 = smov (!%p250_p4, %s1524_s15), 1  ;;  %276 = vst.msk [vmem:[#allocation2 + $0x8] sm:$0xff] %vm274_vm1, %v1536_v0  ;;  %278 = vst.msk [vmem:[#allocation2 + $0x18] sm:$0xff] %vm274_vm1, %v1536_v0  ;;  %v517_v2 = vsel %vm515_vm0, 4294967295, %v1537_v1  ;;  %v1431_v5 = vld [vmem:[%s2228_s1] sm:$0xff]   ;;  %vm466_vm3 = vcmask 220160  }
  0x2d   : > { %279 = vst.msk [vmem:[#allocation2 + $0x20] sm:$0xff] %vm274_vm1, %v1536_v0  ;;  %280 = vst.msk [vmem:[#allocation2 + $0x28] sm:$0xff] %vm274_vm1, %v1536_v0  ;;  %s1323_s9 = sshll.u32 %s2243_s15, 7  ;;  %v518_v3 = vsel %vm516_vm2, %v517_v2, 0  ;;  %s1324_s21 = sshll.u32 %s2243_s15, 8 }
  0x2e   : > { %281 = vst.msk [vmem:[#allocation2 + $0x30] sm:$0xff] %vm274_vm1, %v1536_v0  ;;  %282 = vst.msk [vmem:[#allocation2 + $0x38] sm:$0xff] %vm274_vm1, %v1536_v0  ;;  %s1669_s12 = scalar_lea.vmem %s2227_s0, %s1323_s9  ;;  %v520_v6 = vand.u32 %v1430_v4, %v518_v3  ;;  %s2132_s23 = scalar_lea.vmem %s2231_s4, %s1324_s21 }
  0x2f   : > { %283 = vst.msk [vmem:[#allocation2 + $0x40] sm:$0xff] %vm274_vm1, %v1536_v0  ;;  %284 = vst.msk [vmem:[#allocation2 + $0x48] sm:$0xff] %vm274_vm1, %v1536_v0  ;;  %v1432_v7 = vld [vmem:[%s1669_s12] sm:$0xff]   ;;  %v1433_v8 = vld [vmem:[%s1669_s12 + $0x8] sm:$0xff]  }
  0x30   : > { %285 = vst.msk [vmem:[#allocation2 + $0x50] sm:$0xff] %vm274_vm1, %v1536_v0  ;;  %286 = vst.msk [vmem:[#allocation2 + $0x58] sm:$0xff] %vm274_vm1, %v1536_v0  ;;  %1343 = vmatprep.subr.bf16.mxu0 %v520_v6  ;;  %1347 = vmatprep.mubr.msk.bf16.mxu0 %vm466_vm3, %v1432_v7  ;;  %v1434_v9 = vld [vmem:[%s1669_s12 + $0x10] sm:$0xff]   ;;  %v1440_v10 = vld [vmem:[%s1669_s12 + $0x40] sm:$0xff]  }
  0x31   : > { %287 = vst.msk [vmem:[#allocation2 + $0x60] sm:$0xff] %vm274_vm1, %v1536_v0  ;;  %288 = vst.msk [vmem:[#allocation2 + $0x68] sm:$0xff] %vm274_vm1, %v1536_v0  ;;  %1344 = vmatpush3.bf16.msra.mxu0 %v520_v6  ;;  %1379 = vmatprep.subr.bf16.mxu1 %v520_v6  ;;  %v1441_v11 = vld [vmem:[%s1669_s12 + $0x48] sm:$0xff]   ;;  %v1442_v12 = vld [vmem:[%s1669_s12 + $0x50] sm:$0xff]  }
  0x32   : > { %289 = vst.msk [vmem:[#allocation2 + $0x70] sm:$0xff] %vm274_vm1, %v1536_v0  ;;  %290 = vst.msk [vmem:[#allocation2 + $0x78] sm:$0xff] %vm274_vm1, %v1536_v0  ;;  %1345 = vmatprep.subr.bf16.mxu0 %v1431_v5  ;;  %1381 = vmatpush3.bf16.msra.mxu1 %v520_v6  ;;  %v1435_v13 = vld [vmem:[%s1669_s12 + $0x18] sm:$0xff]   ;;  %v1436_v14 = vld [vmem:[%s1669_s12 + $0x20] sm:$0xff]  }
  0x33   : > { %291 = vst.msk [vmem:[#allocation2 + $0x80] sm:$0xff] %vm274_vm1, %v1536_v0  ;;  %292 = vst.msk [vmem:[#allocation2 + $0x88] sm:$0xff] %vm274_vm1, %v1536_v0  ;;  %1380 = vmatprep.subr.bf16.mxu1 %v1431_v5  ;;  %1363 = vmatprep.mubr.msk.bf16.mxu1 %vm466_vm3, %v1440_v10  ;;  %v1443_v15 = vld [vmem:[%s1669_s12 + $0x58] sm:$0xff]   ;;  %v1444_v16 = vld [vmem:[%s1669_s12 + $0x60] sm:$0xff]  }
  0x34   : > { %293 = vst.msk [vmem:[#allocation2 + $0x90] sm:$0xff] %vm274_vm1, %v1536_v0  ;;  %294 = vst.msk [vmem:[#allocation2 + $0x98] sm:$0xff] %vm274_vm1, %v1536_v0  ;;  %v1437_v17 = vld [vmem:[%s1669_s12 + $0x28] sm:$0xff]   ;;  %v1438_v18 = vld [vmem:[%s1669_s12 + $0x30] sm:$0xff]  }
  0x35   : > { %295 = vst.msk [vmem:[#allocation2 + $0xa0] sm:$0xff] %vm274_vm1, %v1536_v0  ;;  %296 = vst.msk [vmem:[#allocation2 + $0xa8] sm:$0xff] %vm274_vm1, %v1536_v0  ;;  %1346 = vmatpush3.bf16.msra.mxu0 %v1431_v5  ;;  %v1445_v19 = vld [vmem:[%s1669_s12 + $0x68] sm:$0xff]   ;;  %v1446_v20 = vld [vmem:[%s1669_s12 + $0x70] sm:$0xff]  }
  0x36   : > { %297 = vst.msk [vmem:[#allocation2 + $0xb0] sm:$0xff] %vm274_vm1, %v1536_v0  ;;  %298 = vst.msk [vmem:[#allocation2 + $0xb8] sm:$0xff] %vm274_vm1, %v1536_v0  ;;  %1382 = vmatpush3.bf16.msra.mxu1 %v1431_v5  ;;  %v1439_v21 = vld [vmem:[%s1669_s12 + $0x38] sm:$0xff]   ;;  %v309_v23 = vld [vmem:[#allocation2 + $0x10] sm:$0xff] }
  0x37   : > { %299 = vst.msk [vmem:[#allocation2 + $0xc0] sm:$0xff] %vm274_vm1, %v1536_v0  ;;  %300 = vst.msk [vmem:[#allocation2 + $0xc8] sm:$0xff] %vm274_vm1, %v1536_v0  ;;  %v1447_v22 = vld [vmem:[%s1669_s12 + $0x78] sm:$0xff]   ;;  %v307_v26 = vld [vmem:[#allocation2] sm:$0xff] }
  0x38   : > { %301 = vst.msk [vmem:[#allocation2 + $0xd0] sm:$0xff] %vm274_vm1, %v1536_v0  ;;  %302 = vst.msk [vmem:[#allocation2 + $0xd8] sm:$0xff] %vm274_vm1, %v1536_v0  ;;  %1348 = vmatmul.mubr.msk.bf16.vlgmr.msra.gmra.mxu0 %vm466_vm3, %v1433_v8  ;;  %v310_v31 = vld [vmem:[#allocation2 + $0x18] sm:$0xff]  ;;  %v308_v37 = vld [vmem:[#allocation2 + $0x8] sm:$0xff] }
  0x39   : > { %303 = vst.msk [vmem:[#allocation2 + $0xe0] sm:$0xff] %vm274_vm1, %v1536_v0  ;;  %304 = vst.msk [vmem:[#allocation2 + $0xe8] sm:$0xff] %vm274_vm1, %v1536_v0  ;;  %1351 = vmatprep.mubr.msk.bf16.mxu0 %vm466_vm3, %v1434_v9  ;;  %1364 = vmatmul.mubr.msk.bf16.vlgmr.msra.gmra.mxu1 %vm466_vm3, %v1441_v11  ;;  %v313_v43 = vld [vmem:[#allocation2 + $0x30] sm:$0xff]  ;;  %v311_v49 = vld [vmem:[#allocation2 + $0x20] sm:$0xff] }
  0x3a   : > { %305 = vst.msk [vmem:[#allocation2 + $0xf0] sm:$0xff] %vm274_vm1, %v1536_v0  ;;  %306 = vst.msk [vmem:[#allocation2 + $0xf8] sm:$0xff] %vm274_vm1, %v1536_v0  ;;  %1367 = vmatprep.mubr.msk.bf16.mxu1 %vm466_vm3, %v1442_v12  ;;  %v323_v29 = vld [vmem:[#allocation2 + $0x80] sm:$0xff]  ;;  %v324_v41 = vld [vmem:[#allocation2 + $0x88] sm:$0xff] }
  0x3b   : > { %v325_v24 = vld [vmem:[#allocation2 + $0x90] sm:$0xff]  ;;  %v326_v35 = vld [vmem:[#allocation2 + $0x98] sm:$0xff]  ;;  %v312_v61 = vld [vmem:[#allocation2 + $0x28] sm:$0xff] }
  0x3c   : > { %v327_v53 = vld [vmem:[#allocation2 + $0xa0] sm:$0xff]  ;;  %v314_v55 = vld [vmem:[#allocation2 + $0x38] sm:$0xff]  ;;  %v328_v1 = vld [vmem:[#allocation2 + $0xa8] sm:$0xff] }
  0x3d   : > { %v329_v47 = vld [vmem:[#allocation2 + $0xb0] sm:$0xff]  ;;  %v330_v59 = vld [vmem:[#allocation2 + $0xb8] sm:$0xff]  ;;  %v315_v12 = vld [vmem:[#allocation2 + $0x40] sm:$0xff] }
  0x3e   : > { %v317_v4 = vld [vmem:[#allocation2 + $0x50] sm:$0xff] }
  0x3f   : > { %v333_v8 = vld [vmem:[#allocation2 + $0xd0] sm:$0xff] }
  0x40   : > { %1352 = vmatmul.mubr.msk.bf16.gmra.mxu0 %vm466_vm3, %v1435_v13 }
  0x41   : > { %1355 = vmatprep.mubr.msk.bf16.mxu0 %vm466_vm3, %v1436_v14  ;;  %1368 = vmatmul.mubr.msk.bf16.gmra.mxu1 %vm466_vm3, %v1443_v15 }
  0x42   : > { %1371 = vmatprep.mubr.msk.bf16.mxu1 %vm466_vm3, %v1444_v16 }
  0x48   : > { %1356 = vmatmul.mubr.msk.bf16.gmra.mxu0 %vm466_vm3, %v1437_v17 }
  0x49   : > { %1359 = vmatprep.mubr.msk.bf16.mxu0 %vm466_vm3, %v1438_v18  ;;  %1372 = vmatmul.mubr.msk.bf16.gmra.mxu1 %vm466_vm3, %v1445_v19  ;;  %v331_v18 = vld [vmem:[#allocation2 + $0xc0] sm:$0xff] }
  0x4a   : > { %1375 = vmatprep.mubr.msk.bf16.mxu1 %vm466_vm3, %v1446_v20 }
  0x50   : > { %1360 = vmatmul.mubr.msk.bf16.gmra.mxu0 %vm466_vm3, %v1439_v21 }
  0x51   : > { %1376 = vmatmul.mubr.msk.bf16.gmra.mxu1 %vm466_vm3, %v1447_v22  ;;  %v318_v22 = vld [vmem:[#allocation2 + $0x58] sm:$0xff] }
  0xf8   : > { %v1349_v25 = vpop.f32.mrf.mxu0 }
  0xf9   : > { %v685_v27 = vadd.f32 %v1349_v25, %v309_v23  ;;  %v1365_v28 = vpop.f32.mrf.mxu1 }
  0xfa   : > { %v556_v30 = vpop.f32.mrf.mxu0  ;;  %v701_v32 = vadd.f32 %v1365_v28, %v325_v24 }
  0xfb   : > { %718 = vst.msk [vmem:[#allocation2 + $0x10] sm:$0xff] %vm274_vm1, %v685_v27  ;;  %v683_v33 = vadd.f32 %v556_v30, %v307_v26  ;;  %v620_v34 = vpop.f32.mrf.mxu1  ;;  %v334_v27 = vld [vmem:[#allocation2 + $0xd8] sm:$0xff] }
  0xfc   : > { %v1350_v36 = vpop.f32.mrf.mxu0  ;;  %734 = vst.msk [vmem:[#allocation2 + $0x90] sm:$0xff] %vm274_vm1, %v701_v32  ;;  %v699_v38 = vadd.f32 %v620_v34, %v323_v29 }
  0xfd   : > { %716 = vst.msk [vmem:[#allocation2] sm:$0xff] %vm274_vm1, %v683_v33  ;;  %v686_v39 = vadd.f32 %v1350_v36, %v310_v31  ;;  %v1366_v40 = vpop.f32.mrf.mxu1  ;;  %v316_v31 = vld [vmem:[#allocation2 + $0x48] sm:$0xff] }
  0xfe   : > { %v559_v42 = vpop.f32.mrf.mxu0  ;;  %732 = vst.msk [vmem:[#allocation2 + $0x80] sm:$0xff] %vm274_vm1, %v699_v38  ;;  %v702_v44 = vadd.f32 %v1366_v40, %v326_v35  ;;  %v332_v36 = vld [vmem:[#allocation2 + $0xc8] sm:$0xff] }
  0xff   : > { %719 = vst.msk [vmem:[#allocation2 + $0x18] sm:$0xff] %vm274_vm1, %v686_v39  ;;  %v684_v45 = vadd.f32 %v559_v42, %v308_v37  ;;  %v623_v46 = vpop.f32.mrf.mxu1  ;;  %v321_v39 = vld [vmem:[#allocation2 + $0x70] sm:$0xff] }
 0x100   : > { %v1353_v48 = vpop.f32.mrf.mxu0  ;;  %735 = vst.msk [vmem:[#allocation2 + $0x98] sm:$0xff] %vm274_vm1, %v702_v44  ;;  %v700_v50 = vadd.f32 %v623_v46, %v324_v41  ;;  %v337_v44 = vld [vmem:[#allocation2 + $0xf0] sm:$0xff] }
 0x101   : > { %717 = vst.msk [vmem:[#allocation2 + $0x8] sm:$0xff] %vm274_vm1, %v684_v45  ;;  %v689_v51 = vadd.f32 %v1353_v48, %v313_v43  ;;  %v1369_v52 = vpop.f32.mrf.mxu1 }
 0x102   : > { %v572_v54 = vpop.f32.mrf.mxu0  ;;  %733 = vst.msk [vmem:[#allocation2 + $0x88] sm:$0xff] %vm274_vm1, %v700_v50  ;;  %v705_v56 = vadd.f32 %v1369_v52, %v329_v47  ;;  %v1724_v9 = vld [vmem:[#allocation2 + $0x10] sm:$0xff] }
 0x103   : > { %722 = vst.msk [vmem:[#allocation2 + $0x30] sm:$0xff] %vm274_vm1, %v689_v51  ;;  %v687_v57 = vadd.f32 %v572_v54, %v311_v49  ;;  %v636_v58 = vpop.f32.mrf.mxu1  ;;  %v786_v24 = vsel %vm274_vm1, %v1724_v9, 0.0  ;;  %v319_v49 = vld [vmem:[#allocation2 + $0x60] sm:$0xff] }
 0x104   : > { %v1354_v60 = vpop.f32.mrf.mxu0  ;;  %738 = vst.msk [vmem:[#allocation2 + $0xb0] sm:$0xff] %vm274_vm1, %v705_v56  ;;  %v703_v62 = vadd.f32 %v636_v58, %v327_v53  ;;  %v1720_v2 = vld [vmem:[#allocation2] sm:$0xff]  ;;  %v322_v58 = vld [vmem:[#allocation2 + $0x78] sm:$0xff] }
 0x105   : > { %720 = vst.msk [vmem:[#allocation2 + $0x20] sm:$0xff] %vm274_vm1, %v687_v57  ;;  %v690_v63 = vadd.f32 %v1354_v60, %v314_v55  ;;  %v1370_v0 = vpop.f32.mrf.mxu1  ;;  %v783_v14 = vsel %vm274_vm1, %v1720_v2, 0.0  ;;  %v335_v54 = vld [vmem:[#allocation2 + $0xe0] sm:$0xff] }
 0x106   : > { %v575_v3 = vpop.f32.mrf.mxu0  ;;  %736 = vst.msk [vmem:[#allocation2 + $0xa0] sm:$0xff] %vm274_vm1, %v703_v62  ;;  %v706_v5 = vadd.f32 %v1370_v0, %v330_v59  ;;  %v1734_v19 = vld [vmem:[#allocation2 + $0x18] sm:$0xff] }
 0x107   : > { %723 = vst.msk [vmem:[#allocation2 + $0x38] sm:$0xff] %vm274_vm1, %v690_v63  ;;  %v688_v6 = vadd.f32 %v575_v3, %v312_v61  ;;  %v639_v7 = vpop.f32.mrf.mxu1  ;;  %v788_v33 = vsel %vm274_vm1, %v1734_v19, 0.0  ;;  %v338_v63 = vld [vmem:[#allocation2 + $0xf8] sm:$0xff] }
 0x108   : > { %v1726_v10 = vld [vmem:[#allocation2 + $0x8] sm:$0xff]  ;;  %v1357_v11 = vpop.f32.mrf.mxu0  ;;  %739 = vst.msk [vmem:[#allocation2 + $0xb8] sm:$0xff] %vm274_vm1, %v706_v5  ;;  %v704_v13 = vadd.f32 %v639_v7, %v328_v1 }
 0x109   : > { %v784_v15 = vsel %vm274_vm1, %v1726_v10, 0.0  ;;  %721 = vst.msk [vmem:[#allocation2 + $0x28] sm:$0xff] %vm274_vm1, %v688_v6  ;;  %v693_v16 = vadd.f32 %v1357_v11, %v317_v4  ;;  %v1373_v17 = vpop.f32.mrf.mxu1  ;;  %v320_v4 = vld [vmem:[#allocation2 + $0x68] sm:$0xff] }
 0x10a   : > { %v785_v20 = vadd.f32 %v784_v15, %v783_v14  ;;  %v588_v21 = vpop.f32.mrf.mxu0  ;;  %737 = vst.msk [vmem:[#allocation2 + $0xa8] sm:$0xff] %vm274_vm1, %v704_v13  ;;  %v709_v23 = vadd.f32 %v1373_v17, %v333_v8  ;;  %v1750_v45 = vld [vmem:[#allocation2 + $0x30] sm:$0xff]  ;;  %v336_v11 = vld [vmem:[#allocation2 + $0xe8] sm:$0xff] }
 0x10b   : > { %726 = vst.msk [vmem:[#allocation2 + $0x50] sm:$0xff] %vm274_vm1, %v693_v16  ;;  %v691_v25 = vadd.f32 %v588_v21, %v315_v12  ;;  %v652_v26 = vpop.f32.mrf.mxu1  ;;  %v794_v60 = vsel %vm274_vm1, %v1750_v45, 0.0 }
 0x10c   : > { %v787_v28 = vadd.f32 %v786_v24, %v785_v20  ;;  %v1740_v29 = vld [vmem:[#allocation2 + $0x20] sm:$0xff]  ;;  %v1358_v30 = vpop.f32.mrf.mxu0  ;;  %742 = vst.msk [vmem:[#allocation2 + $0xd0] sm:$0xff] %vm274_vm1, %v709_v23  ;;  %v707_v32 = vadd.f32 %v652_v26, %v331_v18 }
 0x10d   : > { %724 = vst.msk [vmem:[#allocation2 + $0x40] sm:$0xff] %vm274_vm1, %v691_v25  ;;  %v694_v34 = vadd.f32 %v1358_v30, %v318_v22  ;;  %v1374_v35 = vpop.f32.mrf.mxu1  ;;  %v790_v41 = vsel %vm274_vm1, %v1740_v29, 0.0 }
 0x10e   : > { %v789_v37 = vadd.f32 %v788_v33, %v787_v28  ;;  %v591_v38 = vpop.f32.mrf.mxu0  ;;  %740 = vst.msk [vmem:[#allocation2 + $0xc0] sm:$0xff] %vm274_vm1, %v707_v32  ;;  %v710_v40 = vadd.f32 %v1374_v35, %v334_v27  ;;  %v1758_v55 = vld [vmem:[#allocation2 + $0x38] sm:$0xff] }
 0x10f   : > { %727 = vst.msk [vmem:[#allocation2 + $0x58] sm:$0xff] %vm274_vm1, %v694_v34  ;;  %v692_v42 = vadd.f32 %v591_v38, %v316_v31  ;;  %v655_v43 = vpop.f32.mrf.mxu1  ;;  %v796_v6 = vsel %vm274_vm1, %v1758_v55, 0.0 }
 0x110   : > { %v791_v46 = vadd.f32 %v790_v41, %v789_v37  ;;  %v1752_v47 = vld [vmem:[#allocation2 + $0x28] sm:$0xff]  ;;  %v1361_v48 = vpop.f32.mrf.mxu0  ;;  %743 = vst.msk [vmem:[#allocation2 + $0xd8] sm:$0xff] %vm274_vm1, %v710_v40  ;;  %v708_v50 = vadd.f32 %v655_v43, %v332_v36  ;;  %v1803_v40 = vld [vmem:[#allocation2 + $0x80] sm:$0xff] }
 0x111   : > { %v792_v51 = vsel %vm274_vm1, %v1752_v47, 0.0  ;;  %725 = vst.msk [vmem:[#allocation2 + $0x48] sm:$0xff] %vm274_vm1, %v692_v42  ;;  %v697_v52 = vadd.f32 %v1361_v48, %v321_v39  ;;  %v1377_v53 = vpop.f32.mrf.mxu1  ;;  %v1807_v43 = vld [vmem:[#allocation2 + $0x88] sm:$0xff]  ;;  %v1811_v48 = vld [vmem:[#allocation2 + $0x90] sm:$0xff] }
 0x112   : > { %v793_v56 = vadd.f32 %v792_v51, %v791_v46  ;;  %v604_v57 = vpop.f32.mrf.mxu0  ;;  %741 = vst.msk [vmem:[#allocation2 + $0xc8] sm:$0xff] %vm274_vm1, %v708_v50  ;;  %v713_v59 = vadd.f32 %v1377_v53, %v337_v44  ;;  %v1774_v18 = vld [vmem:[#allocation2 + $0x50] sm:$0xff]  ;;  %v814_v46 = vsel %vm274_vm1, %v1803_v40, 0.0  ;;  %v816_v50 = vsel %vm274_vm1, %v1807_v43, 0.0  ;;  %v1815_v51 = vld [vmem:[#allocation2 + $0x98] sm:$0xff] }
 0x113   : > { %730 = vst.msk [vmem:[#allocation2 + $0x70] sm:$0xff] %vm274_vm1, %v697_v52  ;;  %v695_v61 = vadd.f32 %v604_v57, %v319_v49  ;;  %v668_v62 = vpop.f32.mrf.mxu1  ;;  %v802_v26 = vsel %vm274_vm1, %v1774_v18, 0.0  ;;  %v818_v53 = vsel %vm274_vm1, %v1811_v48, 0.0  ;;  %v820_v57 = vsel %vm274_vm1, %v1815_v51, 0.0 }
 0x114   : > { %v795_v0 = vadd.f32 %v794_v60, %v793_v56  ;;  %v1764_v1 = vld [vmem:[#allocation2 + $0x40] sm:$0xff]  ;;  %v1362_v3 = vpop.f32.mrf.mxu0  ;;  %746 = vst.msk [vmem:[#allocation2 + $0xf0] sm:$0xff] %vm274_vm1, %v713_v59  ;;  %v711_v5 = vadd.f32 %v668_v62, %v335_v54  ;;  %v1823_v59 = vld [vmem:[#allocation2 + $0xa8] sm:$0xff] }
 0x115   : > { %728 = vst.msk [vmem:[#allocation2 + $0x60] sm:$0xff] %vm274_vm1, %v695_v61  ;;  %v698_v7 = vadd.f32 %v1362_v3, %v322_v58  ;;  %v1378_v8 = vpop.f32.mrf.mxu1  ;;  %v798_v15 = vsel %vm274_vm1, %v1764_v1, 0.0  ;;  %v1819_v56 = vld [vmem:[#allocation2 + $0xa0] sm:$0xff]  ;;  %v1827_v61 = vld [vmem:[#allocation2 + $0xb0] sm:$0xff] }
 0x116   : > { %v797_v12 = vadd.f32 %v796_v6, %v795_v0  ;;  %v607_v13 = vpop.f32.mrf.mxu0  ;;  %744 = vst.msk [vmem:[#allocation2 + $0xe0] sm:$0xff] %vm274_vm1, %v711_v5  ;;  %v714_v14 = vadd.f32 %v1378_v8, %v338_v63  ;;  %v1782_v24 = vld [vmem:[#allocation2 + $0x58] sm:$0xff]  ;;  %v822_v60 = vsel %vm274_vm1, %v1819_v56, 0.0  ;;  %v824_v63 = vsel %vm274_vm1, %v1823_v59, 0.0  ;;  %v1835_v6 = vld [vmem:[#allocation2 + $0xc0] sm:$0xff] }
 0x117   : > { %731 = vst.msk [vmem:[#allocation2 + $0x78] sm:$0xff] %vm274_vm1, %v698_v7  ;;  %v696_v16 = vadd.f32 %v607_v13, %v320_v4  ;;  %v671_v17 = vpop.f32.mrf.mxu1  ;;  %v804_v30 = vsel %vm274_vm1, %v1782_v24, 0.0  ;;  %v1831_v0 = vld [vmem:[#allocation2 + $0xb8] sm:$0xff]  ;;  %v826_v4 = vsel %vm274_vm1, %v1827_v61, 0.0  ;;  %v1843_v13 = vld [vmem:[#allocation2 + $0xd0] sm:$0xff] }
 0x118   : > { %v799_v20 = vadd.f32 %v798_v15, %v797_v12  ;;  %v1776_v21 = vld [vmem:[#allocation2 + $0x48] sm:$0xff]  ;;  %747 = vst.msk [vmem:[#allocation2 + $0xf8] sm:$0xff] %vm274_vm1, %v714_v14  ;;  %v712_v22 = vadd.f32 %v671_v17, %v336_v11  ;;  %v828_v7 = vsel %vm274_vm1, %v1831_v0, 0.0  ;;  %v830_v12 = vsel %vm274_vm1, %v1835_v6, 0.0 }
 0x119   : > { %v800_v23 = vsel %vm274_vm1, %v1776_v21, 0.0  ;;  %729 = vst.msk [vmem:[#allocation2 + $0x68] sm:$0xff] %vm274_vm1, %v696_v16  ;;  %v1839_v11 = vld [vmem:[#allocation2 + $0xc8] sm:$0xff]  ;;  %v1847_v16 = vld [vmem:[#allocation2 + $0xd8] sm:$0xff] }
 0x11a   : > { %v801_v25 = vadd.f32 %v800_v23, %v799_v20  ;;  %745 = vst.msk [vmem:[#allocation2 + $0xe8] sm:$0xff] %vm274_vm1, %v712_v22  ;;  %v1793_v33 = vld [vmem:[#allocation2 + $0x70] sm:$0xff]  ;;  %v832_v15 = vsel %vm274_vm1, %v1839_v11, 0.0  ;;  %v834_v20 = vsel %vm274_vm1, %v1843_v13, 0.0 }
 0x11b   : > { %v810_v39 = vsel %vm274_vm1, %v1793_v33, 0.0 }
 0x11c   : > { %v803_v27 = vadd.f32 %v802_v26, %v801_v25  ;;  %v1787_v28 = vld [vmem:[#allocation2 + $0x60] sm:$0xff]  ;;  %v836_v25 = vsel %vm274_vm1, %v1847_v16, 0.0 }
 0x11d   : > { %v806_v32 = vsel %vm274_vm1, %v1787_v28, 0.0  ;;  %v1851_v23 = vld [vmem:[#allocation2 + $0xe0] sm:$0xff] }
 0x11e   : > { %v805_v31 = vadd.f32 %v804_v30, %v803_v27  ;;  %v1799_v37 = vld [vmem:[#allocation2 + $0x78] sm:$0xff]  ;;  %v838_v30 = vsel %vm274_vm1, %v1851_v23, 0.0 }
 0x11f   : > { %v812_v42 = vsel %vm274_vm1, %v1799_v37, 0.0 }
 0x120   : > { %v807_v34 = vadd.f32 %v806_v32, %v805_v31  ;;  %v1795_v35 = vld [vmem:[#allocation2 + $0x68] sm:$0xff]  ;;  %v1859_v31 = vld [vmem:[#allocation2 + $0xf0] sm:$0xff] }
 0x121   : > { %v808_v36 = vsel %vm274_vm1, %v1795_v35, 0.0  ;;  %v1855_v27 = vld [vmem:[#allocation2 + $0xe8] sm:$0xff] }
 0x122   : > { %v809_v38 = vadd.f32 %v808_v36, %v807_v34  ;;  %v840_v34 = vsel %vm274_vm1, %v1855_v27, 0.0  ;;  %v1863_v36 = vld [vmem:[#allocation2 + $0xf8] sm:$0xff] }
 0x124   : > { %v811_v41 = vadd.f32 %v810_v39, %v809_v38  ;;  %v842_v39 = vsel %vm274_vm1, %v1859_v31, 0.0 }
 0x126   : > { %v813_v44 = vadd.f32 %v812_v42, %v811_v41  ;;  %v844_v42 = vsel %vm274_vm1, %v1863_v36, 0.0 }
 0x128   : > { %v815_v49 = vadd.f32 %v814_v46, %v813_v44 }
 0x12a   : > { %v817_v52 = vadd.f32 %v816_v50, %v815_v49 }
 0x12c   : > { %v819_v54 = vadd.f32 %v818_v53, %v817_v52 }
 0x12e   : > { %v821_v58 = vadd.f32 %v820_v57, %v819_v54 }
 0x130   : > { %v823_v62 = vadd.f32 %v822_v60, %v821_v58 }
 0x132   : > { %v825_v3 = vadd.f32 %v824_v63, %v823_v62 }
 0x134   : > { %v827_v5 = vadd.f32 %v826_v4, %v825_v3 }
 0x136   : > { %v829_v8 = vadd.f32 %v828_v7, %v827_v5 }
 0x138   : > { %v831_v14 = vadd.f32 %v830_v12, %v829_v8 }
 0x13a   : > { %v833_v17 = vadd.f32 %v832_v15, %v831_v14 }
 0x13c   : > { %v835_v22 = vadd.f32 %v834_v20, %v833_v17 }
 0x13e   : > { %v837_v26 = vadd.f32 %v836_v25, %v835_v22 }
 0x140   : > { %v839_v32 = vadd.f32 %v838_v30, %v837_v26 }
 0x142   : > { %v841_v38 = vadd.f32 %v840_v34, %v839_v32 }
 0x144   : > { %v843_v41 = vadd.f32 %v842_v39, %v841_v38 }
 0x146   : > { %v845_v44 = vadd.f32 %v844_v42, %v843_v41 }
 0x148   : > { %v846_v46 = vrot.slane %v845_v44, 4 }
 0x14a   : > { %v847_v49 = vadd.f32 %v846_v46, %v845_v44 }
 0x14c   : > { %v848_v50 = vrot.slane %v847_v49, 2 }
 0x14e   : > { %v849_v52 = vadd.f32 %v848_v50, %v847_v49 }
 0x150   : > { %v850_v53 = vrot.slane %v849_v52, 1 }
 0x152   : > { %v851_v54 = vadd.f32 %v850_v53, %v849_v52 }
 0x154   : > { %v1869_v57 = vmul.f32 0.00390625, %v851_v54 }
 0x156   : > { %v1873_v58 = vsub.f32 %v1720_v2, %v1869_v57  ;;  %v1877_v60 = vsub.f32 %v1726_v10, %v1869_v57  ;;  %v1881_v62 = vsub.f32 %v1724_v9, %v1869_v57  ;;  %v1885_v63 = vsub.f32 %v1734_v19, %v1869_v57 }
 0x157   : > { %v1893_v2 = vsub.f32 %v1740_v29, %v1869_v57  ;;  %v1899_v9 = vsub.f32 %v1752_v47, %v1869_v57  ;;  %v1907_v12 = vsub.f32 %v1750_v45, %v1869_v57  ;;  %v1914_v47 = vsub.f32 %v1758_v55, %v1869_v57 }
 0x158   : > { %v886_v3 = vmul.f32 %v1873_v58, %v1873_v58  ;;  %v887_v4 = vmul.f32 %v1877_v60, %v1877_v60  ;;  %v888_v10 = vmul.f32 %v1881_v62, %v1881_v62  ;;  %v889_v19 = vmul.f32 %v1885_v63, %v1885_v63 }
 0x159   : > { %v890_v29 = vmul.f32 %v1893_v2, %v1893_v2  ;;  %v891_v17 = vmul.f32 %v1899_v9, %v1899_v9  ;;  %v1921_v45 = vsub.f32 %v1764_v1, %v1869_v57  ;;  %v892_v25 = vmul.f32 %v1907_v12, %v1907_v12 }
 0x15a   : > { %v918_v5 = vsel %vm274_vm1, %v886_v3, 0.0  ;;  %v919_v7 = vsel %vm274_vm1, %v887_v4, 0.0  ;;  %v921_v14 = vsel %vm274_vm1, %v888_v10, 0.0  ;;  %v923_v20 = vsel %vm274_vm1, %v889_v19, 0.0 }
 0x15b   : > { %v920_v8 = vadd.f32 %v919_v7, %v918_v5  ;;  %v925_v26 = vsel %vm274_vm1, %v890_v29, 0.0  ;;  %v1928_v55 = vsub.f32 %v1776_v21, %v1869_v57  ;;  %v893_v32 = vmul.f32 %v1914_v47, %v1914_v47 }
 0x15c   : > { %v927_v34 = vsel %vm274_vm1, %v891_v17, 0.0  ;;  %v1935_v1 = vsub.f32 %v1774_v18, %v1869_v57  ;;  %v894_v39 = vmul.f32 %v1921_v45, %v1921_v45  ;;  %v929_v41 = vsel %vm274_vm1, %v892_v25, 0.0 }
 0x15d   : > { %v922_v15 = vadd.f32 %v921_v14, %v920_v8  ;;  %v1942_v21 = vsub.f32 %v1782_v24, %v1869_v57  ;;  %v895_v44 = vmul.f32 %v1928_v55, %v1928_v55  ;;  %v931_v46 = vsel %vm274_vm1, %v893_v32, 0.0 }
 0x15e   : > { %v1949_v18 = vsub.f32 %v1787_v28, %v1869_v57  ;;  %v896_v50 = vmul.f32 %v1935_v1, %v1935_v1  ;;  %v933_v52 = vsel %vm274_vm1, %v894_v39, 0.0  ;;  %v1956_v24 = vsub.f32 %v1795_v35, %v1869_v57 }
 0x15f   : > { %v924_v22 = vadd.f32 %v923_v20, %v922_v15  ;;  %v897_v54 = vmul.f32 %v1942_v21, %v1942_v21  ;;  %v935_v3 = vsel %vm274_vm1, %v895_v44, 0.0  ;;  %v1963_v28 = vsub.f32 %v1793_v33, %v1869_v57 }
 0x160   : > { %v898_v10 = vmul.f32 %v1949_v18, %v1949_v18  ;;  %v937_v19 = vsel %vm274_vm1, %v896_v50, 0.0  ;;  %v1970_v35 = vsub.f32 %v1799_v37, %v1869_v57  ;;  %v899_v7 = vmul.f32 %v1956_v24, %v1956_v24 }
 0x161   : > { %v926_v30 = vadd.f32 %v925_v26, %v924_v22  ;;  %v939_v8 = vsel %vm274_vm1, %v897_v54, 0.0  ;;  %v1977_v33 = vsub.f32 %v1803_v40, %v1869_v57  ;;  %v900_v14 = vmul.f32 %v1963_v28, %v1963_v28 }
 0x162   : > { %v941_v15 = vsel %vm274_vm1, %v898_v10, 0.0  ;;  %v1984_v37 = vsub.f32 %v1807_v43, %v1869_v57  ;;  %v901_v20 = vmul.f32 %v1970_v35, %v1970_v35  ;;  %v943_v22 = vsel %vm274_vm1, %v899_v7, 0.0 }
 0x163   : > { %v928_v38 = vadd.f32 %v927_v34, %v926_v30  ;;  %v1991_v40 = vsub.f32 %v1811_v48, %v1869_v57  ;;  %v902_v26 = vmul.f32 %v1977_v33, %v1977_v33  ;;  %v945_v30 = vsel %vm274_vm1, %v900_v14, 0.0 }
 0x164   : > { %v1998_v43 = vsub.f32 %v1815_v51, %v1869_v57  ;;  %v903_v34 = vmul.f32 %v1984_v37, %v1984_v37  ;;  %v2005_v48 = vsub.f32 %v1819_v56, %v1869_v57  ;;  %v2012_v51 = vsub.f32 %v1823_v59, %v1869_v57 }
 0x165   : > { %v930_v42 = vadd.f32 %v929_v41, %v928_v38  ;;  %v947_v38 = vsel %vm274_vm1, %v901_v20, 0.0  ;;  %v904_v41 = vmul.f32 %v1991_v40, %v1991_v40  ;;  %v2019_v56 = vsub.f32 %v1827_v61, %v1869_v57 }
 0x166   : > { %v2026_v59 = vsub.f32 %v1831_v0, %v1869_v57  ;;  %v2033_v61 = vsub.f32 %v1835_v6, %v1869_v57  ;;  %v2040_v0 = vsub.f32 %v1839_v11, %v1869_v57  ;;  %v2047_v6 = vsub.f32 %v1843_v13, %v1869_v57 }
 0x167   : > { %v932_v49 = vadd.f32 %v931_v46, %v930_v42  ;;  %v949_v42 = vsel %vm274_vm1, %v902_v26, 0.0  ;;  %v905_v46 = vmul.f32 %v1998_v43, %v1998_v43  ;;  %v2054_v11 = vsub.f32 %v1847_v16, %v1869_v57 }
 0x168   : > { %v2061_v13 = vsub.f32 %v1851_v23, %v1869_v57  ;;  %v883_v16 = vsub.f32 %v1855_v27, %v1869_v57 }
 0x169   : > { %v934_v53 = vadd.f32 %v933_v52, %v932_v49  ;;  %v951_v49 = vsel %vm274_vm1, %v903_v34, 0.0  ;;  %v906_v52 = vmul.f32 %v2005_v48, %v2005_v48 }
 0x16a   : > { %v914_v23 = vmul.f32 %v2061_v13, %v2061_v13 }
 0x16b   : > { %v936_v4 = vadd.f32 %v935_v3, %v934_v53  ;;  %v953_v53 = vsel %vm274_vm1, %v904_v41, 0.0  ;;  %v907_v3 = vmul.f32 %v2012_v51, %v2012_v51 }
 0x16d   : > { %v938_v5 = vadd.f32 %v937_v19, %v936_v4  ;;  %v955_v4 = vsel %vm274_vm1, %v905_v46, 0.0  ;;  %v908_v19 = vmul.f32 %v2019_v56, %v2019_v56 }
 0x16f   : > { %v940_v29 = vadd.f32 %v939_v8, %v938_v5  ;;  %v957_v5 = vsel %vm274_vm1, %v906_v52, 0.0  ;;  %v909_v8 = vmul.f32 %v2026_v59, %v2026_v59 }
 0x171   : > { %v942_v17 = vadd.f32 %v941_v15, %v940_v29  ;;  %v959_v29 = vsel %vm274_vm1, %v907_v3, 0.0  ;;  %v910_v15 = vmul.f32 %v2033_v61, %v2033_v61 }
 0x173   : > { %v944_v25 = vadd.f32 %v943_v22, %v942_v17  ;;  %v961_v17 = vsel %vm274_vm1, %v908_v19, 0.0  ;;  %v911_v22 = vmul.f32 %v2040_v0, %v2040_v0 }
 0x175   : > { %v946_v32 = vadd.f32 %v945_v30, %v944_v25  ;;  %v963_v25 = vsel %vm274_vm1, %v909_v8, 0.0  ;;  %v912_v30 = vmul.f32 %v2047_v6, %v2047_v6 }
 0x177   : > { %v948_v39 = vadd.f32 %v947_v38, %v946_v32  ;;  %v965_v32 = vsel %vm274_vm1, %v910_v15, 0.0  ;;  %v913_v38 = vmul.f32 %v2054_v11, %v2054_v11 }
 0x179   : > { %v950_v44 = vadd.f32 %v949_v42, %v948_v39  ;;  %v967_v39 = vsel %vm274_vm1, %v911_v22, 0.0  ;;  %v884_v42 = vsub.f32 %v1859_v31, %v1869_v57  ;;  %v971_v27 = vsel %vm274_vm1, %v913_v38, 0.0 }
 0x17b   : > { %v952_v50 = vadd.f32 %v951_v49, %v950_v44  ;;  %v969_v44 = vsel %vm274_vm1, %v912_v30, 0.0  ;;  %v885_v49 = vsub.f32 %v1863_v36, %v1869_v57 }
 0x17d   : > { %v954_v54 = vadd.f32 %v953_v53, %v952_v50  ;;  %v915_v50 = vmul.f32 %v883_v16, %v883_v16  ;;  %v916_v53 = vmul.f32 %v884_v42, %v884_v42 }
 0x17f   : > { %v956_v10 = vadd.f32 %v955_v4, %v954_v54  ;;  %v973_v54 = vsel %vm274_vm1, %v914_v23, 0.0  ;;  %v917_v4 = vmul.f32 %v885_v49, %v885_v49  ;;  %v975_v31 = vsel %vm274_vm1, %v915_v50, 0.0  ;;  %v1319_v50 = vld [vmem:[#allocation3] ss:$0 sm:$0xff] }
 0x180   : > { %v977_v19 = vsel %vm274_vm1, %v916_v53, 0.0 }
 0x181   : > { %v958_v7 = vadd.f32 %v957_v5, %v956_v10 }
 0x183   : > { %v960_v14 = vadd.f32 %v959_v29, %v958_v7  ;;  %v979_v7 = vsel %vm274_vm1, %v917_v4, 0.0 }
 0x185   : > { %v962_v20 = vadd.f32 %v961_v17, %v960_v14 }
 0x187   : > { %v964_v26 = vadd.f32 %v963_v25, %v962_v20 }
 0x189   : > { %v966_v34 = vadd.f32 %v965_v32, %v964_v26 }
 0x18b   : > { %v968_v41 = vadd.f32 %v967_v39, %v966_v34 }
 0x18d   : > { %v970_v46 = vadd.f32 %v969_v44, %v968_v41 }
 0x18f   : > { %v972_v52 = vadd.f32 %v971_v27, %v970_v46 }
 0x191   : > { %v974_v3 = vadd.f32 %v973_v54, %v972_v52 }
 0x193   : > { %v976_v10 = vadd.f32 %v975_v31, %v974_v3 }
 0x195   : > { %v978_v5 = vadd.f32 %v977_v19, %v976_v10 }
 0x197   : > { %v980_v8 = vadd.f32 %v979_v7, %v978_v5 }
 0x199   : > { %v981_v29 = vrot.slane %v980_v8, 4 }
 0x19b   : > { %v982_v36 = vadd.f32 %v981_v29, %v980_v8 }
 0x19d   : > { %v983_v57 = vrot.slane %v982_v36, 2 }
 0x19f   : > { %v984_v14 = vadd.f32 %v983_v57, %v982_v36  ;;  %v1320_v57 = vld [vmem:[#allocation5] ss:$0 sm:$0xff] }
 0x1a1   : > { %v985_v15 = vrot.slane %v984_v14, 1 }
 0x1a3   : > { %v986_v17 = vadd.f32 %v985_v15, %v984_v14 }
 0x1a5   : > { %v987_v20 = vmul.f32 0.00390625, %v986_v17 }
 0x1a7   : > { %v988_v22 = vadd.f32 1e-05, %v987_v20 }
 0x1a9   : > { %1448 = vrsqrt.f32 %v988_v22 }
 0x1b6   : > { %v1449_v25 = vpop.eup %1448 }
 0x1b7   : > { %v990_v26 = vmul.f32 %v1449_v25, %v1873_v58  ;;  %v991_v30 = vmul.f32 %v1449_v25, %v1877_v60  ;;  %v992_v32 = vmul.f32 %v1449_v25, %v1881_v62  ;;  %v993_v34 = vmul.f32 %v1449_v25, %v1885_v63 }
 0x1b8   : > { %v994_v38 = vmul.f32 %v1449_v25, %v1893_v2  ;;  %v995_v39 = vmul.f32 %v1449_v25, %v1899_v9  ;;  %v996_v41 = vmul.f32 %v1449_v25, %v1907_v12  ;;  %v997_v23 = vmul.f32 %v1449_v25, %v1914_v47 }
 0x1b9   : > { %v998_v44 = vmul.f32 %v1449_v25, %v1921_v45  ;;  %v999_v46 = vmul.f32 %v1449_v25, %v1928_v55  ;;  %v1000_v58 = vmul.f32 %v1449_v25, %v1935_v1  ;;  %v1001_v60 = vmul.f32 %v1449_v25, %v1942_v21 }
 0x1ba   : > { %v1002_v62 = vmul.f32 %v1449_v25, %v1949_v18  ;;  %v1003_v63 = vmul.f32 %v1449_v25, %v1956_v24  ;;  %v1004_v2 = vmul.f32 %v1449_v25, %v1963_v28  ;;  %v1005_v9 = vmul.f32 %v1449_v25, %v1970_v35 }
 0x1bb   : > { %v1006_v12 = vmul.f32 %v1449_v25, %v1977_v33  ;;  %v1007_v47 = vmul.f32 %v1449_v25, %v1984_v37  ;;  %v1008_v45 = vmul.f32 %v1449_v25, %v1991_v40  ;;  %v1009_v55 = vmul.f32 %v1449_v25, %v1998_v43 }
 0x1bc   : > { %v1010_v1 = vmul.f32 %v1449_v25, %v2005_v48  ;;  %v1011_v21 = vmul.f32 %v1449_v25, %v2012_v51  ;;  %v1012_v18 = vmul.f32 %v1449_v25, %v2019_v56  ;;  %v1013_v24 = vmul.f32 %v1449_v25, %v2026_v59 }
 0x1bd   : > { %v1014_v28 = vmul.f32 %v1449_v25, %v2033_v61  ;;  %v1015_v35 = vmul.f32 %v1449_v25, %v2040_v0  ;;  %v1016_v33 = vmul.f32 %v1449_v25, %v2047_v6  ;;  %v1017_v37 = vmul.f32 %v1449_v25, %v2054_v11 }
 0x1be   : > { %v1018_v40 = vmul.f32 %v1449_v25, %v2061_v13  ;;  %v1019_v43 = vmul.f32 %v1449_v25, %v883_v16  ;;  %v1020_v27 = vmul.f32 %v1449_v25, %v884_v42  ;;  %v1021_v48 = vmul.f32 %v1449_v25, %v885_v49 }
 0x1bf   : > { %v1029_v52 = vmul.f32 %v1319_v50, %v990_v26  ;;  %v1030_v51 = vmul.f32 %v1319_v50, %v991_v30  ;;  %v1031_v53 = vmul.f32 %v1319_v50, %v992_v32  ;;  %v1032_v56 = vmul.f32 %v1319_v50, %v993_v34 }
 0x1c0   : > { %v1033_v54 = vmul.f32 %v1319_v50, %v994_v38  ;;  %v1034_v59 = vmul.f32 %v1319_v50, %v995_v39  ;;  %v1035_v3 = vmul.f32 %v1319_v50, %v996_v41  ;;  %v1036_v4 = vmul.f32 %v1319_v50, %v997_v23 }
 0x1c1   : > { %v1037_v61 = vmul.f32 %v1319_v50, %v998_v44  ;;  %v1038_v31 = vmul.f32 %v1319_v50, %v999_v46  ;;  %v1039_v0 = vmul.f32 %v1319_v50, %v1000_v58  ;;  %v1040_v10 = vmul.f32 %v1319_v50, %v1001_v60 }
 0x1c2   : > { %v1041_v6 = vmul.f32 %v1319_v50, %v1002_v62  ;;  %v1042_v19 = vmul.f32 %v1319_v50, %v1003_v63  ;;  %v1043_v11 = vmul.f32 %v1319_v50, %v1004_v2  ;;  %v1044_v5 = vmul.f32 %v1319_v50, %v1005_v9 }
 0x1c3   : > { %v1045_v13 = vmul.f32 %v1319_v50, %v1006_v12  ;;  %v1046_v16 = vmul.f32 %v1319_v50, %v1007_v47  ;;  %v1047_v42 = vmul.f32 %v1319_v50, %v1008_v45  ;;  %v1048_v49 = vmul.f32 %v1319_v50, %v1009_v55 }
 0x1c4   : > { %v1049_v7 = vmul.f32 %v1319_v50, %v1010_v1  ;;  %v1050_v8 = vmul.f32 %v1319_v50, %v1011_v21  ;;  %v1051_v29 = vmul.f32 %v1319_v50, %v1012_v18  ;;  %v1052_v36 = vmul.f32 %v1319_v50, %v1013_v24 }
 0x1c5   : > { %v1053_v14 = vmul.f32 %v1319_v50, %v1014_v28  ;;  %v1054_v15 = vmul.f32 %v1319_v50, %v1015_v35  ;;  %v1055_v17 = vmul.f32 %v1319_v50, %v1016_v33  ;;  %v1056_v20 = vmul.f32 %v1319_v50, %v1017_v37 }
 0x1c6   : > { %v1057_v22 = vmul.f32 %v1319_v50, %v1018_v40  ;;  %v1058_v25 = vmul.f32 %v1319_v50, %v1019_v43  ;;  %v1059_v26 = vmul.f32 %v1319_v50, %v1020_v27  ;;  %v1060_v30 = vmul.f32 %v1319_v50, %v1021_v48 }
 0x1c7   : > { %v1068_v32 = vadd.f32 %v1320_v57, %v1029_v52  ;;  %v1069_v34 = vadd.f32 %v1320_v57, %v1030_v51  ;;  %v1070_v38 = vadd.f32 %v1320_v57, %v1031_v53  ;;  %v1071_v39 = vadd.f32 %v1320_v57, %v1032_v56 }
 0x1c8   : > { %v1072_v41 = vadd.f32 %v1320_v57, %v1033_v54  ;;  %v1073_v23 = vadd.f32 %v1320_v57, %v1034_v59  ;;  %v1074_v44 = vadd.f32 %v1320_v57, %v1035_v3  ;;  %v1075_v46 = vadd.f32 %v1320_v57, %v1036_v4 }
 0x1c9   : > { %v1076_v58 = vadd.f32 %v1320_v57, %v1037_v61  ;;  %v1077_v60 = vadd.f32 %v1320_v57, %v1038_v31  ;;  %v1078_v62 = vadd.f32 %v1320_v57, %v1039_v0  ;;  %v1079_v63 = vadd.f32 %v1320_v57, %v1040_v10 }
 0x1ca   : > { %v1080_v2 = vadd.f32 %v1320_v57, %v1041_v6  ;;  %v1081_v9 = vadd.f32 %v1320_v57, %v1042_v19  ;;  %v1082_v12 = vadd.f32 %v1320_v57, %v1043_v11  ;;  %v1083_v47 = vadd.f32 %v1320_v57, %v1044_v5 }
 0x1cb   : > { %v1084_v45 = vadd.f32 %v1320_v57, %v1045_v13  ;;  %v1085_v55 = vadd.f32 %v1320_v57, %v1046_v16  ;;  %v1086_v1 = vadd.f32 %v1320_v57, %v1047_v42  ;;  %v1087_v21 = vadd.f32 %v1320_v57, %v1048_v49 }
 0x1cc   : > { %v2113_v18 = vadd.f32 %v1320_v57, %v1049_v7  ;;  %v2115_v24 = vadd.f32 %v1320_v57, %v1050_v8  ;;  %v2117_v50 = vadd.f32 %v1320_v57, %v1051_v29  ;;  %v2119_v28 = vadd.f32 %v1320_v57, %v1052_v36 }
 0x1cd   : > { %v2121_v35 = vadd.f32 %v1320_v57, %v1053_v14  ;;  %v2123_v33 = vadd.f32 %v1320_v57, %v1054_v15  ;;  %v2125_v37 = vadd.f32 %v1320_v57, %v1055_v17  ;;  %v2127_v40 = vadd.f32 %v1320_v57, %v1056_v20 }
 0x1ce   : > { %v2134_v43 = vadd.f32 %v1320_v57, %v1057_v22  ;;  %v2136_v27 = vadd.f32 %v1320_v57, %v1058_v25  ;;  %v2138_v48 = vadd.f32 %v1320_v57, %v1059_v26  ;;  %v2140_v52 = vadd.f32 %v1320_v57, %v1060_v30 }
 0x1cf   : > { %v1100_v51 = vmax.f32 %v1068_v32, 0.0  ;;  %v1101_v53 = vmax.f32 %v1069_v34, 0.0  ;;  %v1102_v56 = vmax.f32 %v1070_v38, 0.0  ;;  %v1103_v54 = vmax.f32 %v1071_v39, 0.0 }
 0x1d0   : > { %v1104_v59 = vmax.f32 %v1072_v41, 0.0  ;;  %v1105_v3 = vmax.f32 %v1073_v23, 0.0  ;;  %v1106_v4 = vmax.f32 %v1074_v44, 0.0  ;;  %v1107_v61 = vmax.f32 %v1075_v46, 0.0 }
 0x1d1   : > { %v1108_v31 = vmax.f32 %v1076_v58, 0.0  ;;  %v1109_v0 = vmax.f32 %v1077_v60, 0.0  ;;  %v1110_v10 = vmax.f32 %v1078_v62, 0.0  ;;  %v1111_v6 = vmax.f32 %v1079_v63, 0.0  ;;  %1132 = vst.msk [vmem:[%s2132_s23] sm:$0xff] %vm274_vm1, %v1100_v51  ;;  %1133 = vst.msk [vmem:[%s2132_s23 + $0x8] sm:$0xff] %vm274_vm1, %v1101_v53 }
 0x1d2   : > { %1134 = vst.msk [vmem:[%s2132_s23 + $0x10] sm:$0xff] %vm274_vm1, %v1102_v56  ;;  %1135 = vst.msk [vmem:[%s2132_s23 + $0x18] sm:$0xff] %vm274_vm1, %v1103_v54  ;;  %v1112_v19 = vmax.f32 %v1080_v2, 0.0  ;;  %v1113_v11 = vmax.f32 %v1081_v9, 0.0  ;;  %v1114_v5 = vmax.f32 %v1082_v12, 0.0  ;;  %v1115_v13 = vmax.f32 %v1083_v47, 0.0 }
 0x1d3   : > { %1136 = vst.msk [vmem:[%s2132_s23 + $0x20] sm:$0xff] %vm274_vm1, %v1104_v59  ;;  %1137 = vst.msk [vmem:[%s2132_s23 + $0x28] sm:$0xff] %vm274_vm1, %v1105_v3  ;;  %v1116_v16 = vmax.f32 %v1084_v45, 0.0  ;;  %v1117_v42 = vmax.f32 %v1085_v55, 0.0  ;;  %v1118_v49 = vmax.f32 %v1086_v1, 0.0  ;;  %v1119_v7 = vmax.f32 %v1087_v21, 0.0 }
 0x1d4   : > { %1138 = vst.msk [vmem:[%s2132_s23 + $0x30] sm:$0xff] %vm274_vm1, %v1106_v4  ;;  %1139 = vst.msk [vmem:[%s2132_s23 + $0x38] sm:$0xff] %vm274_vm1, %v1107_v61  ;;  %v1120_v8 = vmax.f32 %v2113_v18, 0.0  ;;  %v1121_v29 = vmax.f32 %v2115_v24, 0.0  ;;  %v1122_v36 = vmax.f32 %v2117_v50, 0.0  ;;  %v1123_v57 = vmax.f32 %v2119_v28, 0.0 }
 0x1d5   : > { %1140 = vst.msk [vmem:[%s2132_s23 + $0x40] sm:$0xff] %vm274_vm1, %v1108_v31  ;;  %1141 = vst.msk [vmem:[%s2132_s23 + $0x48] sm:$0xff] %vm274_vm1, %v1109_v0  ;;  %v1124_v14 = vmax.f32 %v2121_v35, 0.0  ;;  %v1125_v15 = vmax.f32 %v2123_v33, 0.0  ;;  %v1126_v17 = vmax.f32 %v2125_v37, 0.0  ;;  %v1127_v20 = vmax.f32 %v2127_v40, 0.0 }
 0x1d6   : > { %1142 = vst.msk [vmem:[%s2132_s23 + $0x50] sm:$0xff] %vm274_vm1, %v1110_v10  ;;  %1143 = vst.msk [vmem:[%s2132_s23 + $0x58] sm:$0xff] %vm274_vm1, %v1111_v6  ;;  %v1128_v22 = vmax.f32 %v2134_v43, 0.0  ;;  %v1129_v25 = vmax.f32 %v2136_v27, 0.0  ;;  %v1130_v26 = vmax.f32 %v2138_v48, 0.0  ;;  %v1131_v30 = vmax.f32 %v2140_v52, 0.0 }
 0x1d7   : > { %1144 = vst.msk [vmem:[%s2132_s23 + $0x60] sm:$0xff] %vm274_vm1, %v1112_v19  ;;  %1145 = vst.msk [vmem:[%s2132_s23 + $0x68] sm:$0xff] %vm274_vm1, %v1113_v11 }
 0x1d8   : > { %1146 = vst.msk [vmem:[%s2132_s23 + $0x70] sm:$0xff] %vm274_vm1, %v1114_v5  ;;  %1147 = vst.msk [vmem:[%s2132_s23 + $0x78] sm:$0xff] %vm274_vm1, %v1115_v13 }
 0x1d9   : > { %1148 = vst.msk [vmem:[%s2132_s23 + $0x80] sm:$0xff] %vm274_vm1, %v1116_v16  ;;  %1149 = vst.msk [vmem:[%s2132_s23 + $0x88] sm:$0xff] %vm274_vm1, %v1117_v42 }
 0x1da   : > { %1150 = vst.msk [vmem:[%s2132_s23 + $0x90] sm:$0xff] %vm274_vm1, %v1118_v49  ;;  %1151 = vst.msk [vmem:[%s2132_s23 + $0x98] sm:$0xff] %vm274_vm1, %v1119_v7 }
 0x1db   : > { %1152 = vst.msk [vmem:[%s2132_s23 + $0xa0] sm:$0xff] %vm274_vm1, %v1120_v8  ;;  %1153 = vst.msk [vmem:[%s2132_s23 + $0xa8] sm:$0xff] %vm274_vm1, %v1121_v29 }
 0x1dc   : > { %1154 = vst.msk [vmem:[%s2132_s23 + $0xb0] sm:$0xff] %vm274_vm1, %v1122_v36  ;;  %1155 = vst.msk [vmem:[%s2132_s23 + $0xb8] sm:$0xff] %vm274_vm1, %v1123_v57 }
 0x1dd   : > { %1156 = vst.msk [vmem:[%s2132_s23 + $0xc0] sm:$0xff] %vm274_vm1, %v1124_v14  ;;  %1157 = vst.msk [vmem:[%s2132_s23 + $0xc8] sm:$0xff] %vm274_vm1, %v1125_v15 }
 0x1de   : > { %1158 = vst.msk [vmem:[%s2132_s23 + $0xd0] sm:$0xff] %vm274_vm1, %v1126_v17  ;;  %1159 = vst.msk [vmem:[%s2132_s23 + $0xd8] sm:$0xff] %vm274_vm1, %v1127_v20 }
 0x1df   : > { %1160 = vst.msk [vmem:[%s2132_s23 + $0xe0] sm:$0xff] %vm274_vm1, %v1128_v22  ;;  %1161 = vst.msk [vmem:[%s2132_s23 + $0xe8] sm:$0xff] %vm274_vm1, %v1129_v25 }
 0x1e0   : > { %1162 = vst.msk [vmem:[%s2132_s23 + $0xf0] sm:$0xff] %vm274_vm1, %v1130_v26  ;;  %1163 = vst.msk [vmem:[%s2132_s23 + $0xf8] sm:$0xff] %vm274_vm1, %v1131_v30 }
 0x1e1 PF: > { %s16_s17 = sadd.s32 1, %s1532_s17   ;;  %s2238_s15 = smov %s1528_s16 }
 0x1e2   : > { %p13_p3 = scmp.ge.s32.totalorder %s16_s17, 4   ;;  %s2239_s16 = smov %s2241_s19 }
 0x1e4   :  { %15 = sbr.rel (!%p13_p3) target bundleno = 3 (0x3), region = 86 }
 0x1e9   :  { %1185 = vsyncpa [#allocation4], 1 }
 0x1ea   :  { %1187 = vsyncpa [#allocation4 + $0x1], 1 }
 0x1eb   :  { %1188 = vsyncpa [#allocation6], 1 }

// kernel: forward.16
= control target key start
LH: loop header
LB: loop body
LE: loop exit
PB: predicated region body
PF: predicated region fallthrough
CT: control target
= control target key end

     0   :  { %s485_s15 = smov 0   ;;  %s576_s0 = inlined_call_operand.vmem [shape: f32[2,64,64], index: 0, kind: input, shape index: {}]   ;;  %s577_s1 = inlined_call_operand.vmem [shape: f32[2,64,64], index: 1, kind: input, shape index: {}]   ;;  %s578_s2 = inlined_call_operand.vmem [shape: f32[2,64,64], index: 2, kind: input, shape index: {}]   ;;  %s579_s3 = inlined_call_operand.vmem [shape: f32[2,64,64], index: 3, kind: input, shape index: {}]   ;;  %s580_s4 = inlined_call_operand.vmem [shape: f32[2,64,64], index: 4, kind: output, shape index: {}]  }
   0x1 LB: > { %s422_s16 = sadd.s32 4294967295, %s458_s15   ;;  %p426_p0 = scmp.ge.s32.totalorder %s458_s15, 1  ;;  %s458_s15 = sphi %s485_s15, %s14_s15  }
   0x2   : > { %p192_p1 = scmp.lt.s32.totalorder %s458_s15, 3 }
   0x4   : > { %p193_p2 = pnand %p426_p0, %p192_p1 }
   0x5   : > { %p233_p3 = scmp.lt.s32.totalorder (!%p193_p2), %s422_s16, 1 }
   0x6   : > { %196 = sbr.rel (%p193_p2) target bundleno = 33 (0x21), region = 36 }
   0xb   : > { %s582_s16 = smov (!%p233_p3, %s422_s16), 1  ;;  %vm322_vm0 = vcmask 523264  }
   0xc   : > { %s493_s17 = sshll.u32 %s582_s16, 6 }
   0xd   : > { %s499_s20 = scalar_lea.vmem %s576_s0, %s493_s17  ;;  %s505_s23 = scalar_lea.vmem %s577_s1, %s493_s17 }
   0xe   : > { %s511_s26 = scalar_lea.vmem %s578_s2, %s493_s17  ;;  %s517_s29 = scalar_lea.vmem %s579_s3, %s493_s17  ;;  %v258_v0 = vld [vmem:[%s499_s20] sm:$0xff]  ;;  %v259_v2 = vld [vmem:[%s499_s20 + $0x8] sm:$0xff]  ;;  %v260_v9 = vld [vmem:[%s499_s20 + $0x10] sm:$0xff] }
   0xf   : > { %v266_v1 = vld [vmem:[%s505_s23] sm:$0xff]  ;;  %v267_v5 = vld [vmem:[%s505_s23 + $0x8] sm:$0xff]  ;;  %v268_v12 = vld [vmem:[%s505_s23 + $0x10] sm:$0xff]  ;;  %s540_s6 = scalar_lea.vmem %s580_s4, %s493_s17 }
  0x10   : > { %v274_v3 = vadd.f32 %v266_v1, %v258_v0  ;;  %v282_v4 = vld [vmem:[%s511_s26] sm:$0xff]  ;;  %v275_v7 = vadd.f32 %v267_v5, %v259_v2  ;;  %v283_v8 = vld [vmem:[%s511_s26 + $0x8] sm:$0xff]  ;;  %v284_v13 = vld [vmem:[%s511_s26 + $0x10] sm:$0xff]  ;;  %v276_v15 = vadd.f32 %v268_v12, %v260_v9 }
  0x11   : > { %v298_v6 = vld [vmem:[%s517_s29] sm:$0xff]  ;;  %v299_v11 = vld [vmem:[%s517_s29 + $0x8] sm:$0xff]  ;;  %v261_v16 = vld [vmem:[%s499_s20 + $0x18] sm:$0xff] }
  0x12   : > { %v290_v10 = vadd.f32 %v282_v4, %v274_v3  ;;  %v291_v14 = vadd.f32 %v283_v8, %v275_v7  ;;  %v269_v17 = vld [vmem:[%s505_s23 + $0x18] sm:$0xff]  ;;  %v300_v20 = vld [vmem:[%s517_s29 + $0x10] sm:$0xff]  ;;  %v262_v22 = vld [vmem:[%s499_s20 + $0x20] sm:$0xff]  ;;  %v292_v25 = vadd.f32 %v284_v13, %v276_v15 }
  0x13   : > { %v285_v18 = vld [vmem:[%s511_s26 + $0x18] sm:$0xff]  ;;  %v277_v21 = vadd.f32 %v269_v17, %v261_v16  ;;  %v270_v23 = vld [vmem:[%s505_s23 + $0x20] sm:$0xff]  ;;  %v263_v29 = vld [vmem:[%s499_s20 + $0x28] sm:$0xff] }
  0x14   : > { %v306_v19 = vadd.f32 %v298_v6, %v290_v10  ;;  %v307_v24 = vadd.f32 %v299_v11, %v291_v14  ;;  %v301_v26 = vld [vmem:[%s517_s29 + $0x18] sm:$0xff]  ;;  %v278_v27 = vadd.f32 %v270_v23, %v262_v22  ;;  %v286_v28 = vld [vmem:[%s511_s26 + $0x20] sm:$0xff]  ;;  %v271_v33 = vld [vmem:[%s505_s23 + $0x28] sm:$0xff]  ;;  %v308_v36 = vadd.f32 %v300_v20, %v292_v25 }
  0x15   : > { %v293_v31 = vadd.f32 %v285_v18, %v277_v21  ;;  %v302_v32 = vld [vmem:[%s517_s29 + $0x20] sm:$0xff]  ;;  %v287_v34 = vld [vmem:[%s511_s26 + $0x28] sm:$0xff]  ;;  %v279_v38 = vadd.f32 %v271_v33, %v263_v29  ;;  %v264_v39 = vld [vmem:[%s499_s20 + $0x30] sm:$0xff] }
  0x16   : > { %v314_v30 = vmul.f32 0.25, %v306_v19  ;;  %v315_v35 = vmul.f32 0.25, %v307_v24  ;;  %v294_v37 = vadd.f32 %v286_v28, %v278_v27  ;;  %v272_v40 = vld [vmem:[%s505_s23 + $0x30] sm:$0xff]  ;;  %v303_v43 = vld [vmem:[%s517_s29 + $0x28] sm:$0xff]  ;;  %v265_v45 = vld [vmem:[%s499_s20 + $0x38] sm:$0xff]  ;;  %v316_v47 = vmul.f32 0.25, %v308_v36 }
  0x17   : > { %v288_v41 = vld [vmem:[%s511_s26 + $0x30] sm:$0xff]  ;;  %v309_v42 = vadd.f32 %v301_v26, %v293_v31  ;;  %v280_v44 = vadd.f32 %v272_v40, %v264_v39  ;;  %v273_v46 = vld [vmem:[%s505_s23 + $0x38] sm:$0xff]  ;;  %v295_v49 = vadd.f32 %v287_v34, %v279_v38 }
  0x18   : > { %323 = vst.msk [vmem:[%s540_s6] sm:$0xff] %vm322_vm0, %v314_v30  ;;  %324 = vst.msk [vmem:[%s540_s6 + $0x8] sm:$0xff] %vm322_vm0, %v315_v35  ;;  %v310_v48 = vadd.f32 %v302_v32, %v294_v37  ;;  %v304_v50 = vld [vmem:[%s517_s29 + $0x30] sm:$0xff]  ;;  %v281_v51 = vadd.f32 %v273_v46, %v265_v45  ;;  %v289_v52 = vld [vmem:[%s511_s26 + $0x38] sm:$0xff] }
  0x19   : > { %v317_v53 = vmul.f32 0.25, %v309_v42  ;;  %v296_v54 = vadd.f32 %v288_v41, %v280_v44  ;;  %v305_v55 = vld [vmem:[%s517_s29 + $0x38] sm:$0xff]  ;;  %325 = vst.msk [vmem:[%s540_s6 + $0x10] sm:$0xff] %vm322_vm0, %v316_v47  ;;  %v311_v57 = vadd.f32 %v303_v43, %v295_v49 }
  0x1a   : > { %v318_v56 = vmul.f32 0.25, %v310_v48  ;;  %v297_v58 = vadd.f32 %v289_v52, %v281_v51 }
  0x1b   : > { %326 = vst.msk [vmem:[%s540_s6 + $0x18] sm:$0xff] %vm322_vm0, %v317_v53  ;;  %v312_v59 = vadd.f32 %v304_v50, %v296_v54  ;;  %v319_v60 = vmul.f32 0.25, %v311_v57 }
  0x1c   : > { %327 = vst.msk [vmem:[%s540_s6 + $0x20] sm:$0xff] %vm322_vm0, %v318_v56  ;;  %v313_v61 = vadd.f32 %v305_v55, %v297_v58 }
  0x1d   : > { %v320_v62 = vmul.f32 0.25, %v312_v59  ;;  %328 = vst.msk [vmem:[%s540_s6 + $0x28] sm:$0xff] %vm322_vm0, %v319_v60 }
  0x1e   : > { %v321_v63 = vmul.f32 0.25, %v313_v61 }
  0x1f   : > { %329 = vst.msk [vmem:[%s540_s6 + $0x30] sm:$0xff] %vm322_vm0, %v320_v62 }
  0x20   : > { %330 = vst.msk [vmem:[%s540_s6 + $0x38] sm:$0xff] %vm322_vm0, %v321_v63 }
  0x21 PF: > { %s14_s15 = sadd.s32 1, %s458_s15  }
  0x22   : > { %p11_p4 = scmp.ge.s32.totalorder %s14_s15, 4  }
  0x24   :  { %13 = sbr.rel (!%p11_p4) target bundleno = 1 (0x1), region = 75 }

// kernel: forward.15
= control target key start
LH: loop header
LB: loop body
LE: loop exit
PB: predicated region body
PF: predicated region fallthrough
CT: control target
= control target key end

     0   :  { %s2871_s15 = smov 0   ;;  %s2873_s16 = smov 0   ;;  %s3906_s0 = inlined_call_operand.vmem [shape: bf16[2,256,576], index: 0, kind: input, shape index: {}]   ;;  %s3907_s1 = inlined_call_operand.vmem [shape: bf16[576,64], index: 1, kind: input, shape index: {}]   ;;  %s3908_s2 = inlined_call_operand.vmem [shape: f32[1,64], index: 2, kind: input, shape index: {}]   ;;  %s3909_s3 = inlined_call_operand.vmem [shape: f32[1,64], index: 3, kind: input, shape index: {}]   ;;  %s3910_s4 = inlined_call_operand.vmem [shape: f32[2,256,64], index: 4, kind: output, shape index: {}]  }
   0x1   :  { %s2875_s17 = smov 0  }
   0x2 LB: > { %s26_s18 = sadd.s32 1, %s2839_s16  ;;  %p2204_p0 = scmp.ge.s32.totalorder %s2843_s17, 1  ;;  %s2843_s17 = sphi %s2875_s17, %s14_s17   ;;  %s2839_s16 = sphi %s2873_s16, %s3958_s16   ;;  %s2835_s15 = sphi %s2871_s15, %s3957_s15  }
   0x3   : > { %p28_p1 = scmp.ge.s32.totalorder %s26_s18, 2  ;;  %p192_p2 = scmp.lt.s32.totalorder %s2843_s17, 3 }
   0x5   : > { %s3960_s18 = smov (%p28_p1, %s26_s18), 0  ;;  %p193_p3 = pnand %p2204_p0, %p192_p2 }
   0x7   : > { %196 = sbr.rel (%p193_p3) target bundleno = 568 (0x238), region = 36 }
   0xc   : > { %v2671_v0 = vld [vmem:[%s3907_s1 + $0x78] sm:$0xff]   ;;  %v2673_v2 = vld [vmem:[%s3907_s1 + $0x70] sm:$0xff]   ;;  %p228_p4 = scmp.lt.s32.totalorder %s2835_s15, 1  ;;  %v2675_v4 = vld [vmem:[%s3907_s1 + $0x68] sm:$0xff]   ;;  %vm253_vm0 = vcmask 523264  }
   0xd   : > { %v2672_v1 = vld [vmem:[%s3907_s1 + $0x38] sm:$0xff]   ;;  %2345 = vmatprep.subr.bf16.mxu0 %v2671_v0  ;;  %2629 = vmatprep.subr.bf16.mxu1 %v2671_v0  ;;  %v2674_v3 = vld [vmem:[%s3907_s1 + $0x30] sm:$0xff]   ;;  %v2676_v5 = vld [vmem:[%s3907_s1 + $0x28] sm:$0xff]  }
   0xe   : > { %2346 = vmatpush3.bf16.msra.mxu0 %v2672_v1  ;;  %2637 = vmatpush3.bf16.msra.mxu1 %v2672_v1  ;;  %s3962_s15 = smov (!%p228_p4, %s2835_s15), 1  ;;  %v2677_v6 = vld [vmem:[%s3907_s1 + $0x60] sm:$0xff]   ;;  %v2679_v8 = vld [vmem:[%s3907_s1 + $0x58] sm:$0xff]   ;;  %v2681_v10 = vld [vmem:[%s3907_s1 + $0x50] sm:$0xff]  }
   0xf   : > { %2347 = vmatprep.subr.bf16.mxu0 %v2673_v2  ;;  %2630 = vmatprep.subr.bf16.mxu1 %v2673_v2  ;;  %s2645_s7 = smul.u32 640, %s3962_s15  ;;  %v2678_v7 = vld [vmem:[%s3907_s1 + $0x20] sm:$0xff]   ;;  %v2680_v9 = vld [vmem:[%s3907_s1 + $0x18] sm:$0xff]   ;;  %v2682_v13 = vld [vmem:[%s3907_s1 + $0x10] sm:$0xff]   ;;  %s2344_s8 = sshll.u32 %s3962_s15, 8 }
  0x10   : > { %v2683_v14 = vld [vmem:[%s3907_s1 + $0x48] sm:$0xff]   ;;  %v2685_v16 = vld [vmem:[%s3907_s1 + $0x40] sm:$0xff]   ;;  %v2693_v18 = vld [vmem:[%s3907_s1 + $0xf8] sm:$0xff]   ;;  %s3811_s10 = scalar_lea.vmem %s3910_s4, %s2344_s8 }
  0x11   : > { %s2922_s14 = scalar_lea.vmem %s3906_s0, %s2645_s7  ;;  %v2684_v15 = vld [vmem:[%s3907_s1 + $0x8] sm:$0xff]   ;;  %v2686_v17 = vld [vmem:[%s3907_s1] sm:$0xff]   ;;  %v2694_v19 = vld [vmem:[%s3907_s1 + $0x118] sm:$0xff]  }
  0x12   : > { %2348 = vmatpush3.bf16.msra.mxu0 %v2674_v3  ;;  %2638 = vmatpush3.bf16.msra.mxu1 %v2674_v3  ;;  %v2689_v11 = vld [vmem:[%s2922_s14 + $0x4] ss:$20 sps:$4 sm:$0xff]   ;;  %v2687_v20 = vld [vmem:[%s2922_s14] ss:$20 sps:$4 sm:$0xff]   ;;  %v2702_v27 = vld [vmem:[%s2922_s14 + $0x28] ss:$20 sps:$4 sm:$0xff]  }
  0x13   : > { %2349 = vmatprep.subr.bf16.mxu0 %v2675_v4  ;;  %2631 = vmatprep.subr.bf16.mxu1 %v2675_v4  ;;  %v2692_v12 = vld [vmem:[%s2922_s14 + $0x1e4] ss:$20 sps:$4 sm:$0xff]   ;;  %v2690_v21 = vld [vmem:[%s2922_s14 + $0x1e0] ss:$20 sps:$4 sm:$0xff]   ;;  %v2704_v28 = vld [vmem:[%s3907_s1 + $0xe8] sm:$0xff]  }
  0x14   : > { %1183 = vmatprep.mubr.bf16.mxu0 %v2689_v11  ;;  %1279 = vmatprep.mubr.bf16.mxu1 %v2692_v12  ;;  %v2695_v22 = vld [vmem:[%s3907_s1 + $0xb8] sm:$0xff]   ;;  %v2696_v23 = vld [vmem:[%s3907_s1 + $0xf0] sm:$0xff]   ;;  %v2698_v24 = vld [vmem:[%s2922_s14 + $0x2c] ss:$20 sps:$4 sm:$0xff]  }
  0x15   : > { %v2700_v25 = vld [vmem:[%s2922_s14 + $0x20c] ss:$20 sps:$4 sm:$0xff]   ;;  %v2697_v26 = vld [vmem:[%s3907_s1 + $0xb0] sm:$0xff]   ;;  %v2703_v29 = vld [vmem:[%s2922_s14 + $0x208] ss:$20 sps:$4 sm:$0xff]  }
  0x16   : > { %2350 = vmatpush3.bf16.msra.mxu0 %v2676_v5  ;;  %2639 = vmatpush3.bf16.msra.mxu1 %v2676_v5  ;;  %v2705_v30 = vld [vmem:[%s3907_s1 + $0xa8] sm:$0xff]   ;;  %v2706_v31 = vld [vmem:[%s3907_s1 + $0xe0] sm:$0xff]   ;;  %v2725_v34 = vld [vmem:[%s3907_s1 + $0x110] sm:$0xff]  }
  0x17   : > { %2351 = vmatprep.subr.bf16.mxu0 %v2677_v6  ;;  %2632 = vmatprep.subr.bf16.mxu1 %v2677_v6  ;;  %v2708_v32 = vld [vmem:[%s2922_s14 + $0x54] ss:$20 sps:$4 sm:$0xff]   ;;  %v2707_v35 = vld [vmem:[%s3907_s1 + $0xa0] sm:$0xff]   ;;  %v2714_v37 = vld [vmem:[%s3907_s1 + $0xd8] sm:$0xff]  }
  0x18   : > { %v2710_v33 = vld [vmem:[%s2922_s14 + $0x234] ss:$20 sps:$4 sm:$0xff]   ;;  %v2712_v36 = vld [vmem:[%s2922_s14 + $0x50] ss:$20 sps:$4 sm:$0xff]   ;;  %v2715_v39 = vld [vmem:[%s3907_s1 + $0x98] sm:$0xff]  }
  0x19   : > { %v2713_v38 = vld [vmem:[%s2922_s14 + $0x230] ss:$20 sps:$4 sm:$0xff]   ;;  %v2722_v44 = vld [vmem:[%s2922_s14 + $0x78] ss:$20 sps:$4 sm:$0xff]   ;;  %v2731_v53 = vld [vmem:[%s2922_s14 + $0x8] ss:$20 sps:$4 sm:$0xff]  }
  0x1a   : > { %2352 = vmatpush3.bf16.msra.mxu0 %v2678_v7  ;;  %2640 = vmatpush3.bf16.msra.mxu1 %v2678_v7  ;;  %v2716_v40 = vld [vmem:[%s3907_s1 + $0xd0] sm:$0xff]   ;;  %v2723_v45 = vld [vmem:[%s2922_s14 + $0x258] ss:$20 sps:$4 sm:$0xff]   ;;  %v2727_v49 = vld [vmem:[%s3907_s1 + $0xc0] sm:$0xff]  }
  0x1b   : > { %2353 = vmatprep.subr.bf16.mxu0 %v2679_v8  ;;  %2633 = vmatprep.subr.bf16.mxu1 %v2679_v8  ;;  %v2718_v41 = vld [vmem:[%s2922_s14 + $0x7c] ss:$20 sps:$4 sm:$0xff]   ;;  %v2724_v46 = vld [vmem:[%s3907_s1 + $0xc8] sm:$0xff]   ;;  %v2729_v50 = vld [vmem:[%s2922_s14 + $0xa4] ss:$20 sps:$4 sm:$0xff]  }
  0x1c   : > { %v2720_v42 = vld [vmem:[%s2922_s14 + $0x25c] ss:$20 sps:$4 sm:$0xff]   ;;  %v2747_v47 = vld [vmem:[%s3907_s1 + $0x108] sm:$0xff]   ;;  %v2728_v52 = vld [vmem:[%s3907_s1 + $0x80] sm:$0xff]  }
  0x1d   : > { %v2717_v43 = vld [vmem:[%s3907_s1 + $0x90] sm:$0xff]   ;;  %v2726_v48 = vld [vmem:[%s3907_s1 + $0x88] sm:$0xff]   ;;  %v2766_v56 = vld [vmem:[%s3907_s1 + $0x100] sm:$0xff]  }
  0x1e   : > { %2354 = vmatpush3.bf16.msra.mxu0 %v2680_v9  ;;  %2641 = vmatpush3.bf16.msra.mxu1 %v2680_v9  ;;  %v2733_v51 = vld [vmem:[%s2922_s14 + $0xc] ss:$20 sps:$4 sm:$0xff]   ;;  %v2737_v57 = vld [vmem:[%s2922_s14 + $0x34] ss:$20 sps:$4 sm:$0xff]   ;;  %v2740_v59 = vld [vmem:[%s2922_s14 + $0x30] ss:$20 sps:$4 sm:$0xff]  }
  0x1f   : > { %2355 = vmatprep.subr.bf16.mxu0 %v2681_v10  ;;  %2634 = vmatprep.subr.bf16.mxu1 %v2681_v10  ;;  %v2734_v54 = vld [vmem:[%s2922_s14 + $0xa0] ss:$20 sps:$4 sm:$0xff]   ;;  %v2739_v58 = vld [vmem:[%s2922_s14 + $0xc8] ss:$20 sps:$4 sm:$0xff]   ;;  %v2745_v62 = vld [vmem:[%s2922_s14 + $0xf0] ss:$20 sps:$4 sm:$0xff]  }
  0x20   : > { %v2735_v55 = vld [vmem:[%s2922_s14 + $0xcc] ss:$20 sps:$4 sm:$0xff]   ;;  %v2741_v60 = vld [vmem:[%s2922_s14 + $0xf4] ss:$20 sps:$4 sm:$0xff]   ;;  %v2743_v61 = vld [vmem:[%s2922_s14 + $0x5c] ss:$20 sps:$4 sm:$0xff]  }
  0x21   : > { %v2746_v63 = vld [vmem:[%s2922_s14 + $0x58] ss:$20 sps:$4 sm:$0xff]   ;;  %v2748_v0 = vld [vmem:[%s2922_s14 + $0x11c] ss:$20 sps:$4 sm:$0xff]   ;;  %v2753_v3 = vld [vmem:[%s2922_s14 + $0x80] ss:$20 sps:$4 sm:$0xff]  }
  0x22   : > { %2356 = vmatpush3.bf16.msra.mxu0 %v2682_v13  ;;  %2642 = vmatpush3.bf16.msra.mxu1 %v2682_v13  ;;  %v2750_v1 = vld [vmem:[%s2922_s14 + $0x84] ss:$20 sps:$4 sm:$0xff]   ;;  %v2756_v5 = vld [vmem:[%s2922_s14 + $0xac] ss:$20 sps:$4 sm:$0xff]   ;;  %v2759_v7 = vld [vmem:[%s2922_s14 + $0xa8] ss:$20 sps:$4 sm:$0xff]  }
  0x23   : > { %2357 = vmatprep.subr.bf16.mxu0 %v2683_v14  ;;  %2635 = vmatprep.subr.bf16.mxu1 %v2683_v14  ;;  %v2752_v2 = vld [vmem:[%s2922_s14 + $0x118] ss:$20 sps:$4 sm:$0xff]   ;;  %v2758_v6 = vld [vmem:[%s2922_s14 + $0x140] ss:$20 sps:$4 sm:$0xff]   ;;  %v2764_v10 = vld [vmem:[%s2922_s14 + $0x168] ss:$20 sps:$4 sm:$0xff]  }
  0x24   : > { %v2754_v4 = vld [vmem:[%s2922_s14 + $0x144] ss:$20 sps:$4 sm:$0xff]   ;;  %v2760_v8 = vld [vmem:[%s2922_s14 + $0x16c] ss:$20 sps:$4 sm:$0xff]   ;;  %v2762_v9 = vld [vmem:[%s2922_s14 + $0xd4] ss:$20 sps:$4 sm:$0xff]  }
  0x25   : > { %v2765_v11 = vld [vmem:[%s2922_s14 + $0xd0] ss:$20 sps:$4 sm:$0xff]   ;;  %v2767_v12 = vld [vmem:[%s2922_s14 + $0x194] ss:$20 sps:$4 sm:$0xff]  }
  0x26   : > { %2358 = vmatpush3.bf16.msra.mxu0 %v2684_v15  ;;  %2643 = vmatpush3.bf16.msra.mxu1 %v2684_v15  ;;  %v2769_v13 = vld [vmem:[%s2922_s14 + $0xfc] ss:$20 sps:$4 sm:$0xff]   ;;  %v2772_v15 = vld [vmem:[%s2922_s14 + $0xf8] ss:$20 sps:$4 sm:$0xff]  }
  0x27   : > { %2359 = vmatprep.subr.bf16.mxu0 %v2685_v16  ;;  %2636 = vmatprep.subr.bf16.mxu1 %v2685_v16  ;;  %v2771_v14 = vld [vmem:[%s2922_s14 + $0x190] ss:$20 sps:$4 sm:$0xff]  }
  0x28   : > { %v2773_v16 = vld [vmem:[%s2922_s14 + $0x1bc] ss:$20 sps:$4 sm:$0xff]  }
  0x2a   : > { %2360 = vmatpush3.bf16.msra.mxu0 %v2686_v17  ;;  %2644 = vmatpush3.bf16.msra.mxu1 %v2686_v17  ;;  %v2775_v17 = vld [vmem:[%s2922_s14 + $0x124] ss:$20 sps:$4 sm:$0xff]  }
  0x2b   : > { %2457 = vmatprep.subr.bf16.mxu1 %v2693_v18  ;;  %2589 = vmatprep.subr.bf16.mxu0 %v2694_v19  ;;  %v2777_v18 = vld [vmem:[%s2922_s14 + $0x1b8] ss:$20 sps:$4 sm:$0xff]  }
  0x2d   : > { %1184 = vmatmul.mubr.bf16.vlgmr.msra.gmra.mxu0 %v2687_v20  ;;  %1280 = vmatmul.mubr.bf16.vlgmr.msra.gmra.mxu1 %v2690_v21  ;;  %v2779_v20 = vld [vmem:[%s2922_s14 + $0x14c] ss:$20 sps:$4 sm:$0xff]   ;;  %v2781_v21 = vld [vmem:[%s2922_s14 + $0x10] ss:$20 sps:$4 sm:$0xff]  }
  0x2e   : > { %2458 = vmatpush3.bf16.msra.mxu1 %v2695_v22  ;;  %2590 = vmatpush3.bf16.msra.mxu0 %v2694_v19  ;;  %v2778_v19 = vld [vmem:[%s2922_s14 + $0x120] ss:$20 sps:$4 sm:$0xff]   ;;  %v2782_v22 = vld [vmem:[%s2922_s14 + $0x148] ss:$20 sps:$4 sm:$0xff]  }
  0x2f   : > { %2459 = vmatprep.subr.bf16.mxu1 %v2696_v23  ;;  %1191 = vmatprep.mubr.bf16.mxu0 %v2698_v24  ;;  %v2783_v23 = vld [vmem:[%s2922_s14 + $0x38] ss:$20 sps:$4 sm:$0xff]   ;;  %v2784_v24 = vld [vmem:[%s2922_s14 + $0x174] ss:$20 sps:$4 sm:$0xff]  }
  0x30   : > { %1287 = vmatprep.mubr.bf16.mxu1 %v2700_v25  ;;  %2591 = vmatprep.subr.bf16.mxu0 %v2725_v34  ;;  %v2786_v25 = vld [vmem:[%s2922_s14 + $0x60] ss:$20 sps:$4 sm:$0xff]  }
  0x32   : > { %2460 = vmatpush3.bf16.msra.mxu1 %v2697_v26  ;;  %2592 = vmatpush3.bf16.msra.mxu0 %v2725_v34  ;;  %v2787_v26 = vld [vmem:[%s2922_s14 + $0x170] ss:$20 sps:$4 sm:$0xff]   ;;  %v2797_v34 = vld [vmem:[%s2922_s14 + $0x1c0] ss:$20 sps:$4 sm:$0xff]  }
  0x33   : > { %2461 = vmatprep.subr.bf16.mxu1 %v2704_v28  ;;  %2593 = vmatprep.subr.bf16.mxu0 %v2747_v47  ;;  %v2789_v28 = vld [vmem:[%s2922_s14 + $0x19c] ss:$20 sps:$4 sm:$0xff]  }
  0x35   : > { %1192 = vmatmul.mubr.bf16.gmra.mxu0 %v2702_v27  ;;  %1288 = vmatmul.mubr.bf16.gmra.mxu1 %v2703_v29  ;;  %v2788_v27 = vld [vmem:[%s2922_s14 + $0x88] ss:$20 sps:$4 sm:$0xff]   ;;  %v2791_v29 = vld [vmem:[%s2922_s14 + $0xb0] ss:$20 sps:$4 sm:$0xff]  }
  0x36   : > { %2462 = vmatpush3.bf16.msra.mxu1 %v2705_v30  ;;  %1199 = vmatprep.mubr.bf16.mxu0 %v2708_v32  ;;  %v2792_v30 = vld [vmem:[%s2922_s14 + $0x198] ss:$20 sps:$4 sm:$0xff]  }
  0x37   : > { %2463 = vmatprep.subr.bf16.mxu1 %v2706_v31  ;;  %1295 = vmatprep.mubr.bf16.mxu1 %v2710_v33  ;;  %v2793_v31 = vld [vmem:[%s2922_s14 + $0xd8] ss:$20 sps:$4 sm:$0xff]   ;;  %v2796_v33 = vld [vmem:[%s2922_s14 + $0x100] ss:$20 sps:$4 sm:$0xff]  }
  0x38   : > { %2594 = vmatpush3.bf16.msra.mxu0 %v2747_v47  ;;  %v2794_v32 = vld [vmem:[%s2922_s14 + $0x1c4] ss:$20 sps:$4 sm:$0xff]  }
  0x39   : > { %2595 = vmatprep.subr.bf16.mxu0 %v2766_v56  ;;  %v2813_v47 = vld [vmem:[%s2922_s14 + $0x218] ss:$20 sps:$4 sm:$0xff]  }
  0x3a   : > { %2464 = vmatpush3.bf16.msra.mxu1 %v2707_v35  ;;  %v2798_v35 = vld [vmem:[%s2922_s14 + $0x128] ss:$20 sps:$4 sm:$0xff]  }
  0x3b   : > { %2465 = vmatprep.subr.bf16.mxu1 %v2714_v37  ;;  %v2801_v37 = vld [vmem:[%s2922_s14 + $0x150] ss:$20 sps:$4 sm:$0xff]  }
  0x3c   : > { %2596 = vmatpush3.bf16.msra.mxu0 %v2766_v56 }
  0x3d   : > { %1200 = vmatmul.mubr.bf16.gmra.mxu0 %v2712_v36  ;;  %1296 = vmatmul.mubr.bf16.gmra.mxu1 %v2713_v38  ;;  %v2799_v36 = vld [vmem:[%s2922_s14 + $0x1ec] ss:$20 sps:$4 sm:$0xff]   ;;  %v2802_v38 = vld [vmem:[%s2922_s14 + $0x1e8] ss:$20 sps:$4 sm:$0xff]  }
  0x3e   : > { %2466 = vmatpush3.bf16.msra.mxu1 %v2715_v39  ;;  %1207 = vmatprep.mubr.bf16.mxu0 %v2718_v41  ;;  %v2803_v39 = vld [vmem:[%s2922_s14 + $0x178] ss:$20 sps:$4 sm:$0xff]   ;;  %v2806_v41 = vld [vmem:[%s2922_s14 + $0x1a0] ss:$20 sps:$4 sm:$0xff]  }
  0x3f   : > { %2467 = vmatprep.subr.bf16.mxu1 %v2716_v40  ;;  %1303 = vmatprep.mubr.bf16.mxu1 %v2720_v42  ;;  %v2804_v40 = vld [vmem:[%s2922_s14 + $0x214] ss:$20 sps:$4 sm:$0xff]   ;;  %v2807_v42 = vld [vmem:[%s2922_s14 + $0x210] ss:$20 sps:$4 sm:$0xff]  }
  0x42   : > { %2468 = vmatpush3.bf16.msra.mxu1 %v2717_v43  ;;  %v2808_v43 = vld [vmem:[%s2922_s14 + $0x1c8] ss:$20 sps:$4 sm:$0xff]  }
  0x43   : > { %2469 = vmatprep.subr.bf16.mxu1 %v2724_v46  ;;  %v2812_v46 = vld [vmem:[%s2922_s14 + $0x238] ss:$20 sps:$4 sm:$0xff]  }
  0x45   : > { %1208 = vmatmul.mubr.bf16.gmra.mxu0 %v2722_v44  ;;  %1304 = vmatmul.mubr.bf16.gmra.mxu1 %v2723_v45  ;;  %v2809_v44 = vld [vmem:[%s2922_s14 + $0x23c] ss:$20 sps:$4 sm:$0xff]  }
  0x46   : > { %2470 = vmatpush3.bf16.msra.mxu1 %v2726_v48  ;;  %1215 = vmatprep.mubr.bf16.mxu0 %v2729_v50  ;;  %v2811_v45 = vld [vmem:[%s2922_s14 + $0x1f0] ss:$20 sps:$4 sm:$0xff]   ;;  %v2817_v50 = vld [vmem:[%s2922_s14 + $0x260] ss:$20 sps:$4 sm:$0xff]  }
  0x47   : > { %2471 = vmatprep.subr.bf16.mxu1 %v2727_v49  ;;  %1344 = vmatprep.mubr.bf16.mxu1 %v2733_v51  ;;  %v2814_v48 = vld [vmem:[%s2922_s14 + $0x264] ss:$20 sps:$4 sm:$0xff]   ;;  %v2816_v49 = vld [vmem:[%s2922_s14 + $0x240] ss:$20 sps:$4 sm:$0xff]   ;;  %v2818_v51 = vld [vmem:[%s2922_s14 + $0x268] ss:$20 sps:$4 sm:$0xff]  }
  0x4a   : > { %2472 = vmatpush3.bf16.msra.mxu1 %v2728_v52  ;;  %v2845_v52 = vmov 0.0  }
  0x4b   : > { %256 = vst.msk [vmem:[#allocation2 + $0x10] sm:$0xff] %vm253_vm0, %v2845_v52  ;;  %254 = vst.msk [vmem:[#allocation2] sm:$0xff] %vm253_vm0, %v2845_v52 }
  0x4c   : > { %255 = vst.msk [vmem:[#allocation2 + $0x8] sm:$0xff] %vm253_vm0, %v2845_v52  ;;  %257 = vst.msk [vmem:[#allocation2 + $0x18] sm:$0xff] %vm253_vm0, %v2845_v52 }
  0x4d   : > { %1216 = vmatmul.mubr.bf16.gmra.mxu0 %v2734_v54  ;;  %1345 = vmatmul.mubr.bf16.vlgmr.msra.gmra.mxu1 %v2731_v53  ;;  %258 = vst.msk [vmem:[#allocation2 + $0x20] sm:$0xff] %vm253_vm0, %v2845_v52  ;;  %259 = vst.msk [vmem:[#allocation2 + $0x28] sm:$0xff] %vm253_vm0, %v2845_v52 }
  0x4e   : > { %1223 = vmatprep.mubr.bf16.mxu0 %v2735_v55  ;;  %1352 = vmatprep.mubr.bf16.mxu1 %v2737_v57  ;;  %260 = vst.msk [vmem:[#allocation2 + $0x30] sm:$0xff] %vm253_vm0, %v2845_v52  ;;  %261 = vst.msk [vmem:[#allocation2 + $0x38] sm:$0xff] %vm253_vm0, %v2845_v52 }
  0x4f   : > { %262 = vst.msk [vmem:[#allocation2 + $0x40] sm:$0xff] %vm253_vm0, %v2845_v52  ;;  %263 = vst.msk [vmem:[#allocation2 + $0x48] sm:$0xff] %vm253_vm0, %v2845_v52 }
  0x50   : > { %264 = vst.msk [vmem:[#allocation2 + $0x50] sm:$0xff] %vm253_vm0, %v2845_v52  ;;  %265 = vst.msk [vmem:[#allocation2 + $0x58] sm:$0xff] %vm253_vm0, %v2845_v52 }
  0x51   : > { %266 = vst.msk [vmem:[#allocation2 + $0x60] sm:$0xff] %vm253_vm0, %v2845_v52  ;;  %267 = vst.msk [vmem:[#allocation2 + $0x68] sm:$0xff] %vm253_vm0, %v2845_v52 }
  0x52   : > { %268 = vst.msk [vmem:[#allocation2 + $0x70] sm:$0xff] %vm253_vm0, %v2845_v52  ;;  %269 = vst.msk [vmem:[#allocation2 + $0x78] sm:$0xff] %vm253_vm0, %v2845_v52 }
  0x53   : > { %270 = vst.msk [vmem:[#allocation2 + $0x80] sm:$0xff] %vm253_vm0, %v2845_v52  ;;  %271 = vst.msk [vmem:[#allocation2 + $0x88] sm:$0xff] %vm253_vm0, %v2845_v52 }
  0x54   : > { %272 = vst.msk [vmem:[#allocation2 + $0x90] sm:$0xff] %vm253_vm0, %v2845_v52  ;;  %273 = vst.msk [vmem:[#allocation2 + $0x98] sm:$0xff] %vm253_vm0, %v2845_v52 }
  0x55   : > { %1224 = vmatmul.mubr.bf16.gmra.mxu0 %v2739_v58  ;;  %1353 = vmatmul.mubr.bf16.gmra.mxu1 %v2740_v59  ;;  %274 = vst.msk [vmem:[#allocation2 + $0xa0] sm:$0xff] %vm253_vm0, %v2845_v52  ;;  %275 = vst.msk [vmem:[#allocation2 + $0xa8] sm:$0xff] %vm253_vm0, %v2845_v52 }
  0x56   : > { %1231 = vmatprep.mubr.bf16.mxu0 %v2741_v60  ;;  %1360 = vmatprep.mubr.bf16.mxu1 %v2743_v61  ;;  %276 = vst.msk [vmem:[#allocation2 + $0xb0] sm:$0xff] %vm253_vm0, %v2845_v52  ;;  %277 = vst.msk [vmem:[#allocation2 + $0xb8] sm:$0xff] %vm253_vm0, %v2845_v52 }
  0x57   : > { %278 = vst.msk [vmem:[#allocation2 + $0xc0] sm:$0xff] %vm253_vm0, %v2845_v52  ;;  %279 = vst.msk [vmem:[#allocation2 + $0xc8] sm:$0xff] %vm253_vm0, %v2845_v52 }
  0x58   : > { %280 = vst.msk [vmem:[#allocation2 + $0xd0] sm:$0xff] %vm253_vm0, %v2845_v52  ;;  %281 = vst.msk [vmem:[#allocation2 + $0xd8] sm:$0xff] %vm253_vm0, %v2845_v52 }
  0x59   : > { %282 = vst.msk [vmem:[#allocation2 + $0xe0] sm:$0xff] %vm253_vm0, %v2845_v52  ;;  %283 = vst.msk [vmem:[#allocation2 + $0xe8] sm:$0xff] %vm253_vm0, %v2845_v52 }
  0x5a   : > { %284 = vst.msk [vmem:[#allocation2 + $0xf0] sm:$0xff] %vm253_vm0, %v2845_v52  ;;  %285 = vst.msk [vmem:[#allocation2 + $0xf8] sm:$0xff] %vm253_vm0, %v2845_v52 }
  0x5d   : > { %1232 = vmatmul.mubr.bf16.gmra.mxu0 %v2745_v62  ;;  %1361 = vmatmul.mubr.bf16.gmra.mxu1 %v2746_v63 }
  0x5e   : > { %1239 = vmatprep.mubr.bf16.mxu0 %v2748_v0  ;;  %1368 = vmatprep.mubr.bf16.mxu1 %v2750_v1 }
  0x65   : > { %1240 = vmatmul.mubr.bf16.gmra.mxu0 %v2752_v2  ;;  %1369 = vmatmul.mubr.bf16.gmra.mxu1 %v2753_v3 }
  0x66   : > { %1247 = vmatprep.mubr.bf16.mxu0 %v2754_v4  ;;  %1376 = vmatprep.mubr.bf16.mxu1 %v2756_v5 }
  0x6d   : > { %1248 = vmatmul.mubr.bf16.gmra.mxu0 %v2758_v6  ;;  %1377 = vmatmul.mubr.bf16.gmra.mxu1 %v2759_v7 }
  0x6e   : > { %1255 = vmatprep.mubr.bf16.mxu0 %v2760_v8  ;;  %1384 = vmatprep.mubr.bf16.mxu1 %v2762_v9 }
  0x75   : > { %1256 = vmatmul.mubr.bf16.gmra.mxu0 %v2764_v10  ;;  %1385 = vmatmul.mubr.bf16.gmra.mxu1 %v2765_v11 }
  0x76   : > { %1263 = vmatprep.mubr.bf16.mxu0 %v2767_v12  ;;  %1392 = vmatprep.mubr.bf16.mxu1 %v2769_v13 }
  0x7d   : > { %1264 = vmatmul.mubr.bf16.gmra.mxu0 %v2771_v14  ;;  %1393 = vmatmul.mubr.bf16.gmra.mxu1 %v2772_v15 }
  0x7e   : > { %1271 = vmatprep.mubr.bf16.mxu0 %v2773_v16  ;;  %1400 = vmatprep.mubr.bf16.mxu1 %v2775_v17 }
  0x85   : > { %1272 = vmatmul.mubr.bf16.gmra.mxu0 %v2777_v18  ;;  %1401 = vmatmul.mubr.bf16.gmra.mxu1 %v2778_v19 }
  0x86   : > { %1408 = vmatprep.mubr.bf16.mxu1 %v2779_v20  ;;  %2597 = vmatprep.mubr.msk.bf16.mxu0 %vm253_vm0, %v2781_v21 }
  0x8d   : > { %1409 = vmatmul.mubr.bf16.gmra.mxu1 %v2782_v22  ;;  %2598 = vmatmul.mubr.msk.bf16.vlgmr.msra.gmra.mxu0 %vm253_vm0, %v2783_v23 }
  0x8e   : > { %1416 = vmatprep.mubr.bf16.mxu1 %v2784_v24  ;;  %2601 = vmatprep.mubr.msk.bf16.mxu0 %vm253_vm0, %v2786_v25 }
  0x95   : > { %1417 = vmatmul.mubr.bf16.gmra.mxu1 %v2787_v26  ;;  %2602 = vmatmul.mubr.msk.bf16.gmra.mxu0 %vm253_vm0, %v2788_v27 }
  0x96   : > { %1424 = vmatprep.mubr.bf16.mxu1 %v2789_v28  ;;  %2605 = vmatprep.mubr.msk.bf16.mxu0 %vm253_vm0, %v2791_v29 }
  0x9d   : > { %1425 = vmatmul.mubr.bf16.gmra.mxu1 %v2792_v30  ;;  %2606 = vmatmul.mubr.msk.bf16.gmra.mxu0 %vm253_vm0, %v2793_v31 }
  0x9e   : > { %1432 = vmatprep.mubr.bf16.mxu1 %v2794_v32  ;;  %2609 = vmatprep.mubr.msk.bf16.mxu0 %vm253_vm0, %v2796_v33 }
  0xa5   : > { %1433 = vmatmul.mubr.bf16.gmra.mxu1 %v2797_v34  ;;  %2610 = vmatmul.mubr.msk.bf16.gmra.mxu0 %vm253_vm0, %v2798_v35 }
  0xa6   : > { %1440 = vmatprep.mubr.bf16.mxu1 %v2799_v36  ;;  %2613 = vmatprep.mubr.msk.bf16.mxu0 %vm253_vm0, %v2801_v37 }
  0xad   : > { %1441 = vmatmul.mubr.bf16.gmra.mxu1 %v2802_v38  ;;  %2614 = vmatmul.mubr.msk.bf16.gmra.mxu0 %vm253_vm0, %v2803_v39 }
  0xae   : > { %1448 = vmatprep.mubr.bf16.mxu1 %v2804_v40  ;;  %2617 = vmatprep.mubr.msk.bf16.mxu0 %vm253_vm0, %v2806_v41 }
  0xb5   : > { %1449 = vmatmul.mubr.bf16.gmra.mxu1 %v2807_v42  ;;  %2618 = vmatmul.mubr.msk.bf16.gmra.mxu0 %vm253_vm0, %v2808_v43 }
  0xb6   : > { %1456 = vmatprep.mubr.bf16.mxu1 %v2809_v44  ;;  %2621 = vmatprep.mubr.msk.bf16.mxu0 %vm253_vm0, %v2811_v45 }
  0xbd   : > { %1457 = vmatmul.mubr.bf16.gmra.mxu1 %v2812_v46  ;;  %2622 = vmatmul.mubr.msk.bf16.gmra.mxu0 %vm253_vm0, %v2813_v47 }
  0xbe   : > { %1464 = vmatprep.mubr.bf16.mxu1 %v2814_v48  ;;  %2625 = vmatprep.mubr.msk.bf16.mxu0 %vm253_vm0, %v2816_v49 }
  0xc5   : > { %1465 = vmatmul.mubr.bf16.gmra.mxu1 %v2817_v50  ;;  %2626 = vmatmul.mubr.msk.bf16.gmra.mxu0 %vm253_vm0, %v2818_v51 }
  0xed   : > { %v2361_v53 = vpop.f32.mrf.mxu0  ;;  %v2433_v54 = vpop.f32.mrf.mxu1 }
  0xef   : > { %v2362_v55 = vpop.f32.mrf.mxu0  ;;  %v2434_v56 = vpop.f32.mrf.mxu1 }
  0xf0   : > { %v3133_v57 = vadd.f32 %v2362_v55, %v2361_v53  ;;  %v3135_v58 = vadd.f32 %v2434_v56, %v2433_v54 }
  0xf1   : > { %v2364_v59 = vpop.f32.mrf.mxu0  ;;  %v2436_v60 = vpop.f32.mrf.mxu1 }
  0xf2   : > { %3911 = vst [vmem:[#allocation3_spill] sm:$0xff] %v3135_v58 }
  0xf3   : > { %v2365_v61 = vpop.f32.mrf.mxu0  ;;  %v2437_v62 = vpop.f32.mrf.mxu1 }
  0xf4   : > { %v3137_v63 = vadd.f32 %v2365_v61, %v2364_v59  ;;  %v3139_v0 = vadd.f32 %v2437_v62, %v2436_v60 }
  0xf5   : > { %v2367_v1 = vpop.f32.mrf.mxu0  ;;  %v2439_v2 = vpop.f32.mrf.mxu1 }
  0xf6   : > { %3912 = vst [vmem:[#allocation4_spill] sm:$0xff] %v3139_v0 }
  0xf7   : > { %v2368_v3 = vpop.f32.mrf.mxu0  ;;  %v2440_v4 = vpop.f32.mrf.mxu1 }
  0xf8   : > { %v3141_v5 = vadd.f32 %v2368_v3, %v2367_v1  ;;  %v3143_v6 = vadd.f32 %v2440_v4, %v2439_v2 }
  0xf9   : > { %v2370_v7 = vpop.f32.mrf.mxu0  ;;  %v2442_v8 = vpop.f32.mrf.mxu1 }
  0xfa   : > { %3913 = vst [vmem:[#allocation5_spill] sm:$0xff] %v3143_v6 }
  0xfb   : > { %v2371_v9 = vpop.f32.mrf.mxu0  ;;  %v2443_v10 = vpop.f32.mrf.mxu1 }
  0xfc   : > { %v3145_v11 = vadd.f32 %v2371_v9, %v2370_v7  ;;  %v3147_v12 = vadd.f32 %v2443_v10, %v2442_v8 }
  0xfd   : > { %v2373_v13 = vpop.f32.mrf.mxu0  ;;  %v2445_v14 = vpop.f32.mrf.mxu1 }
  0xfe   : > { %3914 = vst [vmem:[#allocation6_spill] sm:$0xff] %v3147_v12 }
  0xff   : > { %v2374_v15 = vpop.f32.mrf.mxu0  ;;  %v2446_v16 = vpop.f32.mrf.mxu1 }
 0x100   : > { %v3149_v17 = vadd.f32 %v2374_v15, %v2373_v13  ;;  %v3151_v18 = vadd.f32 %v2446_v16, %v2445_v14 }
 0x101   : > { %v2376_v19 = vpop.f32.mrf.mxu0  ;;  %v2448_v20 = vpop.f32.mrf.mxu1 }
 0x102   : > { %3915 = vst [vmem:[#allocation7_spill] sm:$0xff] %v3151_v18 }
 0x103   : > { %v2377_v21 = vpop.f32.mrf.mxu0  ;;  %v2449_v22 = vpop.f32.mrf.mxu1 }
 0x104   : > { %v3153_v23 = vadd.f32 %v2377_v21, %v2376_v19  ;;  %v3155_v24 = vadd.f32 %v2449_v22, %v2448_v20 }
 0x105   : > { %v2379_v25 = vpop.f32.mrf.mxu0  ;;  %v2451_v26 = vpop.f32.mrf.mxu1 }
 0x106   : > { %3916 = vst [vmem:[#allocation8_spill] sm:$0xff] %v3155_v24 }
 0x107   : > { %v2380_v27 = vpop.f32.mrf.mxu0  ;;  %v2452_v28 = vpop.f32.mrf.mxu1 }
 0x108   : > { %v3157_v29 = vadd.f32 %v2380_v27, %v2379_v25  ;;  %v3159_v30 = vadd.f32 %v2452_v28, %v2451_v26 }
 0x109   : > { %v2382_v31 = vpop.f32.mrf.mxu0  ;;  %v2454_v32 = vpop.f32.mrf.mxu1 }
 0x10a   : > { %3917 = vst [vmem:[#allocation9_spill] sm:$0xff] %v3159_v30 }
 0x10b   : > { %v2383_v33 = vpop.f32.mrf.mxu0  ;;  %v2455_v34 = vpop.f32.mrf.mxu1 }
 0x10c   : > { %v3161_v35 = vadd.f32 %v2383_v33, %v2382_v31  ;;  %v3163_v36 = vadd.f32 %v2455_v34, %v2454_v32 }
 0x10d   : > { %v2385_v37 = vpop.f32.mrf.mxu0  ;;  %v3165_v38 = vpop.f32.mrf.mxu1 }
 0x10e   : > { %3918 = vst [vmem:[#allocation10_spill] sm:$0xff] %v3163_v36 }
 0x10f   : > { %v2386_v39 = vpop.f32.mrf.mxu0  ;;  %v3167_v40 = vpop.f32.mrf.mxu1 }
 0x110   : > { %v3169_v41 = vadd.f32 %v2386_v39, %v2385_v37 }
 0x111   : > { %v2388_v42 = vpop.f32.mrf.mxu0  ;;  %v3171_v43 = vpop.f32.mrf.mxu1 }
 0x113   : > { %v2389_v44 = vpop.f32.mrf.mxu0  ;;  %v3173_v45 = vpop.f32.mrf.mxu1 }
 0x114   : > { %v3175_v46 = vadd.f32 %v2389_v44, %v2388_v42 }
 0x115   : > { %v2391_v47 = vpop.f32.mrf.mxu0  ;;  %v2479_v48 = vpop.f32.mrf.mxu1 }
 0x117   : > { %v2392_v49 = vpop.f32.mrf.mxu0  ;;  %v2480_v50 = vpop.f32.mrf.mxu1 }
 0x118   : > { %v3177_v51 = vadd.f32 %v2392_v49, %v2391_v47  ;;  %v2481_v58 = vadd.f32 %v2480_v50, %v2479_v48  ;;  %v2478_v48 = vadd.f32 %v3173_v45, %v3171_v43 }
 0x119   : > { %v2394_v52 = vpop.f32.mrf.mxu0  ;;  %v2482_v53 = vpop.f32.mrf.mxu1 }
 0x11a   : > { %v1350_v43 = vadd.f32 %v2478_v48, %v3137_v63 }
 0x11b   : > { %v2395_v54 = vpop.f32.mrf.mxu0  ;;  %v2483_v55 = vpop.f32.mrf.mxu1 }
 0x11c   : > { %v3179_v56 = vadd.f32 %v2395_v54, %v2394_v52 }
 0x11d   : > { %v2397_v59 = vpop.f32.mrf.mxu0  ;;  %v3181_v60 = vpop.f32.mrf.mxu1 }
 0x11f   : > { %v2398_v61 = vpop.f32.mrf.mxu0  ;;  %v3183_v62 = vpop.f32.mrf.mxu1 }
 0x120   : > { %v3185_v1 = vadd.f32 %v2398_v61, %v2397_v59 }
 0x121   : > { %v2400_v2 = vpop.f32.mrf.mxu0  ;;  %v3187_v3 = vpop.f32.mrf.mxu1 }
 0x123   : > { %v2401_v4 = vpop.f32.mrf.mxu0  ;;  %v3189_v7 = vpop.f32.mrf.mxu1 }
 0x124   : > { %v3191_v8 = vadd.f32 %v2401_v4, %v2400_v2 }
 0x125   : > { %v3193_v9 = vpop.f32.mrf.mxu0  ;;  %v2491_v10 = vpop.f32.mrf.mxu1 }
 0x127   : > { %v3195_v13 = vpop.f32.mrf.mxu0  ;;  %v2492_v14 = vpop.f32.mrf.mxu1 }
 0x129   : > { %v3197_v15 = vpop.f32.mrf.mxu0  ;;  %v3199_v16 = vpop.f32.mrf.mxu1 }
 0x12b   : > { %v3201_v19 = vpop.f32.mrf.mxu0  ;;  %v2495_v20 = vpop.f32.mrf.mxu1 }
 0x12d   : > { %v3203_v21 = vpop.f32.mrf.mxu0  ;;  %v3205_v22 = vpop.f32.mrf.mxu1 }
 0x12e   : > { %3919 = vst [vmem:[#allocation11_spill] sm:$0xff] %v3203_v21 }
 0x12f   : > { %v3207_v25 = vpop.f32.mrf.mxu0  ;;  %v3209_v26 = vpop.f32.mrf.mxu1 }
 0x130   : > { %3920 = vst [vmem:[#allocation12_spill] sm:$0xff] %v3207_v25 }
 0x131   : > { %v3211_v27 = vpop.f32.mrf.mxu0  ;;  %v3213_v28 = vpop.f32.mrf.mxu1 }
 0x132   : > { %3921 = vst [vmem:[#allocation13_spill] sm:$0xff] %v3211_v27 }
 0x133   : > { %v3215_v31 = vpop.f32.mrf.mxu0  ;;  %v3217_v32 = vpop.f32.mrf.mxu1 }
 0x134   : > { %3922 = vst [vmem:[#allocation14_spill] sm:$0xff] %v3215_v31  ;;  %v2484_v31 = vadd.f32 %v2483_v55, %v2482_v53 }
 0x135   : > { %v3219_v33 = vpop.f32.mrf.mxu0  ;;  %v3221_v34 = vpop.f32.mrf.mxu1 }
 0x136   : > { %v1358_v53 = vadd.f32 %v2484_v31, %v3145_v11 }
 0x137   : > { %v3223_v37 = vpop.f32.mrf.mxu0  ;;  %v3225_v39 = vpop.f32.mrf.mxu1 }
 0x139   : > { %v3227_v42 = vpop.f32.mrf.mxu0  ;;  %v3229_v44 = vpop.f32.mrf.mxu1 }
 0x13a   : > { %3923 = vst [vmem:[#allocation15_spill] sm:$0xff] %v3227_v42 }
 0x13b   : > { %v3231_v47 = vpop.f32.mrf.mxu0  ;;  %v3233_v49 = vpop.f32.mrf.mxu1 }
 0x13c   : > { %3924 = vst [vmem:[#allocation16_spill] sm:$0xff] %v3231_v47 }
 0x13d   : > { %v3235_v52 = vpop.f32.mrf.mxu0  ;;  %v3237_v54 = vpop.f32.mrf.mxu1 }
 0x13e   : > { %3925 = vst [vmem:[#allocation17_spill] sm:$0xff] %v3235_v52 }
 0x13f   : > { %v3239_v59 = vpop.f32.mrf.mxu0  ;;  %v3241_v61 = vpop.f32.mrf.mxu1 }
 0x140   : > { %3926 = vst [vmem:[#allocation18_spill] sm:$0xff] %v3239_v59 }
 0x141   : > { %v3243_v2 = vpop.f32.mrf.mxu0  ;;  %v3245_v4 = vpop.f32.mrf.mxu1 }
 0x142   : > { %3927 = vst [vmem:[#allocation19_spill] sm:$0xff] %v3243_v2  ;;  %v2475_v2 = vadd.f32 %v3167_v40, %v3165_v38  ;;  %v286_v38 = vld [vmem:[#allocation2] sm:$0xff] }
 0x143   : > { %v3247_v36 = vpop.f32.mrf.mxu0  ;;  %v3249_v24 = vpop.f32.mrf.mxu1 }
 0x144   : > { %3928 = vst [vmem:[#allocation20_spill] sm:$0xff] %v3247_v36 }
 0x145   : > { %v3251_v30 = vpop.f32.mrf.mxu0  ;;  %v3253_v18 = vpop.f32.mrf.mxu1 }
 0x146   : > { %3929 = vst [vmem:[#allocation21_spill] sm:$0xff] %v3251_v30  ;;  %v1355_v30 = vadd.f32 %v2481_v58, %v3141_v5  ;;  %v289_v5 = vld [vmem:[#allocation2 + $0x18] sm:$0xff] }
 0x147   : > { %v3255_v0 = vpop.f32.mrf.mxu0  ;;  %v3257_v12 = vpop.f32.mrf.mxu1 }
 0x148   : > { %3930 = vst [vmem:[#allocation22_spill] sm:$0xff] %v3255_v0  ;;  %v288_v0 = vld [vmem:[#allocation2 + $0x10] sm:$0xff] }
 0x149   : > { %v3259_v6 = vpop.f32.mrf.mxu0  ;;  %v3261_v59 = vpop.f32.mrf.mxu1 }
 0x14a   : > { %3931 = vst [vmem:[#allocation23_spill] sm:$0xff] %v3259_v6  ;;  %v1347_v6 = vadd.f32 %v2475_v2, %v3133_v57 }
 0x14b   : > { %v3265_v52 = vpop.f32.mrf.mxu0  ;;  %v3267_v36 = vpop.f32.mrf.mxu1 }
 0x14c   : > { %3932 = vst [vmem:[#allocation24_spill] sm:$0xff] %v3265_v52  ;;  %v2493_v52 = vadd.f32 %v2492_v14, %v2491_v10  ;;  %v287_v10 = vld [vmem:[#allocation2 + $0x8] sm:$0xff] }
 0x14d   : > { %v3270_v27 = vpop.f32.mrf.mxu1  ;;  %v2599_v47 = vpop.f32.mrf.mxu0 }
 0x14e   : > { %3933 = vst [vmem:[#allocation25_spill] sm:$0xff] %v3270_v27  ;;  %v1516_v50 = vadd.f32 %v2599_v47, %v1355_v30  ;;  %v2487_v27 = vadd.f32 %v3183_v62, %v3181_v60  ;;  %v1371_v31 = vadd.f32 %v2493_v52, %v3157_v29  ;;  %v292_v60 = vld [vmem:[#allocation2 + $0x30] sm:$0xff]  ;;  %v2505_v29 = vadd.f32 %v3225_v39, %v3221_v34 }
 0x14f   : > { %v3275_v42 = vpop.f32.mrf.mxu1  ;;  %v1507_v40 = vpop.f32.mrf.mxu0  ;;  %v2508_v34 = vadd.f32 %v3233_v49, %v3229_v44 }
 0x150   : > { %v1636_v25 = vadd.f32 %v1516_v50, %v288_v0  ;;  %v1508_v21 = vadd.f32 %v1507_v40, %v1347_v6  ;;  %v2496_v6 = vadd.f32 %v2495_v20, %v3199_v16  ;;  %v1363_v2 = vadd.f32 %v2487_v27, %v3149_v17  ;;  %v290_v20 = vld [vmem:[#allocation2 + $0x20] sm:$0xff] }
 0x151   : > { %v3278_v58 = vpop.f32.mrf.mxu1  ;;  %v2600_v55 = vpop.f32.mrf.mxu0  ;;  %v2499_v17 = vadd.f32 %v3209_v26, %v3205_v22  ;;  %v2502_v22 = vadd.f32 %v3217_v32, %v3213_v28  ;;  %v294_v32 = vld [vmem:[#allocation2 + $0x40] sm:$0xff] }
 0x152   : > { %1668 = vst.msk [vmem:[#allocation2 + $0x10] sm:$0xff] %vm253_vm0, %v1636_v25  ;;  %v1634_v30 = vadd.f32 %v1508_v21, %v286_v38  ;;  %v1519_v57 = vadd.f32 %v2600_v55, %v1358_v53  ;;  %v2490_v21 = vadd.f32 %v3189_v7, %v3187_v3  ;;  %v1374_v38 = vadd.f32 %v2496_v6, %v3161_v35  ;;  %v293_v7 = vld [vmem:[#allocation2 + $0x38] sm:$0xff]  ;;  %v291_v55 = vld [vmem:[#allocation2 + $0x28] sm:$0xff] }
 0x153   : > { %v3284_v45 = vpop.f32.mrf.mxu1  ;;  %v1510_v0 = vpop.f32.mrf.mxu0  ;;  %v1379_v6 = vadd.f32 %v2499_v17, %v3169_v41  ;;  %v295_v17 = vld [vmem:[#allocation2 + $0x48] sm:$0xff] }
 0x154   : > { %1666 = vst.msk [vmem:[#allocation2] sm:$0xff] %vm253_vm0, %v1634_v30  ;;  %v1637_v11 = vadd.f32 %v1519_v57, %v289_v5  ;;  %v1511_v14 = vadd.f32 %v1510_v0, %v1350_v43  ;;  %v1366_v5 = vadd.f32 %v2490_v21, %v3153_v23  ;;  %v1387_v43 = vadd.f32 %v2505_v29, %v3177_v51  ;;  %v296_v23 = vld [vmem:[#allocation2 + $0x50] sm:$0xff] }
 0x155   : > { %v3289_v47 = vpop.f32.mrf.mxu1  ;;  %v2603_v62 = vpop.f32.mrf.mxu0  ;;  %v2511_v29 = vadd.f32 %v3241_v61, %v3237_v54 }
 0x156   : > { %1669 = vst.msk [vmem:[#allocation2 + $0x18] sm:$0xff] %vm253_vm0, %v1637_v11  ;;  %v1635_v63 = vadd.f32 %v1511_v14, %v287_v10  ;;  %v1532_v25 = vadd.f32 %v2603_v62, %v1371_v31  ;;  %v2517_v11 = vadd.f32 %v3257_v12, %v3253_v18  ;;  %v2405_v18 = vadd.f32 %v3195_v13, %v3193_v9 }
 0x157   : > { %v3295_v16 = vpop.f32.mrf.mxu1  ;;  %v1523_v48 = vpop.f32.mrf.mxu0  ;;  %v2520_v9 = vadd.f32 %v3267_v36, %v3261_v59  ;;  %v2514_v36 = vadd.f32 %v3249_v24, %v3245_v4  ;;  %v298_v4 = vld [vmem:[#allocation2 + $0x60] sm:$0xff] }
 0x158   : > { %1667 = vst.msk [vmem:[#allocation2 + $0x8] sm:$0xff] %vm253_vm0, %v1635_v63  ;;  %v1640_v52 = vadd.f32 %v1532_v25, %v292_v60  ;;  %v1524_v50 = vadd.f32 %v1523_v48, %v1363_v2  ;;  %v1390_v60 = vadd.f32 %v2508_v34, %v3179_v56  ;;  %v1382_v48 = vadd.f32 %v2502_v22, %v3175_v46 }
 0x159   : > { %v3301_v3 = vpop.f32.mrf.mxu1  ;;  %v2604_v40 = vpop.f32.mrf.mxu0  ;;  %v3323_v14 = vld [vmem:[#allocation2 + $0x10] sm:$0xff]  ;;  %v1395_v22 = vadd.f32 %v2511_v29, %v3185_v1  ;;  %v2417_v1 = vadd.f32 %v3223_v37, %v3219_v33  ;;  %v3936_v33 = vld [vmem:[#allocation12_spill] sm:$0xff] }
 0x15a   : > { %1672 = vst.msk [vmem:[#allocation2 + $0x30] sm:$0xff] %vm253_vm0, %v1640_v52  ;;  %v1638_v27 = vadd.f32 %v1524_v50, %v290_v20  ;;  %v1535_v53 = vadd.f32 %v2604_v40, %v1374_v38  ;;  %v297_v20 = vld [vmem:[#allocation2 + $0x58] sm:$0xff]  ;;  %v1736_v52 = vsel %vm253_vm0, %v3323_v14, 0.0 }
 0x15b   : > { %v3309_v39 = vpop.f32.mrf.mxu1  ;;  %v1526_v35 = vpop.f32.mrf.mxu0  ;;  %v3315_v26 = vld [vmem:[#allocation2] sm:$0xff] }
 0x15c   : > { %1670 = vst.msk [vmem:[#allocation2 + $0x20] sm:$0xff] %vm253_vm0, %v1638_v27  ;;  %v1641_v30 = vadd.f32 %v1535_v53, %v293_v7  ;;  %v1527_v57 = vadd.f32 %v1526_v35, %v1366_v5  ;;  %v1733_v62 = vsel %vm253_vm0, %v3315_v26, 0.0  ;;  %v1403_v53 = vadd.f32 %v2517_v11, %v2405_v18  ;;  %v3934_v18 = vld [vmem:[#allocation25_spill] sm:$0xff] }
 0x15d   : > { %v3317_v10 = vpop.f32.mrf.mxu1  ;;  %v2607_v0 = vpop.f32.mrf.mxu0  ;;  %v3337_v63 = vld [vmem:[#allocation2 + $0x18] sm:$0xff]  ;;  %v2408_v5 = vadd.f32 %v3201_v19, %v3197_v15 }
 0x15e   : > { %1673 = vst.msk [vmem:[#allocation2 + $0x38] sm:$0xff] %vm253_vm0, %v1641_v30  ;;  %v1639_v44 = vadd.f32 %v1527_v57, %v291_v55  ;;  %v1548_v49 = vadd.f32 %v2607_v0, %v1387_v43  ;;  %v1738_v54 = vsel %vm253_vm0, %v3337_v63, 0.0  ;;  %v300_v55 = vld [vmem:[#allocation2 + $0x70] sm:$0xff] }
 0x15f   : > { %v3325_v51 = vld [vmem:[#allocation2 + $0x8] sm:$0xff]  ;;  %v3327_v28 = vpop.f32.mrf.mxu1  ;;  %v1539_v31 = vpop.f32.mrf.mxu0 }
 0x160   : > { %v1734_v21 = vsel %vm253_vm0, %v3325_v51, 0.0  ;;  %1671 = vst.msk [vmem:[#allocation2 + $0x28] sm:$0xff] %vm253_vm0, %v1639_v44  ;;  %v1644_v41 = vadd.f32 %v1548_v49, %v296_v23  ;;  %v1540_v12 = vadd.f32 %v1539_v31, %v1379_v6  ;;  %v1406_v44 = vadd.f32 %v2520_v9, %v2408_v5 }
 0x161   : > { %v1735_v25 = vadd.f32 %v1734_v21, %v1733_v62  ;;  %v3339_v2 = vpop.f32.mrf.mxu1  ;;  %v2608_v56 = vpop.f32.mrf.mxu0  ;;  %v3366_v23 = vld [vmem:[#allocation2 + $0x30] sm:$0xff]  ;;  %v2529_v49 = vadd.f32 %v3295_v16, %v3289_v47  ;;  %v301_v21 = vld [vmem:[#allocation2 + $0x78] sm:$0xff]  ;;  %v2523_v47 = vadd.f32 %v3275_v42, %v3934_v18 }
 0x162   : > { %1676 = vst.msk [vmem:[#allocation2 + $0x50] sm:$0xff] %vm253_vm0, %v1644_v41  ;;  %v1642_v50 = vadd.f32 %v1540_v12, %v294_v32  ;;  %v1551_v38 = vadd.f32 %v2608_v56, %v1390_v60  ;;  %v1398_v12 = vadd.f32 %v2514_v36, %v3191_v8  ;;  %v1744_v16 = vsel %vm253_vm0, %v3366_v23, 0.0  ;;  %v3935_v56 = vld [vmem:[#allocation11_spill] sm:$0xff] }
 0x163   : > { %v1737_v13 = vadd.f32 %v1736_v52, %v1735_v25  ;;  %v3349_v7 = vld [vmem:[#allocation2 + $0x20] sm:$0xff]  ;;  %v3351_v40 = vpop.f32.mrf.mxu1  ;;  %v1542_v46 = vpop.f32.mrf.mxu0  ;;  %v2411_v37 = vadd.f32 %v3936_v33, %v3935_v56  ;;  %v3943_v33 = vld [vmem:[#allocation17_spill] sm:$0xff] }
 0x164   : > { %1674 = vst.msk [vmem:[#allocation2 + $0x40] sm:$0xff] %vm253_vm0, %v1642_v50  ;;  %v1645_v61 = vadd.f32 %v1551_v38, %v297_v20  ;;  %v1543_v27 = vadd.f32 %v1542_v46, %v1382_v48  ;;  %v1740_v30 = vsel %vm253_vm0, %v3349_v7, 0.0  ;;  %v2532_v48 = vadd.f32 %v3309_v39, %v3301_v3  ;;  %v299_v50 = vld [vmem:[#allocation2 + $0x68] sm:$0xff]  ;;  %v3937_v46 = vld [vmem:[#allocation15_spill] sm:$0xff] }
 0x165   : > { %v1739_v59 = vadd.f32 %v1738_v54, %v1737_v13  ;;  %v3360_v34 = vpop.f32.mrf.mxu1  ;;  %v2611_v35 = vpop.f32.mrf.mxu0  ;;  %v3377_v31 = vld [vmem:[#allocation2 + $0x38] sm:$0xff]  ;;  %v3938_v54 = vld [vmem:[#allocation16_spill] sm:$0xff]  ;;  %v2526_v3 = vadd.f32 %v3284_v45, %v3278_v58 }
 0x166   : > { %1677 = vst.msk [vmem:[#allocation2 + $0x58] sm:$0xff] %vm253_vm0, %v1645_v61  ;;  %v1643_v57 = vadd.f32 %v1543_v27, %v295_v17  ;;  %v1564_v43 = vadd.f32 %v2611_v35, %v1403_v53  ;;  %v1746_v42 = vsel %vm253_vm0, %v3377_v31, 0.0  ;;  %v1419_v17 = vadd.f32 %v2529_v49, %v2417_v1  ;;  %v304_v53 = vld [vmem:[#allocation2 + $0x90] sm:$0xff] }
 0x167   : > { %v1741_v15 = vadd.f32 %v1740_v30, %v1739_v59  ;;  %v3368_v19 = vld [vmem:[#allocation2 + $0x28] sm:$0xff]  ;;  %v2540_v24 = vpop.f32.mrf.mxu1  ;;  %v1555_v0 = vpop.f32.mrf.mxu0  ;;  %v2420_v61 = vadd.f32 %v3938_v54, %v3937_v46  ;;  %v1411_v35 = vadd.f32 %v2523_v47, %v2411_v37  ;;  %v3939_v30 = vld [vmem:[#allocation13_spill] sm:$0xff]  ;;  %v305_v47 = vld [vmem:[#allocation2 + $0x98] sm:$0xff] }
 0x168   : > { %v1742_v6 = vsel %vm253_vm0, %v3368_v19, 0.0  ;;  %1675 = vst.msk [vmem:[#allocation2 + $0x48] sm:$0xff] %vm253_vm0, %v1643_v57  ;;  %v1648_v11 = vadd.f32 %v1564_v43, %v300_v55  ;;  %v1556_v32 = vadd.f32 %v1555_v0, %v1395_v22  ;;  %v3940_v57 = vld [vmem:[#allocation14_spill] sm:$0xff]  ;;  %v3941_v1 = vld [vmem:[#allocation21_spill] sm:$0xff]  ;;  %v3945_v54 = vld [vmem:[#allocation23_spill] sm:$0xff] }
 0x169   : > { %v1743_v60 = vadd.f32 %v1742_v6, %v1741_v15  ;;  %v2542_v62 = vpop.f32.mrf.mxu1  ;;  %v2612_v41 = vpop.f32.mrf.mxu0  ;;  %v2414_v43 = vadd.f32 %v3940_v57, %v3939_v30  ;;  %v3405_v22 = vld [vmem:[#allocation2 + $0x50] sm:$0xff]  ;;  %v2541_v6 = vadd.f32 %v2540_v24, %v3360_v34  ;;  %v2535_v34 = vadd.f32 %v3327_v28, %v3317_v10  ;;  %v3944_v37 = vld [vmem:[#allocation18_spill] sm:$0xff]  ;;  %v3947_v30 = vld [vmem:[#allocation19_spill] sm:$0xff] }
 0x16a   : > { %1680 = vst.msk [vmem:[#allocation2 + $0x70] sm:$0xff] %vm253_vm0, %v1648_v11  ;;  %v1646_v25 = vadd.f32 %v1556_v32, %v298_v4  ;;  %v1567_v20 = vadd.f32 %v2612_v41, %v1406_v44  ;;  %v302_v4 = vld [vmem:[#allocation2 + $0x80] sm:$0xff]  ;;  %v1422_v44 = vadd.f32 %v2532_v48, %v2420_v61  ;;  %v2423_v48 = vadd.f32 %v3944_v37, %v3943_v33  ;;  %v3946_v61 = vld [vmem:[#allocation24_spill] sm:$0xff] }
 0x16b   : > { %v1745_v29 = vadd.f32 %v1744_v16, %v1743_v60  ;;  %v3389_v52 = vld [vmem:[#allocation2 + $0x40] sm:$0xff]  ;;  %v2543_v8 = vpop.f32.mrf.mxu1  ;;  %v1558_v38 = vpop.f32.mrf.mxu0  ;;  %v3942_v60 = vld [vmem:[#allocation22_spill] sm:$0xff]  ;;  %v3948_v57 = vld [vmem:[#allocation20_spill] sm:$0xff] }
 0x16c   : > { %1678 = vst.msk [vmem:[#allocation2 + $0x60] sm:$0xff] %vm253_vm0, %v1646_v25  ;;  %v1649_v9 = vadd.f32 %v1567_v20, %v301_v21  ;;  %v1559_v13 = vadd.f32 %v1558_v38, %v1398_v12  ;;  %v1748_v36 = vsel %vm253_vm0, %v3389_v52, 0.0  ;;  %v2429_v21 = vadd.f32 %v3942_v60, %v3941_v1 }
 0x16d   : > { %v1747_v39 = vadd.f32 %v1746_v42, %v1745_v29  ;;  %v3398_v27 = vpop.f32.mrf.mxu1  ;;  %v2615_v5 = vpop.f32.mrf.mxu0  ;;  %v3417_v41 = vld [vmem:[#allocation2 + $0x58] sm:$0xff]  ;;  %v1414_v25 = vadd.f32 %v2526_v3, %v2414_v43  ;;  %v1752_v20 = vsel %vm253_vm0, %v3405_v22, 0.0  ;;  %v2544_v38 = vadd.f32 %v2543_v8, %v2542_v62  ;;  %v308_v62 = vld [vmem:[#allocation2 + $0xb0] sm:$0xff] }
 0x16e   : > { %1681 = vst.msk [vmem:[#allocation2 + $0x78] sm:$0xff] %vm253_vm0, %v1649_v9  ;;  %v1647_v59 = vadd.f32 %v1559_v13, %v299_v50  ;;  %v1580_v55 = vadd.f32 %v2615_v5, %v1419_v17  ;;  %v303_v9 = vld [vmem:[#allocation2 + $0x88] sm:$0xff]  ;;  %v1754_v17 = vsel %vm253_vm0, %v3417_v41, 0.0  ;;  %v1435_v46 = vadd.f32 %v2541_v6, %v2429_v21 }
 0x16f   : > { %v1749_v15 = vadd.f32 %v1748_v36, %v1747_v39  ;;  %v3407_v58 = vld [vmem:[#allocation2 + $0x48] sm:$0xff]  ;;  %v3409_v45 = vpop.f32.mrf.mxu1  ;;  %v1571_v0 = vpop.f32.mrf.mxu0  ;;  %v2432_v3 = vadd.f32 %v3946_v61, %v3945_v54  ;;  %v2538_v39 = vadd.f32 %v3351_v40, %v3339_v2  ;;  %v2426_v43 = vadd.f32 %v3948_v57, %v3947_v30  ;;  %v306_v40 = vld [vmem:[#allocation2 + $0xa0] sm:$0xff]  ;;  %v312_v61 = vld [vmem:[#allocation2 + $0xd0] sm:$0xff] }
 0x170   : > { %v1750_v49 = vsel %vm253_vm0, %v3407_v58, 0.0  ;;  %1679 = vst.msk [vmem:[#allocation2 + $0x68] sm:$0xff] %vm253_vm0, %v1647_v59  ;;  %v1652_v11 = vadd.f32 %v1580_v55, %v304_v53  ;;  %v1572_v32 = vadd.f32 %v1571_v0, %v1411_v35  ;;  %v1427_v35 = vadd.f32 %v2535_v34, %v2423_v48  ;;  %v310_v30 = vld [vmem:[#allocation2 + $0xc0] sm:$0xff] }
 0x171   : > { %v1751_v12 = vadd.f32 %v1750_v49, %v1749_v15  ;;  %v3419_v18 = vpop.f32.mrf.mxu1  ;;  %v2616_v16 = vpop.f32.mrf.mxu0  ;;  %v3442_v15 = vld [vmem:[#allocation2 + $0x70] sm:$0xff]  ;;  %v1438_v49 = vadd.f32 %v2544_v38, %v2432_v3  ;;  %v2547_v34 = vadd.f32 %v3409_v45, %v3398_v27  ;;  %v307_v38 = vld [vmem:[#allocation2 + $0xa8] sm:$0xff] }
 0x172   : > { %1684 = vst.msk [vmem:[#allocation2 + $0x90] sm:$0xff] %vm253_vm0, %v1652_v11  ;;  %v1650_v24 = vadd.f32 %v1572_v32, %v302_v4  ;;  %v1583_v56 = vadd.f32 %v2616_v16, %v1422_v44 }
 0x173   : > { %v1753_v29 = vadd.f32 %v1752_v20, %v1751_v12  ;;  %v3428_v50 = vld [vmem:[#allocation2 + $0x60] sm:$0xff]  ;;  %v2549_v42 = vpop.f32.mrf.mxu1  ;;  %v1574_v13 = vpop.f32.mrf.mxu0  ;;  %v1760_v20 = vsel %vm253_vm0, %v3442_v15, 0.0 }
 0x174   : > { %1682 = vst.msk [vmem:[#allocation2 + $0x80] sm:$0xff] %vm253_vm0, %v1650_v24  ;;  %v1653_v10 = vadd.f32 %v1583_v56, %v305_v47  ;;  %v1575_v28 = vadd.f32 %v1574_v13, %v1414_v25  ;;  %v1756_v36 = vsel %vm253_vm0, %v3428_v50, 0.0  ;;  %v309_v47 = vld [vmem:[#allocation2 + $0xb8] sm:$0xff]  ;;  %v1430_v25 = vadd.f32 %v2538_v39, %v2426_v43 }
 0x175   : > { %v1755_v53 = vadd.f32 %v1754_v17, %v1753_v29  ;;  %v2551_v5 = vpop.f32.mrf.mxu1  ;;  %v2619_v8 = vpop.f32.mrf.mxu0  ;;  %v3446_v6 = vld [vmem:[#allocation2 + $0x78] sm:$0xff] }
 0x176   : > { %1685 = vst.msk [vmem:[#allocation2 + $0x98] sm:$0xff] %vm253_vm0, %v1653_v10  ;;  %v1651_v59 = vadd.f32 %v1575_v28, %v303_v9  ;;  %v1596_v55 = vadd.f32 %v2619_v8, %v1435_v46  ;;  %v1762_v33 = vsel %vm253_vm0, %v3446_v6, 0.0  ;;  %v3949_v28 = vld [vmem:[#allocation5_spill] sm:$0xff]  ;;  %v2550_v46 = vadd.f32 %v2549_v42, %v3419_v18 }
 0x177   : > { %v1757_v4 = vadd.f32 %v1756_v36, %v1755_v53  ;;  %v3444_v0 = vld [vmem:[#allocation2 + $0x68] sm:$0xff]  ;;  %v2552_v2 = vpop.f32.mrf.mxu1  ;;  %v1587_v44 = vpop.f32.mrf.mxu0 }
 0x178   : > { %v1758_v11 = vsel %vm253_vm0, %v3444_v0, 0.0  ;;  %1683 = vst.msk [vmem:[#allocation2 + $0x88] sm:$0xff] %vm253_vm0, %v1651_v59  ;;  %v1656_v32 = vadd.f32 %v1596_v55, %v308_v62  ;;  %v2553_v1 = vadd.f32 %v2552_v2, %v2551_v5  ;;  %v1588_v60 = vadd.f32 %v1587_v44, %v1427_v35  ;;  %v3950_v62 = vld [vmem:[#allocation3_spill] sm:$0xff] }
 0x179   : > { %v1759_v21 = vadd.f32 %v1758_v11, %v1757_v4  ;;  %v2554_v12 = vpop.f32.mrf.mxu1  ;;  %v2620_v16 = vpop.f32.mrf.mxu0  ;;  %v1443_v8 = vadd.f32 %v2547_v34, %v3950_v62  ;;  %v3467_v36 = vld [vmem:[#allocation2 + $0x90] sm:$0xff]  ;;  %v3951_v4 = vld [vmem:[#allocation6_spill] sm:$0xff] }
 0x17a   : > { %1688 = vst.msk [vmem:[#allocation2 + $0xb0] sm:$0xff] %vm253_vm0, %v1656_v32  ;;  %v1654_v24 = vadd.f32 %v1588_v60, %v306_v40  ;;  %v1599_v56 = vadd.f32 %v2620_v16, %v1438_v49  ;;  %v1451_v27 = vadd.f32 %v2553_v1, %v3949_v28  ;;  %v313_v11 = vld [vmem:[#allocation2 + $0xd8] sm:$0xff]  ;;  %v3952_v1 = vld [vmem:[#allocation4_spill] sm:$0xff] }
 0x17b   : > { %v1761_v37 = vadd.f32 %v1760_v20, %v1759_v21  ;;  %v3458_v48 = vld [vmem:[#allocation2 + $0x80] sm:$0xff]  ;;  %v2555_v29 = vpop.f32.mrf.mxu1  ;;  %v1590_v9 = vpop.f32.mrf.mxu0  ;;  %v1446_v60 = vadd.f32 %v2550_v46, %v3952_v1  ;;  %v1768_v21 = vsel %vm253_vm0, %v3467_v36, 0.0 }
 0x17c   : > { %1686 = vst.msk [vmem:[#allocation2 + $0xa0] sm:$0xff] %vm253_vm0, %v1654_v24  ;;  %v1657_v13 = vadd.f32 %v1599_v56, %v309_v47  ;;  %v2556_v17 = vadd.f32 %v2555_v29, %v2554_v12  ;;  %v1591_v10 = vadd.f32 %v1590_v9, %v1430_v25  ;;  %v1764_v39 = vsel %vm253_vm0, %v3458_v48, 0.0  ;;  %v311_v24 = vld [vmem:[#allocation2 + $0xc8] sm:$0xff] }
 0x17d   : > { %v1763_v45 = vadd.f32 %v1762_v33, %v1761_v37  ;;  %v2557_v54 = vpop.f32.mrf.mxu1  ;;  %v2623_v3 = vpop.f32.mrf.mxu0  ;;  %v3475_v40 = vld [vmem:[#allocation2 + $0x98] sm:$0xff] }
 0x17e   : > { %1689 = vst.msk [vmem:[#allocation2 + $0xb8] sm:$0xff] %vm253_vm0, %v1657_v13  ;;  %v1655_v53 = vadd.f32 %v1591_v10, %v307_v38  ;;  %v1612_v5 = vadd.f32 %v2623_v3, %v1451_v27  ;;  %v1454_v2 = vadd.f32 %v2556_v17, %v3951_v4  ;;  %v1770_v33 = vsel %vm253_vm0, %v3475_v40, 0.0  ;;  %v3953_v27 = vld [vmem:[#allocation7_spill] sm:$0xff] }
 0x17f   : > { %v1765_v59 = vadd.f32 %v1764_v39, %v1763_v45  ;;  %v3469_v55 = vld [vmem:[#allocation2 + $0x88] sm:$0xff]  ;;  %v2558_v35 = vpop.f32.mrf.mxu1  ;;  %v1603_v18 = vpop.f32.mrf.mxu0  ;;  %v314_v39 = vld [vmem:[#allocation2 + $0xe0] sm:$0xff] }
 0x180   : > { %v1766_v42 = vsel %vm253_vm0, %v3469_v55, 0.0  ;;  %1687 = vst.msk [vmem:[#allocation2 + $0xa8] sm:$0xff] %vm253_vm0, %v1655_v53  ;;  %v1660_v57 = vadd.f32 %v1612_v5, %v312_v61  ;;  %v1604_v43 = vadd.f32 %v1603_v18, %v1443_v8  ;;  %v2559_v12 = vadd.f32 %v2558_v35, %v2557_v54 }
 0x181   : > { %v1767_v44 = vadd.f32 %v1766_v42, %v1765_v59  ;;  %v2560_v49 = vpop.f32.mrf.mxu1  ;;  %v2624_v32 = vpop.f32.mrf.mxu0  ;;  %v3490_v46 = vld [vmem:[#allocation2 + $0xb0] sm:$0xff] }
 0x182   : > { %1692 = vst.msk [vmem:[#allocation2 + $0xd0] sm:$0xff] %vm253_vm0, %v1660_v57  ;;  %v1658_v47 = vadd.f32 %v1604_v43, %v310_v30  ;;  %v1615_v16 = vadd.f32 %v2624_v32, %v1454_v2  ;;  %v1459_v45 = vadd.f32 %v2559_v12, %v3953_v27  ;;  %v1776_v42 = vsel %vm253_vm0, %v3490_v46, 0.0  ;;  %v3954_v57 = vld [vmem:[#allocation9_spill] sm:$0xff]  ;;  %v3955_v2 = vld [vmem:[#allocation8_spill] sm:$0xff] }
 0x183   : > { %v1769_v25 = vadd.f32 %v1768_v21, %v1767_v44  ;;  %v3481_v20 = vld [vmem:[#allocation2 + $0xa0] sm:$0xff]  ;;  %v2561_v34 = vpop.f32.mrf.mxu1  ;;  %v1606_v56 = vpop.f32.mrf.mxu0  ;;  %v316_v32 = vld [vmem:[#allocation2 + $0xf0] sm:$0xff] }
 0x184   : > { %1690 = vst.msk [vmem:[#allocation2 + $0xc0] sm:$0xff] %vm253_vm0, %v1658_v47  ;;  %v1661_v37 = vadd.f32 %v1615_v16, %v313_v11  ;;  %v1607_v29 = vadd.f32 %v1606_v56, %v1446_v60  ;;  %v1772_v17 = vsel %vm253_vm0, %v3481_v20, 0.0  ;;  %v2562_v10 = vadd.f32 %v2561_v34, %v2560_v49  ;;  %v315_v60 = vld [vmem:[#allocation2 + $0xe8] sm:$0xff] }
 0x185   : > { %v1771_v38 = vadd.f32 %v1770_v33, %v1769_v25  ;;  %v2563_v9 = vpop.f32.mrf.mxu1  ;;  %v2627_v13 = vpop.f32.mrf.mxu0  ;;  %v3497_v59 = vld [vmem:[#allocation2 + $0xb8] sm:$0xff] }
 0x186   : > { %1693 = vst.msk [vmem:[#allocation2 + $0xd8] sm:$0xff] %vm253_vm0, %v1661_v37  ;;  %v1659_v28 = vadd.f32 %v1607_v29, %v311_v24  ;;  %v1462_v44 = vadd.f32 %v2562_v10, %v3955_v2  ;;  %v1778_v12 = vsel %vm253_vm0, %v3497_v59, 0.0  ;;  %v3956_v33 = vld [vmem:[#allocation10_spill] sm:$0xff] }
 0x187   : > { %v1773_v54 = vadd.f32 %v1772_v17, %v1771_v38  ;;  %v3492_v61 = vld [vmem:[#allocation2 + $0xa8] sm:$0xff]  ;;  %v2564_v3 = vpop.f32.mrf.mxu1  ;;  %v1619_v53 = vpop.f32.mrf.mxu0  ;;  %v317_v10 = vld [vmem:[#allocation2 + $0xf8] sm:$0xff] }
 0x188   : > { %v1774_v5 = vsel %vm253_vm0, %v3492_v61, 0.0  ;;  %1691 = vst.msk [vmem:[#allocation2 + $0xc8] sm:$0xff] %vm253_vm0, %v1659_v28  ;;  %v2565_v62 = vadd.f32 %v2564_v3, %v2563_v9  ;;  %v1620_v8 = vadd.f32 %v1619_v53, %v1459_v45 }
 0x189   : > { %v1775_v35 = vadd.f32 %v1774_v5, %v1773_v54  ;;  %v2566_v30 = vpop.f32.mrf.mxu1  ;;  %v2628_v18 = vpop.f32.mrf.mxu0  ;;  %v3511_v38 = vld [vmem:[#allocation2 + $0xd0] sm:$0xff] }
 0x18a   : > { %v1467_v43 = vadd.f32 %v2565_v62, %v3954_v57  ;;  %v1662_v4 = vadd.f32 %v1620_v8, %v314_v39  ;;  %v1784_v54 = vsel %vm253_vm0, %v3511_v38, 0.0 }
 0x18b   : > { %v1777_v49 = vadd.f32 %v1776_v42, %v1775_v35  ;;  %v3503_v11 = vld [vmem:[#allocation2 + $0xc0] sm:$0xff]  ;;  %v2567_v1 = vpop.f32.mrf.mxu1  ;;  %v1622_v21 = vpop.f32.mrf.mxu0 }
 0x18c   : > { %v1628_v47 = vadd.f32 %v2627_v13, %v1467_v43  ;;  %1694 = vst.msk [vmem:[#allocation2 + $0xe0] sm:$0xff] %vm253_vm0, %v1662_v4  ;;  %v2568_v16 = vadd.f32 %v2567_v1, %v2566_v30  ;;  %v1623_v25 = vadd.f32 %v1622_v21, %v1462_v44  ;;  %v1780_v24 = vsel %vm253_vm0, %v3503_v11, 0.0 }
 0x18d   : > { %v1779_v34 = vadd.f32 %v1778_v12, %v1777_v49  ;;  %v3519_v27 = vld [vmem:[#allocation2 + $0xd8] sm:$0xff] }
 0x18e   : > { %v1664_v56 = vadd.f32 %v1628_v47, %v316_v32  ;;  %v1470_v37 = vadd.f32 %v2568_v16, %v3956_v33  ;;  %v1663_v29 = vadd.f32 %v1623_v25, %v315_v60  ;;  %v1786_v5 = vsel %vm253_vm0, %v3519_v27, 0.0 }
 0x18f   : > { %v1781_v9 = vadd.f32 %v1780_v24, %v1779_v34  ;;  %v3513_v17 = vld [vmem:[#allocation2 + $0xc8] sm:$0xff] }
 0x190   : > { %v1782_v13 = vsel %vm253_vm0, %v3513_v17, 0.0  ;;  %1696 = vst.msk [vmem:[#allocation2 + $0xf0] sm:$0xff] %vm253_vm0, %v1664_v56  ;;  %v1631_v28 = vadd.f32 %v2628_v18, %v1470_v37  ;;  %1695 = vst.msk [vmem:[#allocation2 + $0xe8] sm:$0xff] %vm253_vm0, %v1663_v29 }
 0x191   : > { %v1783_v45 = vadd.f32 %v1782_v13, %v1781_v9 }
 0x192   : > { %v1665_v3 = vadd.f32 %v1631_v28, %v317_v10 }
 0x193   : > { %v1785_v39 = vadd.f32 %v1784_v54, %v1783_v45  ;;  %v3523_v53 = vld [vmem:[#allocation2 + $0xe0] sm:$0xff] }
 0x194   : > { %1697 = vst.msk [vmem:[#allocation2 + $0xf8] sm:$0xff] %vm253_vm0, %v1665_v3  ;;  %v1788_v8 = vsel %vm253_vm0, %v3523_v53, 0.0 }
 0x195   : > { %v1787_v62 = vadd.f32 %v1786_v5, %v1785_v39 }
 0x197   : > { %v3530_v35 = vld [vmem:[#allocation2 + $0xf0] sm:$0xff]  ;;  %v1789_v30 = vadd.f32 %v1788_v8, %v1787_v62  ;;  %v3532_v18 = vld [vmem:[#allocation2 + $0xe8] sm:$0xff] }
 0x198   : > { %v1790_v42 = vsel %vm253_vm0, %v3532_v18, 0.0  ;;  %v1792_v43 = vsel %vm253_vm0, %v3530_v35, 0.0 }
 0x199   : > { %v1791_v57 = vadd.f32 %v1790_v42, %v1789_v30 }
 0x19b   : > { %v3538_v4 = vld [vmem:[#allocation2 + $0xf8] sm:$0xff]  ;;  %v1793_v2 = vadd.f32 %v1792_v43, %v1791_v57 }
 0x19c   : > { %v1794_v44 = vsel %vm253_vm0, %v3538_v4, 0.0 }
 0x19d   : > { %v1795_v49 = vadd.f32 %v1794_v44, %v1793_v2 }
 0x19f   : > { %v1796_v32 = vrot.slane %v1795_v49, 4 }
 0x1a1   : > { %v1797_v1 = vadd.f32 %v1796_v32, %v1795_v49 }
 0x1a3   : > { %v1798_v60 = vrot.slane %v1797_v1, 2 }
 0x1a5   : > { %v1799_v21 = vadd.f32 %v1798_v60, %v1797_v1 }
 0x1a7   : > { %v1800_v12 = vrot.slane %v1799_v21, 1 }
 0x1a9   : > { %v1801_v47 = vadd.f32 %v1800_v12, %v1799_v21 }
 0x1ab   : > { %v3542_v16 = vmul.f32 0.00390625, %v1801_v47 }
 0x1ad   : > { %v3546_v25 = vsub.f32 %v3315_v26, %v3542_v16  ;;  %v3550_v34 = vsub.f32 %v3325_v51, %v3542_v16  ;;  %v3554_v24 = vsub.f32 %v3323_v14, %v3542_v16  ;;  %v3558_v56 = vsub.f32 %v3337_v63, %v3542_v16 }
 0x1ae   : > { %v3566_v26 = vsub.f32 %v3349_v7, %v3542_v16  ;;  %v3572_v14 = vsub.f32 %v3368_v19, %v3542_v16  ;;  %v3580_v13 = vsub.f32 %v3366_v23, %v3542_v16  ;;  %v3587_v19 = vsub.f32 %v3377_v31, %v3542_v16 }
 0x1af   : > { %v1836_v33 = vmul.f32 %v3546_v25, %v3546_v25  ;;  %v1837_v37 = vmul.f32 %v3550_v34, %v3550_v34  ;;  %v1838_v51 = vmul.f32 %v3554_v24, %v3554_v24  ;;  %v1839_v63 = vmul.f32 %v3558_v56, %v3558_v56 }
 0x1b0   : > { %v1840_v7 = vmul.f32 %v3566_v26, %v3566_v26  ;;  %v1841_v54 = vmul.f32 %v3572_v14, %v3572_v14  ;;  %v3594_v23 = vsub.f32 %v3389_v52, %v3542_v16  ;;  %v1842_v5 = vmul.f32 %v3580_v13, %v3580_v13 }
 0x1b1   : > { %v1868_v29 = vsel %vm253_vm0, %v1836_v33, 0.0  ;;  %v1869_v9 = vsel %vm253_vm0, %v1837_v37, 0.0  ;;  %v1871_v28 = vsel %vm253_vm0, %v1838_v51, 0.0  ;;  %v1873_v3 = vsel %vm253_vm0, %v1839_v63, 0.0 }
 0x1b2   : > { %v1870_v10 = vadd.f32 %v1869_v9, %v1868_v29  ;;  %v1875_v62 = vsel %vm253_vm0, %v1840_v7, 0.0  ;;  %v3601_v31 = vsub.f32 %v3407_v58, %v3542_v16  ;;  %v1843_v30 = vmul.f32 %v3587_v19, %v3587_v19 }
 0x1b3   : > { %v1877_v42 = vsel %vm253_vm0, %v1841_v54, 0.0  ;;  %v3608_v52 = vsub.f32 %v3405_v22, %v3542_v16  ;;  %v1844_v43 = vmul.f32 %v3594_v23, %v3594_v23  ;;  %v1879_v2 = vsel %vm253_vm0, %v1842_v5, 0.0 }
 0x1b4   : > { %v1872_v45 = vadd.f32 %v1871_v28, %v1870_v10  ;;  %v3615_v58 = vsub.f32 %v3417_v41, %v3542_v16  ;;  %v1845_v49 = vmul.f32 %v3601_v31, %v3601_v31  ;;  %v1881_v32 = vsel %vm253_vm0, %v1843_v30, 0.0 }
 0x1b5   : > { %v3622_v22 = vsub.f32 %v3428_v50, %v3542_v16  ;;  %v1846_v60 = vmul.f32 %v3608_v52, %v3608_v52  ;;  %v1883_v21 = vsel %vm253_vm0, %v1844_v43, 0.0  ;;  %v3629_v41 = vsub.f32 %v3444_v0, %v3542_v16 }
 0x1b6   : > { %v1874_v39 = vadd.f32 %v1873_v3, %v1872_v45  ;;  %v1847_v47 = vmul.f32 %v3615_v58, %v3615_v58  ;;  %v1885_v33 = vsel %vm253_vm0, %v1845_v49, 0.0  ;;  %v3636_v50 = vsub.f32 %v3442_v15, %v3542_v16 }
 0x1b7   : > { %v1848_v51 = vmul.f32 %v3622_v22, %v3622_v22  ;;  %v1887_v63 = vsel %vm253_vm0, %v1846_v60, 0.0  ;;  %v3643_v0 = vsub.f32 %v3446_v6, %v3542_v16  ;;  %v1849_v9 = vmul.f32 %v3629_v41, %v3629_v41 }
 0x1b8   : > { %v1876_v8 = vadd.f32 %v1875_v62, %v1874_v39  ;;  %v1889_v10 = vsel %vm253_vm0, %v1847_v47, 0.0  ;;  %v3650_v15 = vsub.f32 %v3458_v48, %v3542_v16  ;;  %v1850_v28 = vmul.f32 %v3636_v50, %v3636_v50 }
 0x1b9   : > { %v1891_v45 = vsel %vm253_vm0, %v1848_v51, 0.0  ;;  %v3657_v6 = vsub.f32 %v3469_v55, %v3542_v16  ;;  %v1851_v3 = vmul.f32 %v3643_v0, %v3643_v0  ;;  %v1893_v39 = vsel %vm253_vm0, %v1849_v9, 0.0 }
 0x1ba   : > { %v1878_v57 = vadd.f32 %v1877_v42, %v1876_v8  ;;  %v3664_v48 = vsub.f32 %v3467_v36, %v3542_v16  ;;  %v1852_v62 = vmul.f32 %v3650_v15, %v3650_v15  ;;  %v1895_v8 = vsel %vm253_vm0, %v1850_v28, 0.0 }
 0x1bb   : > { %v3671_v55 = vsub.f32 %v3475_v40, %v3542_v16  ;;  %v1853_v42 = vmul.f32 %v3657_v6, %v3657_v6  ;;  %v3678_v36 = vsub.f32 %v3481_v20, %v3542_v16  ;;  %v3685_v40 = vsub.f32 %v3492_v61, %v3542_v16 }
 0x1bc   : > { %v1880_v44 = vadd.f32 %v1879_v2, %v1878_v57  ;;  %v1897_v57 = vsel %vm253_vm0, %v1851_v3, 0.0  ;;  %v1854_v2 = vmul.f32 %v3664_v48, %v3664_v48  ;;  %v3692_v20 = vsub.f32 %v3490_v46, %v3542_v16 }
 0x1bd   : > { %v3699_v61 = vsub.f32 %v3497_v59, %v3542_v16  ;;  %v3706_v46 = vsub.f32 %v3503_v11, %v3542_v16  ;;  %v3713_v59 = vsub.f32 %v3513_v17, %v3542_v16  ;;  %v3720_v11 = vsub.f32 %v3511_v38, %v3542_v16 }
 0x1be   : > { %v1882_v1 = vadd.f32 %v1881_v32, %v1880_v44  ;;  %v1899_v44 = vsel %vm253_vm0, %v1852_v62, 0.0  ;;  %v1855_v32 = vmul.f32 %v3671_v55, %v3671_v55  ;;  %v3727_v17 = vsub.f32 %v3519_v27, %v3542_v16 }
 0x1bf   : > { %v3734_v38 = vsub.f32 %v3523_v53, %v3542_v16  ;;  %v1833_v27 = vsub.f32 %v3532_v18, %v3542_v16 }
 0x1c0   : > { %v1884_v12 = vadd.f32 %v1883_v21, %v1882_v1  ;;  %v1901_v1 = vsel %vm253_vm0, %v1853_v42, 0.0  ;;  %v1856_v21 = vmul.f32 %v3678_v36, %v3678_v36 }
 0x1c1   : > { %v1864_v53 = vmul.f32 %v3734_v38, %v3734_v38 }
 0x1c2   : > { %v1886_v37 = vadd.f32 %v1885_v33, %v1884_v12  ;;  %v1903_v12 = vsel %vm253_vm0, %v1854_v2, 0.0  ;;  %v1857_v33 = vmul.f32 %v3685_v40, %v3685_v40 }
 0x1c4   : > { %v1888_v29 = vadd.f32 %v1887_v63, %v1886_v37  ;;  %v1905_v37 = vsel %vm253_vm0, %v1855_v32, 0.0  ;;  %v1858_v63 = vmul.f32 %v3692_v20, %v3692_v20 }
 0x1c6   : > { %v1890_v7 = vadd.f32 %v1889_v10, %v1888_v29  ;;  %v1907_v29 = vsel %vm253_vm0, %v1856_v21, 0.0  ;;  %v1859_v10 = vmul.f32 %v3699_v61, %v3699_v61 }
 0x1c8   : > { %v1892_v54 = vadd.f32 %v1891_v45, %v1890_v7  ;;  %v1909_v7 = vsel %vm253_vm0, %v1857_v33, 0.0  ;;  %v1860_v45 = vmul.f32 %v3706_v46, %v3706_v46 }
 0x1ca   : > { %v1894_v5 = vadd.f32 %v1893_v39, %v1892_v54  ;;  %v1911_v54 = vsel %vm253_vm0, %v1858_v63, 0.0  ;;  %v1861_v39 = vmul.f32 %v3713_v59, %v3713_v59 }
 0x1cc   : > { %v1896_v30 = vadd.f32 %v1895_v8, %v1894_v5  ;;  %v1913_v5 = vsel %vm253_vm0, %v1859_v10, 0.0  ;;  %v1862_v8 = vmul.f32 %v3720_v11, %v3720_v11 }
 0x1ce   : > { %v1898_v43 = vadd.f32 %v1897_v57, %v1896_v30  ;;  %v1915_v30 = vsel %vm253_vm0, %v1860_v45, 0.0  ;;  %v1863_v57 = vmul.f32 %v3727_v17, %v3727_v17 }
 0x1d0   : > { %v1900_v49 = vadd.f32 %v1899_v44, %v1898_v43  ;;  %v1917_v43 = vsel %vm253_vm0, %v1861_v39, 0.0  ;;  %v1834_v44 = vsub.f32 %v3530_v35, %v3542_v16  ;;  %v1921_v18 = vsel %vm253_vm0, %v1863_v57, 0.0 }
 0x1d2   : > { %v1902_v60 = vadd.f32 %v1901_v1, %v1900_v49  ;;  %v1919_v49 = vsel %vm253_vm0, %v1862_v8, 0.0  ;;  %v1835_v1 = vsub.f32 %v3538_v4, %v3542_v16 }
 0x1d4   : > { %v1904_v47 = vadd.f32 %v1903_v12, %v1902_v60  ;;  %v1865_v60 = vmul.f32 %v1833_v27, %v1833_v27  ;;  %v1866_v12 = vmul.f32 %v1834_v44, %v1834_v44 }
 0x1d6   : > { %v1906_v51 = vadd.f32 %v1905_v37, %v1904_v47  ;;  %v1923_v47 = vsel %vm253_vm0, %v1864_v53, 0.0  ;;  %v1867_v37 = vmul.f32 %v1835_v1, %v1835_v1  ;;  %v1925_v35 = vsel %vm253_vm0, %v1865_v60, 0.0 }
 0x1d7   : > { %v1927_v63 = vsel %vm253_vm0, %v1866_v12, 0.0 }
 0x1d8   : > { %v1908_v9 = vadd.f32 %v1907_v29, %v1906_v51 }
 0x1da   : > { %v1910_v28 = vadd.f32 %v1909_v7, %v1908_v9  ;;  %v1929_v9 = vsel %vm253_vm0, %v1867_v37, 0.0 }
 0x1dc   : > { %v1912_v3 = vadd.f32 %v1911_v54, %v1910_v28 }
 0x1de   : > { %v1914_v62 = vadd.f32 %v1913_v5, %v1912_v3 }
 0x1e0   : > { %v1916_v42 = vadd.f32 %v1915_v30, %v1914_v62 }
 0x1e2   : > { %v1918_v2 = vadd.f32 %v1917_v43, %v1916_v42 }
 0x1e4   : > { %v1920_v32 = vadd.f32 %v1919_v49, %v1918_v2 }
 0x1e6   : > { %v1922_v21 = vadd.f32 %v1921_v18, %v1920_v32 }
 0x1e8   : > { %v1924_v33 = vadd.f32 %v1923_v47, %v1922_v21 }
 0x1ea   : > { %v1926_v51 = vadd.f32 %v1925_v35, %v1924_v33 }
 0x1ec   : > { %v1928_v29 = vadd.f32 %v1927_v63, %v1926_v51 }
 0x1ee   : > { %v1930_v10 = vadd.f32 %v1929_v9, %v1928_v29 }
 0x1f0   : > { %v1931_v7 = vrot.slane %v1930_v10, 4 }
 0x1f2   : > { %v1932_v4 = vadd.f32 %v1931_v7, %v1930_v10 }
 0x1f4   : > { %v1933_v16 = vrot.slane %v1932_v4, 2 }
 0x1f6   : > { %v1934_v28 = vadd.f32 %v1933_v16, %v1932_v4  ;;  %v2341_v16 = vld [vmem:[%s3909_s3] ss:$0 sm:$0xff] }
 0x1f8   : > { %v1935_v45 = vrot.slane %v1934_v28, 1 }
 0x1fa   : > { %v1936_v54 = vadd.f32 %v1935_v45, %v1934_v28 }
 0x1fc   : > { %v1937_v3 = vmul.f32 0.00390625, %v1936_v54 }
 0x1fe   : > { %v1938_v39 = vadd.f32 1e-05, %v1937_v3 }
 0x200   : > { %2819 = vrsqrt.f32 %v1938_v39 }
 0x20d   : > { %v2820_v5 = vpop.eup %2819 }
 0x20e   : > { %v1940_v62 = vmul.f32 %v2820_v5, %v3546_v25  ;;  %v1941_v8 = vmul.f32 %v2820_v5, %v3550_v34  ;;  %v1942_v30 = vmul.f32 %v2820_v5, %v3554_v24  ;;  %v1943_v42 = vmul.f32 %v2820_v5, %v3558_v56 }
 0x20f   : > { %v1944_v57 = vmul.f32 %v2820_v5, %v3566_v26  ;;  %v1945_v43 = vmul.f32 %v2820_v5, %v3572_v14  ;;  %v1946_v2 = vmul.f32 %v2820_v5, %v3580_v13  ;;  %v1947_v53 = vmul.f32 %v2820_v5, %v3587_v19 }
 0x210   : > { %v1948_v49 = vmul.f32 %v2820_v5, %v3594_v23  ;;  %v1949_v32 = vmul.f32 %v2820_v5, %v3601_v31  ;;  %v1950_v25 = vmul.f32 %v2820_v5, %v3608_v52  ;;  %v1951_v34 = vmul.f32 %v2820_v5, %v3615_v58 }
 0x211   : > { %v1952_v24 = vmul.f32 %v2820_v5, %v3622_v22  ;;  %v1953_v56 = vmul.f32 %v2820_v5, %v3629_v41  ;;  %v1954_v26 = vmul.f32 %v2820_v5, %v3636_v50  ;;  %v1955_v14 = vmul.f32 %v2820_v5, %v3643_v0  ;;  %v2340_v50 = vld [vmem:[%s3908_s2] ss:$0 sm:$0xff] }
 0x212   : > { %v1956_v13 = vmul.f32 %v2820_v5, %v3650_v15  ;;  %v1957_v19 = vmul.f32 %v2820_v5, %v3657_v6  ;;  %v1958_v23 = vmul.f32 %v2820_v5, %v3664_v48  ;;  %v1959_v31 = vmul.f32 %v2820_v5, %v3671_v55 }
 0x213   : > { %v1960_v52 = vmul.f32 %v2820_v5, %v3678_v36  ;;  %v1961_v58 = vmul.f32 %v2820_v5, %v3685_v40  ;;  %v1962_v22 = vmul.f32 %v2820_v5, %v3692_v20  ;;  %v1963_v41 = vmul.f32 %v2820_v5, %v3699_v61 }
 0x214   : > { %v1964_v0 = vmul.f32 %v2820_v5, %v3706_v46  ;;  %v1965_v15 = vmul.f32 %v2820_v5, %v3713_v59  ;;  %v1966_v6 = vmul.f32 %v2820_v5, %v3720_v11  ;;  %v1967_v48 = vmul.f32 %v2820_v5, %v3727_v17 }
 0x215   : > { %v1968_v55 = vmul.f32 %v2820_v5, %v3734_v38  ;;  %v1969_v36 = vmul.f32 %v2820_v5, %v1833_v27  ;;  %v1970_v40 = vmul.f32 %v2820_v5, %v1834_v44  ;;  %v1971_v60 = vmul.f32 %v2820_v5, %v1835_v1 }
 0x216   : > { %v1979_v20 = vmul.f32 %v2340_v50, %v1940_v62  ;;  %v1980_v18 = vmul.f32 %v2340_v50, %v1941_v8  ;;  %v1981_v61 = vmul.f32 %v2340_v50, %v1942_v30  ;;  %v1982_v21 = vmul.f32 %v2340_v50, %v1943_v42 }
 0x217   : > { %v1983_v12 = vmul.f32 %v2340_v50, %v1944_v57  ;;  %v1984_v47 = vmul.f32 %v2340_v50, %v1945_v43  ;;  %v1985_v33 = vmul.f32 %v2340_v50, %v1946_v2  ;;  %v1986_v37 = vmul.f32 %v2340_v50, %v1947_v53 }
 0x218   : > { %v1987_v46 = vmul.f32 %v2340_v50, %v1948_v49  ;;  %v1988_v35 = vmul.f32 %v2340_v50, %v1949_v32  ;;  %v1989_v59 = vmul.f32 %v2340_v50, %v1950_v25  ;;  %v1990_v51 = vmul.f32 %v2340_v50, %v1951_v34 }
 0x219   : > { %v1991_v11 = vmul.f32 %v2340_v50, %v1952_v24  ;;  %v1992_v63 = vmul.f32 %v2340_v50, %v1953_v56  ;;  %v1993_v17 = vmul.f32 %v2340_v50, %v1954_v26  ;;  %v1994_v29 = vmul.f32 %v2340_v50, %v1955_v14 }
 0x21a   : > { %v1995_v38 = vmul.f32 %v2340_v50, %v1956_v13  ;;  %v1996_v27 = vmul.f32 %v2340_v50, %v1957_v19  ;;  %v1997_v44 = vmul.f32 %v2340_v50, %v1958_v23  ;;  %v1998_v1 = vmul.f32 %v2340_v50, %v1959_v31 }
 0x21b   : > { %v1999_v9 = vmul.f32 %v2340_v50, %v1960_v52  ;;  %v2000_v10 = vmul.f32 %v2340_v50, %v1961_v58  ;;  %v2001_v7 = vmul.f32 %v2340_v50, %v1962_v22  ;;  %v2002_v4 = vmul.f32 %v2340_v50, %v1963_v41 }
 0x21c   : > { %v2003_v28 = vmul.f32 %v2340_v50, %v1964_v0  ;;  %v2004_v45 = vmul.f32 %v2340_v50, %v1965_v15  ;;  %v2005_v54 = vmul.f32 %v2340_v50, %v1966_v6  ;;  %v2006_v3 = vmul.f32 %v2340_v50, %v1967_v48 }
 0x21d   : > { %v2007_v39 = vmul.f32 %v2340_v50, %v1968_v55  ;;  %v2008_v5 = vmul.f32 %v2340_v50, %v1969_v36  ;;  %v2009_v62 = vmul.f32 %v2340_v50, %v1970_v40  ;;  %v2010_v8 = vmul.f32 %v2340_v50, %v1971_v60 }
 0x21e   : > { %v2018_v30 = vadd.f32 %v2341_v16, %v1979_v20  ;;  %v2019_v42 = vadd.f32 %v2341_v16, %v1980_v18  ;;  %v2020_v57 = vadd.f32 %v2341_v16, %v1981_v61  ;;  %v2021_v43 = vadd.f32 %v2341_v16, %v1982_v21 }
 0x21f   : > { %v2022_v2 = vadd.f32 %v2341_v16, %v1983_v12  ;;  %v2023_v53 = vadd.f32 %v2341_v16, %v1984_v47  ;;  %v2024_v49 = vadd.f32 %v2341_v16, %v1985_v33  ;;  %v2025_v32 = vadd.f32 %v2341_v16, %v1986_v37 }
 0x220   : > { %v2026_v25 = vadd.f32 %v2341_v16, %v1987_v46  ;;  %v2027_v34 = vadd.f32 %v2341_v16, %v1988_v35  ;;  %v2028_v24 = vadd.f32 %v2341_v16, %v1989_v59  ;;  %v2029_v56 = vadd.f32 %v2341_v16, %v1990_v51 }
 0x221   : > { %v2030_v26 = vadd.f32 %v2341_v16, %v1991_v11  ;;  %v2031_v14 = vadd.f32 %v2341_v16, %v1992_v63  ;;  %v2032_v13 = vadd.f32 %v2341_v16, %v1993_v17  ;;  %v2033_v19 = vadd.f32 %v2341_v16, %v1994_v29 }
 0x222   : > { %v2034_v23 = vadd.f32 %v2341_v16, %v1995_v38  ;;  %v2035_v31 = vadd.f32 %v2341_v16, %v1996_v27  ;;  %v2036_v52 = vadd.f32 %v2341_v16, %v1997_v44  ;;  %v2037_v58 = vadd.f32 %v2341_v16, %v1998_v1 }
 0x223   : > { %v3792_v22 = vadd.f32 %v2341_v16, %v1999_v9  ;;  %v3794_v41 = vadd.f32 %v2341_v16, %v2000_v10  ;;  %v3796_v50 = vadd.f32 %v2341_v16, %v2001_v7  ;;  %v3798_v0 = vadd.f32 %v2341_v16, %v2002_v4 }
 0x224   : > { %v3800_v15 = vadd.f32 %v2341_v16, %v2003_v28  ;;  %v3802_v6 = vadd.f32 %v2341_v16, %v2004_v45  ;;  %v3804_v48 = vadd.f32 %v2341_v16, %v2005_v54  ;;  %v3806_v55 = vadd.f32 %v2341_v16, %v2006_v3 }
 0x225   : > { %v3813_v36 = vadd.f32 %v2341_v16, %v2007_v39  ;;  %v3815_v40 = vadd.f32 %v2341_v16, %v2008_v5  ;;  %v3817_v60 = vadd.f32 %v2341_v16, %v2009_v62  ;;  %v3819_v20 = vadd.f32 %v2341_v16, %v2010_v8 }
 0x226   : > { %v2050_v18 = vmax.f32 %v2018_v30, 0.0  ;;  %v2051_v61 = vmax.f32 %v2019_v42, 0.0  ;;  %v2052_v21 = vmax.f32 %v2020_v57, 0.0  ;;  %v2053_v12 = vmax.f32 %v2021_v43, 0.0 }
 0x227   : > { %v2054_v47 = vmax.f32 %v2022_v2, 0.0  ;;  %v2055_v33 = vmax.f32 %v2023_v53, 0.0  ;;  %v2056_v37 = vmax.f32 %v2024_v49, 0.0  ;;  %v2057_v46 = vmax.f32 %v2025_v32, 0.0 }
 0x228   : > { %v2058_v35 = vmax.f32 %v2026_v25, 0.0  ;;  %v2059_v59 = vmax.f32 %v2027_v34, 0.0  ;;  %v2060_v51 = vmax.f32 %v2028_v24, 0.0  ;;  %v2061_v11 = vmax.f32 %v2029_v56, 0.0  ;;  %2082 = vst.msk [vmem:[%s3811_s10] sm:$0xff] %vm253_vm0, %v2050_v18  ;;  %2083 = vst.msk [vmem:[%s3811_s10 + $0x8] sm:$0xff] %vm253_vm0, %v2051_v61 }
 0x229   : > { %2084 = vst.msk [vmem:[%s3811_s10 + $0x10] sm:$0xff] %vm253_vm0, %v2052_v21  ;;  %2085 = vst.msk [vmem:[%s3811_s10 + $0x18] sm:$0xff] %vm253_vm0, %v2053_v12  ;;  %v2062_v63 = vmax.f32 %v2030_v26, 0.0  ;;  %v2063_v17 = vmax.f32 %v2031_v14, 0.0  ;;  %v2064_v29 = vmax.f32 %v2032_v13, 0.0  ;;  %v2065_v38 = vmax.f32 %v2033_v19, 0.0 }
 0x22a   : > { %2086 = vst.msk [vmem:[%s3811_s10 + $0x20] sm:$0xff] %vm253_vm0, %v2054_v47  ;;  %2087 = vst.msk [vmem:[%s3811_s10 + $0x28] sm:$0xff] %vm253_vm0, %v2055_v33  ;;  %v2066_v27 = vmax.f32 %v2034_v23, 0.0  ;;  %v2067_v44 = vmax.f32 %v2035_v31, 0.0  ;;  %v2068_v1 = vmax.f32 %v2036_v52, 0.0  ;;  %v2069_v9 = vmax.f32 %v2037_v58, 0.0 }
 0x22b   : > { %2088 = vst.msk [vmem:[%s3811_s10 + $0x30] sm:$0xff] %vm253_vm0, %v2056_v37  ;;  %2089 = vst.msk [vmem:[%s3811_s10 + $0x38] sm:$0xff] %vm253_vm0, %v2057_v46  ;;  %v2070_v10 = vmax.f32 %v3792_v22, 0.0  ;;  %v2071_v7 = vmax.f32 %v3794_v41, 0.0  ;;  %v2072_v4 = vmax.f32 %v3796_v50, 0.0  ;;  %v2073_v16 = vmax.f32 %v3798_v0, 0.0 }
 0x22c   : > { %2090 = vst.msk [vmem:[%s3811_s10 + $0x40] sm:$0xff] %vm253_vm0, %v2058_v35  ;;  %2091 = vst.msk [vmem:[%s3811_s10 + $0x48] sm:$0xff] %vm253_vm0, %v2059_v59  ;;  %v2074_v28 = vmax.f32 %v3800_v15, 0.0  ;;  %v2075_v45 = vmax.f32 %v3802_v6, 0.0  ;;  %v2076_v54 = vmax.f32 %v3804_v48, 0.0  ;;  %v2077_v3 = vmax.f32 %v3806_v55, 0.0 }
 0x22d   : > { %2092 = vst.msk [vmem:[%s3811_s10 + $0x50] sm:$0xff] %vm253_vm0, %v2060_v51  ;;  %2093 = vst.msk [vmem:[%s3811_s10 + $0x58] sm:$0xff] %vm253_vm0, %v2061_v11  ;;  %v2078_v39 = vmax.f32 %v3813_v36, 0.0  ;;  %v2079_v5 = vmax.f32 %v3815_v40, 0.0  ;;  %v2080_v62 = vmax.f32 %v3817_v60, 0.0  ;;  %v2081_v8 = vmax.f32 %v3819_v20, 0.0 }
 0x22e   : > { %2094 = vst.msk [vmem:[%s3811_s10 + $0x60] sm:$0xff] %vm253_vm0, %v2062_v63  ;;  %2095 = vst.msk [vmem:[%s3811_s10 + $0x68] sm:$0xff] %vm253_vm0, %v2063_v17 }
 0x22f   : > { %2096 = vst.msk [vmem:[%s3811_s10 + $0x70] sm:$0xff] %vm253_vm0, %v2064_v29  ;;  %2097 = vst.msk [vmem:[%s3811_s10 + $0x78] sm:$0xff] %vm253_vm0, %v2065_v38 }
 0x230   : > { %2098 = vst.msk [vmem:[%s3811_s10 + $0x80] sm:$0xff] %vm253_vm0, %v2066_v27  ;;  %2099 = vst.msk [vmem:[%s3811_s10 + $0x88] sm:$0xff] %vm253_vm0, %v2067_v44 }
 0x231   : > { %2100 = vst.msk [vmem:[%s3811_s10 + $0x90] sm:$0xff] %vm253_vm0, %v2068_v1  ;;  %2101 = vst.msk [vmem:[%s3811_s10 + $0x98] sm:$0xff] %vm253_vm0, %v2069_v9 }
 0x232   : > { %2102 = vst.msk [vmem:[%s3811_s10 + $0xa0] sm:$0xff] %vm253_vm0, %v2070_v10  ;;  %2103 = vst.msk [vmem:[%s3811_s10 + $0xa8] sm:$0xff] %vm253_vm0, %v2071_v7 }
 0x233   : > { %2104 = vst.msk [vmem:[%s3811_s10 + $0xb0] sm:$0xff] %vm253_vm0, %v2072_v4  ;;  %2105 = vst.msk [vmem:[%s3811_s10 + $0xb8] sm:$0xff] %vm253_vm0, %v2073_v16 }
 0x234   : > { %2106 = vst.msk [vmem:[%s3811_s10 + $0xc0] sm:$0xff] %vm253_vm0, %v2074_v28  ;;  %2107 = vst.msk [vmem:[%s3811_s10 + $0xc8] sm:$0xff] %vm253_vm0, %v2075_v45 }
 0x235   : > { %2108 = vst.msk [vmem:[%s3811_s10 + $0xd0] sm:$0xff] %vm253_vm0, %v2076_v54  ;;  %2109 = vst.msk [vmem:[%s3811_s10 + $0xd8] sm:$0xff] %vm253_vm0, %v2077_v3 }
 0x236   : > { %2110 = vst.msk [vmem:[%s3811_s10 + $0xe0] sm:$0xff] %vm253_vm0, %v2078_v39  ;;  %2111 = vst.msk [vmem:[%s3811_s10 + $0xe8] sm:$0xff] %vm253_vm0, %v2079_v5 }
 0x237   : > { %2112 = vst.msk [vmem:[%s3811_s10 + $0xf0] sm:$0xff] %vm253_vm0, %v2080_v62  ;;  %2113 = vst.msk [vmem:[%s3811_s10 + $0xf8] sm:$0xff] %vm253_vm0, %v2081_v8 }
 0x238 PF: > { %s14_s17 = sadd.s32 1, %s2843_s17   ;;  %s3957_s15 = smov %s2839_s16 }
 0x239   : > { %p11_p5 = scmp.ge.s32.totalorder %s14_s17, 4   ;;  %s3958_s16 = smov %s3960_s18 }
 0x23b   :  { %13 = sbr.rel (!%p11_p5) target bundleno = 2 (0x2), region = 77 }

// kernel: forward.17
= control target key start
LH: loop header
LB: loop body
LE: loop exit
PB: predicated region body
PF: predicated region fallthrough
CT: control target
= control target key end

     0   :  { %s1428_s15 = smov 0   ;;  %s1430_s16 = smov 0   ;;  %s1605_s0 = inlined_call_operand.vmem [shape: bf16[2,64,576], index: 0, kind: input, shape index: {}]   ;;  %s1606_s1 = inlined_call_operand.vmem [shape: bf16[576,128], index: 1, kind: input, shape index: {}]   ;;  %s1607_s2 = inlined_call_operand.vmem [shape: f32[1,128], index: 2, kind: input, shape index: {}]   ;;  %s1608_s3 = inlined_call_operand.vmem [shape: f32[1,128], index: 3, kind: input, shape index: {}]   ;;  %s1609_s4 = inlined_call_operand.vmem [shape: f32[2,64,128], index: 4, kind: output, shape index: {}]  }
   0x1   :  { %s1432_s17 = smov 0  }
   0x2 LB: > { %s26_s18 = sadd.s32 1, %s1397_s16  ;;  %p1107_p0 = scmp.ge.s32.totalorder %s1401_s17, 1  ;;  %s1401_s17 = sphi %s1432_s17, %s14_s17   ;;  %s1397_s16 = sphi %s1430_s16, %s1611_s16   ;;  %s1393_s15 = sphi %s1428_s15, %s1610_s15  }
   0x3   : > { %p28_p1 = scmp.ge.s32.totalorder %s26_s18, 2  ;;  %p192_p2 = scmp.lt.s32.totalorder %s1401_s17, 3 }
   0x5   : > { %s1613_s18 = smov (%p28_p1, %s26_s18), 0  ;;  %p193_p3 = pnand %p1107_p0, %p192_p2 }
   0x6   : > { %p228_p4 = scmp.lt.s32.totalorder (!%p193_p3), %s1393_s15, 1 }
   0x7   : > { %196 = sbr.rel (%p193_p3) target bundleno = 367 (0x16f), region = 36 }
   0xc   : > { %v1313_v0 = vld [vmem:[%s1606_s1 + $0x78] sm:$0xff]   ;;  %v1317_v4 = vld [vmem:[%s1606_s1 + $0x70] sm:$0xff]   ;;  %v1321_v8 = vld [vmem:[%s1606_s1 + $0x68] sm:$0xff]   ;;  %s1615_s15 = smov (!%p228_p4, %s1393_s15), 1  ;;  %vm681_vm0 = vcmask 523264  }
   0xd   : > { %v1314_v1 = vld [vmem:[%s1606_s1 + $0xf8] sm:$0xff]   ;;  %1176 = vmatprep.subr.bf16.mxu0 %v1313_v0  ;;  %v1318_v5 = vld [vmem:[%s1606_s1 + $0xf0] sm:$0xff]   ;;  %v1322_v9 = vld [vmem:[%s1606_s1 + $0xe8] sm:$0xff]   ;;  %s1288_s27 = smul.u32 160, %s1615_s15  ;;  %s1175_s7 = sshll.u32 %s1615_s15, 6 }
   0xe   : > { %v1315_v2 = vld [vmem:[%s1606_s1 + $0x38] sm:$0xff]   ;;  %1216 = vmatprep.subr.bf16.mxu1 %v1314_v1  ;;  %v1319_v6 = vld [vmem:[%s1606_s1 + $0x30] sm:$0xff]   ;;  %v1323_v10 = vld [vmem:[%s1606_s1 + $0x28] sm:$0xff]   ;;  %s247_s10 = scalar_lea.vmem %s1609_s4, %s1175_s7 }
   0xf   : > { %v1316_v3 = vld [vmem:[%s1606_s1 + $0xb8] sm:$0xff]   ;;  %1177 = vmatpush3.bf16.msra.mxu0 %v1315_v2  ;;  %v1320_v7 = vld [vmem:[%s1606_s1 + $0xb0] sm:$0xff]   ;;  %v1324_v11 = vld [vmem:[%s1606_s1 + $0xa8] sm:$0xff]   ;;  %s1546_s12 = scalar_lea.vmem %s1605_s0, %s1288_s27 }
  0x10   : > { %1217 = vmatpush3.bf16.msra.mxu1 %v1316_v3  ;;  %1178 = vmatprep.subr.bf16.mxu0 %v1317_v4  ;;  %v1325_v12 = vld [vmem:[%s1606_s1 + $0x60] sm:$0xff]   ;;  %v1329_v16 = vld [vmem:[%s1606_s1 + $0x58] sm:$0xff]   ;;  %v1333_v20 = vld [vmem:[%s1606_s1 + $0x50] sm:$0xff]  }
  0x11   : > { %1218 = vmatprep.subr.bf16.mxu1 %v1318_v5  ;;  %v1326_v13 = vld [vmem:[%s1606_s1 + $0xe0] sm:$0xff]   ;;  %v1330_v17 = vld [vmem:[%s1606_s1 + $0xd8] sm:$0xff]   ;;  %v1334_v21 = vld [vmem:[%s1606_s1 + $0xd0] sm:$0xff]  }
  0x12   : > { %v1327_v14 = vld [vmem:[%s1606_s1 + $0x20] sm:$0xff]   ;;  %v1331_v18 = vld [vmem:[%s1606_s1 + $0x18] sm:$0xff]   ;;  %v1335_v22 = vld [vmem:[%s1606_s1 + $0x10] sm:$0xff]  }
  0x13   : > { %1179 = vmatpush3.bf16.msra.mxu0 %v1319_v6  ;;  %v1328_v15 = vld [vmem:[%s1606_s1 + $0xa0] sm:$0xff]   ;;  %v1332_v19 = vld [vmem:[%s1606_s1 + $0x98] sm:$0xff]   ;;  %v1336_v23 = vld [vmem:[%s1606_s1 + $0x90] sm:$0xff]  }
  0x14   : > { %1219 = vmatpush3.bf16.msra.mxu1 %v1320_v7  ;;  %1180 = vmatprep.subr.bf16.mxu0 %v1321_v8  ;;  %v1337_v24 = vld [vmem:[%s1606_s1 + $0x48] sm:$0xff]   ;;  %v1341_v28 = vld [vmem:[%s1606_s1 + $0x40] sm:$0xff]   ;;  %v1351_v36 = vld [vmem:[%s1606_s1 + $0x118] sm:$0xff]  }
  0x15   : > { %1220 = vmatprep.subr.bf16.mxu1 %v1322_v9  ;;  %v1338_v25 = vld [vmem:[%s1606_s1 + $0xc8] sm:$0xff]   ;;  %v1342_v29 = vld [vmem:[%s1606_s1 + $0xc0] sm:$0xff]   ;;  %v1358_v39 = vld [vmem:[%s1606_s1 + $0x110] sm:$0xff]  }
  0x16   : > { %v1339_v26 = vld [vmem:[%s1606_s1 + $0x8] sm:$0xff]   ;;  %v1343_v30 = vld [vmem:[%s1606_s1] sm:$0xff]   ;;  %v1361_v43 = vld [vmem:[%s1546_s12 + $0x5c] ss:$20 sps:$4 sm:$0xff]  }
  0x17   : > { %1181 = vmatpush3.bf16.msra.mxu0 %v1323_v10  ;;  %v1340_v27 = vld [vmem:[%s1606_s1 + $0x88] sm:$0xff]   ;;  %v1344_v31 = vld [vmem:[%s1606_s1 + $0x80] sm:$0xff]   ;;  %v1366_v48 = vld [vmem:[%s1546_s12 + $0x7c] ss:$20 sps:$4 sm:$0xff]  }
  0x18   : > { %1221 = vmatpush3.bf16.msra.mxu1 %v1324_v11  ;;  %1182 = vmatprep.subr.bf16.mxu0 %v1325_v12  ;;  %v1345_v32 = vld [vmem:[%s1546_s12] ss:$20 sps:$4 sm:$0xff]   ;;  %v1347_v33 = vld [vmem:[%s1546_s12 + $0x4] ss:$20 sps:$4 sm:$0xff]   ;;  %v1348_v34 = vld [vmem:[%s1546_s12 + $0x8] ss:$20 sps:$4 sm:$0xff]  }
  0x19   : > { %1222 = vmatprep.subr.bf16.mxu1 %v1326_v13  ;;  %v1350_v35 = vld [vmem:[%s1546_s12 + $0xc] ss:$20 sps:$4 sm:$0xff]   ;;  %726 = vmatprep.mubr.bf16.mxu0 %v1347_v33  ;;  %v1354_v38 = vld [vmem:[%s1546_s12 + $0x34] ss:$20 sps:$4 sm:$0xff]   ;;  %v1357_v41 = vld [vmem:[%s1546_s12 + $0x30] ss:$20 sps:$4 sm:$0xff]  }
  0x1a   : > { %791 = vmatprep.mubr.bf16.mxu1 %v1350_v35  ;;  %v1352_v37 = vld [vmem:[%s1546_s12 + $0x2c] ss:$20 sps:$4 sm:$0xff]   ;;  %v1356_v40 = vld [vmem:[%s1546_s12 + $0x28] ss:$20 sps:$4 sm:$0xff]   ;;  %v1363_v46 = vld [vmem:[%s1546_s12 + $0x50] ss:$20 sps:$4 sm:$0xff]  }
  0x1b   : > { %1183 = vmatpush3.bf16.msra.mxu0 %v1327_v14  ;;  %v1359_v42 = vld [vmem:[%s1546_s12 + $0x54] ss:$20 sps:$4 sm:$0xff]   ;;  %v1372_v45 = vld [vmem:[%s1606_s1 + $0x100] sm:$0xff]   ;;  %v1364_v47 = vld [vmem:[%s1546_s12 + $0x58] ss:$20 sps:$4 sm:$0xff]  }
  0x1c   : > { %1223 = vmatpush3.bf16.msra.mxu1 %v1328_v15  ;;  %1184 = vmatprep.subr.bf16.mxu0 %v1329_v16  ;;  %v1365_v44 = vld [vmem:[%s1606_s1 + $0x108] sm:$0xff]   ;;  %v1368_v49 = vld [vmem:[%s1546_s12 + $0x84] ss:$20 sps:$4 sm:$0xff]   ;;  %v1371_v51 = vld [vmem:[%s1546_s12 + $0x80] ss:$20 sps:$4 sm:$0xff]  }
  0x1d   : > { %1224 = vmatprep.subr.bf16.mxu1 %v1330_v17  ;;  %v1370_v50 = vld [vmem:[%s1546_s12 + $0x78] ss:$20 sps:$4 sm:$0xff]   ;;  %v1373_v52 = vld [vmem:[%s1546_s12 + $0x10] ss:$20 sps:$4 sm:$0xff]   ;;  %v1374_v53 = vld [vmem:[%s1546_s12 + $0x60] ss:$20 sps:$4 sm:$0xff]  }
  0x1e   : > { %v1375_v54 = vld [vmem:[%s1546_s12 + $0x38] ss:$20 sps:$4 sm:$0xff]   ;;  %v1376_v55 = vld [vmem:[%s1546_s12 + $0x88] ss:$20 sps:$4 sm:$0xff]  }
  0x1f   : > { %1185 = vmatpush3.bf16.msra.mxu0 %v1331_v18 }
  0x20   : > { %1225 = vmatpush3.bf16.msra.mxu1 %v1332_v19  ;;  %1186 = vmatprep.subr.bf16.mxu0 %v1333_v20 }
  0x21   : > { %1226 = vmatprep.subr.bf16.mxu1 %v1334_v21 }
  0x23   : > { %1187 = vmatpush3.bf16.msra.mxu0 %v1335_v22 }
  0x24   : > { %1227 = vmatpush3.bf16.msra.mxu1 %v1336_v23  ;;  %1188 = vmatprep.subr.bf16.mxu0 %v1337_v24 }
  0x25   : > { %1228 = vmatprep.subr.bf16.mxu1 %v1338_v25 }
  0x27   : > { %1189 = vmatpush3.bf16.msra.mxu0 %v1339_v26 }
  0x28   : > { %1229 = vmatpush3.bf16.msra.mxu1 %v1340_v27  ;;  %1190 = vmatprep.subr.bf16.mxu0 %v1341_v28 }
  0x29   : > { %1230 = vmatprep.subr.bf16.mxu1 %v1342_v29 }
  0x2b   : > { %1191 = vmatpush3.bf16.msra.mxu0 %v1343_v30 }
  0x2c   : > { %1231 = vmatpush3.bf16.msra.mxu1 %v1344_v31  ;;  %1264 = vmatprep.subr.bf16.mxu0 %v1351_v36 }
  0x2d   : > { %1280 = vmatprep.subr.bf16.mxu1 %v1351_v36 }
  0x2e   : > { %727 = vmatmul.mubr.bf16.vlgmr.msra.gmra.mxu0 %v1345_v32 }
  0x2f   : > { %792 = vmatmul.mubr.bf16.vlgmr.msra.gmra.mxu1 %v1348_v34  ;;  %1265 = vmatpush3.bf16.msra.mxu0 %v1351_v36 }
  0x30   : > { %734 = vmatprep.mubr.bf16.mxu0 %v1352_v37  ;;  %799 = vmatprep.mubr.bf16.mxu1 %v1354_v38 }
  0x31   : > { %1284 = vmatpush3.bf16.msra.mxu1 %v1351_v36  ;;  %1266 = vmatprep.subr.bf16.mxu0 %v1358_v39 }
  0x32   : > { %1281 = vmatprep.subr.bf16.mxu1 %v1358_v39 }
  0x33   : > { %1267 = vmatpush3.bf16.msra.mxu0 %v1358_v39 }
  0x34   : > { %1268 = vmatprep.subr.bf16.mxu0 %v1365_v44 }
  0x35   : > { %1285 = vmatpush3.bf16.msra.mxu1 %v1358_v39 }
  0x36   : > { %735 = vmatmul.mubr.bf16.gmra.mxu0 %v1356_v40  ;;  %1282 = vmatprep.subr.bf16.mxu1 %v1365_v44 }
  0x37   : > { %800 = vmatmul.mubr.bf16.gmra.mxu1 %v1357_v41  ;;  %742 = vmatprep.mubr.bf16.mxu0 %v1359_v42 }
  0x38   : > { %807 = vmatprep.mubr.bf16.mxu1 %v1361_v43  ;;  %1269 = vmatpush3.bf16.msra.mxu0 %v1365_v44 }
  0x39   : > { %1270 = vmatprep.subr.bf16.mxu0 %v1372_v45  ;;  %1286 = vmatpush3.bf16.msra.mxu1 %v1365_v44 }
  0x3a   : > { %1283 = vmatprep.subr.bf16.mxu1 %v1372_v45 }
  0x3c   : > { %1271 = vmatpush3.bf16.msra.mxu0 %v1372_v45 }
  0x3d   : > { %1287 = vmatpush3.bf16.msra.mxu1 %v1372_v45 }
  0x3e   : > { %743 = vmatmul.mubr.bf16.gmra.mxu0 %v1363_v46 }
  0x3f   : > { %808 = vmatmul.mubr.bf16.gmra.mxu1 %v1364_v47  ;;  %750 = vmatprep.mubr.bf16.mxu0 %v1366_v48 }
  0x40   : > { %815 = vmatprep.mubr.bf16.mxu1 %v1368_v49 }
  0x46   : > { %751 = vmatmul.mubr.bf16.gmra.mxu0 %v1370_v50 }
  0x47   : > { %816 = vmatmul.mubr.bf16.gmra.mxu1 %v1371_v51  ;;  %1272 = vmatprep.mubr.msk.bf16.mxu0 %vm681_vm0, %v1373_v52 }
  0x48   : > { %1276 = vmatprep.mubr.msk.bf16.mxu1 %vm681_vm0, %v1374_v53 }
  0x4e   : > { %1273 = vmatmul.mubr.msk.bf16.vlgmr.msra.gmra.mxu0 %vm681_vm0, %v1375_v54 }
  0x4f   : > { %1277 = vmatmul.mubr.msk.bf16.vlgmr.msra.gmra.mxu1 %vm681_vm0, %v1376_v55 }
  0xee   : > { %v1192_v56 = vpop.f32.mrf.mxu0 }
  0xef   : > { %v1232_v57 = vpop.f32.mrf.mxu1 }
  0xf0   : > { %v1193_v58 = vpop.f32.mrf.mxu0 }
  0xf1   : > { %v1233_v59 = vpop.f32.mrf.mxu1  ;;  %v1194_v25 = vadd.f32 %v1193_v58, %v1192_v56 }
  0xf2   : > { %v1195_v60 = vpop.f32.mrf.mxu0  ;;  %v1234_v26 = vadd.f32 %v1233_v59, %v1232_v57 }
  0xf3   : > { %v1235_v61 = vpop.f32.mrf.mxu1 }
  0xf4   : > { %v1196_v62 = vpop.f32.mrf.mxu0  ;;  %v794_v37 = vadd.f32 %v1234_v26, %v1194_v25 }
  0xf5   : > { %v1236_v63 = vpop.f32.mrf.mxu1  ;;  %v1197_v27 = vadd.f32 %v1196_v62, %v1195_v60 }
  0xf6   : > { %v1198_v0 = vpop.f32.mrf.mxu0  ;;  %v1237_v28 = vadd.f32 %v1236_v63, %v1235_v61 }
  0xf7   : > { %v1238_v1 = vpop.f32.mrf.mxu1 }
  0xf8   : > { %v1199_v2 = vpop.f32.mrf.mxu0  ;;  %v797_v38 = vadd.f32 %v1237_v28, %v1197_v27 }
  0xf9   : > { %v1239_v3 = vpop.f32.mrf.mxu1  ;;  %v1200_v31 = vadd.f32 %v1199_v2, %v1198_v0 }
  0xfa   : > { %v1201_v4 = vpop.f32.mrf.mxu0  ;;  %v1240_v32 = vadd.f32 %v1239_v3, %v1238_v1 }
  0xfb   : > { %v1241_v5 = vpop.f32.mrf.mxu1 }
  0xfc   : > { %v1202_v6 = vpop.f32.mrf.mxu0  ;;  %v802_v42 = vadd.f32 %v1240_v32, %v1200_v31 }
  0xfd   : > { %v1242_v7 = vpop.f32.mrf.mxu1  ;;  %v1203_v35 = vadd.f32 %v1202_v6, %v1201_v4 }
  0xfe   : > { %v1204_v8 = vpop.f32.mrf.mxu0  ;;  %v1243_v36 = vadd.f32 %v1242_v7, %v1241_v5 }
  0xff   : > { %v1244_v9 = vpop.f32.mrf.mxu1 }
 0x100   : > { %v1205_v10 = vpop.f32.mrf.mxu0  ;;  %v805_v49 = vadd.f32 %v1243_v36, %v1203_v35 }
 0x101   : > { %v1245_v11 = vpop.f32.mrf.mxu1  ;;  %v1206_v39 = vadd.f32 %v1205_v10, %v1204_v8 }
 0x102   : > { %v1207_v12 = vpop.f32.mrf.mxu0  ;;  %v1246_v40 = vadd.f32 %v1245_v11, %v1244_v9 }
 0x103   : > { %v1247_v13 = vpop.f32.mrf.mxu1 }
 0x104   : > { %v1208_v14 = vpop.f32.mrf.mxu0  ;;  %v810_v51 = vadd.f32 %v1246_v40, %v1206_v39 }
 0x105   : > { %v1248_v15 = vpop.f32.mrf.mxu1  ;;  %v1209_v45 = vadd.f32 %v1208_v14, %v1207_v12 }
 0x106   : > { %v1210_v16 = vpop.f32.mrf.mxu0  ;;  %v1249_v46 = vadd.f32 %v1248_v15, %v1247_v13 }
 0x107   : > { %v1250_v17 = vpop.f32.mrf.mxu1 }
 0x108   : > { %v1211_v18 = vpop.f32.mrf.mxu0  ;;  %v813_v56 = vadd.f32 %v1249_v46, %v1209_v45  ;;  %v1171_v46 = vld [vmem:[%s1607_s2] ss:$0 sm:$0xff] }
 0x109   : > { %v1251_v19 = vpop.f32.mrf.mxu1  ;;  %v1212_v52 = vadd.f32 %v1211_v18, %v1210_v16 }
 0x10a   : > { %v1213_v20 = vpop.f32.mrf.mxu0  ;;  %v1252_v53 = vadd.f32 %v1251_v19, %v1250_v17 }
 0x10b   : > { %v1253_v21 = vpop.f32.mrf.mxu1 }
 0x10c   : > { %v1214_v22 = vpop.f32.mrf.mxu0  ;;  %v818_v62 = vadd.f32 %v1252_v53, %v1212_v52 }
 0x10d   : > { %v1254_v23 = vpop.f32.mrf.mxu1  ;;  %v1215_v58 = vadd.f32 %v1214_v22, %v1213_v20 }
 0x10e   : > { %v1274_v24 = vpop.f32.mrf.mxu0  ;;  %v1255_v59 = vadd.f32 %v1254_v23, %v1253_v21 }
 0x10f   : > { %v1278_v29 = vpop.f32.mrf.mxu1  ;;  %v867_v48 = vadd.f32 %v1274_v24, %v802_v42 }
 0x110   : > { %v858_v30 = vpop.f32.mrf.mxu0  ;;  %v883_v1 = vadd.f32 %v1278_v29, %v818_v62  ;;  %v821_v2 = vadd.f32 %v1255_v59, %v1215_v58 }
 0x111   : > { %v874_v33 = vpop.f32.mrf.mxu1  ;;  %v859_v43 = vadd.f32 %v858_v30, %v794_v37 }
 0x112   : > { %v1275_v34 = vpop.f32.mrf.mxu0  ;;  %v875_v60 = vadd.f32 %v874_v33, %v810_v51 }
 0x113   : > { %v1279_v47 = vpop.f32.mrf.mxu1  ;;  %v870_v54 = vadd.f32 %v1275_v34, %v805_v49 }
 0x114   : > { %v861_v41 = vpop.f32.mrf.mxu0  ;;  %v886_v4 = vadd.f32 %v1279_v47, %v821_v2 }
 0x115   : > { %v862_v44 = vadd.f32 %v861_v41, %v797_v38  ;;  %v877_v57 = vpop.f32.mrf.mxu1 }
 0x116   : > { %v878_v63 = vadd.f32 %v877_v57, %v813_v56 }
 0x117   : > { %v916_v50 = vadd.f32 %v862_v44, %v859_v43 }
 0x119   : > { %v917_v55 = vadd.f32 %v916_v50, %v867_v48 }
 0x11b   : > { %v918_v61 = vadd.f32 %v917_v55, %v870_v54  ;;  %v1172_v55 = vld [vmem:[%s1608_s3] ss:$0 sm:$0xff] }
 0x11d   : > { %v919_v0 = vadd.f32 %v918_v61, %v875_v60 }
 0x11f   : > { %v920_v3 = vadd.f32 %v919_v0, %v878_v63 }
 0x121   : > { %v921_v5 = vadd.f32 %v920_v3, %v883_v1 }
 0x123   : > { %v922_v6 = vadd.f32 %v921_v5, %v886_v4 }
 0x125   : > { %v923_v7 = vrot.slane %v922_v6, 4 }
 0x127   : > { %v924_v8 = vadd.f32 %v923_v7, %v922_v6 }
 0x129   : > { %v925_v9 = vrot.slane %v924_v8, 2 }
 0x12b   : > { %v926_v10 = vadd.f32 %v925_v9, %v924_v8 }
 0x12d   : > { %v927_v11 = vrot.slane %v926_v10, 1 }
 0x12f   : > { %v928_v12 = vadd.f32 %v927_v11, %v926_v10 }
 0x131   : > { %v930_v13 = vmul.f32 0.015625, %v928_v12 }
 0x133   : > { %v931_v14 = vsub.f32 %v859_v43, %v930_v13  ;;  %v932_v15 = vsub.f32 %v862_v44, %v930_v13  ;;  %v933_v16 = vsub.f32 %v867_v48, %v930_v13  ;;  %v934_v17 = vsub.f32 %v870_v54, %v930_v13 }
 0x134   : > { %v935_v20 = vsub.f32 %v875_v60, %v930_v13  ;;  %v936_v23 = vsub.f32 %v878_v63, %v930_v13  ;;  %v937_v26 = vsub.f32 %v883_v1, %v930_v13  ;;  %v938_v29 = vsub.f32 %v886_v4, %v930_v13 }
 0x135   : > { %v939_v18 = vmul.f32 %v931_v14, %v931_v14  ;;  %v940_v19 = vmul.f32 %v932_v15, %v932_v15  ;;  %v941_v21 = vmul.f32 %v933_v16, %v933_v16  ;;  %v942_v24 = vmul.f32 %v934_v17, %v934_v17 }
 0x136   : > { %v943_v27 = vmul.f32 %v935_v20, %v935_v20  ;;  %v944_v30 = vmul.f32 %v936_v23, %v936_v23  ;;  %v945_v32 = vmul.f32 %v937_v26, %v937_v26  ;;  %v946_v34 = vmul.f32 %v938_v29, %v938_v29 }
 0x137   : > { %v947_v22 = vadd.f32 %v940_v19, %v939_v18 }
 0x139   : > { %v948_v25 = vadd.f32 %v947_v22, %v941_v21 }
 0x13b   : > { %v949_v28 = vadd.f32 %v948_v25, %v942_v24 }
 0x13d   : > { %v950_v31 = vadd.f32 %v949_v28, %v943_v27 }
 0x13f   : > { %v951_v33 = vadd.f32 %v950_v31, %v944_v30 }
 0x141   : > { %v952_v35 = vadd.f32 %v951_v33, %v945_v32 }
 0x143   : > { %v953_v36 = vadd.f32 %v952_v35, %v946_v34 }
 0x145   : > { %v954_v37 = vrot.slane %v953_v36, 4 }
 0x147   : > { %v955_v38 = vadd.f32 %v954_v37, %v953_v36 }
 0x149   : > { %v956_v39 = vrot.slane %v955_v38, 2 }
 0x14b   : > { %v957_v40 = vadd.f32 %v956_v39, %v955_v38 }
 0x14d   : > { %v958_v41 = vrot.slane %v957_v40, 1 }
 0x14f   : > { %v959_v42 = vadd.f32 %v958_v41, %v957_v40 }
 0x151   : > { %v960_v43 = vmul.f32 0.015625, %v959_v42 }
 0x153   : > { %v961_v44 = vadd.f32 1e-05, %v960_v43 }
 0x155   : > { %1377 = vrsqrt.f32 %v961_v44 }
 0x162   : > { %v1378_v45 = vpop.eup %1377 }
 0x163   : > { %v963_v47 = vmul.f32 %v1378_v45, %v931_v14  ;;  %v964_v48 = vmul.f32 %v1378_v45, %v932_v15  ;;  %v965_v49 = vmul.f32 %v1378_v45, %v933_v16  ;;  %v966_v50 = vmul.f32 %v1378_v45, %v934_v17 }
 0x164   : > { %v967_v51 = vmul.f32 %v1378_v45, %v935_v20  ;;  %v968_v52 = vmul.f32 %v1378_v45, %v936_v23  ;;  %v969_v53 = vmul.f32 %v1378_v45, %v937_v26  ;;  %v970_v54 = vmul.f32 %v1378_v45, %v938_v29 }
 0x165   : > { %v978_v56 = vmul.f32 %v1171_v46, %v963_v47  ;;  %v979_v57 = vmul.f32 %v1171_v46, %v964_v48  ;;  %v980_v58 = vmul.f32 %v1171_v46, %v965_v49  ;;  %v981_v59 = vmul.f32 %v1171_v46, %v966_v50 }
 0x166   : > { %v982_v60 = vmul.f32 %v1171_v46, %v967_v51  ;;  %v983_v61 = vmul.f32 %v1171_v46, %v968_v52  ;;  %v984_v62 = vmul.f32 %v1171_v46, %v969_v53  ;;  %v985_v63 = vmul.f32 %v1171_v46, %v970_v54 }
 0x167   : > { %v993_v0 = vadd.f32 %v1172_v55, %v978_v56  ;;  %v994_v1 = vadd.f32 %v1172_v55, %v979_v57  ;;  %v995_v2 = vadd.f32 %v1172_v55, %v980_v58  ;;  %v996_v3 = vadd.f32 %v1172_v55, %v981_v59 }
 0x168   : > { %v997_v4 = vadd.f32 %v1172_v55, %v982_v60  ;;  %v998_v5 = vadd.f32 %v1172_v55, %v983_v61  ;;  %v999_v6 = vadd.f32 %v1172_v55, %v984_v62  ;;  %v1000_v7 = vadd.f32 %v1172_v55, %v985_v63 }
 0x169   : > { %v1001_v8 = vmax.f32 %v993_v0, 0.0  ;;  %v1002_v9 = vmax.f32 %v994_v1, 0.0  ;;  %v1003_v10 = vmax.f32 %v995_v2, 0.0  ;;  %v1004_v11 = vmax.f32 %v996_v3, 0.0 }
 0x16a   : > { %v1005_v12 = vmax.f32 %v997_v4, 0.0  ;;  %v1006_v13 = vmax.f32 %v998_v5, 0.0  ;;  %v1007_v14 = vmax.f32 %v999_v6, 0.0  ;;  %v1008_v15 = vmax.f32 %v1000_v7, 0.0 }
 0x16b   : > { %1009 = vst [vmem:[%s247_s10] sm:$0xff] %v1001_v8  ;;  %1010 = vst [vmem:[%s247_s10 + $0x8] sm:$0xff] %v1002_v9 }
 0x16c   : > { %1011 = vst [vmem:[%s247_s10 + $0x10] sm:$0xff] %v1003_v10  ;;  %1012 = vst [vmem:[%s247_s10 + $0x18] sm:$0xff] %v1004_v11 }
 0x16d   : > { %1013 = vst [vmem:[%s247_s10 + $0x20] sm:$0xff] %v1005_v12  ;;  %1014 = vst [vmem:[%s247_s10 + $0x28] sm:$0xff] %v1006_v13 }
 0x16e   : > { %1015 = vst [vmem:[%s247_s10 + $0x30] sm:$0xff] %v1007_v14  ;;  %1016 = vst [vmem:[%s247_s10 + $0x38] sm:$0xff] %v1008_v15 }
 0x16f PF: > { %s14_s17 = sadd.s32 1, %s1401_s17   ;;  %s1610_s15 = smov %s1397_s16 }
 0x170   : > { %p11_p5 = scmp.ge.s32.totalorder %s14_s17, 4   ;;  %s1611_s16 = smov %s1613_s18 }
 0x172   :  { %13 = sbr.rel (!%p11_p5) target bundleno = 2 (0x2), region = 77 }

// kernel: forward.19
= control target key start
LH: loop header
LB: loop body
LE: loop exit
PB: predicated region body
PF: predicated region fallthrough
CT: control target
= control target key end

     0   :  { %s430_s15 = smov 0   ;;  %s456_s0 = inlined_call_operand.vmem [shape: f32[2,16,128], index: 0, kind: input, shape index: {}]   ;;  %s457_s1 = inlined_call_operand.vmem [shape: f32[2,16,128], index: 1, kind: input, shape index: {}]   ;;  %s458_s2 = inlined_call_operand.vmem [shape: f32[2,16,128], index: 2, kind: input, shape index: {}]   ;;  %s459_s3 = inlined_call_operand.vmem [shape: f32[2,16,128], index: 3, kind: input, shape index: {}]   ;;  %s460_s4 = inlined_call_operand.vmem [shape: f32[2,16,128], index: 4, kind: output, shape index: {}]  }
   0x1 LB: > { %s367_s16 = sadd.s32 4294967295, %s403_s15   ;;  %p371_p0 = scmp.ge.s32.totalorder %s403_s15, 1  ;;  %s403_s15 = sphi %s430_s15, %s14_s15  }
   0x2   : > { %p192_p1 = scmp.lt.s32.totalorder %s403_s15, 3 }
   0x4   : > { %p193_p2 = pnand %p371_p0, %p192_p1 }
   0x5   : > { %p233_p3 = scmp.lt.s32.totalorder (!%p193_p2), %s367_s16, 1 }
   0x6   : > { %196 = sbr.rel (%p193_p2) target bundleno = 25 (0x19), region = 36 }
   0xb   : > { %s462_s16 = smov (!%p233_p3, %s367_s16), 1 }
   0xc   : > { %s384_s17 = sshll.u32 %s462_s16, 4 }
   0xd   : > { %s237_s20 = scalar_lea.vmem %s456_s0, %s384_s17  ;;  %s242_s23 = scalar_lea.vmem %s457_s1, %s384_s17 }
   0xe   : > { %s247_s26 = scalar_lea.vmem %s458_s2, %s384_s17  ;;  %s252_s29 = scalar_lea.vmem %s459_s3, %s384_s17  ;;  %v258_v0 = vld [vmem:[%s237_s20] sm:$0xff]  ;;  %v259_v2 = vld [vmem:[%s237_s20 + $0x8] sm:$0xff] }
   0xf   : > { %v260_v1 = vld [vmem:[%s242_s23] sm:$0xff]  ;;  %v261_v5 = vld [vmem:[%s242_s23 + $0x8] sm:$0xff]  ;;  %s257_s6 = scalar_lea.vmem %s460_s4, %s384_s17 }
  0x10   : > { %v262_v3 = vadd.f32 %v260_v1, %v258_v0  ;;  %v264_v4 = vld [vmem:[%s247_s26] sm:$0xff]  ;;  %v263_v7 = vadd.f32 %v261_v5, %v259_v2  ;;  %v265_v8 = vld [vmem:[%s247_s26 + $0x8] sm:$0xff] }
  0x11   : > { %v268_v6 = vld [vmem:[%s252_s29] sm:$0xff]  ;;  %v269_v10 = vld [vmem:[%s252_s29 + $0x8] sm:$0xff] }
  0x12   : > { %v266_v9 = vadd.f32 %v264_v4, %v262_v3  ;;  %v267_v11 = vadd.f32 %v265_v8, %v263_v7 }
  0x14   : > { %v270_v12 = vadd.f32 %v268_v6, %v266_v9  ;;  %v271_v13 = vadd.f32 %v269_v10, %v267_v11 }
  0x16   : > { %v272_v14 = vmul.f32 0.25, %v270_v12  ;;  %v273_v15 = vmul.f32 0.25, %v271_v13 }
  0x18   : > { %274 = vst [vmem:[%s257_s6] sm:$0xff] %v272_v14  ;;  %275 = vst [vmem:[%s257_s6 + $0x8] sm:$0xff] %v273_v15 }
  0x19 PF: > { %s14_s15 = sadd.s32 1, %s403_s15  }
  0x1a   : > { %p11_p4 = scmp.ge.s32.totalorder %s14_s15, 4  }
  0x1c   :  { %13 = sbr.rel (!%p11_p4) target bundleno = 1 (0x1), region = 75 }

// kernel: forward.18
= control target key start
LH: loop header
LB: loop body
LE: loop exit
PB: predicated region body
PF: predicated region fallthrough
CT: control target
= control target key end

     0   :  { %s2141_s15 = smov 0   ;;  %s2143_s16 = smov 0   ;;  %s2481_s0 = inlined_call_operand.vmem [shape: bf16[2,64,1152], index: 0, kind: input, shape index: {}]   ;;  %s2482_s1 = inlined_call_operand.vmem [shape: bf16[1152,128], index: 1, kind: input, shape index: {}]   ;;  %s2483_s2 = inlined_call_operand.vmem [shape: f32[1,128], index: 2, kind: input, shape index: {}]   ;;  %s2484_s3 = inlined_call_operand.vmem [shape: f32[1,128], index: 3, kind: input, shape index: {}]   ;;  %s2485_s4 = inlined_call_operand.vmem [shape: f32[2,64,128], index: 4, kind: output, shape index: {}]  }
   0x1   :  { %s2145_s17 = smov 0  }
   0x2 LB: > { %s26_s18 = sadd.s32 1, %s2110_s16  ;;  %p1612_p0 = scmp.ge.s32.totalorder %s2114_s17, 1  ;;  %s2114_s17 = sphi %s2145_s17, %s14_s17   ;;  %s2110_s16 = sphi %s2143_s16, %s2513_s16   ;;  %s2106_s15 = sphi %s2141_s15, %s2512_s15  }
   0x3   : > { %p28_p1 = scmp.ge.s32.totalorder %s26_s18, 2  ;;  %p192_p2 = scmp.lt.s32.totalorder %s2114_s17, 3 }
   0x5   : > { %s2515_s18 = smov (%p28_p1, %s26_s18), 0  ;;  %p193_p3 = pnand %p1612_p0, %p192_p2 }
   0x7   : > { %196 = sbr.rel (%p193_p3) target bundleno = 400 (0x190), region = 36 }
   0xc   : > { %v1966_v0 = vld [vmem:[%s2482_s1 + $0x78] sm:$0xff]   ;;  %v1970_v4 = vld [vmem:[%s2482_s1 + $0x70] sm:$0xff]   ;;  %v1974_v8 = vld [vmem:[%s2482_s1 + $0x68] sm:$0xff]   ;;  %p228_p4 = scmp.lt.s32.totalorder %s2106_s15, 1 }
   0xd   : > { %v1967_v1 = vld [vmem:[%s2482_s1 + $0xf8] sm:$0xff]   ;;  %1729 = vmatprep.subr.bf16.mxu0 %v1966_v0  ;;  %v1971_v5 = vld [vmem:[%s2482_s1 + $0xf0] sm:$0xff]   ;;  %v1975_v9 = vld [vmem:[%s2482_s1 + $0xe8] sm:$0xff]  }
   0xe   : > { %v1968_v2 = vld [vmem:[%s2482_s1 + $0x38] sm:$0xff]   ;;  %1769 = vmatprep.subr.bf16.mxu1 %v1967_v1  ;;  %v1972_v6 = vld [vmem:[%s2482_s1 + $0x30] sm:$0xff]   ;;  %v1976_v10 = vld [vmem:[%s2482_s1 + $0x28] sm:$0xff]   ;;  %s2517_s15 = smov (!%p228_p4, %s2106_s15), 1 }
   0xf   : > { %v1969_v3 = vld [vmem:[%s2482_s1 + $0xb8] sm:$0xff]   ;;  %1730 = vmatpush3.bf16.msra.mxu0 %v1968_v2  ;;  %v1973_v7 = vld [vmem:[%s2482_s1 + $0xb0] sm:$0xff]   ;;  %v1977_v11 = vld [vmem:[%s2482_s1 + $0xa8] sm:$0xff]   ;;  %s1941_s27 = smul.u32 288, %s2517_s15  ;;  %s1728_s20 = sshll.u32 %s2517_s15, 6 }
  0x10   : > { %1770 = vmatpush3.bf16.msra.mxu1 %v1969_v3  ;;  %1731 = vmatprep.subr.bf16.mxu0 %v1970_v4  ;;  %v1978_v12 = vld [vmem:[%s2482_s1 + $0x60] sm:$0xff]   ;;  %v1982_v16 = vld [vmem:[%s2482_s1 + $0x58] sm:$0xff]   ;;  %v1986_v20 = vld [vmem:[%s2482_s1 + $0x50] sm:$0xff]   ;;  %s247_s23 = scalar_lea.vmem %s2485_s4, %s1728_s20 }
  0x11   : > { %1771 = vmatprep.subr.bf16.mxu1 %v1971_v5  ;;  %v1979_v13 = vld [vmem:[%s2482_s1 + $0xe0] sm:$0xff]   ;;  %v1983_v17 = vld [vmem:[%s2482_s1 + $0xd8] sm:$0xff]   ;;  %v1987_v21 = vld [vmem:[%s2482_s1 + $0xd0] sm:$0xff]   ;;  %s2259_s12 = scalar_lea.vmem %s2481_s0, %s1941_s27 }
  0x12   : > { %v1980_v14 = vld [vmem:[%s2482_s1 + $0x20] sm:$0xff]   ;;  %v1984_v18 = vld [vmem:[%s2482_s1 + $0x18] sm:$0xff]   ;;  %v1988_v22 = vld [vmem:[%s2482_s1 + $0x10] sm:$0xff]  }
  0x13   : > { %1732 = vmatpush3.bf16.msra.mxu0 %v1972_v6  ;;  %v1981_v15 = vld [vmem:[%s2482_s1 + $0xa0] sm:$0xff]   ;;  %v1985_v19 = vld [vmem:[%s2482_s1 + $0x98] sm:$0xff]   ;;  %v1989_v23 = vld [vmem:[%s2482_s1 + $0x90] sm:$0xff]  }
  0x14   : > { %1772 = vmatpush3.bf16.msra.mxu1 %v1973_v7  ;;  %1733 = vmatprep.subr.bf16.mxu0 %v1974_v8  ;;  %v1990_v24 = vld [vmem:[%s2482_s1 + $0x48] sm:$0xff]   ;;  %v1994_v28 = vld [vmem:[%s2482_s1 + $0x40] sm:$0xff]   ;;  %v2004_v36 = vld [vmem:[%s2482_s1 + $0x178] sm:$0xff]  }
  0x15   : > { %1773 = vmatprep.subr.bf16.mxu1 %v1975_v9  ;;  %v1991_v25 = vld [vmem:[%s2482_s1 + $0xc8] sm:$0xff]   ;;  %v1995_v29 = vld [vmem:[%s2482_s1 + $0xc0] sm:$0xff]   ;;  %v2005_v37 = vld [vmem:[%s2482_s1 + $0x1f8] sm:$0xff]  }
  0x16   : > { %v1992_v26 = vld [vmem:[%s2482_s1 + $0x8] sm:$0xff]   ;;  %v1996_v30 = vld [vmem:[%s2482_s1] sm:$0xff]   ;;  %v2006_v38 = vld [vmem:[%s2482_s1 + $0x138] sm:$0xff]  }
  0x17   : > { %1734 = vmatpush3.bf16.msra.mxu0 %v1976_v10  ;;  %v1993_v27 = vld [vmem:[%s2482_s1 + $0x88] sm:$0xff]   ;;  %v1997_v31 = vld [vmem:[%s2482_s1 + $0x80] sm:$0xff]   ;;  %v2007_v39 = vld [vmem:[%s2482_s1 + $0x1b8] sm:$0xff]  }
  0x18   : > { %1774 = vmatpush3.bf16.msra.mxu1 %v1977_v11  ;;  %1735 = vmatprep.subr.bf16.mxu0 %v1978_v12  ;;  %v1998_v32 = vld [vmem:[%s2259_s12] ss:$36 sps:$4 sm:$0xff]   ;;  %v2001_v34 = vld [vmem:[%s2259_s12 + $0x8] ss:$36 sps:$4 sm:$0xff]   ;;  %v2008_v40 = vld [vmem:[%s2482_s1 + $0x170] sm:$0xff]  }
  0x19   : > { %1775 = vmatprep.subr.bf16.mxu1 %v1979_v13  ;;  %v2000_v33 = vld [vmem:[%s2259_s12 + $0x4] ss:$36 sps:$4 sm:$0xff]   ;;  %v2003_v35 = vld [vmem:[%s2259_s12 + $0xc] ss:$36 sps:$4 sm:$0xff]   ;;  %v2014_v45 = vld [vmem:[%s2259_s12 + $0x54] ss:$36 sps:$4 sm:$0xff]  }
  0x1a   : > { %1101 = vmatprep.mubr.bf16.mxu0 %v2000_v33  ;;  %1166 = vmatprep.mubr.bf16.mxu1 %v2003_v35  ;;  %v2009_v41 = vld [vmem:[%s2482_s1 + $0x1f0] sm:$0xff]   ;;  %v2016_v46 = vld [vmem:[%s2259_s12 + $0x48] ss:$36 sps:$4 sm:$0xff]   ;;  %v2022_v52 = vld [vmem:[%s2482_s1 + $0x160] sm:$0xff]  }
  0x1b   : > { %1736 = vmatpush3.bf16.msra.mxu0 %v1980_v14  ;;  %v2010_v42 = vld [vmem:[%s2482_s1 + $0x130] sm:$0xff]   ;;  %v2018_v48 = vld [vmem:[%s2482_s1 + $0x168] sm:$0xff]   ;;  %v2023_v53 = vld [vmem:[%s2482_s1 + $0x1e0] sm:$0xff]  }
  0x1c   : > { %1776 = vmatpush3.bf16.msra.mxu1 %v1981_v15  ;;  %1737 = vmatprep.subr.bf16.mxu0 %v1982_v16  ;;  %v2011_v43 = vld [vmem:[%s2482_s1 + $0x1b0] sm:$0xff]   ;;  %v2019_v49 = vld [vmem:[%s2482_s1 + $0x1e8] sm:$0xff]   ;;  %v2024_v54 = vld [vmem:[%s2482_s1 + $0x120] sm:$0xff]  }
  0x1d   : > { %1777 = vmatprep.subr.bf16.mxu1 %v1983_v17  ;;  %v2012_v44 = vld [vmem:[%s2259_s12 + $0x4c] ss:$36 sps:$4 sm:$0xff]   ;;  %v2025_v55 = vld [vmem:[%s2482_s1 + $0x1a0] sm:$0xff]   ;;  %v2026_v56 = vld [vmem:[%s2259_s12 + $0x94] ss:$36 sps:$4 sm:$0xff]  }
  0x1e   : > { %v2017_v47 = vld [vmem:[%s2259_s12 + $0x50] ss:$36 sps:$4 sm:$0xff]   ;;  %v2020_v50 = vld [vmem:[%s2482_s1 + $0x128] sm:$0xff]   ;;  %v2028_v57 = vld [vmem:[%s2259_s12 + $0x9c] ss:$36 sps:$4 sm:$0xff]  }
  0x1f   : > { %1738 = vmatpush3.bf16.msra.mxu0 %v1984_v18  ;;  %v2021_v51 = vld [vmem:[%s2482_s1 + $0x1a8] sm:$0xff]   ;;  %v2030_v58 = vld [vmem:[%s2259_s12 + $0x90] ss:$36 sps:$4 sm:$0xff]   ;;  %v2031_v59 = vld [vmem:[%s2259_s12 + $0x98] ss:$36 sps:$4 sm:$0xff]  }
  0x20   : > { %1778 = vmatpush3.bf16.msra.mxu1 %v1985_v19  ;;  %1739 = vmatprep.subr.bf16.mxu0 %v1986_v20  ;;  %v2032_v60 = vld [vmem:[%s2482_s1 + $0x158] sm:$0xff]   ;;  %v2036_v0 = vld [vmem:[%s2482_s1 + $0x150] sm:$0xff]   ;;  %v2042_v5 = vld [vmem:[%s2259_s12 + $0xe4] ss:$36 sps:$4 sm:$0xff]  }
  0x21   : > { %1779 = vmatprep.subr.bf16.mxu1 %v1987_v21  ;;  %v2033_v61 = vld [vmem:[%s2482_s1 + $0x1d8] sm:$0xff]   ;;  %v2037_v1 = vld [vmem:[%s2482_s1 + $0x1d0] sm:$0xff]   ;;  %v2045_v7 = vld [vmem:[%s2259_s12 + $0xe0] ss:$36 sps:$4 sm:$0xff]  }
  0x22   : > { %v2034_v62 = vld [vmem:[%s2482_s1 + $0x118] sm:$0xff]   ;;  %v2038_v2 = vld [vmem:[%s2482_s1 + $0x110] sm:$0xff]   ;;  %v2046_v8 = vld [vmem:[%s2482_s1 + $0x148] sm:$0xff]  }
  0x23   : > { %1740 = vmatpush3.bf16.msra.mxu0 %v1988_v22  ;;  %v2035_v63 = vld [vmem:[%s2482_s1 + $0x198] sm:$0xff]   ;;  %v2039_v3 = vld [vmem:[%s2482_s1 + $0x190] sm:$0xff]   ;;  %v2047_v9 = vld [vmem:[%s2482_s1 + $0x1c8] sm:$0xff]  }
  0x24   : > { %1780 = vmatpush3.bf16.msra.mxu1 %v1989_v23  ;;  %1741 = vmatprep.subr.bf16.mxu0 %v1990_v24  ;;  %v2040_v4 = vld [vmem:[%s2259_s12 + $0xdc] ss:$36 sps:$4 sm:$0xff]   ;;  %v2048_v10 = vld [vmem:[%s2482_s1 + $0x108] sm:$0xff]   ;;  %v2054_v16 = vld [vmem:[%s2259_s12 + $0x10] ss:$36 sps:$4 sm:$0xff]  }
  0x25   : > { %1781 = vmatprep.subr.bf16.mxu1 %v1991_v25  ;;  %v2044_v6 = vld [vmem:[%s2259_s12 + $0xd8] ss:$36 sps:$4 sm:$0xff]   ;;  %v2049_v11 = vld [vmem:[%s2482_s1 + $0x188] sm:$0xff]   ;;  %v2050_v12 = vld [vmem:[%s2482_s1 + $0x140] sm:$0xff]  }
  0x26   : > { %v2051_v13 = vld [vmem:[%s2482_s1 + $0x1c0] sm:$0xff]   ;;  %v2056_v17 = vld [vmem:[%s2259_s12 + $0x14] ss:$36 sps:$4 sm:$0xff]   ;;  %v2078_v33 = vld [vmem:[%s2259_s12 + $0xec] ss:$36 sps:$4 sm:$0xff]  }
  0x27   : > { %1742 = vmatpush3.bf16.msra.mxu0 %v1992_v26  ;;  %v2052_v14 = vld [vmem:[%s2482_s1 + $0x100] sm:$0xff]   ;;  %v2057_v18 = vld [vmem:[%s2259_s12 + $0x18] ss:$36 sps:$4 sm:$0xff]   ;;  %v2061_v21 = vld [vmem:[%s2482_s1 + $0x230] sm:$0xff]  }
  0x28   : > { %1782 = vmatpush3.bf16.msra.mxu1 %v1993_v27  ;;  %1743 = vmatprep.subr.bf16.mxu0 %v1994_v28  ;;  %v2053_v15 = vld [vmem:[%s2482_s1 + $0x180] sm:$0xff]   ;;  %v2060_v20 = vld [vmem:[%s2482_s1 + $0x238] sm:$0xff]   ;;  %v2068_v26 = vld [vmem:[%s2482_s1 + $0x228] sm:$0xff]  }
  0x29   : > { %1783 = vmatprep.subr.bf16.mxu1 %v1995_v29  ;;  %v2059_v19 = vld [vmem:[%s2259_s12 + $0x1c] ss:$36 sps:$4 sm:$0xff]   ;;  %v2064_v23 = vld [vmem:[%s2259_s12 + $0x64] ss:$36 sps:$4 sm:$0xff]   ;;  %v2072_v28 = vld [vmem:[%s2259_s12 + $0xac] ss:$36 sps:$4 sm:$0xff]  }
  0x2a   : > { %v2062_v22 = vld [vmem:[%s2259_s12 + $0x5c] ss:$36 sps:$4 sm:$0xff]   ;;  %v2070_v27 = vld [vmem:[%s2259_s12 + $0xa4] ss:$36 sps:$4 sm:$0xff]   ;;  %v2077_v35 = vld [vmem:[%s2482_s1 + $0x210] sm:$0xff]  }
  0x2b   : > { %1744 = vmatpush3.bf16.msra.mxu0 %v1996_v30  ;;  %v2066_v24 = vld [vmem:[%s2259_s12 + $0x58] ss:$36 sps:$4 sm:$0xff]   ;;  %v2067_v25 = vld [vmem:[%s2259_s12 + $0x60] ss:$36 sps:$4 sm:$0xff]  }
  0x2c   : > { %1784 = vmatpush3.bf16.msra.mxu1 %v1997_v31  ;;  %1809 = vmatprep.subr.bf16.mxu0 %v2004_v36  ;;  %v2069_v29 = vld [vmem:[%s2482_s1 + $0x220] sm:$0xff]   ;;  %v2075_v31 = vld [vmem:[%s2259_s12 + $0xa8] ss:$36 sps:$4 sm:$0xff]  }
  0x2d   : > { %1849 = vmatprep.subr.bf16.mxu1 %v2005_v37  ;;  %v2074_v30 = vld [vmem:[%s2259_s12 + $0xa0] ss:$36 sps:$4 sm:$0xff]   ;;  %v2082_v36 = vld [vmem:[%s2259_s12 + $0xe8] ss:$36 sps:$4 sm:$0xff]  }
  0x2e   : > { %1102 = vmatmul.mubr.bf16.vlgmr.msra.gmra.mxu0 %v1998_v32  ;;  %v2076_v32 = vld [vmem:[%s2482_s1 + $0x218] sm:$0xff]   ;;  %v2084_v37 = vld [vmem:[%s2482_s1 + $0x208] sm:$0xff]  }
  0x2f   : > { %1167 = vmatmul.mubr.bf16.vlgmr.msra.gmra.mxu1 %v2001_v34  ;;  %1810 = vmatpush3.bf16.msra.mxu0 %v2006_v38  ;;  %v2080_v34 = vld [vmem:[%s2259_s12 + $0xf4] ss:$36 sps:$4 sm:$0xff]  }
  0x30   : > { %1850 = vmatpush3.bf16.msra.mxu1 %v2007_v39  ;;  %1811 = vmatprep.subr.bf16.mxu0 %v2008_v40  ;;  %v2083_v38 = vld [vmem:[%s2259_s12 + $0xf0] ss:$36 sps:$4 sm:$0xff]   ;;  %v2086_v39 = vld [vmem:[%s2259_s12 + $0x20] ss:$36 sps:$4 sm:$0xff]  }
  0x31   : > { %1851 = vmatprep.subr.bf16.mxu1 %v2009_v41  ;;  %1109 = vmatprep.mubr.bf16.mxu0 %v2012_v44  ;;  %v2087_v40 = vld [vmem:[%s2259_s12 + $0xb0] ss:$36 sps:$4 sm:$0xff]   ;;  %v2085_v41 = vld [vmem:[%s2482_s1 + $0x200] sm:$0xff]  }
  0x32   : > { %1174 = vmatprep.mubr.bf16.mxu1 %v2014_v45 }
  0x33   : > { %1812 = vmatpush3.bf16.msra.mxu0 %v2010_v42  ;;  %v2088_v42 = vld [vmem:[%s2259_s12 + $0x68] ss:$36 sps:$4 sm:$0xff]  }
  0x34   : > { %1852 = vmatpush3.bf16.msra.mxu1 %v2011_v43  ;;  %1813 = vmatprep.subr.bf16.mxu0 %v2018_v48  ;;  %v2089_v43 = vld [vmem:[%s2259_s12 + $0xf8] ss:$36 sps:$4 sm:$0xff]  }
  0x35   : > { %1853 = vmatprep.subr.bf16.mxu1 %v2019_v49 }
  0x36   : > { %1110 = vmatmul.mubr.bf16.gmra.mxu0 %v2016_v46 }
  0x37   : > { %1175 = vmatmul.mubr.bf16.gmra.mxu1 %v2017_v47  ;;  %1814 = vmatpush3.bf16.msra.mxu0 %v2020_v50 }
  0x38   : > { %1854 = vmatpush3.bf16.msra.mxu1 %v2021_v51  ;;  %1815 = vmatprep.subr.bf16.mxu0 %v2022_v52 }
  0x39   : > { %1855 = vmatprep.subr.bf16.mxu1 %v2023_v53  ;;  %1117 = vmatprep.mubr.bf16.mxu0 %v2026_v56 }
  0x3a   : > { %1182 = vmatprep.mubr.bf16.mxu1 %v2028_v57 }
  0x3b   : > { %1816 = vmatpush3.bf16.msra.mxu0 %v2024_v54 }
  0x3c   : > { %1856 = vmatpush3.bf16.msra.mxu1 %v2025_v55  ;;  %1817 = vmatprep.subr.bf16.mxu0 %v2032_v60 }
  0x3d   : > { %1857 = vmatprep.subr.bf16.mxu1 %v2033_v61 }
  0x3e   : > { %1118 = vmatmul.mubr.bf16.gmra.mxu0 %v2030_v58 }
  0x3f   : > { %1183 = vmatmul.mubr.bf16.gmra.mxu1 %v2031_v59  ;;  %1818 = vmatpush3.bf16.msra.mxu0 %v2034_v62 }
  0x40   : > { %1858 = vmatpush3.bf16.msra.mxu1 %v2035_v63  ;;  %1819 = vmatprep.subr.bf16.mxu0 %v2036_v0 }
  0x41   : > { %1859 = vmatprep.subr.bf16.mxu1 %v2037_v1  ;;  %1125 = vmatprep.mubr.bf16.mxu0 %v2040_v4 }
  0x42   : > { %1190 = vmatprep.mubr.bf16.mxu1 %v2042_v5 }
  0x43   : > { %1820 = vmatpush3.bf16.msra.mxu0 %v2038_v2 }
  0x44   : > { %1860 = vmatpush3.bf16.msra.mxu1 %v2039_v3  ;;  %1821 = vmatprep.subr.bf16.mxu0 %v2046_v8 }
  0x45   : > { %1861 = vmatprep.subr.bf16.mxu1 %v2047_v9 }
  0x46   : > { %1126 = vmatmul.mubr.bf16.gmra.mxu0 %v2044_v6 }
  0x47   : > { %1191 = vmatmul.mubr.bf16.gmra.mxu1 %v2045_v7  ;;  %1822 = vmatpush3.bf16.msra.mxu0 %v2048_v10 }
  0x48   : > { %1862 = vmatpush3.bf16.msra.mxu1 %v2049_v11  ;;  %1823 = vmatprep.subr.bf16.mxu0 %v2050_v12 }
  0x49   : > { %1863 = vmatprep.subr.bf16.mxu1 %v2051_v13  ;;  %1231 = vmatprep.mubr.bf16.mxu0 %v2056_v17 }
  0x4a   : > { %1296 = vmatprep.mubr.bf16.mxu1 %v2059_v19 }
  0x4b   : > { %1824 = vmatpush3.bf16.msra.mxu0 %v2052_v14 }
  0x4c   : > { %1864 = vmatpush3.bf16.msra.mxu1 %v2053_v15  ;;  %1901 = vmatprep.subr.bf16.mxu0 %v2060_v20 }
  0x4d   : > { %1925 = vmatprep.subr.bf16.mxu1 %v2060_v20 }
  0x4e   : > { %1232 = vmatmul.mubr.bf16.vlgmr.msra.gmra.mxu0 %v2054_v16 }
  0x4f   : > { %1297 = vmatmul.mubr.bf16.vlgmr.msra.gmra.mxu1 %v2057_v18  ;;  %1902 = vmatpush3.bf16.msra.mxu0 %v2060_v20 }
  0x50   : > { %1933 = vmatpush3.bf16.msra.mxu1 %v2060_v20  ;;  %1903 = vmatprep.subr.bf16.mxu0 %v2061_v21 }
  0x51   : > { %1926 = vmatprep.subr.bf16.mxu1 %v2061_v21  ;;  %1239 = vmatprep.mubr.bf16.mxu0 %v2062_v22 }
  0x52   : > { %1304 = vmatprep.mubr.bf16.mxu1 %v2064_v23 }
  0x53   : > { %1904 = vmatpush3.bf16.msra.mxu0 %v2061_v21 }
  0x54   : > { %1934 = vmatpush3.bf16.msra.mxu1 %v2061_v21  ;;  %1905 = vmatprep.subr.bf16.mxu0 %v2068_v26 }
  0x55   : > { %1927 = vmatprep.subr.bf16.mxu1 %v2068_v26 }
  0x56   : > { %1240 = vmatmul.mubr.bf16.gmra.mxu0 %v2066_v24 }
  0x57   : > { %1305 = vmatmul.mubr.bf16.gmra.mxu1 %v2067_v25  ;;  %1247 = vmatprep.mubr.bf16.mxu0 %v2070_v27 }
  0x58   : > { %1906 = vmatpush3.bf16.msra.mxu0 %v2068_v26  ;;  %1312 = vmatprep.mubr.bf16.mxu1 %v2072_v28 }
  0x59   : > { %1935 = vmatpush3.bf16.msra.mxu1 %v2068_v26  ;;  %1907 = vmatprep.subr.bf16.mxu0 %v2069_v29 }
  0x5a   : > { %1928 = vmatprep.subr.bf16.mxu1 %v2069_v29 }
  0x5c   : > { %1908 = vmatpush3.bf16.msra.mxu0 %v2069_v29 }
  0x5d   : > { %1936 = vmatpush3.bf16.msra.mxu1 %v2069_v29  ;;  %1909 = vmatprep.subr.bf16.mxu0 %v2076_v32 }
  0x5e   : > { %1248 = vmatmul.mubr.bf16.gmra.mxu0 %v2074_v30  ;;  %1929 = vmatprep.subr.bf16.mxu1 %v2076_v32 }
  0x5f   : > { %1313 = vmatmul.mubr.bf16.gmra.mxu1 %v2075_v31  ;;  %1255 = vmatprep.mubr.bf16.mxu0 %v2078_v33 }
  0x60   : > { %1910 = vmatpush3.bf16.msra.mxu0 %v2076_v32  ;;  %1320 = vmatprep.mubr.bf16.mxu1 %v2080_v34 }
  0x61   : > { %1937 = vmatpush3.bf16.msra.mxu1 %v2076_v32  ;;  %1911 = vmatprep.subr.bf16.mxu0 %v2077_v35 }
  0x62   : > { %1930 = vmatprep.subr.bf16.mxu1 %v2077_v35 }
  0x64   : > { %1912 = vmatpush3.bf16.msra.mxu0 %v2077_v35 }
  0x65   : > { %1938 = vmatpush3.bf16.msra.mxu1 %v2077_v35  ;;  %1913 = vmatprep.subr.bf16.mxu0 %v2084_v37 }
  0x66   : > { %1256 = vmatmul.mubr.bf16.gmra.mxu0 %v2082_v36  ;;  %1931 = vmatprep.subr.bf16.mxu1 %v2084_v37 }
  0x67   : > { %1321 = vmatmul.mubr.bf16.gmra.mxu1 %v2083_v38  ;;  %1917 = vmatprep.mubr.bf16.mxu0 %v2086_v39 }
  0x68   : > { %1914 = vmatpush3.bf16.msra.mxu0 %v2084_v37  ;;  %1921 = vmatprep.mubr.bf16.mxu1 %v2087_v40 }
  0x69   : > { %1939 = vmatpush3.bf16.msra.mxu1 %v2084_v37  ;;  %1915 = vmatprep.subr.bf16.mxu0 %v2085_v41 }
  0x6a   : > { %1932 = vmatprep.subr.bf16.mxu1 %v2085_v41 }
  0x6c   : > { %1916 = vmatpush3.bf16.msra.mxu0 %v2085_v41 }
  0x6d   : > { %1940 = vmatpush3.bf16.msra.mxu1 %v2085_v41 }
  0x6f   : > { %1918 = vmatmul.mubr.bf16.vlgmr.msra.gmra.mxu0 %v2088_v42 }
  0x70   : > { %1922 = vmatmul.mubr.bf16.vlgmr.msra.gmra.mxu1 %v2089_v43 }
  0xee   : > { %v1745_v44 = vpop.f32.mrf.mxu0 }
  0xef   : > { %v1785_v45 = vpop.f32.mrf.mxu1 }
  0xf0   : > { %v1746_v46 = vpop.f32.mrf.mxu0 }
  0xf1   : > { %v1786_v47 = vpop.f32.mrf.mxu1  ;;  %v1747_v39 = vadd.f32 %v1746_v46, %v1745_v44 }
  0xf2   : > { %v1748_v48 = vpop.f32.mrf.mxu0  ;;  %v1787_v40 = vadd.f32 %v1786_v47, %v1785_v45 }
  0xf3   : > { %v1788_v49 = vpop.f32.mrf.mxu1 }
  0xf4   : > { %v1749_v50 = vpop.f32.mrf.mxu0 }
  0xf5   : > { %v1789_v51 = vpop.f32.mrf.mxu1  ;;  %v1750_v43 = vadd.f32 %v1749_v50, %v1748_v48 }
  0xf6   : > { %v1751_v52 = vpop.f32.mrf.mxu0 }
  0xf7   : > { %v1791_v53 = vpop.f32.mrf.mxu1 }
  0xf8   : > { %v1752_v54 = vpop.f32.mrf.mxu0 }
  0xf9   : > { %v1792_v55 = vpop.f32.mrf.mxu1 }
  0xfa   : > { %v1754_v56 = vpop.f32.mrf.mxu0 }
  0xfb   : > { %v1794_v57 = vpop.f32.mrf.mxu1 }
  0xfc   : > { %v1755_v58 = vpop.f32.mrf.mxu0 }
  0xfd   : > { %v1795_v59 = vpop.f32.mrf.mxu1 }
  0xfe   : > { %v1757_v60 = vpop.f32.mrf.mxu0 }
  0xff   : > { %v1797_v61 = vpop.f32.mrf.mxu1 }
 0x100   : > { %v1758_v62 = vpop.f32.mrf.mxu0 }
 0x101   : > { %v1798_v63 = vpop.f32.mrf.mxu1 }
 0x102   : > { %v1760_v0 = vpop.f32.mrf.mxu0  ;;  %v1799_v44 = vadd.f32 %v1798_v63, %v1797_v61 }
 0x103   : > { %v2423_v1 = vpop.f32.mrf.mxu1 }
 0x104   : > { %2486 = vst [vmem:[#allocation3_spill] sm:$0xff] %v2423_v1  ;;  %v1761_v2 = vpop.f32.mrf.mxu0 }
 0x105   : > { %v2425_v3 = vpop.f32.mrf.mxu1  ;;  %v1762_v48 = vadd.f32 %v1761_v2, %v1760_v0 }
 0x106   : > { %2487 = vst [vmem:[#allocation4_spill] sm:$0xff] %v2425_v3  ;;  %v2427_v4 = vpop.f32.mrf.mxu0  ;;  %v1169_v3 = vadd.f32 %v1787_v40, %v1747_v39 }
 0x107   : > { %2488 = vst [vmem:[#allocation5_spill] sm:$0xff] %v2427_v4  ;;  %v2429_v5 = vpop.f32.mrf.mxu1 }
 0x108   : > { %2489 = vst [vmem:[#allocation6_spill] sm:$0xff] %v2429_v5  ;;  %v2431_v6 = vpop.f32.mrf.mxu0 }
 0x109   : > { %2490 = vst [vmem:[#allocation7_spill] sm:$0xff] %v2431_v6  ;;  %v2433_v7 = vpop.f32.mrf.mxu1 }
 0x10a   : > { %2491 = vst [vmem:[#allocation8_spill] sm:$0xff] %v2433_v7  ;;  %v2435_v8 = vpop.f32.mrf.mxu0  ;;  %v1796_v7 = vadd.f32 %v1795_v59, %v1794_v57 }
 0x10b   : > { %2492 = vst [vmem:[#allocation9_spill] sm:$0xff] %v2435_v8  ;;  %v2437_v9 = vpop.f32.mrf.mxu1  ;;  %v1756_v8 = vadd.f32 %v1755_v58, %v1754_v56  ;;  %v2499_v56 = vld [vmem:[#allocation3_spill] sm:$0xff] }
 0x10c   : > { %2493 = vst [vmem:[#allocation10_spill] sm:$0xff] %v2437_v9  ;;  %v2439_v10 = vpop.f32.mrf.mxu0  ;;  %v1753_v9 = vadd.f32 %v1752_v54, %v1751_v52 }
 0x10d   : > { %2494 = vst [vmem:[#allocation11_spill] sm:$0xff] %v2439_v10  ;;  %v2441_v11 = vpop.f32.mrf.mxu1  ;;  %v1793_v10 = vadd.f32 %v1792_v55, %v1791_v53  ;;  %v1180_v47 = vadd.f32 %v1796_v7, %v1756_v8  ;;  %v2500_v57 = vld [vmem:[#allocation4_spill] sm:$0xff] }
 0x10e   : > { %2495 = vst [vmem:[#allocation12_spill] sm:$0xff] %v2441_v11  ;;  %v1825_v12 = vpop.f32.mrf.mxu0  ;;  %v1790_v11 = vadd.f32 %v1789_v51, %v1788_v49  ;;  %v1802_v58 = vadd.f32 %v2500_v57, %v2499_v56  ;;  %v2501_v59 = vld [vmem:[#allocation5_spill] sm:$0xff] }
 0x10f   : > { %v1865_v13 = vpop.f32.mrf.mxu1  ;;  %v1177_v45 = vadd.f32 %v1793_v10, %v1753_v9 }
 0x110   : > { %v1826_v14 = vpop.f32.mrf.mxu0  ;;  %v1172_v1 = vadd.f32 %v1790_v11, %v1750_v43  ;;  %v2503_v11 = vld [vmem:[#allocation6_spill] sm:$0xff] }
 0x111   : > { %v1866_v15 = vpop.f32.mrf.mxu1 }
 0x112   : > { %v1828_v16 = vpop.f32.mrf.mxu0  ;;  %v1867_v52 = vadd.f32 %v1866_v15, %v1865_v13  ;;  %v2505_v0 = vld [vmem:[#allocation9_spill] sm:$0xff] }
 0x113   : > { %v1868_v17 = vpop.f32.mrf.mxu1 }
 0x114   : > { %v1829_v18 = vpop.f32.mrf.mxu0  ;;  %v2506_v2 = vld [vmem:[#allocation11_spill] sm:$0xff] }
 0x115   : > { %v1869_v19 = vpop.f32.mrf.mxu1  ;;  %v1830_v4 = vadd.f32 %v1829_v18, %v1828_v16  ;;  %v1768_v8 = vadd.f32 %v2506_v2, %v2505_v0 }
 0x116   : > { %v1831_v20 = vpop.f32.mrf.mxu0  ;;  %v1870_v54 = vadd.f32 %v1869_v19, %v1868_v17 }
 0x117   : > { %v1871_v21 = vpop.f32.mrf.mxu1  ;;  %v1237_v53 = vadd.f32 %v1830_v4, %v1172_v1  ;;  %v2507_v1 = vld [vmem:[#allocation10_spill] sm:$0xff]  ;;  %v2508_v4 = vld [vmem:[#allocation12_spill] sm:$0xff] }
 0x118   : > { %v1832_v22 = vpop.f32.mrf.mxu0  ;;  %v1808_v10 = vadd.f32 %v2508_v4, %v2507_v1 }
 0x119   : > { %v1872_v23 = vpop.f32.mrf.mxu1  ;;  %v1833_v46 = vadd.f32 %v1832_v22, %v1831_v20  ;;  %v1302_v22 = vadd.f32 %v1870_v54, %v1237_v53 }
 0x11a   : > { %v1834_v24 = vpop.f32.mrf.mxu0  ;;  %v1873_v9 = vadd.f32 %v1872_v23, %v1871_v21  ;;  %v1196_v23 = vadd.f32 %v1808_v10, %v1768_v8 }
 0x11b   : > { %v1874_v25 = vpop.f32.mrf.mxu1 }
 0x11c   : > { %v1835_v26 = vpop.f32.mrf.mxu0 }
 0x11d   : > { %v1875_v27 = vpop.f32.mrf.mxu1  ;;  %v1836_v50 = vadd.f32 %v1835_v26, %v1834_v24  ;;  %v1188_v24 = vadd.f32 %v1802_v58, %v1762_v48 }
 0x11e   : > { %v1837_v28 = vpop.f32.mrf.mxu0  ;;  %v1876_v15 = vadd.f32 %v1875_v27, %v1874_v25 }
 0x11f   : > { %v1877_v29 = vpop.f32.mrf.mxu1  ;;  %v1245_v13 = vadd.f32 %v1836_v50, %v1180_v47 }
 0x120   : > { %v1838_v30 = vpop.f32.mrf.mxu0 }
 0x121   : > { %v1878_v31 = vpop.f32.mrf.mxu1  ;;  %v1310_v27 = vadd.f32 %v1876_v15, %v1245_v13 }
 0x122   : > { %v1840_v32 = vpop.f32.mrf.mxu0 }
 0x123   : > { %v2443_v33 = vpop.f32.mrf.mxu1 }
 0x124   : > { %2496 = vst [vmem:[#allocation13_spill] sm:$0xff] %v2443_v33  ;;  %v1841_v34 = vpop.f32.mrf.mxu0  ;;  %v1827_v33 = vadd.f32 %v1826_v14, %v1825_v12  ;;  %v2502_v12 = vld [vmem:[#allocation7_spill] sm:$0xff] }
 0x125   : > { %v2445_v35 = vpop.f32.mrf.mxu1  ;;  %v1765_v14 = vadd.f32 %v2502_v12, %v2501_v59  ;;  %v1842_v16 = vadd.f32 %v1841_v34, %v1840_v32 }
 0x126   : > { %2497 = vst [vmem:[#allocation14_spill] sm:$0xff] %v2445_v35  ;;  %v1843_v36 = vpop.f32.mrf.mxu0  ;;  %v1234_v51 = vadd.f32 %v1827_v33, %v1169_v3  ;;  %v1242_v3 = vadd.f32 %v1833_v46, %v1177_v45 }
 0x127   : > { %v2447_v37 = vpop.f32.mrf.mxu1  ;;  %v1253_v43 = vadd.f32 %v1842_v16, %v1188_v24 }
 0x128   : > { %2498 = vst [vmem:[#allocation15_spill] sm:$0xff] %v2447_v37  ;;  %v1844_v38 = vpop.f32.mrf.mxu0  ;;  %v1759_v37 = vadd.f32 %v1758_v62, %v1757_v60  ;;  %v2504_v60 = vld [vmem:[#allocation8_spill] sm:$0xff]  ;;  %v1839_v62 = vadd.f32 %v1838_v30, %v1837_v28  ;;  %v1299_v20 = vadd.f32 %v1867_v52, %v1234_v51  ;;  %v1879_v30 = vadd.f32 %v1878_v31, %v1877_v29 }
 0x129   : > { %v1884_v41 = vpop.f32.mrf.mxu1  ;;  %v1805_v61 = vadd.f32 %v2504_v60, %v2503_v11  ;;  %v1845_v19 = vadd.f32 %v1844_v38, %v1843_v36  ;;  %v1307_v39 = vadd.f32 %v1873_v9, %v1242_v3 }
 0x12a   : > { %v1846_v42 = vpop.f32.mrf.mxu0  ;;  %v1185_v7 = vadd.f32 %v1799_v44, %v1759_v37 }
 0x12b   : > { %v1886_v5 = vpop.f32.mrf.mxu1  ;;  %v1193_v26 = vadd.f32 %v1805_v61, %v1765_v14  ;;  %v2509_v44 = vld [vmem:[#allocation13_spill] sm:$0xff] }
 0x12c   : > { %v1847_v6 = vpop.f32.mrf.mxu0  ;;  %v1250_v28 = vadd.f32 %v1839_v62, %v1185_v7 }
 0x12d   : > { %v1887_v35 = vpop.f32.mrf.mxu1  ;;  %v1848_v37 = vadd.f32 %v1847_v6, %v1846_v42  ;;  %v2510_v46 = vld [vmem:[#allocation14_spill] sm:$0xff]  ;;  %v1258_v34 = vadd.f32 %v1845_v19, %v1193_v26 }
 0x12e   : > { %v1882_v25 = vadd.f32 %v2510_v46, %v2509_v44  ;;  %v1315_v48 = vadd.f32 %v1879_v30, %v1250_v28  ;;  %v1888_v29 = vadd.f32 %v1887_v35, %v1886_v5 }
 0x12f   : > { %v1919_v49 = vpop.f32.mrf.mxu0  ;;  %v2511_v36 = vld [vmem:[#allocation15_spill] sm:$0xff]  ;;  %v1261_v50 = vadd.f32 %v1848_v37, %v1196_v23 }
 0x130   : > { %v1923_v55 = vpop.f32.mrf.mxu1  ;;  %v1885_v38 = vadd.f32 %v1884_v41, %v2511_v36  ;;  %v1372_v45 = vadd.f32 %v1919_v49, %v1307_v39  ;;  %v1318_v53 = vadd.f32 %v1882_v25, %v1253_v43 }
 0x131   : > { %v1363_v63 = vpop.f32.mrf.mxu0  ;;  %v1326_v56 = vadd.f32 %v1888_v29, %v1261_v50  ;;  %v1725_v29 = vld [vmem:[%s2484_s3] ss:$0 sm:$0xff] }
 0x132   : > { %v1379_v17 = vpop.f32.mrf.mxu1  ;;  %v1364_v40 = vadd.f32 %v1363_v63, %v1299_v20  ;;  %v1323_v51 = vadd.f32 %v1885_v38, %v1258_v34 }
 0x133   : > { %v1920_v18 = vpop.f32.mrf.mxu0  ;;  %v1380_v52 = vadd.f32 %v1379_v17, %v1315_v48 }
 0x134   : > { %v1924_v32 = vpop.f32.mrf.mxu1  ;;  %v1375_v31 = vadd.f32 %v1920_v18, %v1310_v27  ;;  %v1388_v59 = vadd.f32 %v1923_v55, %v1323_v51  ;;  %v1724_v27 = vld [vmem:[%s2483_s2] ss:$0 sm:$0xff] }
 0x135   : > { %v1366_v33 = vpop.f32.mrf.mxu0  ;;  %v1391_v14 = vadd.f32 %v1924_v32, %v1326_v56 }
 0x136   : > { %v1367_v21 = vadd.f32 %v1366_v33, %v1302_v22  ;;  %v1382_v42 = vpop.f32.mrf.mxu1 }
 0x137   : > { %v1383_v57 = vadd.f32 %v1382_v42, %v1318_v53 }
 0x138   : > { %v1421_v47 = vadd.f32 %v1367_v21, %v1364_v40 }
 0x13a   : > { %v1422_v6 = vadd.f32 %v1421_v47, %v1372_v45 }
 0x13c   : > { %v1423_v54 = vadd.f32 %v1422_v6, %v1375_v31 }
 0x13e   : > { %v1424_v58 = vadd.f32 %v1423_v54, %v1380_v52 }
 0x140   : > { %v1425_v12 = vadd.f32 %v1424_v58, %v1383_v57 }
 0x142   : > { %v1426_v11 = vadd.f32 %v1425_v12, %v1388_v59 }
 0x144   : > { %v1427_v41 = vadd.f32 %v1426_v11, %v1391_v14 }
 0x146   : > { %v1428_v49 = vrot.slane %v1427_v41, 4 }
 0x148   : > { %v1429_v60 = vadd.f32 %v1428_v49, %v1427_v41 }
 0x14a   : > { %v1430_v61 = vrot.slane %v1429_v60, 2 }
 0x14c   : > { %v1431_v62 = vadd.f32 %v1430_v61, %v1429_v60 }
 0x14e   : > { %v1432_v5 = vrot.slane %v1431_v62, 1 }
 0x150   : > { %v1433_v35 = vadd.f32 %v1432_v5, %v1431_v62 }
 0x152   : > { %v1435_v63 = vmul.f32 0.015625, %v1433_v35 }
 0x154   : > { %v1436_v7 = vsub.f32 %v1364_v40, %v1435_v63  ;;  %v1437_v0 = vsub.f32 %v1367_v21, %v1435_v63  ;;  %v1438_v2 = vsub.f32 %v1372_v45, %v1435_v63  ;;  %v1439_v8 = vsub.f32 %v1375_v31, %v1435_v63 }
 0x155   : > { %v1440_v1 = vsub.f32 %v1380_v52, %v1435_v63  ;;  %v1441_v10 = vsub.f32 %v1383_v57, %v1435_v63  ;;  %v1442_v16 = vsub.f32 %v1388_v59, %v1435_v63  ;;  %v1443_v19 = vsub.f32 %v1391_v14, %v1435_v63 }
 0x156   : > { %v1444_v3 = vmul.f32 %v1436_v7, %v1436_v7  ;;  %v1445_v9 = vmul.f32 %v1437_v0, %v1437_v0  ;;  %v1446_v4 = vmul.f32 %v1438_v2, %v1438_v2  ;;  %v1447_v13 = vmul.f32 %v1439_v8, %v1439_v8 }
 0x157   : > { %v1448_v17 = vmul.f32 %v1440_v1, %v1440_v1  ;;  %v1449_v20 = vmul.f32 %v1441_v10, %v1441_v10  ;;  %v1450_v24 = vmul.f32 %v1442_v16, %v1442_v16  ;;  %v1451_v28 = vmul.f32 %v1443_v19, %v1443_v19 }
 0x158   : > { %v1452_v55 = vadd.f32 %v1445_v9, %v1444_v3 }
 0x15a   : > { %v1453_v15 = vadd.f32 %v1452_v55, %v1446_v4 }
 0x15c   : > { %v1454_v18 = vadd.f32 %v1453_v15, %v1447_v13 }
 0x15e   : > { %v1455_v22 = vadd.f32 %v1454_v18, %v1448_v17 }
 0x160   : > { %v1456_v26 = vadd.f32 %v1455_v22, %v1449_v20 }
 0x162   : > { %v1457_v30 = vadd.f32 %v1456_v26, %v1450_v24 }
 0x164   : > { %v1458_v33 = vadd.f32 %v1457_v30, %v1451_v28 }
 0x166   : > { %v1459_v37 = vrot.slane %v1458_v33, 4 }
 0x168   : > { %v1460_v39 = vadd.f32 %v1459_v37, %v1458_v33 }
 0x16a   : > { %v1461_v40 = vrot.slane %v1460_v39, 2 }
 0x16c   : > { %v1462_v21 = vadd.f32 %v1461_v40, %v1460_v39 }
 0x16e   : > { %v1463_v23 = vrot.slane %v1462_v21, 1 }
 0x170   : > { %v1464_v43 = vadd.f32 %v1463_v23, %v1462_v21 }
 0x172   : > { %v1465_v44 = vmul.f32 0.015625, %v1464_v43 }
 0x174   : > { %v1466_v46 = vadd.f32 1e-05, %v1465_v44 }
 0x176   : > { %2090 = vrsqrt.f32 %v1466_v46 }
 0x183   : > { %v2091_v25 = vpop.eup %2090 }
 0x184   : > { %v1468_v32 = vmul.f32 %v2091_v25, %v1436_v7  ;;  %v1469_v34 = vmul.f32 %v2091_v25, %v1437_v0  ;;  %v1470_v36 = vmul.f32 %v2091_v25, %v1438_v2  ;;  %v1471_v38 = vmul.f32 %v2091_v25, %v1439_v8 }
 0x185   : > { %v1472_v45 = vmul.f32 %v2091_v25, %v1440_v1  ;;  %v1473_v47 = vmul.f32 %v2091_v25, %v1441_v10  ;;  %v1474_v48 = vmul.f32 %v2091_v25, %v1442_v16  ;;  %v1475_v50 = vmul.f32 %v2091_v25, %v1443_v19 }
 0x186   : > { %v1483_v31 = vmul.f32 %v1724_v27, %v1468_v32  ;;  %v1484_v6 = vmul.f32 %v1724_v27, %v1469_v34  ;;  %v1485_v42 = vmul.f32 %v1724_v27, %v1470_v36  ;;  %v1486_v51 = vmul.f32 %v1724_v27, %v1471_v38 }
 0x187   : > { %v1487_v52 = vmul.f32 %v1724_v27, %v1472_v45  ;;  %v1488_v53 = vmul.f32 %v1724_v27, %v1473_v47  ;;  %v1489_v54 = vmul.f32 %v1724_v27, %v1474_v48  ;;  %v1490_v56 = vmul.f32 %v1724_v27, %v1475_v50 }
 0x188   : > { %v1498_v57 = vadd.f32 %v1725_v29, %v1483_v31  ;;  %v1499_v58 = vadd.f32 %v1725_v29, %v1484_v6  ;;  %v1500_v59 = vadd.f32 %v1725_v29, %v1485_v42  ;;  %v1501_v12 = vadd.f32 %v1725_v29, %v1486_v51 }
 0x189   : > { %v1502_v14 = vadd.f32 %v1725_v29, %v1487_v52  ;;  %v1503_v11 = vadd.f32 %v1725_v29, %v1488_v53  ;;  %v1504_v41 = vadd.f32 %v1725_v29, %v1489_v54  ;;  %v1505_v49 = vadd.f32 %v1725_v29, %v1490_v56 }
 0x18a   : > { %v1506_v60 = vmax.f32 %v1498_v57, 0.0  ;;  %v1507_v61 = vmax.f32 %v1499_v58, 0.0  ;;  %v1508_v62 = vmax.f32 %v1500_v59, 0.0  ;;  %v1509_v5 = vmax.f32 %v1501_v12, 0.0 }
 0x18b   : > { %v1510_v35 = vmax.f32 %v1502_v14, 0.0  ;;  %v1511_v63 = vmax.f32 %v1503_v11, 0.0  ;;  %v1512_v7 = vmax.f32 %v1504_v41, 0.0  ;;  %v1513_v0 = vmax.f32 %v1505_v49, 0.0 }
 0x18c   : > { %1514 = vst [vmem:[%s247_s23] sm:$0xff] %v1506_v60  ;;  %1515 = vst [vmem:[%s247_s23 + $0x8] sm:$0xff] %v1507_v61 }
 0x18d   : > { %1516 = vst [vmem:[%s247_s23 + $0x10] sm:$0xff] %v1508_v62  ;;  %1517 = vst [vmem:[%s247_s23 + $0x18] sm:$0xff] %v1509_v5 }
 0x18e   : > { %1518 = vst [vmem:[%s247_s23 + $0x20] sm:$0xff] %v1510_v35  ;;  %1519 = vst [vmem:[%s247_s23 + $0x28] sm:$0xff] %v1511_v63 }
 0x18f   : > { %1520 = vst [vmem:[%s247_s23 + $0x30] sm:$0xff] %v1512_v7  ;;  %1521 = vst [vmem:[%s247_s23 + $0x38] sm:$0xff] %v1513_v0 }
 0x190 PF: > { %s14_s17 = sadd.s32 1, %s2114_s17   ;;  %s2512_s15 = smov %s2110_s16 }
 0x191   : > { %p11_p5 = scmp.ge.s32.totalorder %s14_s17, 4   ;;  %s2513_s16 = smov %s2515_s18 }
 0x193   :  { %13 = sbr.rel (!%p11_p5) target bundleno = 2 (0x2), region = 77 }

// kernel: forward.20
= control target key start
LH: loop header
LB: loop body
LE: loop exit
PB: predicated region body
PF: predicated region fallthrough
CT: control target
= control target key end

     0   :  { %s2062_s15 = smov 0   ;;  %s2064_s16 = smov 0   ;;  %s2552_s0 = inlined_call_operand.vmem [shape: bf16[2,16,1152], index: 0, kind: input, shape index: {}]   ;;  %s2553_s1 = inlined_call_operand.vmem [shape: bf16[1152,256], index: 1, kind: input, shape index: {}]   ;;  %s2554_s2 = inlined_call_operand.vmem [shape: f32[1,256], index: 2, kind: input, shape index: {}]   ;;  %s2555_s3 = inlined_call_operand.vmem [shape: f32[1,256], index: 3, kind: input, shape index: {}]   ;;  %s2556_s4 = inlined_call_operand.vmem [shape: f32[2,16,256], index: 4, kind: output, shape index: {}]  }
   0x1   :  { %s2066_s17 = smov 0  }
   0x2 LB: > { %s26_s18 = sadd.s32 1, %s2030_s16  ;;  %p1593_p0 = scmp.ge.s32.totalorder %s2034_s17, 1  ;;  %s2034_s17 = sphi %s2066_s17, %s14_s17   ;;  %s2030_s16 = sphi %s2064_s16, %s2558_s16   ;;  %s2026_s15 = sphi %s2062_s15, %s2557_s15  }
   0x3   : > { %p28_p1 = scmp.ge.s32.totalorder %s26_s18, 2  ;;  %p193_p2 = scmp.lt.s32.totalorder %s2034_s17, 3 }
   0x5   : > { %s2560_s18 = smov (%p28_p1, %s26_s18), 0  ;;  %p194_p3 = pnand %p1593_p0, %p193_p2 }
   0x6   : > { %p230_p4 = scmp.lt.s32.totalorder (!%p194_p3), %s2026_s15, 1 }
   0x7   : > { %197 = sbr.rel (%p194_p3) target bundleno = 435 (0x1b3), region = 36 }
   0xc   : > { %v1779_v0 = vld [vmem:[%s2553_s1 + $0x74] ss:$8 sps:$4 sm:$0xff]   ;;  %v1783_v2 = vld [vmem:[%s2553_s1 + $0x70] ss:$8 sps:$4 sm:$0xff]   ;;  %v1785_v4 = vld [vmem:[%s2553_s1 + $0x64] ss:$8 sps:$4 sm:$0xff]  }
   0xd   : > { %v1781_v1 = vld [vmem:[%s2553_s1 + $0x174] ss:$8 sps:$4 sm:$0xff]   ;;  %1184 = vmatprep.subr.bf16.mxu0 %v1779_v0  ;;  %v1784_v3 = vld [vmem:[%s2553_s1 + $0x170] ss:$8 sps:$4 sm:$0xff]   ;;  %v1787_v5 = vld [vmem:[%s2553_s1 + $0x164] ss:$8 sps:$4 sm:$0xff]  }
   0xe   : > { %1227 = vmatprep.subr.bf16.mxu1 %v1781_v1  ;;  %1185 = vmatpush1.bf16.msra.mxu0 %v1783_v2  ;;  %v1789_v6 = vld [vmem:[%s2553_s1 + $0x60] ss:$8 sps:$4 sm:$0xff]   ;;  %v1791_v8 = vld [vmem:[%s2553_s1 + $0x54] ss:$8 sps:$4 sm:$0xff]   ;;  %v1795_v10 = vld [vmem:[%s2553_s1 + $0x50] ss:$8 sps:$4 sm:$0xff]  }
   0xf   : > { %1228 = vmatpush1.bf16.msra.mxu1 %v1784_v3  ;;  %1186 = vmatprep.subr.bf16.mxu0 %v1785_v4  ;;  %v1790_v7 = vld [vmem:[%s2553_s1 + $0x160] ss:$8 sps:$4 sm:$0xff]   ;;  %v1793_v9 = vld [vmem:[%s2553_s1 + $0x154] ss:$8 sps:$4 sm:$0xff]   ;;  %v1796_v11 = vld [vmem:[%s2553_s1 + $0x150] ss:$8 sps:$4 sm:$0xff]  }
  0x10   : > { %1229 = vmatprep.subr.bf16.mxu1 %v1787_v5  ;;  %v1797_v12 = vld [vmem:[%s2553_s1 + $0x44] ss:$8 sps:$4 sm:$0xff]   ;;  %v1801_v14 = vld [vmem:[%s2553_s1 + $0x40] ss:$8 sps:$4 sm:$0xff]   ;;  %v1803_v16 = vld [vmem:[%s2553_s1 + $0x34] ss:$8 sps:$4 sm:$0xff]  }
  0x11   : > { %v1799_v13 = vld [vmem:[%s2553_s1 + $0x144] ss:$8 sps:$4 sm:$0xff]   ;;  %v1802_v15 = vld [vmem:[%s2553_s1 + $0x140] ss:$8 sps:$4 sm:$0xff]   ;;  %v1805_v17 = vld [vmem:[%s2553_s1 + $0x134] ss:$8 sps:$4 sm:$0xff]  }
  0x12   : > { %1187 = vmatpush1.bf16.msra.mxu0 %v1789_v6  ;;  %v1807_v18 = vld [vmem:[%s2553_s1 + $0x30] ss:$8 sps:$4 sm:$0xff]   ;;  %v1809_v20 = vld [vmem:[%s2553_s1 + $0x24] ss:$8 sps:$4 sm:$0xff]   ;;  %v1813_v22 = vld [vmem:[%s2553_s1 + $0x20] ss:$8 sps:$4 sm:$0xff]  }
  0x13   : > { %1230 = vmatpush1.bf16.msra.mxu1 %v1790_v7  ;;  %1188 = vmatprep.subr.bf16.mxu0 %v1791_v8  ;;  %v1808_v19 = vld [vmem:[%s2553_s1 + $0x130] ss:$8 sps:$4 sm:$0xff]   ;;  %v1811_v21 = vld [vmem:[%s2553_s1 + $0x124] ss:$8 sps:$4 sm:$0xff]   ;;  %v1814_v23 = vld [vmem:[%s2553_s1 + $0x120] ss:$8 sps:$4 sm:$0xff]  }
  0x14   : > { %1231 = vmatprep.subr.bf16.mxu1 %v1793_v9  ;;  %v1815_v24 = vld [vmem:[%s2553_s1 + $0x14] ss:$8 sps:$4 sm:$0xff]   ;;  %v1819_v26 = vld [vmem:[%s2553_s1 + $0x10] ss:$8 sps:$4 sm:$0xff]   ;;  %v1821_v28 = vld [vmem:[%s2553_s1 + $0x4] ss:$8 sps:$4 sm:$0xff]  }
  0x15   : > { %v1817_v25 = vld [vmem:[%s2553_s1 + $0x114] ss:$8 sps:$4 sm:$0xff]   ;;  %v1820_v27 = vld [vmem:[%s2553_s1 + $0x110] ss:$8 sps:$4 sm:$0xff]   ;;  %v1823_v29 = vld [vmem:[%s2553_s1 + $0x104] ss:$8 sps:$4 sm:$0xff]  }
  0x16   : > { %1189 = vmatpush1.bf16.msra.mxu0 %v1795_v10  ;;  %v1825_v30 = vld [vmem:[%s2553_s1] ss:$8 sps:$4 sm:$0xff]   ;;  %v1827_v32 = vld [vmem:[%s2553_s1 + $0xf4] ss:$8 sps:$4 sm:$0xff]   ;;  %v1831_v34 = vld [vmem:[%s2553_s1 + $0xf0] ss:$8 sps:$4 sm:$0xff]  }
  0x17   : > { %1232 = vmatpush1.bf16.msra.mxu1 %v1796_v11  ;;  %1190 = vmatprep.subr.bf16.mxu0 %v1797_v12  ;;  %v1826_v31 = vld [vmem:[%s2553_s1 + $0x100] ss:$8 sps:$4 sm:$0xff]   ;;  %v1829_v33 = vld [vmem:[%s2553_s1 + $0x1f4] ss:$8 sps:$4 sm:$0xff]   ;;  %v1832_v35 = vld [vmem:[%s2553_s1 + $0x1f0] ss:$8 sps:$4 sm:$0xff]  }
  0x18   : > { %1233 = vmatprep.subr.bf16.mxu1 %v1799_v13  ;;  %v1833_v36 = vld [vmem:[%s2553_s1 + $0xe4] ss:$8 sps:$4 sm:$0xff]   ;;  %s2562_s15 = smov (!%p230_p4, %s2026_s15), 1  ;;  %v1837_v38 = vld [vmem:[%s2553_s1 + $0xe0] ss:$8 sps:$4 sm:$0xff]  }
  0x19   : > { %v1835_v37 = vld [vmem:[%s2553_s1 + $0x1e4] ss:$8 sps:$4 sm:$0xff]   ;;  %v1838_v39 = vld [vmem:[%s2553_s1 + $0x1e0] ss:$8 sps:$4 sm:$0xff]   ;;  %v1839_v40 = vld [vmem:[%s2553_s1 + $0xd4] ss:$8 sps:$4 sm:$0xff]  }
  0x1a   : > { %1191 = vmatpush1.bf16.msra.mxu0 %v1801_v14  ;;  %s1753_s9 = smul.u32 72, %s2562_s15  ;;  %v1841_v41 = vld [vmem:[%s2553_s1 + $0x1d4] ss:$8 sps:$4 sm:$0xff]   ;;  %v1843_v42 = vld [vmem:[%s2553_s1 + $0xd0] ss:$8 sps:$4 sm:$0xff]   ;;  %s1752_s11 = sshll.u32 %s2562_s15, 5 }
  0x1b   : > { %1234 = vmatpush1.bf16.msra.mxu1 %v1802_v15  ;;  %1192 = vmatprep.subr.bf16.mxu0 %v1803_v16  ;;  %v1844_v43 = vld [vmem:[%s2553_s1 + $0x1d0] ss:$8 sps:$4 sm:$0xff]   ;;  %v1845_v44 = vld [vmem:[%s2553_s1 + $0xc4] ss:$8 sps:$4 sm:$0xff]   ;;  %v1849_v46 = vld [vmem:[%s2553_s1 + $0xc0] ss:$8 sps:$4 sm:$0xff]   ;;  %s250_s14 = scalar_lea.vmem %s2556_s4, %s1752_s11 }
  0x1c   : > { %1235 = vmatprep.subr.bf16.mxu1 %v1805_v17  ;;  %s2225_s24 = scalar_lea.vmem %s2552_s0, %s1753_s9  ;;  %v1847_v45 = vld [vmem:[%s2553_s1 + $0x1c4] ss:$8 sps:$4 sm:$0xff]   ;;  %v1850_v47 = vld [vmem:[%s2553_s1 + $0x1c0] ss:$8 sps:$4 sm:$0xff]   ;;  %v1851_v48 = vld [vmem:[%s2553_s1 + $0xb4] ss:$8 sps:$4 sm:$0xff]  }
  0x1d   : > { %v1877_v49 = vld [vmem:[%s2225_s24 + $0x4] ss:$36 sps:$4 sm:$0xff]   ;;  %v1853_v50 = vld [vmem:[%s2553_s1 + $0x1b4] ss:$8 sps:$4 sm:$0xff]   ;;  %v1880_v51 = vld [vmem:[%s2225_s24 + $0xc] ss:$36 sps:$4 sm:$0xff]  }
  0x1e   : > { %1193 = vmatpush1.bf16.msra.mxu0 %v1807_v18  ;;  %1216 = vmatprep.mubr.bf16.mxu0 %v1877_v49  ;;  %v1855_v52 = vld [vmem:[%s2553_s1 + $0xb0] ss:$8 sps:$4 sm:$0xff]   ;;  %v1857_v54 = vld [vmem:[%s2553_s1 + $0xa4] ss:$8 sps:$4 sm:$0xff]   ;;  %v1861_v56 = vld [vmem:[%s2553_s1 + $0xa0] ss:$8 sps:$4 sm:$0xff]  }
  0x1f   : > { %1236 = vmatpush1.bf16.msra.mxu1 %v1808_v19  ;;  %1194 = vmatprep.subr.bf16.mxu0 %v1809_v20  ;;  %v1856_v53 = vld [vmem:[%s2553_s1 + $0x1b0] ss:$8 sps:$4 sm:$0xff]   ;;  %v1859_v55 = vld [vmem:[%s2553_s1 + $0x1a4] ss:$8 sps:$4 sm:$0xff]   ;;  %v1862_v57 = vld [vmem:[%s2553_s1 + $0x1a0] ss:$8 sps:$4 sm:$0xff]  }
  0x20   : > { %1237 = vmatprep.subr.bf16.mxu1 %v1811_v21  ;;  %1259 = vmatprep.mubr.bf16.mxu1 %v1880_v51  ;;  %v1863_v58 = vld [vmem:[%s2553_s1 + $0x94] ss:$8 sps:$4 sm:$0xff]   ;;  %v1867_v60 = vld [vmem:[%s2553_s1 + $0x90] ss:$8 sps:$4 sm:$0xff]   ;;  %v1869_v62 = vld [vmem:[%s2553_s1 + $0x84] ss:$8 sps:$4 sm:$0xff]  }
  0x21   : > { %v1865_v59 = vld [vmem:[%s2553_s1 + $0x194] ss:$8 sps:$4 sm:$0xff]   ;;  %v1868_v61 = vld [vmem:[%s2553_s1 + $0x190] ss:$8 sps:$4 sm:$0xff]   ;;  %v1871_v63 = vld [vmem:[%s2553_s1 + $0x184] ss:$8 sps:$4 sm:$0xff]  }
  0x22   : > { %1195 = vmatpush1.bf16.msra.mxu0 %v1813_v22  ;;  %v1873_v0 = vld [vmem:[%s2553_s1 + $0x80] ss:$8 sps:$4 sm:$0xff]   ;;  %v1883_v2 = vld [vmem:[%s2553_s1 + $0x274] ss:$8 sps:$4 sm:$0xff]   ;;  %v1881_v6 = vld [vmem:[%s2553_s1 + $0x270] ss:$8 sps:$4 sm:$0xff]  }
  0x23   : > { %1238 = vmatpush1.bf16.msra.mxu1 %v1814_v23  ;;  %1196 = vmatprep.subr.bf16.mxu0 %v1815_v24  ;;  %v1874_v1 = vld [vmem:[%s2553_s1 + $0x180] ss:$8 sps:$4 sm:$0xff]   ;;  %v1886_v3 = vld [vmem:[%s2553_s1 + $0x374] ss:$8 sps:$4 sm:$0xff]   ;;  %v1884_v7 = vld [vmem:[%s2553_s1 + $0x370] ss:$8 sps:$4 sm:$0xff]  }
  0x24   : > { %1239 = vmatprep.subr.bf16.mxu1 %v1817_v25  ;;  %v1875_v4 = vld [vmem:[%s2225_s24] ss:$36 sps:$4 sm:$0xff]   ;;  %v1878_v5 = vld [vmem:[%s2225_s24 + $0x8] ss:$36 sps:$4 sm:$0xff]   ;;  %v1895_v12 = vld [vmem:[%s2553_s1 + $0x254] ss:$8 sps:$4 sm:$0xff]  }
  0x25   : > { %v1889_v8 = vld [vmem:[%s2553_s1 + $0x264] ss:$8 sps:$4 sm:$0xff]   ;;  %v1887_v10 = vld [vmem:[%s2553_s1 + $0x260] ss:$8 sps:$4 sm:$0xff]   ;;  %v1898_v13 = vld [vmem:[%s2553_s1 + $0x354] ss:$8 sps:$4 sm:$0xff]  }
  0x26   : > { %1197 = vmatpush1.bf16.msra.mxu0 %v1819_v26  ;;  %v1892_v9 = vld [vmem:[%s2553_s1 + $0x364] ss:$8 sps:$4 sm:$0xff]   ;;  %v1890_v11 = vld [vmem:[%s2553_s1 + $0x360] ss:$8 sps:$4 sm:$0xff]   ;;  %v1893_v14 = vld [vmem:[%s2553_s1 + $0x250] ss:$8 sps:$4 sm:$0xff]  }
  0x27   : > { %1240 = vmatpush1.bf16.msra.mxu1 %v1820_v27  ;;  %1198 = vmatprep.subr.bf16.mxu0 %v1821_v28  ;;  %v1896_v15 = vld [vmem:[%s2553_s1 + $0x350] ss:$8 sps:$4 sm:$0xff]   ;;  %v1901_v16 = vld [vmem:[%s2553_s1 + $0x244] ss:$8 sps:$4 sm:$0xff]   ;;  %v1899_v18 = vld [vmem:[%s2553_s1 + $0x240] ss:$8 sps:$4 sm:$0xff]  }
  0x28   : > { %1241 = vmatprep.subr.bf16.mxu1 %v1823_v29  ;;  %v1904_v17 = vld [vmem:[%s2553_s1 + $0x344] ss:$8 sps:$4 sm:$0xff]   ;;  %v1902_v19 = vld [vmem:[%s2553_s1 + $0x340] ss:$8 sps:$4 sm:$0xff]   ;;  %v1907_v20 = vld [vmem:[%s2553_s1 + $0x234] ss:$8 sps:$4 sm:$0xff]  }
  0x29   : > { %v1910_v21 = vld [vmem:[%s2553_s1 + $0x334] ss:$8 sps:$4 sm:$0xff]   ;;  %v1905_v22 = vld [vmem:[%s2553_s1 + $0x230] ss:$8 sps:$4 sm:$0xff]   ;;  %v1913_v24 = vld [vmem:[%s2553_s1 + $0x224] ss:$8 sps:$4 sm:$0xff]  }
  0x2a   : > { %1199 = vmatpush1.bf16.msra.mxu0 %v1825_v30  ;;  %v1908_v23 = vld [vmem:[%s2553_s1 + $0x330] ss:$8 sps:$4 sm:$0xff]   ;;  %v1916_v25 = vld [vmem:[%s2553_s1 + $0x324] ss:$8 sps:$4 sm:$0xff]   ;;  %v1911_v26 = vld [vmem:[%s2553_s1 + $0x220] ss:$8 sps:$4 sm:$0xff]  }
  0x2b   : > { %1242 = vmatpush1.bf16.msra.mxu1 %v1826_v31  ;;  %1200 = vmatprep.subr.bf16.mxu0 %v1827_v32  ;;  %v1914_v27 = vld [vmem:[%s2553_s1 + $0x320] ss:$8 sps:$4 sm:$0xff]   ;;  %v1919_v28 = vld [vmem:[%s2553_s1 + $0x214] ss:$8 sps:$4 sm:$0xff]   ;;  %v1917_v30 = vld [vmem:[%s2553_s1 + $0x210] ss:$8 sps:$4 sm:$0xff]  }
  0x2c   : > { %1243 = vmatprep.subr.bf16.mxu1 %v1829_v33  ;;  %v1922_v29 = vld [vmem:[%s2553_s1 + $0x314] ss:$8 sps:$4 sm:$0xff]   ;;  %v1920_v31 = vld [vmem:[%s2553_s1 + $0x310] ss:$8 sps:$4 sm:$0xff]   ;;  %v1925_v32 = vld [vmem:[%s2553_s1 + $0x204] ss:$8 sps:$4 sm:$0xff]  }
  0x2d   : > { %v1928_v33 = vld [vmem:[%s2553_s1 + $0x304] ss:$8 sps:$4 sm:$0xff]   ;;  %v1944_v49 = vld [vmem:[%s2553_s1 + $0x3d0] ss:$8 sps:$4 sm:$0xff]  }
  0x2e   : > { %1201 = vmatpush2.bf16.msra.mxu0 %v1831_v34  ;;  %v1979_v34 = vld [vmem:[%s2225_s24 + $0x14] ss:$36 sps:$4 sm:$0xff]   ;;  %v1952_v51 = vld [vmem:[%s2553_s1 + $0x3c4] ss:$8 sps:$4 sm:$0xff]  }
  0x2f   : > { %1244 = vmatpush2.bf16.msra.mxu1 %v1832_v35  ;;  %1202 = vmatprep.subr.bf16.mxu0 %v1833_v36  ;;  %v1923_v35 = vld [vmem:[%s2553_s1 + $0x200] ss:$8 sps:$4 sm:$0xff]  }
  0x30   : > { %1245 = vmatprep.subr.bf16.mxu1 %v1835_v37  ;;  %v1926_v36 = vld [vmem:[%s2553_s1 + $0x300] ss:$8 sps:$4 sm:$0xff]  }
  0x31   : > { %v1985_v37 = vld [vmem:[%s2225_s24 + $0x1c] ss:$36 sps:$4 sm:$0xff]  }
  0x32   : > { %1203 = vmatpush2.bf16.msra.mxu0 %v1837_v38  ;;  %v1931_v38 = vld [vmem:[%s2553_s1 + $0x2f4] ss:$8 sps:$4 sm:$0xff]  }
  0x33   : > { %1246 = vmatpush2.bf16.msra.mxu1 %v1838_v39  ;;  %1204 = vmatprep.subr.bf16.mxu0 %v1839_v40  ;;  %v1934_v39 = vld [vmem:[%s2553_s1 + $0x3f4] ss:$8 sps:$4 sm:$0xff]   ;;  %v1929_v40 = vld [vmem:[%s2553_s1 + $0x2f0] ss:$8 sps:$4 sm:$0xff]  }
  0x34   : > { %1247 = vmatprep.subr.bf16.mxu1 %v1841_v41  ;;  %v1932_v41 = vld [vmem:[%s2553_s1 + $0x3f0] ss:$8 sps:$4 sm:$0xff]  }
  0x36   : > { %1205 = vmatpush2.bf16.msra.mxu0 %v1843_v42  ;;  %v1937_v42 = vld [vmem:[%s2553_s1 + $0x2e4] ss:$8 sps:$4 sm:$0xff]  }
  0x37   : > { %1248 = vmatpush2.bf16.msra.mxu1 %v1844_v43  ;;  %1206 = vmatprep.subr.bf16.mxu0 %v1845_v44  ;;  %v1940_v43 = vld [vmem:[%s2553_s1 + $0x3e4] ss:$8 sps:$4 sm:$0xff]   ;;  %v1935_v44 = vld [vmem:[%s2553_s1 + $0x2e0] ss:$8 sps:$4 sm:$0xff]  }
  0x38   : > { %1249 = vmatprep.subr.bf16.mxu1 %v1847_v45  ;;  %v1938_v45 = vld [vmem:[%s2553_s1 + $0x3e0] ss:$8 sps:$4 sm:$0xff]  }
  0x3a   : > { %1207 = vmatpush2.bf16.msra.mxu0 %v1849_v46  ;;  %v1943_v46 = vld [vmem:[%s2553_s1 + $0x2d4] ss:$8 sps:$4 sm:$0xff]  }
  0x3b   : > { %1250 = vmatpush2.bf16.msra.mxu1 %v1850_v47  ;;  %1208 = vmatprep.subr.bf16.mxu0 %v1851_v48  ;;  %v1946_v47 = vld [vmem:[%s2553_s1 + $0x3d4] ss:$8 sps:$4 sm:$0xff]   ;;  %v1941_v48 = vld [vmem:[%s2553_s1 + $0x2d0] ss:$8 sps:$4 sm:$0xff]  }
  0x3c   : > { %1251 = vmatprep.subr.bf16.mxu1 %v1853_v50  ;;  %v1949_v50 = vld [vmem:[%s2553_s1 + $0x2c4] ss:$8 sps:$4 sm:$0xff]  }
  0x3e   : > { %1209 = vmatpush2.bf16.msra.mxu0 %v1855_v52  ;;  %v1947_v52 = vld [vmem:[%s2553_s1 + $0x2c0] ss:$8 sps:$4 sm:$0xff]  }
  0x3f   : > { %1252 = vmatpush2.bf16.msra.mxu1 %v1856_v53  ;;  %1210 = vmatprep.subr.bf16.mxu0 %v1857_v54  ;;  %v1950_v53 = vld [vmem:[%s2553_s1 + $0x3c0] ss:$8 sps:$4 sm:$0xff]   ;;  %v1955_v54 = vld [vmem:[%s2553_s1 + $0x2b4] ss:$8 sps:$4 sm:$0xff]  }
  0x40   : > { %1253 = vmatprep.subr.bf16.mxu1 %v1859_v55  ;;  %v1958_v55 = vld [vmem:[%s2553_s1 + $0x3b4] ss:$8 sps:$4 sm:$0xff]  }
  0x42   : > { %1211 = vmatpush2.bf16.msra.mxu0 %v1861_v56  ;;  %v1953_v56 = vld [vmem:[%s2553_s1 + $0x2b0] ss:$8 sps:$4 sm:$0xff]  }
  0x43   : > { %1254 = vmatpush2.bf16.msra.mxu1 %v1862_v57  ;;  %1212 = vmatprep.subr.bf16.mxu0 %v1863_v58  ;;  %v1956_v57 = vld [vmem:[%s2553_s1 + $0x3b0] ss:$8 sps:$4 sm:$0xff]   ;;  %v1961_v58 = vld [vmem:[%s2553_s1 + $0x2a4] ss:$8 sps:$4 sm:$0xff]  }
  0x44   : > { %1255 = vmatprep.subr.bf16.mxu1 %v1865_v59  ;;  %v1964_v59 = vld [vmem:[%s2553_s1 + $0x3a4] ss:$8 sps:$4 sm:$0xff]  }
  0x46   : > { %1213 = vmatpush2.bf16.msra.mxu0 %v1867_v60  ;;  %v1959_v60 = vld [vmem:[%s2553_s1 + $0x2a0] ss:$8 sps:$4 sm:$0xff]  }
  0x47   : > { %1256 = vmatpush2.bf16.msra.mxu1 %v1868_v61  ;;  %1214 = vmatprep.subr.bf16.mxu0 %v1869_v62  ;;  %v1962_v61 = vld [vmem:[%s2553_s1 + $0x3a0] ss:$8 sps:$4 sm:$0xff]   ;;  %v1967_v62 = vld [vmem:[%s2553_s1 + $0x294] ss:$8 sps:$4 sm:$0xff]  }
  0x48   : > { %1257 = vmatprep.subr.bf16.mxu1 %v1871_v63  ;;  %v1970_v63 = vld [vmem:[%s2553_s1 + $0x394] ss:$8 sps:$4 sm:$0xff]  }
  0x4a   : > { %1215 = vmatpush2.bf16.msra.mxu0 %v1873_v0  ;;  %v1965_v0 = vld [vmem:[%s2553_s1 + $0x290] ss:$8 sps:$4 sm:$0xff]  }
  0x4b   : > { %1258 = vmatpush2.bf16.msra.mxu1 %v1874_v1  ;;  %1270 = vmatprep.subr.bf16.mxu0 %v1883_v2  ;;  %v1968_v1 = vld [vmem:[%s2553_s1 + $0x390] ss:$8 sps:$4 sm:$0xff]   ;;  %v1973_v2 = vld [vmem:[%s2553_s1 + $0x284] ss:$8 sps:$4 sm:$0xff]  }
  0x4c   : > { %1313 = vmatprep.subr.bf16.mxu1 %v1886_v3  ;;  %v1976_v3 = vld [vmem:[%s2553_s1 + $0x384] ss:$8 sps:$4 sm:$0xff]  }
  0x4d   : > { %1217 = vmatmul.mubr.bf16.vlgmr.msra.gmra.mxu0 %v1875_v4  ;;  %v1971_v4 = vld [vmem:[%s2553_s1 + $0x280] ss:$8 sps:$4 sm:$0xff]  }
  0x4e   : > { %1260 = vmatmul.mubr.bf16.vlgmr.msra.gmra.mxu1 %v1878_v5  ;;  %1271 = vmatpush1.bf16.msra.mxu0 %v1881_v6  ;;  %v1974_v5 = vld [vmem:[%s2553_s1 + $0x380] ss:$8 sps:$4 sm:$0xff]   ;;  %v1982_v6 = vld [vmem:[%s2553_s1 + $0x474] ss:$8 sps:$4 sm:$0xff]  }
  0x4f   : > { %1314 = vmatpush1.bf16.msra.mxu1 %v1884_v7  ;;  %1272 = vmatprep.subr.bf16.mxu0 %v1889_v8  ;;  %v1977_v7 = vld [vmem:[%s2225_s24 + $0x10] ss:$36 sps:$4 sm:$0xff]   ;;  %v1983_v8 = vld [vmem:[%s2225_s24 + $0x18] ss:$36 sps:$4 sm:$0xff]  }
  0x50   : > { %1315 = vmatprep.subr.bf16.mxu1 %v1892_v9  ;;  %1302 = vmatprep.mubr.bf16.mxu0 %v1979_v34  ;;  %v1980_v9 = vld [vmem:[%s2553_s1 + $0x470] ss:$8 sps:$4 sm:$0xff]  }
  0x51   : > { %1345 = vmatprep.mubr.bf16.mxu1 %v1985_v37 }
  0x52   : > { %1273 = vmatpush1.bf16.msra.mxu0 %v1887_v10  ;;  %v1988_v10 = vld [vmem:[%s2553_s1 + $0x464] ss:$8 sps:$4 sm:$0xff]  }
  0x53   : > { %1316 = vmatpush1.bf16.msra.mxu1 %v1890_v11  ;;  %1274 = vmatprep.subr.bf16.mxu0 %v1895_v12  ;;  %v1986_v11 = vld [vmem:[%s2553_s1 + $0x460] ss:$8 sps:$4 sm:$0xff]   ;;  %v2036_v12 = vmov 0  }
  0x54   : > { %1317 = vmatprep.subr.bf16.mxu1 %v1898_v13  ;;  %v1991_v13 = vld [vmem:[%s2553_s1 + $0x454] ss:$8 sps:$4 sm:$0xff]  }
  0x56   : > { %1275 = vmatpush1.bf16.msra.mxu0 %v1893_v14  ;;  %v1989_v14 = vld [vmem:[%s2553_s1 + $0x450] ss:$8 sps:$4 sm:$0xff]  }
  0x57   : > { %1318 = vmatpush1.bf16.msra.mxu1 %v1896_v15  ;;  %1276 = vmatprep.subr.bf16.mxu0 %v1901_v16  ;;  %v1994_v15 = vld [vmem:[%s2553_s1 + $0x444] ss:$8 sps:$4 sm:$0xff]   ;;  %v1992_v16 = vld [vmem:[%s2553_s1 + $0x440] ss:$8 sps:$4 sm:$0xff]  }
  0x58   : > { %1319 = vmatprep.subr.bf16.mxu1 %v1904_v17  ;;  %v1997_v17 = vld [vmem:[%s2553_s1 + $0x434] ss:$8 sps:$4 sm:$0xff]  }
  0x5a   : > { %1277 = vmatpush1.bf16.msra.mxu0 %v1899_v18  ;;  %v1995_v18 = vld [vmem:[%s2553_s1 + $0x430] ss:$8 sps:$4 sm:$0xff]  }
  0x5b   : > { %1320 = vmatpush1.bf16.msra.mxu1 %v1902_v19  ;;  %1278 = vmatprep.subr.bf16.mxu0 %v1907_v20  ;;  %v2000_v19 = vld [vmem:[%s2553_s1 + $0x424] ss:$8 sps:$4 sm:$0xff]   ;;  %v1998_v20 = vld [vmem:[%s2553_s1 + $0x420] ss:$8 sps:$4 sm:$0xff]  }
  0x5c   : > { %1321 = vmatprep.subr.bf16.mxu1 %v1910_v21  ;;  %v2003_v21 = vld [vmem:[%s2553_s1 + $0x414] ss:$8 sps:$4 sm:$0xff]  }
  0x5e   : > { %1279 = vmatpush1.bf16.msra.mxu0 %v1905_v22  ;;  %v2001_v22 = vld [vmem:[%s2553_s1 + $0x410] ss:$8 sps:$4 sm:$0xff]  }
  0x5f   : > { %1322 = vmatpush1.bf16.msra.mxu1 %v1908_v23  ;;  %1280 = vmatprep.subr.bf16.mxu0 %v1913_v24  ;;  %v2006_v23 = vld [vmem:[%s2553_s1 + $0x404] ss:$8 sps:$4 sm:$0xff]   ;;  %v2004_v24 = vld [vmem:[%s2553_s1 + $0x400] ss:$8 sps:$4 sm:$0xff]  }
  0x60   : > { %1323 = vmatprep.subr.bf16.mxu1 %v1916_v25  ;;  %v2007_v25 = vld [vmem:[%s2225_s24 + $0x20] ss:$36 sps:$4 sm:$0xff]  }
  0x62   : > { %1281 = vmatpush1.bf16.msra.mxu0 %v1911_v26 }
  0x63   : > { %1324 = vmatpush1.bf16.msra.mxu1 %v1914_v27  ;;  %1282 = vmatprep.subr.bf16.mxu0 %v1919_v28 }
  0x64   : > { %1325 = vmatprep.subr.bf16.mxu1 %v1922_v29 }
  0x66   : > { %1283 = vmatpush1.bf16.msra.mxu0 %v1917_v30 }
  0x67   : > { %1326 = vmatpush1.bf16.msra.mxu1 %v1920_v31  ;;  %1284 = vmatprep.subr.bf16.mxu0 %v1925_v32 }
  0x68   : > { %1327 = vmatprep.subr.bf16.mxu1 %v1928_v33 }
  0x6a   : > { %1285 = vmatpush1.bf16.msra.mxu0 %v1923_v35 }
  0x6b   : > { %1328 = vmatpush1.bf16.msra.mxu1 %v1926_v36  ;;  %1286 = vmatprep.subr.bf16.mxu0 %v1931_v38 }
  0x6c   : > { %1329 = vmatprep.subr.bf16.mxu1 %v1934_v39 }
  0x6e   : > { %1287 = vmatpush2.bf16.msra.mxu0 %v1929_v40 }
  0x6f   : > { %1330 = vmatpush2.bf16.msra.mxu1 %v1932_v41  ;;  %1288 = vmatprep.subr.bf16.mxu0 %v1937_v42 }
  0x70   : > { %1331 = vmatprep.subr.bf16.mxu1 %v1940_v43 }
  0x72   : > { %1289 = vmatpush2.bf16.msra.mxu0 %v1935_v44 }
  0x73   : > { %1332 = vmatpush2.bf16.msra.mxu1 %v1938_v45  ;;  %1290 = vmatprep.subr.bf16.mxu0 %v1943_v46 }
  0x74   : > { %1333 = vmatprep.subr.bf16.mxu1 %v1946_v47 }
  0x76   : > { %1291 = vmatpush2.bf16.msra.mxu0 %v1941_v48 }
  0x77   : > { %1334 = vmatpush2.bf16.msra.mxu1 %v1944_v49  ;;  %1292 = vmatprep.subr.bf16.mxu0 %v1949_v50 }
  0x78   : > { %1335 = vmatprep.subr.bf16.mxu1 %v1952_v51 }
  0x7a   : > { %1293 = vmatpush2.bf16.msra.mxu0 %v1947_v52 }
  0x7b   : > { %1336 = vmatpush2.bf16.msra.mxu1 %v1950_v53  ;;  %1294 = vmatprep.subr.bf16.mxu0 %v1955_v54 }
  0x7c   : > { %1337 = vmatprep.subr.bf16.mxu1 %v1958_v55 }
  0x7e   : > { %1295 = vmatpush2.bf16.msra.mxu0 %v1953_v56 }
  0x7f   : > { %1338 = vmatpush2.bf16.msra.mxu1 %v1956_v57  ;;  %1296 = vmatprep.subr.bf16.mxu0 %v1961_v58 }
  0x80   : > { %1339 = vmatprep.subr.bf16.mxu1 %v1964_v59 }
  0x82   : > { %1297 = vmatpush2.bf16.msra.mxu0 %v1959_v60 }
  0x83   : > { %1340 = vmatpush2.bf16.msra.mxu1 %v1962_v61  ;;  %1298 = vmatprep.subr.bf16.mxu0 %v1967_v62 }
  0x84   : > { %1341 = vmatprep.subr.bf16.mxu1 %v1970_v63 }
  0x86   : > { %1299 = vmatpush2.bf16.msra.mxu0 %v1965_v0 }
  0x87   : > { %1342 = vmatpush2.bf16.msra.mxu1 %v1968_v1  ;;  %1300 = vmatprep.subr.bf16.mxu0 %v1973_v2 }
  0x88   : > { %1343 = vmatprep.subr.bf16.mxu1 %v1976_v3 }
  0x8a   : > { %1301 = vmatpush2.bf16.msra.mxu0 %v1971_v4 }
  0x8b   : > { %1344 = vmatpush2.bf16.msra.mxu1 %v1974_v5  ;;  %1356 = vmatprep.subr.bf16.mxu0 %v1982_v6 }
  0x8d   : > { %1303 = vmatmul.mubr.bf16.vlgmr.msra.gmra.mxu0 %v1977_v7 }
  0x8e   : > { %1346 = vmatmul.mubr.bf16.vlgmr.msra.gmra.mxu1 %v1983_v8  ;;  %1357 = vmatpush1.bf16.msra.mxu0 %v1980_v9 }
  0x8f   : > { %1388 = vmatprep.mubr.bf16.mxu0 %v2036_v12  ;;  %1358 = vmatprep.subr.bf16.mxu0 %v1988_v10 }
  0x92   : > { %1359 = vmatpush1.bf16.msra.mxu0 %v1986_v11 }
  0x93   : > { %1360 = vmatprep.subr.bf16.mxu0 %v1991_v13 }
  0x96   : > { %1361 = vmatpush1.bf16.msra.mxu0 %v1989_v14 }
  0x97   : > { %1362 = vmatprep.subr.bf16.mxu0 %v1994_v15 }
  0x9a   : > { %1363 = vmatpush1.bf16.msra.mxu0 %v1992_v16 }
  0x9b   : > { %1364 = vmatprep.subr.bf16.mxu0 %v1997_v17 }
  0x9e   : > { %1365 = vmatpush1.bf16.msra.mxu0 %v1995_v18 }
  0x9f   : > { %1366 = vmatprep.subr.bf16.mxu0 %v2000_v19 }
  0xa2   : > { %1367 = vmatpush1.bf16.msra.mxu0 %v1998_v20 }
  0xa3   : > { %1368 = vmatprep.subr.bf16.mxu0 %v2003_v21 }
  0xa6   : > { %1369 = vmatpush1.bf16.msra.mxu0 %v2001_v22 }
  0xa7   : > { %1370 = vmatprep.subr.bf16.mxu0 %v2006_v23 }
  0xaa   : > { %1371 = vmatpush1.bf16.msra.mxu0 %v2004_v24 }
  0xad   : > { %1389 = vmatmul.mubr.bf16.vlgmr.msra.gmra.mxu0 %v2007_v25 }
 0x10d   : > { %v1218_v26 = vpop.f32.mrf.mxu0 }
 0x10e   : > { %v1261_v27 = vpop.f32.mrf.mxu1 }
 0x10f   : > { %v1220_v28 = vpop.f32.mrf.mxu0  ;;  %v1262_v39 = vadd.f32 %v1261_v27, %v1218_v26 }
 0x110   : > { %v1263_v29 = vpop.f32.mrf.mxu1 }
 0x111   : > { %v1222_v30 = vpop.f32.mrf.mxu0  ;;  %v1264_v43 = vadd.f32 %v1263_v29, %v1220_v28 }
 0x112   : > { %v1265_v31 = vpop.f32.mrf.mxu1 }
 0x113   : > { %v1224_v32 = vpop.f32.mrf.mxu0  ;;  %v1266_v40 = vadd.f32 %v1265_v31, %v1222_v30 }
 0x114   : > { %v1267_v34 = vpop.f32.mrf.mxu1 }
 0x115   : > { %v1268_v44 = vadd.f32 %v1267_v34, %v1224_v32 }
 0x14d   : > { %v1304_v33 = vpop.f32.mrf.mxu0 }
 0x14e   : > { %v1347_v36 = vpop.f32.mrf.mxu1  ;;  %v1305_v45 = vadd.f32 %v1304_v33, %v1262_v39  ;;  %v1465_v39 = vlaneseq }
 0x14f   : > { %v1306_v35 = vpop.f32.mrf.mxu0 }
 0x150   : > { %v1349_v38 = vpop.f32.mrf.mxu1  ;;  %v1307_v48 = vadd.f32 %v1306_v35, %v1264_v43  ;;  %v1348_v52 = vadd.f32 %v1347_v36, %v1305_v45  ;;  %v1463_v43 = vld [vmem:[%s2554_s2] sm:$0x3] }
 0x151   : > { %v1308_v37 = vpop.f32.mrf.mxu0  ;;  %v1479_v45 = vld [vmem:[%s2555_s3] sm:$0x3] }
 0x152   : > { %v1351_v42 = vpop.f32.mrf.mxu1  ;;  %v1309_v46 = vadd.f32 %v1308_v37, %v1266_v40  ;;  %v1350_v55 = vadd.f32 %v1349_v38, %v1307_v48 }
 0x153   : > { %v1310_v41 = vpop.f32.mrf.mxu0 }
 0x154   : > { %v1311_v49 = vadd.f32 %v1310_v41, %v1268_v44  ;;  %v1353_v50 = vpop.f32.mrf.mxu1  ;;  %v1352_v53 = vadd.f32 %v1351_v42, %v1309_v46  ;;  %v1466_v41 = vshrl.u32 %v1465_v39, 7 }
 0x156   : > { %v1354_v56 = vadd.f32 %v1353_v50, %v1311_v49  ;;  %v1467_v42 = vsub.s32 0, %v1466_v41  ;;  %v1471_v44 = vsub.s32 1, %v1466_v41 }
 0x158   : > { %v1468_v46 = vrot.slane %v1463_v43, %v1467_v42  ;;  %v1484_v50 = vrot.slane %v1479_v45, %v1467_v42 }
 0x16d   : > { %v1390_v47 = vpop.f32.mrf.mxu0 }
 0x16e   : > { %v1391_v57 = vadd.f32 %v1390_v47, %v1348_v52 }
 0x16f   : > { %v1392_v51 = vpop.f32.mrf.mxu0 }
 0x170   : > { %v1393_v60 = vadd.f32 %v1392_v51, %v1350_v55  ;;  %v1472_v51 = vrot.slane %v1463_v43, %v1471_v44 }
 0x171   : > { %v1394_v54 = vpop.f32.mrf.mxu0 }
 0x172   : > { %v1395_v58 = vadd.f32 %v1394_v54, %v1352_v53  ;;  %v1488_v53 = vrot.slane %v1479_v45, %v1471_v44 }
 0x173   : > { %v1396_v59 = vpop.f32.mrf.mxu0 }
 0x174   : > { %v1414_v61 = vadd.f32 %v1395_v58, %v1391_v57  ;;  %v1397_v62 = vadd.f32 %v1396_v59, %v1354_v56 }
 0x176   : > { %v1415_v63 = vrot.slane %v1414_v61, 4  ;;  %v1421_v0 = vadd.f32 %v1397_v62, %v1393_v60 }
 0x178   : > { %v1416_v1 = vadd.f32 %v1415_v63, %v1414_v61  ;;  %v1422_v2 = vrot.slane %v1421_v0, 4 }
 0x17a   : > { %v1417_v3 = vrot.slane %v1416_v1, 2  ;;  %v1423_v4 = vadd.f32 %v1422_v2, %v1421_v0 }
 0x17c   : > { %v1418_v5 = vadd.f32 %v1417_v3, %v1416_v1  ;;  %v1424_v6 = vrot.slane %v1423_v4, 2 }
 0x17e   : > { %v1419_v7 = vrot.slane %v1418_v5, 1  ;;  %v1425_v8 = vadd.f32 %v1424_v6, %v1423_v4 }
 0x180   : > { %v1420_v9 = vadd.f32 %v1419_v7, %v1418_v5  ;;  %v1426_v10 = vrot.slane %v1425_v8, 1 }
 0x182   : > { %v1429_v11 = vmul.f32 0.0625, %v1420_v9  ;;  %v1427_v12 = vadd.f32 %v1426_v10, %v1425_v8 }
 0x184   : > { %v1431_v13 = vsub.f32 %v1391_v57, %v1429_v11  ;;  %v1433_v14 = vsub.f32 %v1395_v58, %v1429_v11  ;;  %v1430_v15 = vmul.f32 0.0625, %v1427_v12 }
 0x186   : > { %v1435_v16 = vmul.f32 %v1431_v13, %v1431_v13  ;;  %v1437_v17 = vmul.f32 %v1433_v14, %v1433_v14  ;;  %v1432_v18 = vsub.f32 %v1393_v60, %v1430_v15  ;;  %v1434_v19 = vsub.f32 %v1397_v62, %v1430_v15 }
 0x188   : > { %v1439_v20 = vadd.f32 %v1437_v17, %v1435_v16  ;;  %v1436_v21 = vmul.f32 %v1432_v18, %v1432_v18  ;;  %v1438_v22 = vmul.f32 %v1434_v19, %v1434_v19 }
 0x18a   : > { %v1440_v23 = vrot.slane %v1439_v20, 4  ;;  %v1446_v24 = vadd.f32 %v1438_v22, %v1436_v21 }
 0x18c   : > { %v1441_v25 = vadd.f32 %v1440_v23, %v1439_v20  ;;  %v1447_v26 = vrot.slane %v1446_v24, 4 }
 0x18e   : > { %v1442_v27 = vrot.slane %v1441_v25, 2  ;;  %v1448_v28 = vadd.f32 %v1447_v26, %v1446_v24 }
 0x190   : > { %v1443_v29 = vadd.f32 %v1442_v27, %v1441_v25  ;;  %v1449_v30 = vrot.slane %v1448_v28, 2 }
 0x192   : > { %v1444_v31 = vrot.slane %v1443_v29, 1  ;;  %v1450_v32 = vadd.f32 %v1449_v30, %v1448_v28 }
 0x194   : > { %v1445_v33 = vadd.f32 %v1444_v31, %v1443_v29  ;;  %v1451_v34 = vrot.slane %v1450_v32, 1 }
 0x196   : > { %v1453_v35 = vmul.f32 0.0625, %v1445_v33  ;;  %v1452_v36 = vadd.f32 %v1451_v34, %v1450_v32 }
 0x198   : > { %v1455_v37 = vadd.f32 1e-05, %v1453_v35  ;;  %v1454_v38 = vmul.f32 0.0625, %v1452_v36 }
 0x19a   : > { %2008 = vrsqrt.f32 %v1455_v37  ;;  %v1456_v40 = vadd.f32 1e-05, %v1454_v38 }
 0x19c   : > { %2010 = vrsqrt.f32 %v1456_v40 }
 0x1a7   : > { %v2009_v47 = vpop.eup %2008 }
 0x1a8   : > { %v1459_v48 = vmul.f32 %v2009_v47, %v1431_v13  ;;  %v1461_v49 = vmul.f32 %v2009_v47, %v1433_v14 }
 0x1a9   : > { %v2011_v52 = vpop.eup %2010 }
 0x1aa   : > { %v1475_v54 = vmul.f32 %v1468_v46, %v1459_v48  ;;  %v1477_v55 = vmul.f32 %v1468_v46, %v1461_v49  ;;  %v1460_v56 = vmul.f32 %v2011_v52, %v1432_v18  ;;  %v1462_v57 = vmul.f32 %v2011_v52, %v1434_v19 }
 0x1ac   : > { %v1491_v58 = vadd.f32 %v1484_v50, %v1475_v54  ;;  %v1493_v59 = vadd.f32 %v1484_v50, %v1477_v55  ;;  %v1476_v60 = vmul.f32 %v1472_v51, %v1460_v56  ;;  %v1478_v61 = vmul.f32 %v1472_v51, %v1462_v57 }
 0x1ae   : > { %v1495_v62 = vmax.f32 %v1491_v58, 0.0  ;;  %v1497_v63 = vmax.f32 %v1493_v59, 0.0  ;;  %v1492_v0 = vadd.f32 %v1488_v53, %v1476_v60  ;;  %v1494_v1 = vadd.f32 %v1488_v53, %v1478_v61 }
 0x1b0   : > { %1499 = vst [vmem:[%s250_s14] sm:$0xff] %v1495_v62  ;;  %1501 = vst [vmem:[%s250_s14 + $0x10] sm:$0xff] %v1497_v63  ;;  %v1496_v2 = vmax.f32 %v1492_v0, 0.0  ;;  %v1498_v3 = vmax.f32 %v1494_v1, 0.0 }
 0x1b2   : > { %1500 = vst [vmem:[%s250_s14 + $0x8] sm:$0xff] %v1496_v2  ;;  %1502 = vst [vmem:[%s250_s14 + $0x18] sm:$0xff] %v1498_v3 }
 0x1b3 PF: > { %s14_s17 = sadd.s32 1, %s2034_s17   ;;  %s2557_s15 = smov %s2030_s16 }
 0x1b4   : > { %p11_p5 = scmp.ge.s32.totalorder %s14_s17, 4   ;;  %s2558_s16 = smov %s2560_s18 }
 0x1b6   :  { %13 = sbr.rel (!%p11_p5) target bundleno = 2 (0x2), region = 77 }

// kernel: forward.23
= control target key start
LH: loop header
LB: loop body
LE: loop exit
PB: predicated region body
PF: predicated region fallthrough
CT: control target
= control target key end

     0   :  { %s421_s15 = smov 0   ;;  %s441_s0 = inlined_call_operand.vmem [shape: f32[2,4,256], index: 0, kind: input, shape index: {}]   ;;  %s442_s1 = inlined_call_operand.vmem [shape: f32[2,4,256], index: 1, kind: input, shape index: {}]   ;;  %s443_s2 = inlined_call_operand.vmem [shape: f32[2,4,256], index: 2, kind: input, shape index: {}]   ;;  %s444_s3 = inlined_call_operand.vmem [shape: f32[2,4,256], index: 3, kind: input, shape index: {}]   ;;  %s445_s4 = inlined_call_operand.vmem [shape: f32[2,4,256], index: 4, kind: output, shape index: {}]  }
   0x1 LB: > { %s358_s16 = sadd.s32 4294967295, %s394_s15   ;;  %p362_p0 = scmp.ge.s32.totalorder %s394_s15, 1  ;;  %s394_s15 = sphi %s421_s15, %s14_s15  }
   0x2   : > { %p192_p1 = scmp.lt.s32.totalorder %s394_s15, 3 }
   0x4   : > { %p193_p2 = pnand %p362_p0, %p192_p1 }
   0x5   : > { %p233_p3 = scmp.lt.s32.totalorder (!%p193_p2), %s358_s16, 1 }
   0x6   : > { %196 = sbr.rel (%p193_p2) target bundleno = 25 (0x19), region = 36 }
   0xb   : > { %s447_s16 = smov (!%p233_p3, %s358_s16), 1 }
   0xc   : > { %s375_s17 = sshll.u32 %s447_s16, 3 }
   0xd   : > { %s237_s20 = scalar_lea.vmem %s441_s0, %s375_s17  ;;  %s242_s23 = scalar_lea.vmem %s442_s1, %s375_s17 }
   0xe   : > { %s247_s26 = scalar_lea.vmem %s443_s2, %s375_s17  ;;  %s252_s29 = scalar_lea.vmem %s444_s3, %s375_s17  ;;  %v258_v0 = vld [vmem:[%s237_s20] sm:$0xff] }
   0xf   : > { %v259_v1 = vld [vmem:[%s242_s23] sm:$0xff]  ;;  %s257_s6 = scalar_lea.vmem %s445_s4, %s375_s17 }
  0x10   : > { %v260_v2 = vadd.f32 %v259_v1, %v258_v0  ;;  %v261_v3 = vld [vmem:[%s247_s26] sm:$0xff] }
  0x11   : > { %v263_v4 = vld [vmem:[%s252_s29] sm:$0xff] }
  0x12   : > { %v262_v5 = vadd.f32 %v261_v3, %v260_v2 }
  0x14   : > { %v264_v6 = vadd.f32 %v263_v4, %v262_v5 }
  0x16   : > { %v265_v7 = vmul.f32 0.25, %v264_v6 }
  0x18   : > { %266 = vst [vmem:[%s257_s6] sm:$0xff] %v265_v7 }
  0x19 PF: > { %s14_s15 = sadd.s32 1, %s394_s15  }
  0x1a   : > { %p11_p4 = scmp.ge.s32.totalorder %s14_s15, 4  }
  0x1c   :  { %13 = sbr.rel (!%p11_p4) target bundleno = 1 (0x1), region = 75 }

// kernel: forward.21
= control target key start
LH: loop header
LB: loop body
LE: loop exit
PB: predicated region body
PF: predicated region fallthrough
CT: control target
= control target key end

     0   :  { %s2182_s15 = smov 0   ;;  %s2184_s16 = smov 0   ;;  %s2446_s0 = inlined_call_operand.vmem [shape: bf16[2,16,2304], index: 0, kind: input, shape index: {}]   ;;  %s2447_s1 = inlined_call_operand.vmem [shape: bf16[2304,256], index: 1, kind: input, shape index: {}]   ;;  %s2448_s2 = inlined_call_operand.vmem [shape: f32[1,256], index: 2, kind: input, shape index: {}]   ;;  %s2449_s3 = inlined_call_operand.vmem [shape: f32[1,256], index: 3, kind: input, shape index: {}]   ;;  %s2450_s4 = inlined_call_operand.vmem [shape: f32[2,16,256], index: 4, kind: output, shape index: {}]  }
   0x1   :  { %s2186_s17 = smov 0   ;;  %s2188_s18 = smov 0  }
   0x2   :  { %s2190_s19 = smov 0   ;;  %s2192_s20 = smov 0  }
   0x3   :  { %s2194_s21 = smov 0  }
   0x4 LB: > { %s23_s22 = sadd.s32 1, %s2145_s19  ;;  %s26_s23 = sadd.s32 1, %s2149_s20  ;;  %s2153_s21 = sphi %s2194_s21, %s14_s21   ;;  %s2149_s20 = sphi %s2192_s20, %s2456_s20   ;;  %s2145_s19 = sphi %s2190_s19, %s2455_s19   ;;  %s2141_s18 = sphi %s2188_s18, %s2454_s18   ;;  %s2137_s17 = sphi %s2186_s17, %s2453_s17   ;;  %s2133_s16 = sphi %s2184_s16, %s2452_s16   ;;  %s2129_s15 = sphi %s2182_s15, %s2451_s15  }
   0x5   : > { %p24_p0 = scmp.ge.s32.totalorder %s23_s22, 2  ;;  %p42_p1 = scmp.ne.s32.totalorder %s2133_s16, %s2129_s15 }
   0x6   : > { %p43_p2 = scmp.eq.s32.totalorder %s2153_s21, 0  ;;  %s35_s27 = sadd.s32 1, %s2133_s16 }
   0x7   : > { %s2458_s22 = smov (%p24_p0, %s23_s22), 0  ;;  %s2460_s23 = smov (!%p24_p0, %s26_s23), %s2149_s20 }
   0x8   : > { %p44_p3 = por %p43_p2, %p42_p1  ;;  %p28_p4 = scmp.ge.s32.totalorder %s2460_s23, 2 }
   0x9   : > { %s31_s24 = ssub.s32 %s2145_s19, %s2458_s22  ;;  %p1635_p6 = scmp.ge.s32.totalorder %s2153_s21, 4 }
   0xa   : > { %s2462_s23 = smov (%p28_p4, %s2460_s23), 0 }
   0xb   : > { %s30_s25 = ssub.s32 %s2149_s20, %s2462_s23  ;;  %168 = sbr.rel (%p1635_p6) target bundleno = 30 (0x1e), region = 24 }
   0xc   : > { %s32_s26 = sor.u32 %s31_s24, %s30_s25 }
   0xd   : > { %p33_p5 = scmp.eq.s32.totalorder %s32_s26, 0 }
   0xf   : > { %s2233_s28 = scalar_select %p33_p5, %s2133_s16, %s35_s27  }
  0x10   : > { %171 = sbr.rel (!%p44_p3) target bundleno = 30 (0x1e), region = 28  ;;  %s173_s29 = sand.u32 (%p44_p3), 1, %s2133_s16  }
  0x11   : > { %s176_s30 = smul.u32 (%p44_p3), 9, %s2145_s19 }
  0x12   : > { %s1805_s5 = smul.u32 (%p44_p3), 72, %s173_s29 }
  0x13   : > { %s1806_s6 = smul.u32 (%p44_p3), 36, %s2149_s20 }
  0x14   : > { %s175_s12 = scalar_lea.vmem (%p44_p3), [#allocation3], %s1805_s5 }
  0x15   : > { %s178_s7 = sadd.s32 %s1806_s6, %s176_s30 }
  0x16   : > { %s1636_s8 = sshll.u32 %s178_s7, 2 }
  0x17   : > { %s180_s11 = scalar_lea.vmem %s2446_s0, %s1636_s8 }
  0x18   : > { %v195_v0 = vld [vmem:[%s180_s11] sm:$0xff]  ;;  %v197_v1 = vld [vmem:[%s180_s11 + $0x8] sm:$0xff]  ;;  %v199_v2 = vld [vmem:[%s180_s11 + $0x10] sm:$0xff] }
  0x19   : > { %196 = vst [vmem:[%s175_s12] sm:$0xff] %v195_v0  ;;  %198 = vst [vmem:[%s175_s12 + $0x8] sm:$0xff] %v197_v1  ;;  %v201_v3 = vld [vmem:[%s180_s11 + $0x18] sm:$0xff]  ;;  %v203_v4 = vld [vmem:[%s180_s11 + $0x48] sm:$0xff] }
  0x1a   : > { %200 = vst [vmem:[%s175_s12 + $0x10] sm:$0xff] %v199_v2  ;;  %v205_v5 = vld [vmem:[%s180_s11 + $0x50] sm:$0xff]  ;;  %202 = vst [vmem:[%s175_s12 + $0x18] sm:$0xff] %v201_v3  ;;  %v207_v6 = vld [vmem:[%s180_s11 + $0x58] sm:$0xff] }
  0x1b   : > { %204 = vst [vmem:[%s175_s12 + $0x24] sm:$0xff] %v203_v4  ;;  %206 = vst [vmem:[%s175_s12 + $0x2c] sm:$0xff] %v205_v5  ;;  %v209_v7 = vld [vmem:[%s180_s11 + $0x60] sm:$0xff]  ;;  %v1639_v9 = vld [vmem:[%s180_s11 + $0x68] sm:$0xf] }
  0x1c   : > { %v1637_v8 = vld [vmem:[%s180_s11 + $0x20] sm:$0xf]  ;;  %208 = vst [vmem:[%s175_s12 + $0x34] sm:$0xff] %v207_v6  ;;  %210 = vst [vmem:[%s175_s12 + $0x3c] sm:$0xff] %v209_v7 }
  0x1d   : > { %1638 = vst [vmem:[%s175_s12 + $0x20] sm:$0xf] %v1637_v8  ;;  %1640 = vst [vmem:[%s175_s12 + $0x44] sm:$0xf] %v1639_v9 }
  0x1e PF: > { %p1641_p7 = scmp.ge.s32.totalorder %s2153_s21, 1  ;;  %p237_p8 = scmp.lt.s32.totalorder %s2153_s21, 5 }
  0x20   : > { %p238_p9 = pnand %p1641_p7, %p237_p8 }
  0x21   : > { %s244_s13 = sand.u32 (!%p238_p9), 1, %s2129_s15   ;;  %s276_s14 = smul.u32 (!%p238_p9), 144, %s2137_s17 }
  0x22   : > { %241 = sbr.rel (%p238_p9) target bundleno = 483 (0x1e3), region = 58  ;;  %p283_p10 = scmp.lt.s32.totalorder (!%p238_p9), %s2141_s18, 1 }
  0x23   : > { %s1807_s24 = smul.u32 (!%p238_p9), 72, %s244_s13  ;;  %p277_p11 = scmp.lt.s32.totalorder (!%p238_p9), %s276_s14, 287 }
  0x24   : > { %p1646_p12 = scmp.ne.s32.totalorder (!%p238_p9), %s2137_s17, 0 }
  0x25   : > { %s2258_s8 = scalar_lea.vmem (!%p238_p9), [#allocation3], %s1807_s24 }
  0x27   : > { %s2464_s14 = smov (!%p277_p11, %s276_s14), 287  ;;  %s2466_s18 = smov (!%p283_p10, %s2141_s18), 1 }
  0x28   : > { %s1803_s25 = sshll.u32 %s2464_s14, 3  ;;  %s1804_s30 = sshll.u32 %s2466_s18, 5 }
  0x29   : > { %s2251_s29 = scalar_lea.vmem %s2447_s1, %s1803_s25  ;;  %s2256_s7 = scalar_lea.vmem %s2450_s4, %s1804_s30 }
  0x2a   : > { %292 = sbr.rel (%p1646_p12) target bundleno = 50 (0x32), region = 66 }
  0x2f   : > { %v2155_v10 = vmov 0.0  }
  0x30   : > { %293 = vst [vmem:[#allocation2 + $0x10] sm:$0xff] %v2155_v10  ;;  %294 = vst [vmem:[#allocation2] sm:$0xff] %v2155_v10 }
  0x31   : > { %295 = vst [vmem:[#allocation2 + $0x18] sm:$0xff] %v2155_v10  ;;  %296 = vst [vmem:[#allocation2 + $0x8] sm:$0xff] %v2155_v10 }
  0x32 PF: > { %v1866_v11 = vld [vmem:[%s2251_s29 + $0x74] ss:$8 sps:$4 sm:$0xff]   ;;  %v1870_v13 = vld [vmem:[%s2251_s29 + $0x70] ss:$8 sps:$4 sm:$0xff]   ;;  %v1872_v15 = vld [vmem:[%s2251_s29 + $0x64] ss:$8 sps:$4 sm:$0xff]  }
  0x33   : > { %v1868_v12 = vld [vmem:[%s2251_s29 + $0x174] ss:$8 sps:$4 sm:$0xff]   ;;  %1221 = vmatprep.subr.bf16.mxu0 %v1866_v11  ;;  %v1871_v14 = vld [vmem:[%s2251_s29 + $0x170] ss:$8 sps:$4 sm:$0xff]   ;;  %v1874_v16 = vld [vmem:[%s2251_s29 + $0x164] ss:$8 sps:$4 sm:$0xff]  }
  0x34   : > { %1264 = vmatprep.subr.bf16.mxu1 %v1868_v12  ;;  %1222 = vmatpush1.bf16.msra.mxu0 %v1870_v13  ;;  %v1876_v17 = vld [vmem:[%s2251_s29 + $0x60] ss:$8 sps:$4 sm:$0xff]   ;;  %v1878_v19 = vld [vmem:[%s2251_s29 + $0x54] ss:$8 sps:$4 sm:$0xff]   ;;  %v1882_v21 = vld [vmem:[%s2251_s29 + $0x50] ss:$8 sps:$4 sm:$0xff]  }
  0x35   : > { %1265 = vmatpush1.bf16.msra.mxu1 %v1871_v14  ;;  %1223 = vmatprep.subr.bf16.mxu0 %v1872_v15  ;;  %v1877_v18 = vld [vmem:[%s2251_s29 + $0x160] ss:$8 sps:$4 sm:$0xff]   ;;  %v1880_v20 = vld [vmem:[%s2251_s29 + $0x154] ss:$8 sps:$4 sm:$0xff]   ;;  %v1883_v22 = vld [vmem:[%s2251_s29 + $0x150] ss:$8 sps:$4 sm:$0xff]  }
  0x36   : > { %1266 = vmatprep.subr.bf16.mxu1 %v1874_v16  ;;  %v1884_v23 = vld [vmem:[%s2251_s29 + $0x44] ss:$8 sps:$4 sm:$0xff]   ;;  %v1888_v25 = vld [vmem:[%s2251_s29 + $0x40] ss:$8 sps:$4 sm:$0xff]   ;;  %v1890_v27 = vld [vmem:[%s2251_s29 + $0x34] ss:$8 sps:$4 sm:$0xff]  }
  0x37   : > { %v1886_v24 = vld [vmem:[%s2251_s29 + $0x144] ss:$8 sps:$4 sm:$0xff]   ;;  %v1889_v26 = vld [vmem:[%s2251_s29 + $0x140] ss:$8 sps:$4 sm:$0xff]   ;;  %v1892_v28 = vld [vmem:[%s2251_s29 + $0x134] ss:$8 sps:$4 sm:$0xff]  }
  0x38   : > { %1224 = vmatpush1.bf16.msra.mxu0 %v1876_v17  ;;  %v1894_v29 = vld [vmem:[%s2251_s29 + $0x30] ss:$8 sps:$4 sm:$0xff]   ;;  %v1896_v31 = vld [vmem:[%s2251_s29 + $0x24] ss:$8 sps:$4 sm:$0xff]   ;;  %v1900_v33 = vld [vmem:[%s2251_s29 + $0x20] ss:$8 sps:$4 sm:$0xff]  }
  0x39   : > { %1267 = vmatpush1.bf16.msra.mxu1 %v1877_v18  ;;  %1225 = vmatprep.subr.bf16.mxu0 %v1878_v19  ;;  %v1895_v30 = vld [vmem:[%s2251_s29 + $0x130] ss:$8 sps:$4 sm:$0xff]   ;;  %v1898_v32 = vld [vmem:[%s2251_s29 + $0x124] ss:$8 sps:$4 sm:$0xff]   ;;  %v1901_v34 = vld [vmem:[%s2251_s29 + $0x120] ss:$8 sps:$4 sm:$0xff]  }
  0x3a   : > { %1268 = vmatprep.subr.bf16.mxu1 %v1880_v20  ;;  %v1902_v35 = vld [vmem:[%s2251_s29 + $0x14] ss:$8 sps:$4 sm:$0xff]   ;;  %v1906_v37 = vld [vmem:[%s2251_s29 + $0x10] ss:$8 sps:$4 sm:$0xff]   ;;  %v1908_v39 = vld [vmem:[%s2251_s29 + $0x4] ss:$8 sps:$4 sm:$0xff]  }
  0x3b   : > { %v1904_v36 = vld [vmem:[%s2251_s29 + $0x114] ss:$8 sps:$4 sm:$0xff]   ;;  %v1907_v38 = vld [vmem:[%s2251_s29 + $0x110] ss:$8 sps:$4 sm:$0xff]   ;;  %v1910_v40 = vld [vmem:[%s2251_s29 + $0x104] ss:$8 sps:$4 sm:$0xff]  }
  0x3c   : > { %1226 = vmatpush1.bf16.msra.mxu0 %v1882_v21  ;;  %v1912_v41 = vld [vmem:[%s2251_s29] ss:$8 sps:$4 sm:$0xff]   ;;  %v1914_v43 = vld [vmem:[%s2251_s29 + $0xf4] ss:$8 sps:$4 sm:$0xff]   ;;  %v1918_v45 = vld [vmem:[%s2251_s29 + $0xf0] ss:$8 sps:$4 sm:$0xff]  }
  0x3d   : > { %1269 = vmatpush1.bf16.msra.mxu1 %v1883_v22  ;;  %1227 = vmatprep.subr.bf16.mxu0 %v1884_v23  ;;  %v1913_v42 = vld [vmem:[%s2251_s29 + $0x100] ss:$8 sps:$4 sm:$0xff]   ;;  %v1916_v44 = vld [vmem:[%s2251_s29 + $0x1f4] ss:$8 sps:$4 sm:$0xff]   ;;  %v1919_v46 = vld [vmem:[%s2251_s29 + $0x1f0] ss:$8 sps:$4 sm:$0xff]  }
  0x3e   : > { %1270 = vmatprep.subr.bf16.mxu1 %v1886_v24  ;;  %v1920_v47 = vld [vmem:[%s2251_s29 + $0xe4] ss:$8 sps:$4 sm:$0xff]   ;;  %v1924_v49 = vld [vmem:[%s2251_s29 + $0xe0] ss:$8 sps:$4 sm:$0xff]   ;;  %v1926_v51 = vld [vmem:[%s2251_s29 + $0xd4] ss:$8 sps:$4 sm:$0xff]  }
  0x3f   : > { %v1922_v48 = vld [vmem:[%s2251_s29 + $0x1e4] ss:$8 sps:$4 sm:$0xff]   ;;  %v1925_v50 = vld [vmem:[%s2251_s29 + $0x1e0] ss:$8 sps:$4 sm:$0xff]   ;;  %v1928_v52 = vld [vmem:[%s2251_s29 + $0x1d4] ss:$8 sps:$4 sm:$0xff]  }
  0x40   : > { %1228 = vmatpush1.bf16.msra.mxu0 %v1888_v25  ;;  %v1930_v53 = vld [vmem:[%s2251_s29 + $0xd0] ss:$8 sps:$4 sm:$0xff]   ;;  %v1932_v55 = vld [vmem:[%s2251_s29 + $0xc4] ss:$8 sps:$4 sm:$0xff]   ;;  %v1936_v57 = vld [vmem:[%s2251_s29 + $0xc0] ss:$8 sps:$4 sm:$0xff]  }
  0x41   : > { %1271 = vmatpush1.bf16.msra.mxu1 %v1889_v26  ;;  %1229 = vmatprep.subr.bf16.mxu0 %v1890_v27  ;;  %v1931_v54 = vld [vmem:[%s2251_s29 + $0x1d0] ss:$8 sps:$4 sm:$0xff]   ;;  %v1934_v56 = vld [vmem:[%s2251_s29 + $0x1c4] ss:$8 sps:$4 sm:$0xff]   ;;  %v1937_v58 = vld [vmem:[%s2251_s29 + $0x1c0] ss:$8 sps:$4 sm:$0xff]  }
  0x42   : > { %1272 = vmatprep.subr.bf16.mxu1 %v1892_v28  ;;  %v1938_v59 = vld [vmem:[%s2251_s29 + $0xb4] ss:$8 sps:$4 sm:$0xff]   ;;  %v1964_v60 = vld [vmem:[%s2258_s8 + $0x4] ss:$36 sps:$4 sm:$0xff]   ;;  %p1800_p13 = scmp.ne.s32.totalorder %s2137_s17, 1 }
  0x43   : > { %v1940_v61 = vld [vmem:[%s2251_s29 + $0x1b4] ss:$8 sps:$4 sm:$0xff]   ;;  %1253 = vmatprep.mubr.bf16.mxu0 %v1964_v60  ;;  %v1942_v63 = vld [vmem:[%s2251_s29 + $0xb0] ss:$8 sps:$4 sm:$0xff]   ;;  %v1944_v1 = vld [vmem:[%s2251_s29 + $0xa4] ss:$8 sps:$4 sm:$0xff]  }
  0x44   : > { %1230 = vmatpush1.bf16.msra.mxu0 %v1894_v29  ;;  %v1967_v62 = vld [vmem:[%s2258_s8 + $0xc] ss:$36 sps:$4 sm:$0xff]   ;;  %v1948_v3 = vld [vmem:[%s2251_s29 + $0xa0] ss:$8 sps:$4 sm:$0xff]  }
  0x45   : > { %1273 = vmatpush1.bf16.msra.mxu1 %v1895_v30  ;;  %1231 = vmatprep.subr.bf16.mxu0 %v1896_v31  ;;  %v1943_v0 = vld [vmem:[%s2251_s29 + $0x1b0] ss:$8 sps:$4 sm:$0xff]   ;;  %v1946_v2 = vld [vmem:[%s2251_s29 + $0x1a4] ss:$8 sps:$4 sm:$0xff]   ;;  %v1949_v4 = vld [vmem:[%s2251_s29 + $0x1a0] ss:$8 sps:$4 sm:$0xff]  }
  0x46   : > { %1274 = vmatprep.subr.bf16.mxu1 %v1898_v32  ;;  %1296 = vmatprep.mubr.bf16.mxu1 %v1967_v62  ;;  %v1950_v5 = vld [vmem:[%s2251_s29 + $0x94] ss:$8 sps:$4 sm:$0xff]   ;;  %v1954_v7 = vld [vmem:[%s2251_s29 + $0x90] ss:$8 sps:$4 sm:$0xff]   ;;  %v1956_v9 = vld [vmem:[%s2251_s29 + $0x84] ss:$8 sps:$4 sm:$0xff]  }
  0x47   : > { %v1952_v6 = vld [vmem:[%s2251_s29 + $0x194] ss:$8 sps:$4 sm:$0xff]   ;;  %v1955_v8 = vld [vmem:[%s2251_s29 + $0x190] ss:$8 sps:$4 sm:$0xff]   ;;  %v1958_v10 = vld [vmem:[%s2251_s29 + $0x184] ss:$8 sps:$4 sm:$0xff]  }
  0x48   : > { %1232 = vmatpush1.bf16.msra.mxu0 %v1900_v33  ;;  %v1960_v11 = vld [vmem:[%s2251_s29 + $0x80] ss:$8 sps:$4 sm:$0xff]   ;;  %v1970_v13 = vld [vmem:[%s2251_s29 + $0x274] ss:$8 sps:$4 sm:$0xff]   ;;  %v1968_v17 = vld [vmem:[%s2251_s29 + $0x270] ss:$8 sps:$4 sm:$0xff]  }
  0x49   : > { %1275 = vmatpush1.bf16.msra.mxu1 %v1901_v34  ;;  %1233 = vmatprep.subr.bf16.mxu0 %v1902_v35  ;;  %v1961_v12 = vld [vmem:[%s2251_s29 + $0x180] ss:$8 sps:$4 sm:$0xff]   ;;  %v1973_v14 = vld [vmem:[%s2251_s29 + $0x374] ss:$8 sps:$4 sm:$0xff]   ;;  %v1971_v18 = vld [vmem:[%s2251_s29 + $0x370] ss:$8 sps:$4 sm:$0xff]  }
  0x4a   : > { %1276 = vmatprep.subr.bf16.mxu1 %v1904_v36  ;;  %v1962_v15 = vld [vmem:[%s2258_s8] ss:$36 sps:$4 sm:$0xff]   ;;  %v1965_v16 = vld [vmem:[%s2258_s8 + $0x8] ss:$36 sps:$4 sm:$0xff]  }
  0x4b   : > { %v1976_v19 = vld [vmem:[%s2251_s29 + $0x264] ss:$8 sps:$4 sm:$0xff]   ;;  %v1974_v21 = vld [vmem:[%s2251_s29 + $0x260] ss:$8 sps:$4 sm:$0xff]   ;;  %v1982_v23 = vld [vmem:[%s2251_s29 + $0x254] ss:$8 sps:$4 sm:$0xff]  }
  0x4c   : > { %1234 = vmatpush1.bf16.msra.mxu0 %v1906_v37  ;;  %v1979_v20 = vld [vmem:[%s2251_s29 + $0x364] ss:$8 sps:$4 sm:$0xff]   ;;  %v1977_v22 = vld [vmem:[%s2251_s29 + $0x360] ss:$8 sps:$4 sm:$0xff]   ;;  %v1985_v24 = vld [vmem:[%s2251_s29 + $0x354] ss:$8 sps:$4 sm:$0xff]  }
  0x4d   : > { %1277 = vmatpush1.bf16.msra.mxu1 %v1907_v38  ;;  %1235 = vmatprep.subr.bf16.mxu0 %v1908_v39  ;;  %v1980_v25 = vld [vmem:[%s2251_s29 + $0x250] ss:$8 sps:$4 sm:$0xff]   ;;  %v1988_v27 = vld [vmem:[%s2251_s29 + $0x244] ss:$8 sps:$4 sm:$0xff]   ;;  %v1986_v29 = vld [vmem:[%s2251_s29 + $0x240] ss:$8 sps:$4 sm:$0xff]  }
  0x4e   : > { %1278 = vmatprep.subr.bf16.mxu1 %v1910_v40  ;;  %v1983_v26 = vld [vmem:[%s2251_s29 + $0x350] ss:$8 sps:$4 sm:$0xff]   ;;  %v1991_v28 = vld [vmem:[%s2251_s29 + $0x344] ss:$8 sps:$4 sm:$0xff]   ;;  %v1989_v30 = vld [vmem:[%s2251_s29 + $0x340] ss:$8 sps:$4 sm:$0xff]  }
  0x4f   : > { %v1994_v31 = vld [vmem:[%s2251_s29 + $0x234] ss:$8 sps:$4 sm:$0xff]   ;;  %v1992_v33 = vld [vmem:[%s2251_s29 + $0x230] ss:$8 sps:$4 sm:$0xff]   ;;  %v2000_v35 = vld [vmem:[%s2251_s29 + $0x224] ss:$8 sps:$4 sm:$0xff]  }
  0x50   : > { %1236 = vmatpush1.bf16.msra.mxu0 %v1912_v41  ;;  %v1997_v32 = vld [vmem:[%s2251_s29 + $0x334] ss:$8 sps:$4 sm:$0xff]   ;;  %v1995_v34 = vld [vmem:[%s2251_s29 + $0x330] ss:$8 sps:$4 sm:$0xff]   ;;  %v2003_v36 = vld [vmem:[%s2251_s29 + $0x324] ss:$8 sps:$4 sm:$0xff]  }
  0x51   : > { %1279 = vmatpush1.bf16.msra.mxu1 %v1913_v42  ;;  %1237 = vmatprep.subr.bf16.mxu0 %v1914_v43  ;;  %v1998_v37 = vld [vmem:[%s2251_s29 + $0x220] ss:$8 sps:$4 sm:$0xff]   ;;  %v2006_v39 = vld [vmem:[%s2251_s29 + $0x214] ss:$8 sps:$4 sm:$0xff]   ;;  %v2004_v41 = vld [vmem:[%s2251_s29 + $0x210] ss:$8 sps:$4 sm:$0xff]  }
  0x52   : > { %1280 = vmatprep.subr.bf16.mxu1 %v1916_v44  ;;  %v2001_v38 = vld [vmem:[%s2251_s29 + $0x320] ss:$8 sps:$4 sm:$0xff]   ;;  %v2009_v40 = vld [vmem:[%s2251_s29 + $0x314] ss:$8 sps:$4 sm:$0xff]   ;;  %v2007_v42 = vld [vmem:[%s2251_s29 + $0x310] ss:$8 sps:$4 sm:$0xff]  }
  0x53   : > { %v2012_v43 = vld [vmem:[%s2251_s29 + $0x204] ss:$8 sps:$4 sm:$0xff]   ;;  %v2031_v60 = vld [vmem:[%s2251_s29 + $0x3d0] ss:$8 sps:$4 sm:$0xff]  }
  0x54   : > { %1238 = vmatpush2.bf16.msra.mxu0 %v1918_v45  ;;  %v2015_v44 = vld [vmem:[%s2251_s29 + $0x304] ss:$8 sps:$4 sm:$0xff]   ;;  %v2066_v45 = vld [vmem:[%s2258_s8 + $0x14] ss:$36 sps:$4 sm:$0xff]  }
  0x55   : > { %1281 = vmatpush2.bf16.msra.mxu1 %v1919_v46  ;;  %1239 = vmatprep.subr.bf16.mxu0 %v1920_v47  ;;  %v2010_v46 = vld [vmem:[%s2251_s29 + $0x200] ss:$8 sps:$4 sm:$0xff]   ;;  %v2039_v62 = vld [vmem:[%s2251_s29 + $0x3c4] ss:$8 sps:$4 sm:$0xff]  }
  0x56   : > { %1282 = vmatprep.subr.bf16.mxu1 %v1922_v48  ;;  %v2013_v47 = vld [vmem:[%s2251_s29 + $0x300] ss:$8 sps:$4 sm:$0xff]  }
  0x57   : > { %v2072_v48 = vld [vmem:[%s2258_s8 + $0x1c] ss:$36 sps:$4 sm:$0xff]  }
  0x58   : > { %1240 = vmatpush2.bf16.msra.mxu0 %v1924_v49  ;;  %v2018_v49 = vld [vmem:[%s2251_s29 + $0x2f4] ss:$8 sps:$4 sm:$0xff]  }
  0x59   : > { %1283 = vmatpush2.bf16.msra.mxu1 %v1925_v50  ;;  %1241 = vmatprep.subr.bf16.mxu0 %v1926_v51  ;;  %v2021_v50 = vld [vmem:[%s2251_s29 + $0x3f4] ss:$8 sps:$4 sm:$0xff]   ;;  %v2016_v51 = vld [vmem:[%s2251_s29 + $0x2f0] ss:$8 sps:$4 sm:$0xff]  }
  0x5a   : > { %1284 = vmatprep.subr.bf16.mxu1 %v1928_v52  ;;  %v2019_v52 = vld [vmem:[%s2251_s29 + $0x3f0] ss:$8 sps:$4 sm:$0xff]  }
  0x5c   : > { %1242 = vmatpush2.bf16.msra.mxu0 %v1930_v53  ;;  %v2024_v53 = vld [vmem:[%s2251_s29 + $0x2e4] ss:$8 sps:$4 sm:$0xff]  }
  0x5d   : > { %1285 = vmatpush2.bf16.msra.mxu1 %v1931_v54  ;;  %1243 = vmatprep.subr.bf16.mxu0 %v1932_v55  ;;  %v2027_v54 = vld [vmem:[%s2251_s29 + $0x3e4] ss:$8 sps:$4 sm:$0xff]   ;;  %v2022_v55 = vld [vmem:[%s2251_s29 + $0x2e0] ss:$8 sps:$4 sm:$0xff]  }
  0x5e   : > { %1286 = vmatprep.subr.bf16.mxu1 %v1934_v56  ;;  %v2025_v56 = vld [vmem:[%s2251_s29 + $0x3e0] ss:$8 sps:$4 sm:$0xff]  }
  0x60   : > { %1244 = vmatpush2.bf16.msra.mxu0 %v1936_v57  ;;  %v2030_v57 = vld [vmem:[%s2251_s29 + $0x2d4] ss:$8 sps:$4 sm:$0xff]  }
  0x61   : > { %1287 = vmatpush2.bf16.msra.mxu1 %v1937_v58  ;;  %1245 = vmatprep.subr.bf16.mxu0 %v1938_v59  ;;  %v2033_v58 = vld [vmem:[%s2251_s29 + $0x3d4] ss:$8 sps:$4 sm:$0xff]   ;;  %v2028_v59 = vld [vmem:[%s2251_s29 + $0x2d0] ss:$8 sps:$4 sm:$0xff]  }
  0x62   : > { %1288 = vmatprep.subr.bf16.mxu1 %v1940_v61  ;;  %v2036_v61 = vld [vmem:[%s2251_s29 + $0x2c4] ss:$8 sps:$4 sm:$0xff]  }
  0x64   : > { %1246 = vmatpush2.bf16.msra.mxu0 %v1942_v63  ;;  %v2034_v63 = vld [vmem:[%s2251_s29 + $0x2c0] ss:$8 sps:$4 sm:$0xff]  }
  0x65   : > { %1289 = vmatpush2.bf16.msra.mxu1 %v1943_v0  ;;  %1247 = vmatprep.subr.bf16.mxu0 %v1944_v1  ;;  %v2037_v0 = vld [vmem:[%s2251_s29 + $0x3c0] ss:$8 sps:$4 sm:$0xff]   ;;  %v2042_v1 = vld [vmem:[%s2251_s29 + $0x2b4] ss:$8 sps:$4 sm:$0xff]  }
  0x66   : > { %1290 = vmatprep.subr.bf16.mxu1 %v1946_v2  ;;  %v2045_v2 = vld [vmem:[%s2251_s29 + $0x3b4] ss:$8 sps:$4 sm:$0xff]  }
  0x68   : > { %1248 = vmatpush2.bf16.msra.mxu0 %v1948_v3  ;;  %v2040_v3 = vld [vmem:[%s2251_s29 + $0x2b0] ss:$8 sps:$4 sm:$0xff]  }
  0x69   : > { %1291 = vmatpush2.bf16.msra.mxu1 %v1949_v4  ;;  %1249 = vmatprep.subr.bf16.mxu0 %v1950_v5  ;;  %v2043_v4 = vld [vmem:[%s2251_s29 + $0x3b0] ss:$8 sps:$4 sm:$0xff]   ;;  %v2048_v5 = vld [vmem:[%s2251_s29 + $0x2a4] ss:$8 sps:$4 sm:$0xff]  }
  0x6a   : > { %1292 = vmatprep.subr.bf16.mxu1 %v1952_v6  ;;  %v2051_v6 = vld [vmem:[%s2251_s29 + $0x3a4] ss:$8 sps:$4 sm:$0xff]  }
  0x6c   : > { %1250 = vmatpush2.bf16.msra.mxu0 %v1954_v7  ;;  %v2046_v7 = vld [vmem:[%s2251_s29 + $0x2a0] ss:$8 sps:$4 sm:$0xff]  }
  0x6d   : > { %1293 = vmatpush2.bf16.msra.mxu1 %v1955_v8  ;;  %1251 = vmatprep.subr.bf16.mxu0 %v1956_v9  ;;  %v2049_v8 = vld [vmem:[%s2251_s29 + $0x3a0] ss:$8 sps:$4 sm:$0xff]   ;;  %v2054_v9 = vld [vmem:[%s2251_s29 + $0x294] ss:$8 sps:$4 sm:$0xff]  }
  0x6e   : > { %1294 = vmatprep.subr.bf16.mxu1 %v1958_v10  ;;  %v2057_v10 = vld [vmem:[%s2251_s29 + $0x394] ss:$8 sps:$4 sm:$0xff]  }
  0x70   : > { %1252 = vmatpush2.bf16.msra.mxu0 %v1960_v11  ;;  %v2052_v11 = vld [vmem:[%s2251_s29 + $0x290] ss:$8 sps:$4 sm:$0xff]  }
  0x71   : > { %1295 = vmatpush2.bf16.msra.mxu1 %v1961_v12  ;;  %1307 = vmatprep.subr.bf16.mxu0 %v1970_v13  ;;  %v2055_v12 = vld [vmem:[%s2251_s29 + $0x390] ss:$8 sps:$4 sm:$0xff]   ;;  %v2060_v13 = vld [vmem:[%s2251_s29 + $0x284] ss:$8 sps:$4 sm:$0xff]  }
  0x72   : > { %1350 = vmatprep.subr.bf16.mxu1 %v1973_v14  ;;  %v2063_v14 = vld [vmem:[%s2251_s29 + $0x384] ss:$8 sps:$4 sm:$0xff]  }
  0x73   : > { %1254 = vmatmul.mubr.bf16.vlgmr.msra.gmra.mxu0 %v1962_v15  ;;  %v2058_v15 = vld [vmem:[%s2251_s29 + $0x280] ss:$8 sps:$4 sm:$0xff]  }
  0x74   : > { %1297 = vmatmul.mubr.bf16.vlgmr.msra.gmra.mxu1 %v1965_v16  ;;  %1308 = vmatpush1.bf16.msra.mxu0 %v1968_v17  ;;  %v2061_v16 = vld [vmem:[%s2251_s29 + $0x380] ss:$8 sps:$4 sm:$0xff]   ;;  %v2069_v17 = vld [vmem:[%s2251_s29 + $0x474] ss:$8 sps:$4 sm:$0xff]  }
  0x75   : > { %1351 = vmatpush1.bf16.msra.mxu1 %v1971_v18  ;;  %1309 = vmatprep.subr.bf16.mxu0 %v1976_v19  ;;  %v2064_v18 = vld [vmem:[%s2258_s8 + $0x10] ss:$36 sps:$4 sm:$0xff]   ;;  %v2070_v19 = vld [vmem:[%s2258_s8 + $0x18] ss:$36 sps:$4 sm:$0xff]  }
  0x76   : > { %1352 = vmatprep.subr.bf16.mxu1 %v1979_v20  ;;  %1339 = vmatprep.mubr.bf16.mxu0 %v2066_v45  ;;  %v2067_v20 = vld [vmem:[%s2251_s29 + $0x470] ss:$8 sps:$4 sm:$0xff]  }
  0x77   : > { %1382 = vmatprep.mubr.bf16.mxu1 %v2072_v48 }
  0x78   : > { %1310 = vmatpush1.bf16.msra.mxu0 %v1974_v21  ;;  %v2075_v21 = vld [vmem:[%s2251_s29 + $0x464] ss:$8 sps:$4 sm:$0xff]  }
  0x79   : > { %1353 = vmatpush1.bf16.msra.mxu1 %v1977_v22  ;;  %1311 = vmatprep.subr.bf16.mxu0 %v1982_v23  ;;  %v2073_v22 = vld [vmem:[%s2251_s29 + $0x460] ss:$8 sps:$4 sm:$0xff]   ;;  %v2156_v23 = vmov 0  }
  0x7a   : > { %1354 = vmatprep.subr.bf16.mxu1 %v1985_v24  ;;  %v2078_v24 = vld [vmem:[%s2251_s29 + $0x454] ss:$8 sps:$4 sm:$0xff]  }
  0x7c   : > { %1312 = vmatpush1.bf16.msra.mxu0 %v1980_v25  ;;  %v2076_v25 = vld [vmem:[%s2251_s29 + $0x450] ss:$8 sps:$4 sm:$0xff]  }
  0x7d   : > { %1355 = vmatpush1.bf16.msra.mxu1 %v1983_v26  ;;  %1313 = vmatprep.subr.bf16.mxu0 %v1988_v27  ;;  %v2081_v26 = vld [vmem:[%s2251_s29 + $0x444] ss:$8 sps:$4 sm:$0xff]   ;;  %v2079_v27 = vld [vmem:[%s2251_s29 + $0x440] ss:$8 sps:$4 sm:$0xff]  }
  0x7e   : > { %1356 = vmatprep.subr.bf16.mxu1 %v1991_v28  ;;  %v2084_v28 = vld [vmem:[%s2251_s29 + $0x434] ss:$8 sps:$4 sm:$0xff]  }
  0x80   : > { %1314 = vmatpush1.bf16.msra.mxu0 %v1986_v29  ;;  %v2082_v29 = vld [vmem:[%s2251_s29 + $0x430] ss:$8 sps:$4 sm:$0xff]  }
  0x81   : > { %1357 = vmatpush1.bf16.msra.mxu1 %v1989_v30  ;;  %1315 = vmatprep.subr.bf16.mxu0 %v1994_v31  ;;  %v2087_v30 = vld [vmem:[%s2251_s29 + $0x424] ss:$8 sps:$4 sm:$0xff]   ;;  %v2085_v31 = vld [vmem:[%s2251_s29 + $0x420] ss:$8 sps:$4 sm:$0xff]  }
  0x82   : > { %1358 = vmatprep.subr.bf16.mxu1 %v1997_v32  ;;  %v2090_v32 = vld [vmem:[%s2251_s29 + $0x414] ss:$8 sps:$4 sm:$0xff]  }
  0x84   : > { %1316 = vmatpush1.bf16.msra.mxu0 %v1992_v33  ;;  %v2088_v33 = vld [vmem:[%s2251_s29 + $0x410] ss:$8 sps:$4 sm:$0xff]  }
  0x85   : > { %1359 = vmatpush1.bf16.msra.mxu1 %v1995_v34  ;;  %1317 = vmatprep.subr.bf16.mxu0 %v2000_v35  ;;  %v2093_v34 = vld [vmem:[%s2251_s29 + $0x404] ss:$8 sps:$4 sm:$0xff]   ;;  %v2091_v35 = vld [vmem:[%s2251_s29 + $0x400] ss:$8 sps:$4 sm:$0xff]  }
  0x86   : > { %1360 = vmatprep.subr.bf16.mxu1 %v2003_v36  ;;  %v2094_v36 = vld [vmem:[%s2258_s8 + $0x20] ss:$36 sps:$4 sm:$0xff]  }
  0x88   : > { %1318 = vmatpush1.bf16.msra.mxu0 %v1998_v37 }
  0x89   : > { %1361 = vmatpush1.bf16.msra.mxu1 %v2001_v38  ;;  %1319 = vmatprep.subr.bf16.mxu0 %v2006_v39 }
  0x8a   : > { %1362 = vmatprep.subr.bf16.mxu1 %v2009_v40 }
  0x8c   : > { %1320 = vmatpush1.bf16.msra.mxu0 %v2004_v41 }
  0x8d   : > { %1363 = vmatpush1.bf16.msra.mxu1 %v2007_v42  ;;  %1321 = vmatprep.subr.bf16.mxu0 %v2012_v43 }
  0x8e   : > { %1364 = vmatprep.subr.bf16.mxu1 %v2015_v44 }
  0x90   : > { %1322 = vmatpush1.bf16.msra.mxu0 %v2010_v46 }
  0x91   : > { %1365 = vmatpush1.bf16.msra.mxu1 %v2013_v47  ;;  %1323 = vmatprep.subr.bf16.mxu0 %v2018_v49 }
  0x92   : > { %1366 = vmatprep.subr.bf16.mxu1 %v2021_v50 }
  0x94   : > { %1324 = vmatpush2.bf16.msra.mxu0 %v2016_v51 }
  0x95   : > { %1367 = vmatpush2.bf16.msra.mxu1 %v2019_v52  ;;  %1325 = vmatprep.subr.bf16.mxu0 %v2024_v53 }
  0x96   : > { %1368 = vmatprep.subr.bf16.mxu1 %v2027_v54 }
  0x98   : > { %1326 = vmatpush2.bf16.msra.mxu0 %v2022_v55 }
  0x99   : > { %1369 = vmatpush2.bf16.msra.mxu1 %v2025_v56  ;;  %1327 = vmatprep.subr.bf16.mxu0 %v2030_v57 }
  0x9a   : > { %1370 = vmatprep.subr.bf16.mxu1 %v2033_v58 }
  0x9c   : > { %1328 = vmatpush2.bf16.msra.mxu0 %v2028_v59 }
  0x9d   : > { %1371 = vmatpush2.bf16.msra.mxu1 %v2031_v60  ;;  %1329 = vmatprep.subr.bf16.mxu0 %v2036_v61  ;;  %v297_v60 = vld [vmem:[#allocation2 + $0x10] sm:$0xff] }
  0x9e   : > { %1372 = vmatprep.subr.bf16.mxu1 %v2039_v62 }
  0xa0   : > { %1330 = vmatpush2.bf16.msra.mxu0 %v2034_v63 }
  0xa1   : > { %1373 = vmatpush2.bf16.msra.mxu1 %v2037_v0  ;;  %1331 = vmatprep.subr.bf16.mxu0 %v2042_v1 }
  0xa2   : > { %1374 = vmatprep.subr.bf16.mxu1 %v2045_v2  ;;  %v298_v2 = vld [vmem:[#allocation2] sm:$0xff] }
  0xa4   : > { %1332 = vmatpush2.bf16.msra.mxu0 %v2040_v3 }
  0xa5   : > { %1375 = vmatpush2.bf16.msra.mxu1 %v2043_v4  ;;  %1333 = vmatprep.subr.bf16.mxu0 %v2048_v5 }
  0xa6   : > { %1376 = vmatprep.subr.bf16.mxu1 %v2051_v6 }
  0xa8   : > { %1334 = vmatpush2.bf16.msra.mxu0 %v2046_v7  ;;  %v299_v7 = vld [vmem:[#allocation2 + $0x18] sm:$0xff] }
  0xa9   : > { %1377 = vmatpush2.bf16.msra.mxu1 %v2049_v8  ;;  %1335 = vmatprep.subr.bf16.mxu0 %v2054_v9 }
  0xaa   : > { %1378 = vmatprep.subr.bf16.mxu1 %v2057_v10 }
  0xac   : > { %1336 = vmatpush2.bf16.msra.mxu0 %v2052_v11 }
  0xad   : > { %1379 = vmatpush2.bf16.msra.mxu1 %v2055_v12  ;;  %1337 = vmatprep.subr.bf16.mxu0 %v2060_v13  ;;  %v300_v12 = vld [vmem:[#allocation2 + $0x8] sm:$0xff] }
  0xae   : > { %1380 = vmatprep.subr.bf16.mxu1 %v2063_v14 }
  0xb0   : > { %1338 = vmatpush2.bf16.msra.mxu0 %v2058_v15 }
  0xb1   : > { %1381 = vmatpush2.bf16.msra.mxu1 %v2061_v16  ;;  %1393 = vmatprep.subr.bf16.mxu0 %v2069_v17 }
  0xb3   : > { %1340 = vmatmul.mubr.bf16.vlgmr.msra.gmra.mxu0 %v2064_v18 }
  0xb4   : > { %1383 = vmatmul.mubr.bf16.vlgmr.msra.gmra.mxu1 %v2070_v19  ;;  %1394 = vmatpush1.bf16.msra.mxu0 %v2067_v20 }
  0xb5   : > { %1425 = vmatprep.mubr.bf16.mxu0 %v2156_v23  ;;  %1395 = vmatprep.subr.bf16.mxu0 %v2075_v21 }
  0xb8   : > { %1396 = vmatpush1.bf16.msra.mxu0 %v2073_v22 }
  0xb9   : > { %1397 = vmatprep.subr.bf16.mxu0 %v2078_v24 }
  0xbc   : > { %1398 = vmatpush1.bf16.msra.mxu0 %v2076_v25 }
  0xbd   : > { %1399 = vmatprep.subr.bf16.mxu0 %v2081_v26 }
  0xc0   : > { %1400 = vmatpush1.bf16.msra.mxu0 %v2079_v27 }
  0xc1   : > { %1401 = vmatprep.subr.bf16.mxu0 %v2084_v28 }
  0xc4   : > { %1402 = vmatpush1.bf16.msra.mxu0 %v2082_v29 }
  0xc5   : > { %1403 = vmatprep.subr.bf16.mxu0 %v2087_v30 }
  0xc8   : > { %1404 = vmatpush1.bf16.msra.mxu0 %v2085_v31 }
  0xc9   : > { %1405 = vmatprep.subr.bf16.mxu0 %v2090_v32 }
  0xcc   : > { %1406 = vmatpush1.bf16.msra.mxu0 %v2088_v33 }
  0xcd   : > { %1407 = vmatprep.subr.bf16.mxu0 %v2093_v34 }
  0xd0   : > { %1408 = vmatpush1.bf16.msra.mxu0 %v2091_v35 }
  0xd3   : > { %1426 = vmatmul.mubr.bf16.vlgmr.msra.gmra.mxu0 %v2094_v36 }
 0x133   : > { %v1255_v37 = vpop.f32.mrf.mxu0 }
 0x134   : > { %v1298_v38 = vpop.f32.mrf.mxu1 }
 0x135   : > { %v1257_v39 = vpop.f32.mrf.mxu0  ;;  %v1299_v48 = vadd.f32 %v1298_v38, %v1255_v37 }
 0x136   : > { %v1300_v40 = vpop.f32.mrf.mxu1 }
 0x137   : > { %v1259_v41 = vpop.f32.mrf.mxu0  ;;  %v1301_v51 = vadd.f32 %v1300_v40, %v1257_v39 }
 0x138   : > { %v1302_v42 = vpop.f32.mrf.mxu1 }
 0x139   : > { %v1261_v43 = vpop.f32.mrf.mxu0  ;;  %v1303_v53 = vadd.f32 %v1302_v42, %v1259_v41 }
 0x13a   : > { %v1304_v45 = vpop.f32.mrf.mxu1 }
 0x13b   : > { %v1305_v57 = vadd.f32 %v1304_v45, %v1261_v43 }
 0x173   : > { %v1341_v44 = vpop.f32.mrf.mxu0 }
 0x174   : > { %v1384_v47 = vpop.f32.mrf.mxu1  ;;  %v1342_v52 = vadd.f32 %v1341_v44, %v1299_v48 }
 0x175   : > { %v1343_v46 = vpop.f32.mrf.mxu0 }
 0x176   : > { %v1386_v50 = vpop.f32.mrf.mxu1  ;;  %v1344_v54 = vadd.f32 %v1343_v46, %v1301_v51  ;;  %v1385_v58 = vadd.f32 %v1384_v47, %v1342_v52 }
 0x177   : > { %v1345_v49 = vpop.f32.mrf.mxu0 }
 0x178   : > { %v1388_v56 = vpop.f32.mrf.mxu1  ;;  %v1346_v59 = vadd.f32 %v1345_v49, %v1303_v53  ;;  %v1387_v62 = vadd.f32 %v1386_v50, %v1344_v54 }
 0x179   : > { %v1347_v55 = vpop.f32.mrf.mxu0 }
 0x17a   : > { %v1348_v63 = vadd.f32 %v1347_v55, %v1305_v57  ;;  %v1390_v1 = vpop.f32.mrf.mxu1  ;;  %v1389_v4 = vadd.f32 %v1388_v56, %v1346_v59 }
 0x17c   : > { %v1391_v9 = vadd.f32 %v1390_v1, %v1348_v63 }
 0x193   : > { %v1427_v61 = vpop.f32.mrf.mxu0 }
 0x194   : > { %v1428_v0 = vadd.f32 %v1427_v61, %v1385_v58 }
 0x195   : > { %v1429_v3 = vpop.f32.mrf.mxu0 }
 0x196   : > { %v1436_v5 = vadd.f32 %v1428_v0, %v297_v60  ;;  %v1430_v6 = vadd.f32 %v1429_v3, %v1387_v62 }
 0x197   : > { %v1431_v8 = vpop.f32.mrf.mxu0 }
 0x198   : > { %1440 = vst [vmem:[#allocation2 + $0x10] sm:$0xff] %v1436_v5  ;;  %v1437_v10 = vadd.f32 %v1430_v6, %v298_v2  ;;  %v1432_v11 = vadd.f32 %v1431_v8, %v1389_v4 }
 0x199   : > { %v1433_v13 = vpop.f32.mrf.mxu0 }
 0x19a   : > { %1441 = vst [vmem:[#allocation2] sm:$0xff] %v1437_v10  ;;  %v1438_v14 = vadd.f32 %v1432_v11, %v299_v7  ;;  %v1434_v15 = vadd.f32 %v1433_v13, %v1391_v9  ;;  %1447 = sbr.rel (%p1800_p13) target bundleno = 483 (0x1e3), region = 70 }
 0x19c   : > { %1442 = vst [vmem:[#allocation2 + $0x18] sm:$0xff] %v1438_v14  ;;  %v1439_v16 = vadd.f32 %v1434_v15, %v300_v12 }
 0x19e   : > { %1443 = vst [vmem:[#allocation2 + $0x8] sm:$0xff] %v1439_v16 }
 0x19f   : > { %v1448_v17 = vld [vmem:[#allocation2 + $0x10] sm:$0xff]  ;;  %v1503_v63 = vlaneseq  ;;  %v1501_v2 = vld [vmem:[%s2448_s2] sm:$0x3] }
 0x1a0   : > { %v1517_v4 = vld [vmem:[%s2449_s3] sm:$0x3] }
 0x1a1   : > { %v1449_v20 = vld [vmem:[#allocation2] sm:$0xff]  ;;  %v1504_v0 = vshrl.u32 %v1503_v63, 7 }
 0x1a3   : > { %v1450_v18 = vld [vmem:[#allocation2 + $0x18] sm:$0xff]  ;;  %v1505_v1 = vsub.s32 0, %v1504_v0  ;;  %v1509_v3 = vsub.s32 1, %v1504_v0 }
 0x1a4   : > { %v1452_v19 = vadd.f32 %v1450_v18, %v1448_v17 }
 0x1a5   : > { %v1451_v21 = vld [vmem:[#allocation2 + $0x8] sm:$0xff]  ;;  %v1506_v5 = vrot.slane %v1501_v2, %v1505_v1  ;;  %v1510_v7 = vrot.slane %v1501_v2, %v1509_v3  ;;  %v1522_v10 = vrot.slane %v1517_v4, %v1505_v1  ;;  %v1526_v13 = vrot.slane %v1517_v4, %v1509_v3 }
 0x1a6   : > { %v1459_v22 = vadd.f32 %v1451_v21, %v1449_v20  ;;  %v1453_v23 = vrot.slane %v1452_v19, 4 }
 0x1a8   : > { %v1460_v24 = vrot.slane %v1459_v22, 4  ;;  %v1454_v25 = vadd.f32 %v1453_v23, %v1452_v19 }
 0x1aa   : > { %v1461_v26 = vadd.f32 %v1460_v24, %v1459_v22  ;;  %v1455_v27 = vrot.slane %v1454_v25, 2 }
 0x1ac   : > { %v1462_v28 = vrot.slane %v1461_v26, 2  ;;  %v1456_v29 = vadd.f32 %v1455_v27, %v1454_v25 }
 0x1ae   : > { %v1463_v30 = vadd.f32 %v1462_v28, %v1461_v26  ;;  %v1457_v31 = vrot.slane %v1456_v29, 1 }
 0x1b0   : > { %v1464_v32 = vrot.slane %v1463_v30, 1  ;;  %v1458_v33 = vadd.f32 %v1457_v31, %v1456_v29 }
 0x1b2   : > { %v1465_v34 = vadd.f32 %v1464_v32, %v1463_v30  ;;  %v1467_v35 = vmul.f32 0.0625, %v1458_v33 }
 0x1b4   : > { %v1468_v36 = vmul.f32 0.0625, %v1465_v34  ;;  %v1469_v37 = vsub.f32 %v1448_v17, %v1467_v35  ;;  %v1471_v38 = vsub.f32 %v1450_v18, %v1467_v35 }
 0x1b6   : > { %v1470_v39 = vsub.f32 %v1449_v20, %v1468_v36  ;;  %v1472_v40 = vsub.f32 %v1451_v21, %v1468_v36  ;;  %v1473_v41 = vmul.f32 %v1469_v37, %v1469_v37  ;;  %v1475_v42 = vmul.f32 %v1471_v38, %v1471_v38 }
 0x1b8   : > { %v1474_v43 = vmul.f32 %v1470_v39, %v1470_v39  ;;  %v1476_v44 = vmul.f32 %v1472_v40, %v1472_v40  ;;  %v1477_v45 = vadd.f32 %v1475_v42, %v1473_v41 }
 0x1ba   : > { %v1484_v46 = vadd.f32 %v1476_v44, %v1474_v43  ;;  %v1478_v47 = vrot.slane %v1477_v45, 4 }
 0x1bc   : > { %v1485_v48 = vrot.slane %v1484_v46, 4  ;;  %v1479_v49 = vadd.f32 %v1478_v47, %v1477_v45 }
 0x1be   : > { %v1486_v50 = vadd.f32 %v1485_v48, %v1484_v46  ;;  %v1480_v51 = vrot.slane %v1479_v49, 2 }
 0x1c0   : > { %v1487_v52 = vrot.slane %v1486_v50, 2  ;;  %v1481_v53 = vadd.f32 %v1480_v51, %v1479_v49 }
 0x1c2   : > { %v1488_v54 = vadd.f32 %v1487_v52, %v1486_v50  ;;  %v1482_v55 = vrot.slane %v1481_v53, 1 }
 0x1c4   : > { %v1489_v56 = vrot.slane %v1488_v54, 1  ;;  %v1483_v57 = vadd.f32 %v1482_v55, %v1481_v53 }
 0x1c6   : > { %v1490_v58 = vadd.f32 %v1489_v56, %v1488_v54  ;;  %v1491_v59 = vmul.f32 0.0625, %v1483_v57 }
 0x1c8   : > { %v1492_v60 = vmul.f32 0.0625, %v1490_v58  ;;  %v1493_v61 = vadd.f32 1e-05, %v1491_v59 }
 0x1ca   : > { %v1494_v62 = vadd.f32 1e-05, %v1492_v60  ;;  %2095 = vrsqrt.f32 %v1493_v61 }
 0x1cc   : > { %2097 = vrsqrt.f32 %v1494_v62 }
 0x1d7   : > { %v2096_v6 = vpop.eup %2095 }
 0x1d8   : > { %v1497_v9 = vmul.f32 %v2096_v6, %v1469_v37  ;;  %v1499_v11 = vmul.f32 %v2096_v6, %v1471_v38 }
 0x1d9   : > { %v2098_v8 = vpop.eup %2097 }
 0x1da   : > { %v1498_v12 = vmul.f32 %v2098_v8, %v1470_v39  ;;  %v1500_v14 = vmul.f32 %v2098_v8, %v1472_v40  ;;  %v1513_v15 = vmul.f32 %v1506_v5, %v1497_v9  ;;  %v1515_v16 = vmul.f32 %v1506_v5, %v1499_v11 }
 0x1dc   : > { %v1514_v17 = vmul.f32 %v1510_v7, %v1498_v12  ;;  %v1516_v18 = vmul.f32 %v1510_v7, %v1500_v14  ;;  %v1529_v19 = vadd.f32 %v1522_v10, %v1513_v15  ;;  %v1531_v20 = vadd.f32 %v1522_v10, %v1515_v16 }
 0x1de   : > { %v1530_v21 = vadd.f32 %v1526_v13, %v1514_v17  ;;  %v1532_v22 = vadd.f32 %v1526_v13, %v1516_v18  ;;  %v1533_v23 = vmax.f32 %v1529_v19, 0.0  ;;  %v1535_v24 = vmax.f32 %v1531_v20, 0.0 }
 0x1e0   : > { %v1534_v25 = vmax.f32 %v1530_v21, 0.0  ;;  %v1536_v26 = vmax.f32 %v1532_v22, 0.0  ;;  %1537 = vst [vmem:[%s2256_s7] sm:$0xff] %v1533_v23  ;;  %1539 = vst [vmem:[%s2256_s7 + $0x10] sm:$0xff] %v1535_v24 }
 0x1e2   : > { %1538 = vst [vmem:[%s2256_s7 + $0x8] sm:$0xff] %v1534_v25  ;;  %1540 = vst [vmem:[%s2256_s7 + $0x18] sm:$0xff] %v1536_v26 }
 0x1e3 PF: > { %s14_s21 = sadd.s32 1, %s2153_s21   ;;  %s2451_s15 = smov %s2133_s16 }
 0x1e4   : > { %p11_p0 = scmp.ge.s32.totalorder %s14_s21, 6   ;;  %s2452_s16 = smov %s2233_s28 }
 0x1e5   : > { %s2453_s17 = smov %s2145_s19  ;;  %s2454_s18 = smov %s2149_s20 }
 0x1e6   : > { %s2455_s19 = smov %s2458_s22  ;;  %s2456_s20 = smov %s2462_s23 }
 0x1e7   :  { %13 = sbr.rel (!%p11_p0) target bundleno = 4 (0x4), region = 114 }

// kernel: forward.24
= control target key start
LH: loop header
LB: loop body
LE: loop exit
PB: predicated region body
PF: predicated region fallthrough
CT: control target
= control target key end

     0   :  { %s3577_s15 = smov 0   ;;  %s3579_s16 = smov 0   ;;  %s4025_s0 = inlined_call_operand.vmem [shape: bf16[2,4,2304], index: 0, kind: input, shape index: {}]   ;;  %s4026_s1 = inlined_call_operand.vmem [shape: bf16[2304,512], index: 1, kind: input, shape index: {}]   ;;  %s4027_s2 = inlined_call_operand.vmem [shape: f32[1,512], index: 2, kind: input, shape index: {}]   ;;  %s4028_s3 = inlined_call_operand.vmem [shape: f32[1,512], index: 3, kind: input, shape index: {}]   ;;  %s4029_s4 = inlined_call_operand.vmem [shape: f32[2,4,512], index: 4, kind: output, shape index: {}]  }
   0x1   :  { %s3581_s17 = smov 0   ;;  %s3583_s18 = smov 0  }
   0x2   :  { %s3585_s19 = smov 0  }
   0x3 LB: > { %s23_s20 = sadd.s32 1, %s3539_s17  ;;  %s26_s21 = sadd.s32 1, %s3543_s18  ;;  %s3547_s19 = sphi %s3585_s19, %s14_s19   ;;  %s3543_s18 = sphi %s3583_s18, %s4033_s18   ;;  %s3539_s17 = sphi %s3581_s17, %s4032_s17   ;;  %s3535_s16 = sphi %s3579_s16, %s4031_s16   ;;  %s3531_s15 = sphi %s3577_s15, %s4030_s15  }
   0x4   : > { %p24_p0 = scmp.ge.s32.totalorder %s23_s20, 2  ;;  %p2720_p1 = scmp.ge.s32.totalorder %s3547_s19, 1 }
   0x5   : > { %p193_p2 = scmp.lt.s32.totalorder %s3547_s19, 5 }
   0x6   : > { %s4035_s20 = smov (%p24_p0, %s23_s20), 0  ;;  %s4037_s21 = smov (!%p24_p0, %s26_s21), %s3543_s18 }
   0x7   : > { %p194_p3 = pnand %p2720_p1, %p193_p2  ;;  %p28_p4 = scmp.ge.s32.totalorder %s4037_s21, 2 }
   0x8   : > { %s229_s22 = smul.u32 (!%p194_p3), 9, %s3531_s15  ;;  %p230_p5 = scmp.lt.s32.totalorder (!%p194_p3), %s3535_s16, 1 }
   0x9   : > { %s4039_s21 = smov (%p28_p4, %s4037_s21), 0  ;;  %197 = sbr.rel (%p194_p3) target bundleno = 593 (0x251), region = 36 }
   0xa   : > { %s239_s23 = smul.u32 (!%p194_p3), 144, %s3531_s15  ;;  %p232_p6 = scmp.lt.s32.totalorder (!%p194_p3), %s229_s22, 17 }
   0xb   : > { %p2726_p8 = scmp.ne.s32.totalorder (!%p194_p3), %s3531_s15, 0 }
   0xc   : > { %p240_p7 = scmp.lt.s32.totalorder (!%p194_p3), %s239_s23, 287 }
   0xe   : > { %s4041_s16 = smov (!%p230_p5, %s3535_s16), 1  ;;  %s4043_s22 = smov (!%p232_p6, %s229_s22), 17 }
   0xf   : > { %s3021_s24 = smul.u32 18, %s4041_s16  ;;  %s3020_s25 = sshll.u32 %s4041_s16, 4 }
  0x10   : > { %s4045_s23 = smov (!%p240_p7, %s239_s23), 287  ;;  %s3614_s29 = scalar_lea.vmem %s4029_s4, %s3020_s25 }
  0x11   : > { %s235_s26 = sadd.s32 %s3021_s24, %s4043_s22  ;;  %s3019_s5 = sshll.u32 %s4045_s23, 4 }
  0x12   : > { %s2721_s30 = sshll.u32 %s235_s26, 1  ;;  %s3624_s11 = scalar_lea.vmem %s4026_s1, %s3019_s5 }
  0x13   : > { %s3619_s8 = scalar_lea.vmem %s4025_s0, %s2721_s30  ;;  %255 = sbr.rel (%p2726_p8) target bundleno = 26 (0x1a), region = 40 }
  0x18   : > { %v3549_v0 = vmov 0.0  }
  0x19   : > { %256 = vst [vmem:[#allocation2] sm:$0xff] %v3549_v0  ;;  %257 = vst [vmem:[#allocation2 + $0x8] sm:$0xff] %v3549_v0 }
  0x1a PF: > { %v3065_v1 = vld [vmem:[%s3624_s11 + $0xe4] ss:$16 sps:$4 sm:$0xff]   ;;  %v3069_v3 = vld [vmem:[%s3624_s11 + $0xe0] ss:$16 sps:$4 sm:$0xff]   ;;  %v3550_v37 = vmov 1983009808   ;;  %v558_v39 = vlaneseq }
  0x1b   : > { %v3067_v2 = vld [vmem:[%s3624_s11 + $0x2e4] ss:$16 sps:$4 sm:$0xff]   ;;  %2044 = vmatprep.subr.bf16.mxu0 %v3065_v1  ;;  %v3070_v4 = vld [vmem:[%s3624_s11 + $0x2e0] ss:$16 sps:$4 sm:$0xff]   ;;  %v556_v38 = vunpack.c.l.s4 %v3550_v37  ;;  %p3016_p9 = scmp.ne.s32.totalorder %s3531_s15, 1 }
  0x1c   : > { %2085 = vmatprep.subr.bf16.mxu1 %v3067_v2  ;;  %v3071_v5 = vld [vmem:[%s3624_s11 + $0xc4] ss:$16 sps:$4 sm:$0xff]   ;;  %2045 = vmatpush1.bf16.msra.mxu0 %v3069_v3  ;;  %v3075_v7 = vld [vmem:[%s3624_s11 + $0xc0] ss:$16 sps:$4 sm:$0xff]   ;;  %v3666_v44 = vshrl.u32 %v558_v39, 7  ;;  %v261_v39 = vld [vmem:[%s3619_s8 + $0x8] sm:$0xff] }
  0x1d   : > { %2086 = vmatpush1.bf16.msra.mxu1 %v3070_v4  ;;  %v3073_v6 = vld [vmem:[%s3624_s11 + $0x2c4] ss:$16 sps:$4 sm:$0xff]   ;;  %2046 = vmatprep.subr.bf16.mxu0 %v3071_v5  ;;  %v3076_v8 = vld [vmem:[%s3624_s11 + $0x2c0] ss:$16 sps:$4 sm:$0xff]   ;;  %v557_v43 = vunpack.c.0.s8 %v556_v38 }
  0x1e   : > { %2087 = vmatprep.subr.bf16.mxu1 %v3073_v6  ;;  %v3077_v9 = vld [vmem:[%s3624_s11 + $0xa4] ss:$16 sps:$4 sm:$0xff]   ;;  %v3081_v11 = vld [vmem:[%s3624_s11 + $0xa0] ss:$16 sps:$4 sm:$0xff]  }
  0x1f   : > { %v3079_v10 = vld [vmem:[%s3624_s11 + $0x2a4] ss:$16 sps:$4 sm:$0xff]   ;;  %v3082_v12 = vld [vmem:[%s3624_s11 + $0x2a0] ss:$16 sps:$4 sm:$0xff]   ;;  %v3674_v50 = vsub.s32 %v557_v43, %v3666_v44 }
  0x20   : > { %2047 = vmatpush1.bf16.msra.mxu0 %v3075_v7  ;;  %v3083_v13 = vld [vmem:[%s3624_s11 + $0x84] ss:$16 sps:$4 sm:$0xff]   ;;  %v3087_v15 = vld [vmem:[%s3624_s11 + $0x80] ss:$16 sps:$4 sm:$0xff]  }
  0x21   : > { %2088 = vmatpush1.bf16.msra.mxu1 %v3076_v8  ;;  %2048 = vmatprep.subr.bf16.mxu0 %v3077_v9  ;;  %v3085_v14 = vld [vmem:[%s3624_s11 + $0x284] ss:$16 sps:$4 sm:$0xff]   ;;  %v3088_v16 = vld [vmem:[%s3624_s11 + $0x280] ss:$16 sps:$4 sm:$0xff]  }
  0x22   : > { %2089 = vmatprep.subr.bf16.mxu1 %v3079_v10  ;;  %v3089_v17 = vld [vmem:[%s3624_s11 + $0x64] ss:$16 sps:$4 sm:$0xff]   ;;  %v3093_v19 = vld [vmem:[%s3624_s11 + $0x60] ss:$16 sps:$4 sm:$0xff]  }
  0x23   : > { %v3091_v18 = vld [vmem:[%s3624_s11 + $0x264] ss:$16 sps:$4 sm:$0xff]   ;;  %v3094_v20 = vld [vmem:[%s3624_s11 + $0x260] ss:$16 sps:$4 sm:$0xff]  }
  0x24   : > { %2049 = vmatpush1.bf16.msra.mxu0 %v3081_v11  ;;  %v3095_v21 = vld [vmem:[%s3624_s11 + $0x44] ss:$16 sps:$4 sm:$0xff]   ;;  %v3099_v23 = vld [vmem:[%s3624_s11 + $0x40] ss:$16 sps:$4 sm:$0xff]  }
  0x25   : > { %2090 = vmatpush1.bf16.msra.mxu1 %v3082_v12  ;;  %2050 = vmatprep.subr.bf16.mxu0 %v3083_v13  ;;  %v3097_v22 = vld [vmem:[%s3624_s11 + $0x244] ss:$16 sps:$4 sm:$0xff]   ;;  %v3100_v24 = vld [vmem:[%s3624_s11 + $0x240] ss:$16 sps:$4 sm:$0xff]  }
  0x26   : > { %2091 = vmatprep.subr.bf16.mxu1 %v3085_v14  ;;  %v3101_v25 = vld [vmem:[%s3624_s11 + $0x24] ss:$16 sps:$4 sm:$0xff]   ;;  %v3105_v27 = vld [vmem:[%s3624_s11 + $0x20] ss:$16 sps:$4 sm:$0xff]  }
  0x27   : > { %v3103_v26 = vld [vmem:[%s3624_s11 + $0x224] ss:$16 sps:$4 sm:$0xff]   ;;  %v3106_v28 = vld [vmem:[%s3624_s11 + $0x220] ss:$16 sps:$4 sm:$0xff]  }
  0x28   : > { %2051 = vmatpush1.bf16.msra.mxu0 %v3087_v15  ;;  %v3107_v29 = vld [vmem:[%s3624_s11 + $0x4] ss:$16 sps:$4 sm:$0xff]   ;;  %v3111_v31 = vld [vmem:[%s3624_s11] ss:$16 sps:$4 sm:$0xff]  }
  0x29   : > { %2092 = vmatpush1.bf16.msra.mxu1 %v3088_v16  ;;  %2052 = vmatprep.subr.bf16.mxu0 %v3089_v17  ;;  %v3109_v30 = vld [vmem:[%s3624_s11 + $0x204] ss:$16 sps:$4 sm:$0xff]   ;;  %v3112_v32 = vld [vmem:[%s3624_s11 + $0x200] ss:$16 sps:$4 sm:$0xff]  }
  0x2a   : > { %2093 = vmatprep.subr.bf16.mxu1 %v3091_v18  ;;  %v3113_v33 = vld [vmem:[%s3624_s11 + $0x1e4] ss:$16 sps:$4 sm:$0xff]   ;;  %v3117_v35 = vld [vmem:[%s3624_s11 + $0x1e0] ss:$16 sps:$4 sm:$0xff]  }
  0x2b   : > { %v3115_v34 = vld [vmem:[%s3624_s11 + $0x3e4] ss:$16 sps:$4 sm:$0xff]   ;;  %v3118_v36 = vld [vmem:[%s3624_s11 + $0x3e0] ss:$16 sps:$4 sm:$0xff]  }
  0x2c   : > { %2053 = vmatpush1.bf16.msra.mxu0 %v3093_v19  ;;  %v3119_v40 = vld [vmem:[%s3624_s11 + $0x1c4] ss:$16 sps:$4 sm:$0xff]   ;;  %v3123_v42 = vld [vmem:[%s3624_s11 + $0x1c0] ss:$16 sps:$4 sm:$0xff]  }
  0x2d   : > { %2094 = vmatpush1.bf16.msra.mxu1 %v3094_v20  ;;  %2054 = vmatprep.subr.bf16.mxu0 %v3095_v21  ;;  %v3121_v41 = vld [vmem:[%s3624_s11 + $0x3c4] ss:$16 sps:$4 sm:$0xff]   ;;  %v3124_v45 = vld [vmem:[%s3624_s11 + $0x3c0] ss:$16 sps:$4 sm:$0xff]  }
  0x2e   : > { %2095 = vmatprep.subr.bf16.mxu1 %v3097_v22  ;;  %v3125_v46 = vld [vmem:[%s3624_s11 + $0x1a4] ss:$16 sps:$4 sm:$0xff]   ;;  %v3129_v48 = vld [vmem:[%s3624_s11 + $0x1a0] ss:$16 sps:$4 sm:$0xff]  }
  0x2f   : > { %v3127_v47 = vld [vmem:[%s3624_s11 + $0x3a4] ss:$16 sps:$4 sm:$0xff]   ;;  %v3130_v49 = vld [vmem:[%s3624_s11 + $0x3a0] ss:$16 sps:$4 sm:$0xff]  }
  0x30   : > { %2055 = vmatpush1.bf16.msra.mxu0 %v3099_v23  ;;  %v3131_v51 = vld [vmem:[%s3624_s11 + $0x184] ss:$16 sps:$4 sm:$0xff]   ;;  %v3135_v54 = vld [vmem:[%s3624_s11 + $0x180] ss:$16 sps:$4 sm:$0xff]  }
  0x31   : > { %2096 = vmatpush1.bf16.msra.mxu1 %v3100_v24  ;;  %2056 = vmatprep.subr.bf16.mxu0 %v3101_v25  ;;  %v3133_v52 = vld [vmem:[%s3624_s11 + $0x384] ss:$16 sps:$4 sm:$0xff]   ;;  %v3136_v57 = vld [vmem:[%s3624_s11 + $0x380] ss:$16 sps:$4 sm:$0xff]  }
  0x32   : > { %2097 = vmatprep.subr.bf16.mxu1 %v3103_v26  ;;  %v260_v53 = vld [vmem:[%s3619_s8] sm:$0xff] }
  0x33   : > { %v3681_v55 = vrot.slane %v260_v53, %v3674_v50  ;;  %v554_v56 = vcombine.high %v260_v53, %v260_v53  ;;  %v3137_v58 = vld [vmem:[%s3624_s11 + $0x164] ss:$16 sps:$4 sm:$0xff]   ;;  %v3141_v62 = vld [vmem:[%s3624_s11 + $0x160] ss:$16 sps:$4 sm:$0xff]  }
  0x34   : > { %2057 = vmatpush1.bf16.msra.mxu0 %v3105_v27  ;;  %v3139_v59 = vld [vmem:[%s3624_s11 + $0x364] ss:$16 sps:$4 sm:$0xff]   ;;  %v3142_v0 = vld [vmem:[%s3624_s11 + $0x360] ss:$16 sps:$4 sm:$0xff]  }
  0x35   : > { %2098 = vmatpush1.bf16.msra.mxu1 %v3106_v28  ;;  %2058 = vmatprep.subr.bf16.mxu0 %v3107_v29  ;;  %v3688_v60 = vcombine.high %v3681_v55, %v3681_v55  ;;  %v3691_v61 = vrot.slane %v554_v56, %v3674_v50  ;;  %v3143_v1 = vld [vmem:[%s3624_s11 + $0x144] ss:$16 sps:$4 sm:$0xff]   ;;  %v3147_v3 = vld [vmem:[%s3624_s11 + $0x140] ss:$16 sps:$4 sm:$0xff]  }
  0x36   : > { %2099 = vmatprep.subr.bf16.mxu1 %v3109_v30  ;;  %v3145_v2 = vld [vmem:[%s3624_s11 + $0x344] ss:$16 sps:$4 sm:$0xff]   ;;  %v3148_v4 = vld [vmem:[%s3624_s11 + $0x340] ss:$16 sps:$4 sm:$0xff]  }
  0x37   : > { %2076 = vmatprep.mubr.bf16.mxu0 %v3688_v60  ;;  %v3697_v63 = vcombine.high %v3691_v61, %v3691_v61  ;;  %v3149_v5 = vld [vmem:[%s3624_s11 + $0x124] ss:$16 sps:$4 sm:$0xff]   ;;  %v3153_v7 = vld [vmem:[%s3624_s11 + $0x120] ss:$16 sps:$4 sm:$0xff]  }
  0x38   : > { %2059 = vmatpush1.bf16.msra.mxu0 %v3111_v31  ;;  %v3151_v6 = vld [vmem:[%s3624_s11 + $0x324] ss:$16 sps:$4 sm:$0xff]   ;;  %v3154_v8 = vld [vmem:[%s3624_s11 + $0x320] ss:$16 sps:$4 sm:$0xff]  }
  0x39   : > { %2100 = vmatpush1.bf16.msra.mxu1 %v3112_v32  ;;  %2060 = vmatprep.subr.bf16.mxu0 %v3113_v33  ;;  %v3155_v9 = vld [vmem:[%s3624_s11 + $0x104] ss:$16 sps:$4 sm:$0xff]   ;;  %v3159_v11 = vld [vmem:[%s3624_s11 + $0x100] ss:$16 sps:$4 sm:$0xff]  }
  0x3a   : > { %2101 = vmatprep.subr.bf16.mxu1 %v3115_v34  ;;  %2117 = vmatprep.mubr.bf16.mxu1 %v3697_v63  ;;  %v3157_v10 = vld [vmem:[%s3624_s11 + $0x304] ss:$16 sps:$4 sm:$0xff]   ;;  %v3160_v12 = vld [vmem:[%s3624_s11 + $0x300] ss:$16 sps:$4 sm:$0xff]  }
  0x3b   : > { %v3164_v13 = vld [vmem:[%s3624_s11 + $0x4e4] ss:$16 sps:$4 sm:$0xff]   ;;  %v3162_v15 = vld [vmem:[%s3624_s11 + $0x4e0] ss:$16 sps:$4 sm:$0xff]  }
  0x3c   : > { %2061 = vmatpush2.bf16.msra.mxu0 %v3117_v35  ;;  %v3167_v14 = vld [vmem:[%s3624_s11 + $0x6e4] ss:$16 sps:$4 sm:$0xff]   ;;  %v3165_v16 = vld [vmem:[%s3624_s11 + $0x6e0] ss:$16 sps:$4 sm:$0xff]  }
  0x3d   : > { %2102 = vmatpush2.bf16.msra.mxu1 %v3118_v36  ;;  %2062 = vmatprep.subr.bf16.mxu0 %v3119_v40  ;;  %v3170_v17 = vld [vmem:[%s3624_s11 + $0x4c4] ss:$16 sps:$4 sm:$0xff]   ;;  %v3168_v19 = vld [vmem:[%s3624_s11 + $0x4c0] ss:$16 sps:$4 sm:$0xff]   ;;  %v3743_v40 = vrot.slane %v261_v39, %v3674_v50 }
  0x3e   : > { %2103 = vmatprep.subr.bf16.mxu1 %v3121_v41  ;;  %v3173_v18 = vld [vmem:[%s3624_s11 + $0x6c4] ss:$16 sps:$4 sm:$0xff]   ;;  %v3171_v20 = vld [vmem:[%s3624_s11 + $0x6c0] ss:$16 sps:$4 sm:$0xff]   ;;  %v571_v41 = vcombine.high %v261_v39, %v261_v39 }
  0x3f   : > { %v3176_v21 = vld [vmem:[%s3624_s11 + $0x4a4] ss:$16 sps:$4 sm:$0xff]   ;;  %v3174_v23 = vld [vmem:[%s3624_s11 + $0x4a0] ss:$16 sps:$4 sm:$0xff]  }
  0x40   : > { %2063 = vmatpush2.bf16.msra.mxu0 %v3123_v42  ;;  %v3179_v22 = vld [vmem:[%s3624_s11 + $0x6a4] ss:$16 sps:$4 sm:$0xff]   ;;  %v3177_v24 = vld [vmem:[%s3624_s11 + $0x6a0] ss:$16 sps:$4 sm:$0xff]  }
  0x41   : > { %2104 = vmatpush2.bf16.msra.mxu1 %v3124_v45  ;;  %2064 = vmatprep.subr.bf16.mxu0 %v3125_v46  ;;  %v3182_v25 = vld [vmem:[%s3624_s11 + $0x484] ss:$16 sps:$4 sm:$0xff]   ;;  %v3180_v27 = vld [vmem:[%s3624_s11 + $0x480] ss:$16 sps:$4 sm:$0xff]   ;;  %v3749_v45 = vcombine.high %v3743_v40, %v3743_v40  ;;  %v3752_v46 = vrot.slane %v571_v41, %v3674_v50  ;;  %v3280_v41 = vld [vmem:[%s3624_s11 + $0x88] ss:$16 sps:$4 sm:$0xff]  }
  0x42   : > { %2105 = vmatprep.subr.bf16.mxu1 %v3127_v47  ;;  %v3185_v26 = vld [vmem:[%s3624_s11 + $0x684] ss:$16 sps:$4 sm:$0xff]   ;;  %v3183_v28 = vld [vmem:[%s3624_s11 + $0x680] ss:$16 sps:$4 sm:$0xff]  }
  0x43   : > { %v3188_v29 = vld [vmem:[%s3624_s11 + $0x464] ss:$16 sps:$4 sm:$0xff]   ;;  %v3186_v31 = vld [vmem:[%s3624_s11 + $0x460] ss:$16 sps:$4 sm:$0xff]  }
  0x44   : > { %2065 = vmatpush2.bf16.msra.mxu0 %v3129_v48  ;;  %v3191_v30 = vld [vmem:[%s3624_s11 + $0x664] ss:$16 sps:$4 sm:$0xff]   ;;  %v3189_v32 = vld [vmem:[%s3624_s11 + $0x660] ss:$16 sps:$4 sm:$0xff]  }
  0x45   : > { %2106 = vmatpush2.bf16.msra.mxu1 %v3130_v49  ;;  %2066 = vmatprep.subr.bf16.mxu0 %v3131_v51  ;;  %v3194_v33 = vld [vmem:[%s3624_s11 + $0x444] ss:$16 sps:$4 sm:$0xff]   ;;  %v3192_v35 = vld [vmem:[%s3624_s11 + $0x440] ss:$16 sps:$4 sm:$0xff]   ;;  %v3759_v49 = vcombine.high %v3752_v46, %v3752_v46 }
  0x46   : > { %2107 = vmatprep.subr.bf16.mxu1 %v3133_v52  ;;  %v3197_v34 = vld [vmem:[%s3624_s11 + $0x644] ss:$16 sps:$4 sm:$0xff]   ;;  %v3195_v36 = vld [vmem:[%s3624_s11 + $0x640] ss:$16 sps:$4 sm:$0xff]  }
  0x47   : > { %v3200_v37 = vld [vmem:[%s3624_s11 + $0x424] ss:$16 sps:$4 sm:$0xff]   ;;  %v3198_v42 = vld [vmem:[%s3624_s11 + $0x420] ss:$16 sps:$4 sm:$0xff]  }
  0x48   : > { %2067 = vmatpush2.bf16.msra.mxu0 %v3135_v54  ;;  %v3203_v38 = vld [vmem:[%s3624_s11 + $0x624] ss:$16 sps:$4 sm:$0xff]   ;;  %v3201_v43 = vld [vmem:[%s3624_s11 + $0x620] ss:$16 sps:$4 sm:$0xff]  }
  0x49   : > { %2108 = vmatpush2.bf16.msra.mxu1 %v3136_v57  ;;  %2068 = vmatprep.subr.bf16.mxu0 %v3137_v58  ;;  %v3206_v47 = vld [vmem:[%s3624_s11 + $0x404] ss:$16 sps:$4 sm:$0xff]   ;;  %v3204_v51 = vld [vmem:[%s3624_s11 + $0x400] ss:$16 sps:$4 sm:$0xff]  }
  0x4a   : > { %2109 = vmatprep.subr.bf16.mxu1 %v3139_v59  ;;  %v3209_v48 = vld [vmem:[%s3624_s11 + $0x604] ss:$16 sps:$4 sm:$0xff]   ;;  %v3207_v52 = vld [vmem:[%s3624_s11 + $0x600] ss:$16 sps:$4 sm:$0xff]  }
  0x4b   : > { %v3212_v50 = vld [vmem:[%s3624_s11 + $0x5e4] ss:$16 sps:$4 sm:$0xff]   ;;  %v3210_v54 = vld [vmem:[%s3624_s11 + $0x5e0] ss:$16 sps:$4 sm:$0xff]  }
  0x4c   : > { %2069 = vmatpush2.bf16.msra.mxu0 %v3141_v62  ;;  %v3215_v53 = vld [vmem:[%s3624_s11 + $0x7e4] ss:$16 sps:$4 sm:$0xff]   ;;  %v3213_v56 = vld [vmem:[%s3624_s11 + $0x7e0] ss:$16 sps:$4 sm:$0xff]  }
  0x4d   : > { %2110 = vmatpush2.bf16.msra.mxu1 %v3142_v0  ;;  %2070 = vmatprep.subr.bf16.mxu0 %v3143_v1  ;;  %v3218_v57 = vld [vmem:[%s3624_s11 + $0x5c4] ss:$16 sps:$4 sm:$0xff]   ;;  %v3216_v59 = vld [vmem:[%s3624_s11 + $0x5c0] ss:$16 sps:$4 sm:$0xff]  }
  0x4e   : > { %2111 = vmatprep.subr.bf16.mxu1 %v3145_v2  ;;  %v3221_v58 = vld [vmem:[%s3624_s11 + $0x7c4] ss:$16 sps:$4 sm:$0xff]   ;;  %v3219_v62 = vld [vmem:[%s3624_s11 + $0x7c0] ss:$16 sps:$4 sm:$0xff]  }
  0x4f   : > { %v3224_v0 = vld [vmem:[%s3624_s11 + $0x5a4] ss:$16 sps:$4 sm:$0xff]   ;;  %v3222_v2 = vld [vmem:[%s3624_s11 + $0x5a0] ss:$16 sps:$4 sm:$0xff]  }
  0x50   : > { %2071 = vmatpush2.bf16.msra.mxu0 %v3147_v3  ;;  %v3227_v1 = vld [vmem:[%s3624_s11 + $0x7a4] ss:$16 sps:$4 sm:$0xff]   ;;  %v3225_v3 = vld [vmem:[%s3624_s11 + $0x7a0] ss:$16 sps:$4 sm:$0xff]  }
  0x51   : > { %2112 = vmatpush2.bf16.msra.mxu1 %v3148_v4  ;;  %2072 = vmatprep.subr.bf16.mxu0 %v3149_v5  ;;  %v3230_v4 = vld [vmem:[%s3624_s11 + $0x584] ss:$16 sps:$4 sm:$0xff]   ;;  %v3277_v39 = vld [vmem:[%s3624_s11 + $0x880] ss:$16 sps:$4 sm:$0xff]  }
  0x52   : > { %2113 = vmatprep.subr.bf16.mxu1 %v3151_v6  ;;  %v3233_v5 = vld [vmem:[%s3624_s11 + $0x784] ss:$16 sps:$4 sm:$0xff]   ;;  %v3228_v6 = vld [vmem:[%s3624_s11 + $0x580] ss:$16 sps:$4 sm:$0xff]  }
  0x54   : > { %2073 = vmatpush2.bf16.msra.mxu0 %v3153_v7  ;;  %v3231_v7 = vld [vmem:[%s3624_s11 + $0x780] ss:$16 sps:$4 sm:$0xff]  }
  0x55   : > { %2114 = vmatpush2.bf16.msra.mxu1 %v3154_v8  ;;  %2074 = vmatprep.subr.bf16.mxu0 %v3155_v9  ;;  %v3236_v8 = vld [vmem:[%s3624_s11 + $0x564] ss:$16 sps:$4 sm:$0xff]  }
  0x56   : > { %2115 = vmatprep.subr.bf16.mxu1 %v3157_v10  ;;  %v3239_v9 = vld [vmem:[%s3624_s11 + $0x764] ss:$16 sps:$4 sm:$0xff]   ;;  %v3234_v10 = vld [vmem:[%s3624_s11 + $0x560] ss:$16 sps:$4 sm:$0xff]  }
  0x58   : > { %2075 = vmatpush2.bf16.msra.mxu0 %v3159_v11  ;;  %v3237_v11 = vld [vmem:[%s3624_s11 + $0x760] ss:$16 sps:$4 sm:$0xff]  }
  0x59   : > { %2116 = vmatpush2.bf16.msra.mxu1 %v3160_v12  ;;  %2126 = vmatprep.subr.bf16.mxu0 %v3164_v13  ;;  %v3242_v12 = vld [vmem:[%s3624_s11 + $0x544] ss:$16 sps:$4 sm:$0xff]  }
  0x5a   : > { %2167 = vmatprep.subr.bf16.mxu1 %v3167_v14  ;;  %v3245_v13 = vld [vmem:[%s3624_s11 + $0x744] ss:$16 sps:$4 sm:$0xff]   ;;  %v3240_v14 = vld [vmem:[%s3624_s11 + $0x540] ss:$16 sps:$4 sm:$0xff]  }
  0x5b   : > { %2077 = vmatmul.mubr.bf16.vlgmr.msra.gmra.mxu0 %v3681_v55 }
  0x5c   : > { %2118 = vmatmul.mubr.bf16.vlgmr.msra.gmra.mxu1 %v3691_v61  ;;  %2127 = vmatpush1.bf16.msra.mxu0 %v3162_v15  ;;  %v3243_v15 = vld [vmem:[%s3624_s11 + $0x740] ss:$16 sps:$4 sm:$0xff]  }
  0x5d   : > { %2168 = vmatpush1.bf16.msra.mxu1 %v3165_v16  ;;  %2128 = vmatprep.subr.bf16.mxu0 %v3170_v17  ;;  %v3248_v16 = vld [vmem:[%s3624_s11 + $0x524] ss:$16 sps:$4 sm:$0xff]  }
  0x5e   : > { %2169 = vmatprep.subr.bf16.mxu1 %v3173_v18  ;;  %2158 = vmatprep.mubr.bf16.mxu0 %v3749_v45  ;;  %v3251_v17 = vld [vmem:[%s3624_s11 + $0x724] ss:$16 sps:$4 sm:$0xff]   ;;  %v3246_v18 = vld [vmem:[%s3624_s11 + $0x520] ss:$16 sps:$4 sm:$0xff]  }
  0x5f   : > { %2199 = vmatprep.mubr.bf16.mxu1 %v3759_v49 }
  0x60   : > { %2129 = vmatpush1.bf16.msra.mxu0 %v3168_v19  ;;  %v3249_v19 = vld [vmem:[%s3624_s11 + $0x720] ss:$16 sps:$4 sm:$0xff]  }
  0x61   : > { %2170 = vmatpush1.bf16.msra.mxu1 %v3171_v20  ;;  %2130 = vmatprep.subr.bf16.mxu0 %v3176_v21  ;;  %v3254_v20 = vld [vmem:[%s3624_s11 + $0x504] ss:$16 sps:$4 sm:$0xff]  }
  0x62   : > { %2171 = vmatprep.subr.bf16.mxu1 %v3179_v22  ;;  %v3257_v21 = vld [vmem:[%s3624_s11 + $0x704] ss:$16 sps:$4 sm:$0xff]   ;;  %v3252_v22 = vld [vmem:[%s3624_s11 + $0x500] ss:$16 sps:$4 sm:$0xff]  }
  0x64   : > { %2131 = vmatpush1.bf16.msra.mxu0 %v3174_v23  ;;  %v3255_v23 = vld [vmem:[%s3624_s11 + $0x700] ss:$16 sps:$4 sm:$0xff]  }
  0x65   : > { %2172 = vmatpush1.bf16.msra.mxu1 %v3177_v24  ;;  %2132 = vmatprep.subr.bf16.mxu0 %v3182_v25  ;;  %v3261_v24 = vld [vmem:[%s3624_s11 + $0x8e4] ss:$16 sps:$4 sm:$0xff]   ;;  %v3264_v25 = vld [vmem:[%s3624_s11 + $0xec] ss:$16 sps:$4 sm:$0xff]  }
  0x66   : > { %2173 = vmatprep.subr.bf16.mxu1 %v3185_v26  ;;  %v3259_v26 = vld [vmem:[%s3624_s11 + $0x8e0] ss:$16 sps:$4 sm:$0xff]  }
  0x68   : > { %2133 = vmatpush1.bf16.msra.mxu0 %v3180_v27  ;;  %v3262_v27 = vld [vmem:[%s3624_s11 + $0xe8] ss:$16 sps:$4 sm:$0xff]  }
  0x69   : > { %2174 = vmatpush1.bf16.msra.mxu1 %v3183_v28  ;;  %2134 = vmatprep.subr.bf16.mxu0 %v3188_v29  ;;  %v3267_v28 = vld [vmem:[%s3624_s11 + $0x8c4] ss:$16 sps:$4 sm:$0xff]   ;;  %v3270_v29 = vld [vmem:[%s3624_s11 + $0xcc] ss:$16 sps:$4 sm:$0xff]  }
  0x6a   : > { %2175 = vmatprep.subr.bf16.mxu1 %v3191_v30  ;;  %v3265_v30 = vld [vmem:[%s3624_s11 + $0x8c0] ss:$16 sps:$4 sm:$0xff]  }
  0x6c   : > { %2135 = vmatpush1.bf16.msra.mxu0 %v3186_v31  ;;  %v3268_v31 = vld [vmem:[%s3624_s11 + $0xc8] ss:$16 sps:$4 sm:$0xff]  }
  0x6d   : > { %2176 = vmatpush1.bf16.msra.mxu1 %v3189_v32  ;;  %2136 = vmatprep.subr.bf16.mxu0 %v3194_v33  ;;  %v3273_v32 = vld [vmem:[%s3624_s11 + $0x8a4] ss:$16 sps:$4 sm:$0xff]   ;;  %v3276_v33 = vld [vmem:[%s3624_s11 + $0xac] ss:$16 sps:$4 sm:$0xff]  }
  0x6e   : > { %2177 = vmatprep.subr.bf16.mxu1 %v3197_v34  ;;  %v3551_v34 = vmov 0  }
  0x70   : > { %2137 = vmatpush1.bf16.msra.mxu0 %v3192_v35  ;;  %v3271_v35 = vld [vmem:[%s3624_s11 + $0x8a0] ss:$16 sps:$4 sm:$0xff]  }
  0x71   : > { %2178 = vmatpush1.bf16.msra.mxu1 %v3195_v36  ;;  %2138 = vmatprep.subr.bf16.mxu0 %v3200_v37  ;;  %v3274_v36 = vld [vmem:[%s3624_s11 + $0xa8] ss:$16 sps:$4 sm:$0xff]   ;;  %v3279_v37 = vld [vmem:[%s3624_s11 + $0x884] ss:$16 sps:$4 sm:$0xff]  }
  0x72   : > { %2179 = vmatprep.subr.bf16.mxu1 %v3203_v38  ;;  %v3282_v38 = vld [vmem:[%s3624_s11 + $0x8c] ss:$16 sps:$4 sm:$0xff]  }
  0x74   : > { %2139 = vmatpush1.bf16.msra.mxu0 %v3198_v42  ;;  %v3288_v42 = vld [vmem:[%s3624_s11 + $0x6c] ss:$16 sps:$4 sm:$0xff]  }
  0x75   : > { %2180 = vmatpush1.bf16.msra.mxu1 %v3201_v43  ;;  %2140 = vmatprep.subr.bf16.mxu0 %v3206_v47  ;;  %v3283_v43 = vld [vmem:[%s3624_s11 + $0x860] ss:$16 sps:$4 sm:$0xff]   ;;  %v3286_v47 = vld [vmem:[%s3624_s11 + $0x68] ss:$16 sps:$4 sm:$0xff]  }
  0x76   : > { %2181 = vmatprep.subr.bf16.mxu1 %v3209_v48  ;;  %v3291_v48 = vld [vmem:[%s3624_s11 + $0x844] ss:$16 sps:$4 sm:$0xff]  }
  0x78   : > { %2141 = vmatpush1.bf16.msra.mxu0 %v3204_v51  ;;  %v3294_v51 = vld [vmem:[%s3624_s11 + $0x4c] ss:$16 sps:$4 sm:$0xff]  }
  0x79   : > { %2182 = vmatpush1.bf16.msra.mxu1 %v3207_v52  ;;  %2142 = vmatprep.subr.bf16.mxu0 %v3212_v50  ;;  %v3289_v52 = vld [vmem:[%s3624_s11 + $0x840] ss:$16 sps:$4 sm:$0xff]   ;;  %v3292_v50 = vld [vmem:[%s3624_s11 + $0x48] ss:$16 sps:$4 sm:$0xff]  }
  0x7a   : > { %2183 = vmatprep.subr.bf16.mxu1 %v3215_v53  ;;  %v3297_v53 = vld [vmem:[%s3624_s11 + $0x824] ss:$16 sps:$4 sm:$0xff]  }
  0x7c   : > { %2143 = vmatpush2.bf16.msra.mxu0 %v3210_v54  ;;  %v3300_v54 = vld [vmem:[%s3624_s11 + $0x2c] ss:$16 sps:$4 sm:$0xff]  }
  0x7d   : > { %2184 = vmatpush2.bf16.msra.mxu1 %v3213_v56  ;;  %2144 = vmatprep.subr.bf16.mxu0 %v3218_v57  ;;  %v3295_v56 = vld [vmem:[%s3624_s11 + $0x820] ss:$16 sps:$4 sm:$0xff]   ;;  %v3298_v57 = vld [vmem:[%s3624_s11 + $0x28] ss:$16 sps:$4 sm:$0xff]  }
  0x7e   : > { %2185 = vmatprep.subr.bf16.mxu1 %v3221_v58  ;;  %v3303_v58 = vld [vmem:[%s3624_s11 + $0x804] ss:$16 sps:$4 sm:$0xff]  }
  0x80   : > { %2145 = vmatpush2.bf16.msra.mxu0 %v3216_v59  ;;  %v3306_v59 = vld [vmem:[%s3624_s11 + $0xc] ss:$16 sps:$4 sm:$0xff]  }
  0x81   : > { %2186 = vmatpush2.bf16.msra.mxu1 %v3219_v62  ;;  %2146 = vmatprep.subr.bf16.mxu0 %v3224_v0  ;;  %v3301_v62 = vld [vmem:[%s3624_s11 + $0x800] ss:$16 sps:$4 sm:$0xff]   ;;  %v3304_v0 = vld [vmem:[%s3624_s11 + $0x8] ss:$16 sps:$4 sm:$0xff]  }
  0x82   : > { %2187 = vmatprep.subr.bf16.mxu1 %v3227_v1  ;;  %v3309_v1 = vld [vmem:[%s3624_s11 + $0x1ec] ss:$16 sps:$4 sm:$0xff]  }
  0x84   : > { %2147 = vmatpush2.bf16.msra.mxu0 %v3222_v2  ;;  %v3312_v2 = vld [vmem:[%s3624_s11 + $0x2ec] ss:$16 sps:$4 sm:$0xff]  }
  0x85   : > { %2188 = vmatpush2.bf16.msra.mxu1 %v3225_v3  ;;  %2148 = vmatprep.subr.bf16.mxu0 %v3230_v4  ;;  %v3835_v3 = vld.sshfl [vmem:[%s3619_s8 + $0x10] sm:$0x3 pattern:$0x76325410]  ;;  %v3307_v4 = vld [vmem:[%s3624_s11 + $0x1e8] ss:$16 sps:$4 sm:$0xff]  }
  0x86   : > { %2189 = vmatprep.subr.bf16.mxu1 %v3233_v5  ;;  %v3310_v5 = vld [vmem:[%s3624_s11 + $0x2e8] ss:$16 sps:$4 sm:$0xff]  }
  0x88   : > { %2149 = vmatpush2.bf16.msra.mxu0 %v3228_v6  ;;  %v3315_v6 = vld [vmem:[%s3624_s11 + $0x1cc] ss:$16 sps:$4 sm:$0xff]  }
  0x89   : > { %2190 = vmatpush2.bf16.msra.mxu1 %v3231_v7  ;;  %2150 = vmatprep.subr.bf16.mxu0 %v3236_v8  ;;  %v3318_v7 = vld [vmem:[%s3624_s11 + $0x2cc] ss:$16 sps:$4 sm:$0xff]   ;;  %v3313_v8 = vld [vmem:[%s3624_s11 + $0x1c8] ss:$16 sps:$4 sm:$0xff]  }
  0x8a   : > { %2191 = vmatprep.subr.bf16.mxu1 %v3239_v9  ;;  %v3316_v9 = vld [vmem:[%s3624_s11 + $0x2c8] ss:$16 sps:$4 sm:$0xff]  }
  0x8c   : > { %2151 = vmatpush2.bf16.msra.mxu0 %v3234_v10  ;;  %v3321_v10 = vld [vmem:[%s3624_s11 + $0x1ac] ss:$16 sps:$4 sm:$0xff]  }
  0x8d   : > { %2192 = vmatpush2.bf16.msra.mxu1 %v3237_v11  ;;  %2152 = vmatprep.subr.bf16.mxu0 %v3242_v12  ;;  %v3324_v11 = vld [vmem:[%s3624_s11 + $0x2ac] ss:$16 sps:$4 sm:$0xff]   ;;  %v3319_v12 = vld [vmem:[%s3624_s11 + $0x1a8] ss:$16 sps:$4 sm:$0xff]  }
  0x8e   : > { %2193 = vmatprep.subr.bf16.mxu1 %v3245_v13  ;;  %v3322_v13 = vld [vmem:[%s3624_s11 + $0x2a8] ss:$16 sps:$4 sm:$0xff]  }
  0x90   : > { %2153 = vmatpush2.bf16.msra.mxu0 %v3240_v14  ;;  %v3327_v14 = vld [vmem:[%s3624_s11 + $0x18c] ss:$16 sps:$4 sm:$0xff]  }
  0x91   : > { %2194 = vmatpush2.bf16.msra.mxu1 %v3243_v15  ;;  %2154 = vmatprep.subr.bf16.mxu0 %v3248_v16  ;;  %v3330_v15 = vld [vmem:[%s3624_s11 + $0x28c] ss:$16 sps:$4 sm:$0xff]   ;;  %v3325_v16 = vld [vmem:[%s3624_s11 + $0x188] ss:$16 sps:$4 sm:$0xff]  }
  0x92   : > { %2195 = vmatprep.subr.bf16.mxu1 %v3251_v17  ;;  %v3328_v17 = vld [vmem:[%s3624_s11 + $0x288] ss:$16 sps:$4 sm:$0xff]  }
  0x94   : > { %2155 = vmatpush2.bf16.msra.mxu0 %v3246_v18  ;;  %v3336_v18 = vld [vmem:[%s3624_s11 + $0x26c] ss:$16 sps:$4 sm:$0xff]  }
  0x95   : > { %2196 = vmatpush2.bf16.msra.mxu1 %v3249_v19  ;;  %2156 = vmatprep.subr.bf16.mxu0 %v3254_v20  ;;  %v3331_v19 = vld [vmem:[%s3624_s11 + $0x168] ss:$16 sps:$4 sm:$0xff]  }
  0x96   : > { %2197 = vmatprep.subr.bf16.mxu1 %v3257_v21  ;;  %v3334_v20 = vld [vmem:[%s3624_s11 + $0x268] ss:$16 sps:$4 sm:$0xff]   ;;  %v3339_v21 = vld [vmem:[%s3624_s11 + $0x14c] ss:$16 sps:$4 sm:$0xff]  }
  0x98   : > { %2157 = vmatpush2.bf16.msra.mxu0 %v3252_v22  ;;  %v3342_v22 = vld [vmem:[%s3624_s11 + $0x24c] ss:$16 sps:$4 sm:$0xff]  }
  0x99   : > { %2198 = vmatpush2.bf16.msra.mxu1 %v3255_v23  ;;  %2208 = vmatprep.subr.bf16.mxu0 %v3261_v24  ;;  %v3337_v23 = vld [vmem:[%s3624_s11 + $0x148] ss:$16 sps:$4 sm:$0xff]  }
  0x9a   : > { %2249 = vmatprep.subr.bf16.mxu1 %v3264_v25  ;;  %v3340_v24 = vld [vmem:[%s3624_s11 + $0x248] ss:$16 sps:$4 sm:$0xff]   ;;  %v3345_v25 = vld [vmem:[%s3624_s11 + $0x12c] ss:$16 sps:$4 sm:$0xff]  }
  0x9b   : > { %2159 = vmatmul.mubr.bf16.vlgmr.msra.gmra.mxu0 %v3743_v40 }
  0x9c   : > { %2200 = vmatmul.mubr.bf16.vlgmr.msra.gmra.mxu1 %v3752_v46  ;;  %2209 = vmatpush1.bf16.msra.mxu0 %v3259_v26  ;;  %v3348_v26 = vld [vmem:[%s3624_s11 + $0x22c] ss:$16 sps:$4 sm:$0xff]  }
  0x9d   : > { %2250 = vmatpush1.bf16.msra.mxu1 %v3262_v27  ;;  %2210 = vmatprep.subr.bf16.mxu0 %v3267_v28  ;;  %v3343_v27 = vld [vmem:[%s3624_s11 + $0x128] ss:$16 sps:$4 sm:$0xff]  }
  0x9e   : > { %2251 = vmatprep.subr.bf16.mxu1 %v3270_v29  ;;  %2240 = vmatprep.mubr.bf16.mxu0 %v3551_v34  ;;  %v3346_v28 = vld [vmem:[%s3624_s11 + $0x228] ss:$16 sps:$4 sm:$0xff]   ;;  %v3351_v29 = vld [vmem:[%s3624_s11 + $0x10c] ss:$16 sps:$4 sm:$0xff]  }
  0x9f   : > { %2281 = vmatprep.mubr.bf16.mxu1 %v3688_v60  ;;  %v3285_v60 = vld [vmem:[%s3624_s11 + $0x864] ss:$16 sps:$4 sm:$0xff]  }
  0xa0   : > { %2211 = vmatpush1.bf16.msra.mxu0 %v3265_v30  ;;  %v3354_v30 = vld [vmem:[%s3624_s11 + $0x20c] ss:$16 sps:$4 sm:$0xff]  }
  0xa1   : > { %2252 = vmatpush1.bf16.msra.mxu1 %v3268_v31  ;;  %2212 = vmatprep.subr.bf16.mxu0 %v3273_v32  ;;  %v3349_v31 = vld [vmem:[%s3624_s11 + $0x108] ss:$16 sps:$4 sm:$0xff]  }
  0xa2   : > { %2253 = vmatprep.subr.bf16.mxu1 %v3276_v33  ;;  %v3352_v32 = vld [vmem:[%s3624_s11 + $0x208] ss:$16 sps:$4 sm:$0xff]   ;;  %v3357_v33 = vld [vmem:[%s3624_s11 + $0x3ec] ss:$16 sps:$4 sm:$0xff]  }
  0xa4   : > { %2213 = vmatpush1.bf16.msra.mxu0 %v3271_v35  ;;  %v3360_v35 = vld [vmem:[%s3624_s11 + $0x4ec] ss:$16 sps:$4 sm:$0xff]  }
  0xa5   : > { %2254 = vmatpush1.bf16.msra.mxu1 %v3274_v36  ;;  %2214 = vmatprep.subr.bf16.mxu0 %v3279_v37  ;;  %v3355_v36 = vld [vmem:[%s3624_s11 + $0x3e8] ss:$16 sps:$4 sm:$0xff]  }
  0xa6   : > { %2255 = vmatprep.subr.bf16.mxu1 %v3282_v38  ;;  %v3358_v37 = vld [vmem:[%s3624_s11 + $0x4e8] ss:$16 sps:$4 sm:$0xff]   ;;  %v3363_v38 = vld [vmem:[%s3624_s11 + $0x3cc] ss:$16 sps:$4 sm:$0xff]  }
  0xa8   : > { %2215 = vmatpush1.bf16.msra.mxu0 %v3277_v39  ;;  %v3366_v39 = vld [vmem:[%s3624_s11 + $0x4cc] ss:$16 sps:$4 sm:$0xff]  }
  0xa9   : > { %2256 = vmatpush1.bf16.msra.mxu1 %v3280_v41  ;;  %2216 = vmatprep.subr.bf16.mxu0 %v3285_v60  ;;  %v3361_v41 = vld [vmem:[%s3624_s11 + $0x3c8] ss:$16 sps:$4 sm:$0xff]  }
  0xaa   : > { %2257 = vmatprep.subr.bf16.mxu1 %v3288_v42  ;;  %v3364_v60 = vld [vmem:[%s3624_s11 + $0x4c8] ss:$16 sps:$4 sm:$0xff]   ;;  %v3369_v42 = vld [vmem:[%s3624_s11 + $0x3ac] ss:$16 sps:$4 sm:$0xff]  }
  0xac   : > { %2217 = vmatpush1.bf16.msra.mxu0 %v3283_v43  ;;  %v3372_v43 = vld [vmem:[%s3624_s11 + $0x4ac] ss:$16 sps:$4 sm:$0xff]  }
  0xad   : > { %2258 = vmatpush1.bf16.msra.mxu1 %v3286_v47  ;;  %2218 = vmatprep.subr.bf16.mxu0 %v3291_v48  ;;  %v3367_v47 = vld [vmem:[%s3624_s11 + $0x3a8] ss:$16 sps:$4 sm:$0xff]   ;;  %v3375_v48 = vld [vmem:[%s3624_s11 + $0x38c] ss:$16 sps:$4 sm:$0xff]  }
  0xae   : > { %2259 = vmatprep.subr.bf16.mxu1 %v3294_v51  ;;  %v3378_v51 = vld [vmem:[%s3624_s11 + $0x48c] ss:$16 sps:$4 sm:$0xff]  }
  0xb0   : > { %2219 = vmatpush1.bf16.msra.mxu0 %v3289_v52  ;;  %v3373_v52 = vld [vmem:[%s3624_s11 + $0x388] ss:$16 sps:$4 sm:$0xff]  }
  0xb1   : > { %2260 = vmatpush1.bf16.msra.mxu1 %v3292_v50  ;;  %2220 = vmatprep.subr.bf16.mxu0 %v3297_v53  ;;  %v3376_v50 = vld [vmem:[%s3624_s11 + $0x488] ss:$16 sps:$4 sm:$0xff]   ;;  %v3384_v53 = vld [vmem:[%s3624_s11 + $0x46c] ss:$16 sps:$4 sm:$0xff]  }
  0xb2   : > { %2261 = vmatprep.subr.bf16.mxu1 %v3300_v54  ;;  %v3379_v54 = vld [vmem:[%s3624_s11 + $0x368] ss:$16 sps:$4 sm:$0xff]  }
  0xb4   : > { %2221 = vmatpush1.bf16.msra.mxu0 %v3295_v56  ;;  %v3382_v56 = vld [vmem:[%s3624_s11 + $0x468] ss:$16 sps:$4 sm:$0xff]  }
  0xb5   : > { %2262 = vmatpush1.bf16.msra.mxu1 %v3298_v57  ;;  %2222 = vmatprep.subr.bf16.mxu0 %v3303_v58  ;;  %v3387_v57 = vld [vmem:[%s3624_s11 + $0x34c] ss:$16 sps:$4 sm:$0xff]  }
  0xb6   : > { %2263 = vmatprep.subr.bf16.mxu1 %v3306_v59  ;;  %v3390_v58 = vld [vmem:[%s3624_s11 + $0x44c] ss:$16 sps:$4 sm:$0xff]   ;;  %v3385_v59 = vld [vmem:[%s3624_s11 + $0x348] ss:$16 sps:$4 sm:$0xff]  }
  0xb8   : > { %2223 = vmatpush1.bf16.msra.mxu0 %v3301_v62  ;;  %v3388_v62 = vld [vmem:[%s3624_s11 + $0x448] ss:$16 sps:$4 sm:$0xff]  }
  0xb9   : > { %2264 = vmatpush1.bf16.msra.mxu1 %v3304_v0  ;;  %2290 = vmatprep.subr.bf16.mxu0 %v3312_v2  ;;  %v3393_v0 = vld [vmem:[%s3624_s11 + $0x32c] ss:$16 sps:$4 sm:$0xff]   ;;  %v3391_v2 = vld [vmem:[%s3624_s11 + $0x328] ss:$16 sps:$4 sm:$0xff]  }
  0xba   : > { %2265 = vmatprep.subr.bf16.mxu1 %v3309_v1  ;;  %v3396_v1 = vld [vmem:[%s3624_s11 + $0x42c] ss:$16 sps:$4 sm:$0xff]  }
  0xbb   : > { %2241 = vmatmul.mubr.bf16.vlgmr.msra.gmra.mxu0 %v3835_v3 }
  0xbc   : > { %2291 = vmatpush1.bf16.msra.mxu0 %v3310_v5  ;;  %2322 = vmatprep.mubr.bf16.mxu0 %v3697_v63  ;;  %v3333_v63 = vld [vmem:[%s3624_s11 + $0x16c] ss:$16 sps:$4 sm:$0xff]  }
  0xbd   : > { %2266 = vmatpush2.bf16.msra.mxu1 %v3307_v4  ;;  %2292 = vmatprep.subr.bf16.mxu0 %v3318_v7  ;;  %v3394_v4 = vld [vmem:[%s3624_s11 + $0x428] ss:$16 sps:$4 sm:$0xff]   ;;  %v3399_v5 = vld [vmem:[%s3624_s11 + $0x30c] ss:$16 sps:$4 sm:$0xff]  }
  0xbe   : > { %2267 = vmatprep.subr.bf16.mxu1 %v3315_v6  ;;  %v3402_v6 = vld [vmem:[%s3624_s11 + $0x40c] ss:$16 sps:$4 sm:$0xff]   ;;  %v3397_v7 = vld [vmem:[%s3624_s11 + $0x308] ss:$16 sps:$4 sm:$0xff]  }
  0xc0   : > { %2293 = vmatpush1.bf16.msra.mxu0 %v3316_v9  ;;  %v3405_v9 = vld [vmem:[%s3624_s11 + $0x5ec] ss:$16 sps:$4 sm:$0xff]  }
  0xc1   : > { %2268 = vmatpush2.bf16.msra.mxu1 %v3313_v8  ;;  %2294 = vmatprep.subr.bf16.mxu0 %v3324_v11  ;;  %v3400_v8 = vld [vmem:[%s3624_s11 + $0x408] ss:$16 sps:$4 sm:$0xff]  }
  0xc2   : > { %2269 = vmatprep.subr.bf16.mxu1 %v3321_v10  ;;  %v3408_v10 = vld [vmem:[%s3624_s11 + $0x6ec] ss:$16 sps:$4 sm:$0xff]   ;;  %v3403_v11 = vld [vmem:[%s3624_s11 + $0x5e8] ss:$16 sps:$4 sm:$0xff]  }
  0xc4   : > { %2295 = vmatpush1.bf16.msra.mxu0 %v3322_v13  ;;  %v3411_v13 = vld [vmem:[%s3624_s11 + $0x5cc] ss:$16 sps:$4 sm:$0xff]  }
  0xc5   : > { %2270 = vmatpush2.bf16.msra.mxu1 %v3319_v12  ;;  %2296 = vmatprep.subr.bf16.mxu0 %v3330_v15  ;;  %v3406_v12 = vld [vmem:[%s3624_s11 + $0x6e8] ss:$16 sps:$4 sm:$0xff]  }
  0xc6   : > { %2271 = vmatprep.subr.bf16.mxu1 %v3327_v14  ;;  %v3414_v14 = vld [vmem:[%s3624_s11 + $0x6cc] ss:$16 sps:$4 sm:$0xff]   ;;  %v3409_v15 = vld [vmem:[%s3624_s11 + $0x5c8] ss:$16 sps:$4 sm:$0xff]  }
  0xc8   : > { %2297 = vmatpush1.bf16.msra.mxu0 %v3328_v17  ;;  %v3417_v17 = vld [vmem:[%s3624_s11 + $0x5ac] ss:$16 sps:$4 sm:$0xff]  }
  0xc9   : > { %2272 = vmatpush2.bf16.msra.mxu1 %v3325_v16  ;;  %2298 = vmatprep.subr.bf16.mxu0 %v3336_v18  ;;  %v3412_v16 = vld [vmem:[%s3624_s11 + $0x6c8] ss:$16 sps:$4 sm:$0xff]  }
  0xca   : > { %2273 = vmatprep.subr.bf16.mxu1 %v3333_v63  ;;  %v3420_v63 = vld [vmem:[%s3624_s11 + $0x6ac] ss:$16 sps:$4 sm:$0xff]   ;;  %v3415_v18 = vld [vmem:[%s3624_s11 + $0x5a8] ss:$16 sps:$4 sm:$0xff]  }
  0xcc   : > { %2299 = vmatpush1.bf16.msra.mxu0 %v3334_v20  ;;  %v3426_v20 = vld [vmem:[%s3624_s11 + $0x68c] ss:$16 sps:$4 sm:$0xff]  }
  0xcd   : > { %2274 = vmatpush2.bf16.msra.mxu1 %v3331_v19  ;;  %2300 = vmatprep.subr.bf16.mxu0 %v3342_v22  ;;  %v3423_v19 = vld [vmem:[%s3624_s11 + $0x58c] ss:$16 sps:$4 sm:$0xff]   ;;  %v3424_v22 = vld [vmem:[%s3624_s11 + $0x688] ss:$16 sps:$4 sm:$0xff]  }
  0xce   : > { %2275 = vmatprep.subr.bf16.mxu1 %v3339_v21  ;;  %v3421_v21 = vld [vmem:[%s3624_s11 + $0x588] ss:$16 sps:$4 sm:$0xff]  }
  0xd0   : > { %2301 = vmatpush1.bf16.msra.mxu0 %v3340_v24  ;;  %v3427_v24 = vld [vmem:[%s3624_s11 + $0x568] ss:$16 sps:$4 sm:$0xff]  }
  0xd1   : > { %2276 = vmatpush2.bf16.msra.mxu1 %v3337_v23  ;;  %2302 = vmatprep.subr.bf16.mxu0 %v3348_v26  ;;  %v3432_v23 = vld [vmem:[%s3624_s11 + $0x66c] ss:$16 sps:$4 sm:$0xff]  }
  0xd2   : > { %2277 = vmatprep.subr.bf16.mxu1 %v3345_v25  ;;  %v3430_v25 = vld [vmem:[%s3624_s11 + $0x668] ss:$16 sps:$4 sm:$0xff]   ;;  %v3435_v26 = vld [vmem:[%s3624_s11 + $0x54c] ss:$16 sps:$4 sm:$0xff]  }
  0xd4   : > { %2303 = vmatpush1.bf16.msra.mxu0 %v3346_v28  ;;  %v3433_v28 = vld [vmem:[%s3624_s11 + $0x548] ss:$16 sps:$4 sm:$0xff]  }
  0xd5   : > { %2278 = vmatpush2.bf16.msra.mxu1 %v3343_v27  ;;  %2304 = vmatprep.subr.bf16.mxu0 %v3354_v30  ;;  %v3438_v27 = vld [vmem:[%s3624_s11 + $0x64c] ss:$16 sps:$4 sm:$0xff]  }
  0xd6   : > { %2279 = vmatprep.subr.bf16.mxu1 %v3351_v29  ;;  %v3436_v29 = vld [vmem:[%s3624_s11 + $0x648] ss:$16 sps:$4 sm:$0xff]   ;;  %v3441_v30 = vld [vmem:[%s3624_s11 + $0x52c] ss:$16 sps:$4 sm:$0xff]  }
  0xd8   : > { %2305 = vmatpush1.bf16.msra.mxu0 %v3352_v32  ;;  %v3439_v32 = vld [vmem:[%s3624_s11 + $0x528] ss:$16 sps:$4 sm:$0xff]  }
  0xd9   : > { %2280 = vmatpush2.bf16.msra.mxu1 %v3349_v31  ;;  %2306 = vmatprep.subr.bf16.mxu0 %v3357_v33  ;;  %v3444_v31 = vld [vmem:[%s3624_s11 + $0x62c] ss:$16 sps:$4 sm:$0xff]   ;;  %v3442_v33 = vld [vmem:[%s3624_s11 + $0x628] ss:$16 sps:$4 sm:$0xff]  }
  0xda   : > { %2331 = vmatprep.subr.bf16.mxu1 %v3360_v35  ;;  %v3447_v35 = vld [vmem:[%s3624_s11 + $0x50c] ss:$16 sps:$4 sm:$0xff]  }
  0xdc   : > { %2282 = vmatmul.mubr.bf16.vlgmr.msra.gmra.mxu1 %v3681_v55  ;;  %2307 = vmatpush2.bf16.msra.mxu0 %v3355_v36  ;;  %v3370_v55 = vld [vmem:[%s3624_s11 + $0x4a8] ss:$16 sps:$4 sm:$0xff]   ;;  %v3450_v36 = vld [vmem:[%s3624_s11 + $0x60c] ss:$16 sps:$4 sm:$0xff]  }
  0xdd   : > { %2332 = vmatpush1.bf16.msra.mxu1 %v3358_v37  ;;  %2308 = vmatprep.subr.bf16.mxu0 %v3363_v38  ;;  %v3445_v37 = vld [vmem:[%s3624_s11 + $0x508] ss:$16 sps:$4 sm:$0xff]  }
  0xde   : > { %2333 = vmatprep.subr.bf16.mxu1 %v3366_v39  ;;  %2363 = vmatprep.mubr.bf16.mxu1 %v3749_v45  ;;  %v3381_v45 = vld [vmem:[%s3624_s11 + $0x36c] ss:$16 sps:$4 sm:$0xff]   ;;  %v3448_v38 = vld [vmem:[%s3624_s11 + $0x608] ss:$16 sps:$4 sm:$0xff]  }
  0xdf   : > { %v3453_v39 = vld [vmem:[%s3624_s11 + $0x7ec] ss:$16 sps:$4 sm:$0xff]  }
  0xe0   : > { %2309 = vmatpush2.bf16.msra.mxu0 %v3361_v41  ;;  %v3456_v41 = vld [vmem:[%s3624_s11 + $0x8ec] ss:$16 sps:$4 sm:$0xff]  }
  0xe1   : > { %2334 = vmatpush1.bf16.msra.mxu1 %v3364_v60  ;;  %2310 = vmatprep.subr.bf16.mxu0 %v3369_v42  ;;  %v3451_v60 = vld [vmem:[%s3624_s11 + $0x7e8] ss:$16 sps:$4 sm:$0xff]  }
  0xe2   : > { %2335 = vmatprep.subr.bf16.mxu1 %v3372_v43  ;;  %v3454_v42 = vld [vmem:[%s3624_s11 + $0x8e8] ss:$16 sps:$4 sm:$0xff]   ;;  %v3459_v43 = vld [vmem:[%s3624_s11 + $0x7cc] ss:$16 sps:$4 sm:$0xff]  }
  0xe4   : > { %2311 = vmatpush2.bf16.msra.mxu0 %v3367_v47  ;;  %v3462_v47 = vld [vmem:[%s3624_s11 + $0x8cc] ss:$16 sps:$4 sm:$0xff]  }
  0xe5   : > { %2336 = vmatpush1.bf16.msra.mxu1 %v3370_v55  ;;  %2312 = vmatprep.subr.bf16.mxu0 %v3375_v48 }
  0xe6   : > { %2337 = vmatprep.subr.bf16.mxu1 %v3378_v51 }
  0xe8   : > { %2313 = vmatpush2.bf16.msra.mxu0 %v3373_v52  ;;  %v3457_v52 = vld [vmem:[%s3624_s11 + $0x7c8] ss:$16 sps:$4 sm:$0xff]  }
  0xe9   : > { %2338 = vmatpush1.bf16.msra.mxu1 %v3376_v50  ;;  %2314 = vmatprep.subr.bf16.mxu0 %v3381_v45  ;;  %v3460_v50 = vld [vmem:[%s3624_s11 + $0x8c8] ss:$16 sps:$4 sm:$0xff]  }
  0xea   : > { %2339 = vmatprep.subr.bf16.mxu1 %v3384_v53 }
  0xec   : > { %2315 = vmatpush2.bf16.msra.mxu0 %v3379_v54  ;;  %v3465_v54 = vld [vmem:[%s3624_s11 + $0x7ac] ss:$16 sps:$4 sm:$0xff]  }
  0xed   : > { %2340 = vmatpush1.bf16.msra.mxu1 %v3382_v56  ;;  %2316 = vmatprep.subr.bf16.mxu0 %v3387_v57  ;;  %v3468_v56 = vld [vmem:[%s3624_s11 + $0x8ac] ss:$16 sps:$4 sm:$0xff]  }
  0xee   : > { %2341 = vmatprep.subr.bf16.mxu1 %v3390_v58 }
  0xf0   : > { %2317 = vmatpush2.bf16.msra.mxu0 %v3385_v59  ;;  %v3463_v59 = vld [vmem:[%s3624_s11 + $0x7a8] ss:$16 sps:$4 sm:$0xff]  }
  0xf1   : > { %2342 = vmatpush1.bf16.msra.mxu1 %v3388_v62  ;;  %2318 = vmatprep.subr.bf16.mxu0 %v3393_v0  ;;  %v3466_v62 = vld [vmem:[%s3624_s11 + $0x8a8] ss:$16 sps:$4 sm:$0xff]  }
  0xf2   : > { %2343 = vmatprep.subr.bf16.mxu1 %v3396_v1 }
  0xf4   : > { %2319 = vmatpush2.bf16.msra.mxu0 %v3391_v2  ;;  %v3471_v2 = vld [vmem:[%s3624_s11 + $0x78c] ss:$16 sps:$4 sm:$0xff]  }
  0xf5   : > { %2344 = vmatpush1.bf16.msra.mxu1 %v3394_v4  ;;  %2320 = vmatprep.subr.bf16.mxu0 %v3399_v5  ;;  %v3474_v4 = vld [vmem:[%s3624_s11 + $0x88c] ss:$16 sps:$4 sm:$0xff]   ;;  %v3472_v5 = vld [vmem:[%s3624_s11 + $0x888] ss:$16 sps:$4 sm:$0xff]  }
  0xf6   : > { %2345 = vmatprep.subr.bf16.mxu1 %v3402_v6  ;;  %v3477_v6 = vld [vmem:[%s3624_s11 + $0x76c] ss:$16 sps:$4 sm:$0xff]  }
  0xf8   : > { %2321 = vmatpush2.bf16.msra.mxu0 %v3397_v7  ;;  %v3480_v7 = vld [vmem:[%s3624_s11 + $0x86c] ss:$16 sps:$4 sm:$0xff]  }
  0xf9   : > { %2346 = vmatpush1.bf16.msra.mxu1 %v3400_v8  ;;  %2372 = vmatprep.subr.bf16.mxu0 %v3408_v10  ;;  %v3475_v8 = vld [vmem:[%s3624_s11 + $0x768] ss:$16 sps:$4 sm:$0xff]   ;;  %v3483_v10 = vld [vmem:[%s3624_s11 + $0x74c] ss:$16 sps:$4 sm:$0xff]  }
  0xfa   : > { %2347 = vmatprep.subr.bf16.mxu1 %v3405_v9  ;;  %v3478_v9 = vld [vmem:[%s3624_s11 + $0x868] ss:$16 sps:$4 sm:$0xff]  }
  0xfb   : > { %2323 = vmatmul.mubr.bf16.vlgmr.msra.gmra.mxu0 %v3691_v61  ;;  %v3418_v61 = vld [vmem:[%s3624_s11 + $0x6a8] ss:$16 sps:$4 sm:$0xff]  }
  0xfc   : > { %2373 = vmatpush1.bf16.msra.mxu0 %v3406_v12  ;;  %2404 = vmatprep.mubr.bf16.mxu0 %v3759_v49  ;;  %v3429_v49 = vld [vmem:[%s3624_s11 + $0x56c] ss:$16 sps:$4 sm:$0xff]   ;;  %v3481_v12 = vld [vmem:[%s3624_s11 + $0x748] ss:$16 sps:$4 sm:$0xff]  }
  0xfd   : > { %2348 = vmatpush2.bf16.msra.mxu1 %v3403_v11  ;;  %2374 = vmatprep.subr.bf16.mxu0 %v3414_v14  ;;  %v3486_v11 = vld [vmem:[%s3624_s11 + $0x84c] ss:$16 sps:$4 sm:$0xff]  }
  0xfe   : > { %2349 = vmatprep.subr.bf16.mxu1 %v3411_v13  ;;  %v3484_v13 = vld [vmem:[%s3624_s11 + $0x848] ss:$16 sps:$4 sm:$0xff]   ;;  %v3489_v14 = vld [vmem:[%s3624_s11 + $0x72c] ss:$16 sps:$4 sm:$0xff]  }
 0x100   : > { %2375 = vmatpush1.bf16.msra.mxu0 %v3412_v16  ;;  %v3487_v16 = vld [vmem:[%s3624_s11 + $0x728] ss:$16 sps:$4 sm:$0xff]  }
 0x101   : > { %2350 = vmatpush2.bf16.msra.mxu1 %v3409_v15  ;;  %2376 = vmatprep.subr.bf16.mxu0 %v3420_v63  ;;  %v3492_v15 = vld [vmem:[%s3624_s11 + $0x82c] ss:$16 sps:$4 sm:$0xff]  }
 0x102   : > { %2351 = vmatprep.subr.bf16.mxu1 %v3417_v17  ;;  %v3490_v17 = vld [vmem:[%s3624_s11 + $0x828] ss:$16 sps:$4 sm:$0xff]   ;;  %v3495_v63 = vld [vmem:[%s3624_s11 + $0x70c] ss:$16 sps:$4 sm:$0xff]  }
 0x104   : > { %2377 = vmatpush1.bf16.msra.mxu0 %v3418_v61  ;;  %v3493_v61 = vld [vmem:[%s3624_s11 + $0x708] ss:$16 sps:$4 sm:$0xff]  }
 0x105   : > { %2352 = vmatpush2.bf16.msra.mxu1 %v3415_v18  ;;  %2378 = vmatprep.subr.bf16.mxu0 %v3426_v20  ;;  %v3498_v18 = vld [vmem:[%s3624_s11 + $0x80c] ss:$16 sps:$4 sm:$0xff]  }
 0x106   : > { %2353 = vmatprep.subr.bf16.mxu1 %v3423_v19  ;;  %v3496_v19 = vld [vmem:[%s3624_s11 + $0x808] ss:$16 sps:$4 sm:$0xff]  }
 0x108   : > { %2379 = vmatpush1.bf16.msra.mxu0 %v3424_v22 }
 0x109   : > { %2354 = vmatpush2.bf16.msra.mxu1 %v3421_v21  ;;  %2380 = vmatprep.subr.bf16.mxu0 %v3432_v23 }
 0x10a   : > { %2355 = vmatprep.subr.bf16.mxu1 %v3429_v49 }
 0x10c   : > { %2381 = vmatpush1.bf16.msra.mxu0 %v3430_v25 }
 0x10d   : > { %2356 = vmatpush2.bf16.msra.mxu1 %v3427_v24  ;;  %2382 = vmatprep.subr.bf16.mxu0 %v3438_v27 }
 0x10e   : > { %2357 = vmatprep.subr.bf16.mxu1 %v3435_v26 }
 0x110   : > { %2383 = vmatpush1.bf16.msra.mxu0 %v3436_v29 }
 0x111   : > { %2358 = vmatpush2.bf16.msra.mxu1 %v3433_v28  ;;  %2384 = vmatprep.subr.bf16.mxu0 %v3444_v31 }
 0x112   : > { %2359 = vmatprep.subr.bf16.mxu1 %v3441_v30 }
 0x114   : > { %2385 = vmatpush1.bf16.msra.mxu0 %v3442_v33 }
 0x115   : > { %2360 = vmatpush2.bf16.msra.mxu1 %v3439_v32  ;;  %2386 = vmatprep.subr.bf16.mxu0 %v3450_v36 }
 0x116   : > { %2361 = vmatprep.subr.bf16.mxu1 %v3447_v35  ;;  %v258_v35 = vld [vmem:[#allocation2] sm:$0xff] }
 0x118   : > { %2387 = vmatpush1.bf16.msra.mxu0 %v3448_v38 }
 0x119   : > { %2362 = vmatpush2.bf16.msra.mxu1 %v3445_v37  ;;  %2388 = vmatprep.subr.bf16.mxu0 %v3453_v39 }
 0x11a   : > { %2413 = vmatprep.subr.bf16.mxu1 %v3456_v41 }
 0x11b   : > { %v2078_v55 = vpop.f32.mrf.mxu0 }
 0x11c   : > { %v2119_v48 = vpop.f32.mrf.mxu1  ;;  %2364 = vmatmul.mubr.bf16.vlgmr.msra.gmra.mxu1 %v3743_v40  ;;  %2389 = vmatpush2.bf16.msra.mxu0 %v3451_v60 }
 0x11d   : > { %v3944_v51 = vadd.f32 %v2119_v48, %v2078_v55  ;;  %2414 = vmatpush1.bf16.msra.mxu1 %v3454_v42  ;;  %v2080_v45 = vpop.f32.mrf.mxu0  ;;  %2390 = vmatprep.subr.bf16.mxu0 %v3459_v43 }
 0x11e   : > { %v2121_v53 = vpop.f32.mrf.mxu1  ;;  %2415 = vmatprep.subr.bf16.mxu1 %v3462_v47  ;;  %2445 = vmatprep.mubr.bf16.mxu1 %v3551_v34  ;;  %v3469_v34 = vld [vmem:[%s3624_s11 + $0x788] ss:$16 sps:$4 sm:$0xff]  }
 0x11f   : > { %v3950_v57 = vadd.f32 %v2121_v53, %v2080_v45  ;;  %v2082_v40 = vpop.f32.mrf.mxu0 }
 0x120   : > { %v2123_v58 = vpop.f32.mrf.mxu1  ;;  %2391 = vmatpush2.bf16.msra.mxu0 %v3457_v52 }
 0x121   : > { %2416 = vmatpush1.bf16.msra.mxu1 %v3460_v50  ;;  %v2083_v0 = vpop.f32.mrf.mxu0  ;;  %2392 = vmatprep.subr.bf16.mxu0 %v3465_v54 }
 0x122   : > { %v2124_v1 = vpop.f32.mrf.mxu1  ;;  %2417 = vmatprep.subr.bf16.mxu1 %v3468_v56 }
 0x124   : > { %2393 = vmatpush2.bf16.msra.mxu0 %v3463_v59 }
 0x125   : > { %2418 = vmatpush1.bf16.msra.mxu1 %v3466_v62  ;;  %2394 = vmatprep.subr.bf16.mxu0 %v3471_v2 }
 0x126   : > { %2419 = vmatprep.subr.bf16.mxu1 %v3474_v4 }
 0x128   : > { %2395 = vmatpush2.bf16.msra.mxu0 %v3469_v34 }
 0x129   : > { %2420 = vmatpush1.bf16.msra.mxu1 %v3472_v5  ;;  %2396 = vmatprep.subr.bf16.mxu0 %v3477_v6  ;;  %v259_v6 = vld [vmem:[#allocation2 + $0x8] sm:$0xff] }
 0x12a   : > { %2421 = vmatprep.subr.bf16.mxu1 %v3480_v7 }
 0x12c   : > { %2397 = vmatpush2.bf16.msra.mxu0 %v3475_v8 }
 0x12d   : > { %2422 = vmatpush1.bf16.msra.mxu1 %v3478_v9  ;;  %2398 = vmatprep.subr.bf16.mxu0 %v3483_v10 }
 0x12e   : > { %2423 = vmatprep.subr.bf16.mxu1 %v3486_v11 }
 0x130   : > { %2399 = vmatpush2.bf16.msra.mxu0 %v3481_v12 }
 0x131   : > { %2424 = vmatpush1.bf16.msra.mxu1 %v3484_v13  ;;  %2400 = vmatprep.subr.bf16.mxu0 %v3489_v14 }
 0x132   : > { %2425 = vmatprep.subr.bf16.mxu1 %v3492_v15 }
 0x134   : > { %2401 = vmatpush2.bf16.msra.mxu0 %v3487_v16 }
 0x135   : > { %2426 = vmatpush1.bf16.msra.mxu1 %v3490_v17  ;;  %2402 = vmatprep.subr.bf16.mxu0 %v3495_v63 }
 0x136   : > { %2427 = vmatprep.subr.bf16.mxu1 %v3498_v18 }
 0x138   : > { %2403 = vmatpush2.bf16.msra.mxu0 %v3493_v61 }
 0x139   : > { %2428 = vmatpush1.bf16.msra.mxu1 %v3496_v19 }
 0x13b   : > { %2405 = vmatmul.mubr.bf16.vlgmr.msra.gmra.mxu0 %v3752_v46 }
 0x13c   : > { %2446 = vmatmul.mubr.bf16.vlgmr.msra.gmra.mxu1 %v3835_v3 }
 0x15b   : > { %v2160_v20 = vpop.f32.mrf.mxu0 }
 0x15c   : > { %v2201_v21 = vpop.f32.mrf.mxu1  ;;  %v2161_v27 = vadd.f32 %v2160_v20, %v3944_v51 }
 0x15d   : > { %v2162_v22 = vpop.f32.mrf.mxu0 }
 0x15e   : > { %v2203_v49 = vpop.f32.mrf.mxu1  ;;  %v2163_v28 = vadd.f32 %v2162_v22, %v3950_v57  ;;  %v2202_v30 = vadd.f32 %v2201_v21, %v2161_v27 }
 0x15f   : > { %v2164_v23 = vpop.f32.mrf.mxu0 }
 0x160   : > { %v2205_v24 = vpop.f32.mrf.mxu1  ;;  %v2204_v31 = vadd.f32 %v2203_v49, %v2163_v28 }
 0x161   : > { %v2165_v25 = vpop.f32.mrf.mxu0 }
 0x162   : > { %v2206_v26 = vpop.f32.mrf.mxu1 }
 0x17b   : > { %v2242_v29 = vpop.f32.mrf.mxu0 }
 0x17c   : > { %v2243_v33 = vadd.f32 %v2242_v29, %v2202_v30 }
 0x17d   : > { %v2244_v32 = vpop.f32.mrf.mxu0 }
 0x17e   : > { %v2245_v46 = vadd.f32 %v2244_v32, %v2204_v31 }
 0x17f   : > { %v2246_v3 = vpop.f32.mrf.mxu0 }
 0x180   : > { %v2458_v36 = vcombine.low %v2243_v33, %v2245_v46 }
 0x181   : > { %v2247_v37 = vpop.f32.mrf.mxu0 }
 0x182   : > { %v2462_v38 = vadd.f32 %v2458_v36, %v258_v35 }
 0x184   : > { %2464 = vst [vmem:[#allocation2] sm:$0xff] %v2462_v38 }
 0x19c   : > { %v2283_v39 = vpop.f32.mrf.mxu1 }
 0x19e   : > { %v2285_v41 = vpop.f32.mrf.mxu1 }
 0x1a0   : > { %v2287_v60 = vpop.f32.mrf.mxu1 }
 0x1a2   : > { %v2288_v42 = vpop.f32.mrf.mxu1 }
 0x1bb   : > { %v2324_v43 = vpop.f32.mrf.mxu0 }
 0x1bc   : > { %v2325_v53 = vadd.f32 %v2324_v43, %v2283_v39 }
 0x1bd   : > { %v2326_v47 = vpop.f32.mrf.mxu0 }
 0x1be   : > { %v2327_v54 = vadd.f32 %v2326_v47, %v2285_v41 }
 0x1bf   : > { %v2328_v55 = vpop.f32.mrf.mxu0 }
 0x1c1   : > { %v2329_v48 = vpop.f32.mrf.mxu0 }
 0x1dc   : > { %v2365_v51 = vpop.f32.mrf.mxu1 }
 0x1dd   : > { %v2366_v56 = vadd.f32 %v2365_v51, %v2325_v53 }
 0x1de   : > { %v2367_v52 = vpop.f32.mrf.mxu1 }
 0x1df   : > { %v2368_v58 = vadd.f32 %v2367_v52, %v2327_v54 }
 0x1e0   : > { %v2369_v50 = vpop.f32.mrf.mxu1 }
 0x1e2   : > { %v2370_v45 = vpop.f32.mrf.mxu1 }
 0x1fb   : > { %v2406_v57 = vpop.f32.mrf.mxu0 }
 0x1fc   : > { %v2447_v40 = vpop.f32.mrf.mxu1  ;;  %v2407_v59 = vadd.f32 %v2406_v57, %v2366_v56 }
 0x1fd   : > { %v2408_v62 = vpop.f32.mrf.mxu0 }
 0x1fe   : > { %v2449_v0 = vpop.f32.mrf.mxu1  ;;  %v2409_v1 = vadd.f32 %v2408_v62, %v2368_v58  ;;  %v2448_v34 = vadd.f32 %v2447_v40, %v2407_v59 }
 0x1ff   : > { %v2410_v2 = vpop.f32.mrf.mxu0 }
 0x200   : > { %v2451_v4 = vpop.f32.mrf.mxu1  ;;  %v2450_v5 = vadd.f32 %v2449_v0, %v2409_v1 }
 0x201   : > { %v2411_v7 = vpop.f32.mrf.mxu0 }
 0x202   : > { %v2452_v8 = vpop.f32.mrf.mxu1  ;;  %v2459_v9 = vcombine.low %v2448_v34, %v2450_v5  ;;  %2469 = sbr.rel (%p3016_p9) target bundleno = 593 (0x251), region = 44 }
 0x204   : > { %v2463_v10 = vadd.f32 %v2459_v9, %v259_v6 }
 0x206   : > { %2465 = vst [vmem:[#allocation2 + $0x8] sm:$0xff] %v2463_v10 }
 0x207   : > { %v2470_v11 = vld [vmem:[#allocation2] sm:$0xff]  ;;  %vm2478_vm0 = vcmask 1043456  }
 0x208   : > { %v2474_v12 = vcombine.high %v2470_v11, %v2470_v11  ;;  %v2479_v13 = vsel %vm2478_vm0, %v2470_v11, 0.0 }
 0x209   : > { %v2480_v15 = vrot.slane %v2479_v13, 4 }
 0x20a   : > { %v2486_v16 = vsel %vm2478_vm0, %v2474_v12, 0.0 }
 0x20b   : > { %v2481_v18 = vadd.f32 %v2480_v15, %v2479_v13  ;;  %v2487_v61 = vrot.slane %v2486_v16, 4 }
 0x20d   : > { %v2471_v14 = vld [vmem:[#allocation2 + $0x8] sm:$0xff]  ;;  %v2482_v21 = vrot.slane %v2481_v18, 2  ;;  %v2488_v22 = vadd.f32 %v2487_v61, %v2486_v16 }
 0x20e   : > { %v2475_v17 = vcombine.high %v2471_v14, %v2471_v14  ;;  %v2493_v63 = vsel %vm2478_vm0, %v2471_v14, 0.0 }
 0x20f   : > { %v2494_v19 = vrot.slane %v2493_v63, 4  ;;  %v2483_v24 = vadd.f32 %v2482_v21, %v2481_v18  ;;  %v2489_v25 = vrot.slane %v2488_v22, 2 }
 0x210   : > { %v2500_v20 = vsel %vm2478_vm0, %v2475_v17, 0.0 }
 0x211   : > { %v2495_v49 = vadd.f32 %v2494_v19, %v2493_v63  ;;  %v2501_v23 = vrot.slane %v2500_v20, 4  ;;  %v2484_v28 = vrot.slane %v2483_v24, 1  ;;  %v2490_v29 = vadd.f32 %v2489_v25, %v2488_v22 }
 0x212   : > { %v2584_v25 = vsub.s32 0, %v3666_v44 }
 0x213   : > { %v2496_v26 = vrot.slane %v2495_v49, 2  ;;  %v2502_v27 = vadd.f32 %v2501_v23, %v2500_v20  ;;  %v2485_v32 = vadd.f32 %v2484_v28, %v2483_v24  ;;  %v2491_v33 = vrot.slane %v2490_v29, 1 }
 0x214   : > { %v2592_v28 = vsub.s32 2, %v3666_v44 }
 0x215   : > { %v2497_v30 = vadd.f32 %v2496_v26, %v2495_v49  ;;  %v2503_v31 = vrot.slane %v2502_v27, 2  ;;  %v2492_v3 = vadd.f32 %v2491_v33, %v2490_v29  ;;  %v2508_v36 = vmul.f32 0.25, %v2485_v32 }
 0x216   : > { %v2588_v26 = vsub.s32 1, %v3666_v44  ;;  %v2596_v29 = vsub.s32 3, %v3666_v44 }
 0x217   : > { %v2498_v46 = vrot.slane %v2497_v30, 1  ;;  %v2504_v35 = vadd.f32 %v2503_v31, %v2502_v27  ;;  %v2509_v39 = vmul.f32 0.25, %v2492_v3  ;;  %v2580_v27 = vld [vmem:[%s4027_s2] sm:$0xf] }
 0x218   : > { %v2585_v31 = vrot.slane %v2580_v27, %v2584_v25  ;;  %v2589_v32 = vrot.slane %v2580_v27, %v2588_v26  ;;  %v2593_v3 = vrot.slane %v2580_v27, %v2592_v28 }
 0x219   : > { %v2499_v37 = vadd.f32 %v2498_v46, %v2497_v30  ;;  %v2505_v38 = vrot.slane %v2504_v35, 1  ;;  %v2516_v42 = vcombine.low %v2508_v36, %v2509_v39  ;;  %v2604_v30 = vld [vmem:[%s4028_s3] sm:$0xf]  ;;  %v2597_v36 = vrot.slane %v2580_v27, %v2596_v29 }
 0x21a   : > { %v2609_v46 = vrot.slane %v2604_v30, %v2584_v25 }
 0x21b   : > { %v2506_v41 = vadd.f32 %v2505_v38, %v2504_v35  ;;  %v2510_v60 = vmul.f32 0.25, %v2499_v37  ;;  %v3984_v47 = vsub.f32 %v2470_v11, %v2516_v42  ;;  %v2613_v35 = vrot.slane %v2604_v30, %v2588_v26 }
 0x21c   : > { %v2621_v42 = vrot.slane %v2604_v30, %v2596_v29 }
 0x21d   : > { %v2511_v43 = vmul.f32 0.25, %v2506_v41  ;;  %v2522_v48 = vmul.f32 %v3984_v47, %v3984_v47  ;;  %v2598_v41 = vcombine.low %v2585_v31, %v2589_v32 }
 0x21f   : > { %v2517_v55 = vcombine.low %v2510_v60, %v2511_v43  ;;  %v2526_v52 = vcombine.high %v2522_v48, %v2522_v48  ;;  %v2530_v50 = vsel %vm2478_vm0, %v2522_v48, 0.0  ;;  %v2617_v60 = vrot.slane %v2604_v30, %v2592_v28 }
 0x220   : > { %v2531_v53 = vrot.slane %v2530_v50, 4 }
 0x221   : > { %v3988_v51 = vsub.f32 %v2471_v14, %v2517_v55  ;;  %v2537_v54 = vsel %vm2478_vm0, %v2526_v52, 0.0  ;;  %v2622_v55 = vcombine.low %v2609_v46, %v2613_v35  ;;  %v2599_v52 = vcombine.low %v2593_v3, %v2597_v36 }
 0x222   : > { %v2532_v40 = vadd.f32 %v2531_v53, %v2530_v50  ;;  %v2538_v58 = vrot.slane %v2537_v54, 4  ;;  %v2623_v53 = vcombine.low %v2617_v60, %v2621_v42 }
 0x223   : > { %v2523_v45 = vmul.f32 %v3988_v51, %v3988_v51 }
 0x224   : > { %v2533_v0 = vrot.slane %v2532_v40, 2  ;;  %v2539_v1 = vadd.f32 %v2538_v58, %v2537_v54 }
 0x225   : > { %v2527_v56 = vcombine.high %v2523_v45, %v2523_v45  ;;  %v2544_v57 = vsel %vm2478_vm0, %v2523_v45, 0.0 }
 0x226   : > { %v2545_v59 = vrot.slane %v2544_v57, 4  ;;  %v2534_v34 = vadd.f32 %v2533_v0, %v2532_v40  ;;  %v2540_v5 = vrot.slane %v2539_v1, 2 }
 0x227   : > { %v2551_v62 = vsel %vm2478_vm0, %v2527_v56, 0.0 }
 0x228   : > { %v2546_v2 = vadd.f32 %v2545_v59, %v2544_v57  ;;  %v2552_v4 = vrot.slane %v2551_v62, 4  ;;  %v2535_v8 = vrot.slane %v2534_v34, 1  ;;  %v2541_v9 = vadd.f32 %v2540_v5, %v2539_v1 }
 0x22a   : > { %v2547_v6 = vrot.slane %v2546_v2, 2  ;;  %v2553_v7 = vadd.f32 %v2552_v4, %v2551_v62  ;;  %v2536_v12 = vadd.f32 %v2535_v8, %v2534_v34  ;;  %v2542_v13 = vrot.slane %v2541_v9, 1 }
 0x22c   : > { %v2548_v10 = vadd.f32 %v2547_v6, %v2546_v2  ;;  %v2554_v11 = vrot.slane %v2553_v7, 2  ;;  %v2543_v16 = vadd.f32 %v2542_v13, %v2541_v9  ;;  %v2558_v17 = vmul.f32 0.25, %v2536_v12 }
 0x22e   : > { %v2549_v14 = vrot.slane %v2548_v10, 1  ;;  %v2555_v15 = vadd.f32 %v2554_v11, %v2553_v7  ;;  %v2559_v61 = vmul.f32 0.25, %v2543_v16  ;;  %v2562_v19 = vadd.f32 1e-05, %v2558_v17 }
 0x230   : > { %v2550_v63 = vadd.f32 %v2549_v14, %v2548_v10  ;;  %v2556_v18 = vrot.slane %v2555_v15, 1  ;;  %v2563_v22 = vadd.f32 1e-05, %v2559_v61  ;;  %3501 = vrsqrt.f32 %v2562_v19 }
 0x232   : > { %v2557_v20 = vadd.f32 %v2556_v18, %v2555_v15  ;;  %v2560_v21 = vmul.f32 0.25, %v2550_v63  ;;  %3503 = vrsqrt.f32 %v2563_v22 }
 0x234   : > { %v2561_v49 = vmul.f32 0.25, %v2557_v20  ;;  %v2564_v23 = vadd.f32 1e-05, %v2560_v21 }
 0x236   : > { %v2565_v24 = vadd.f32 1e-05, %v2561_v49  ;;  %3505 = vrsqrt.f32 %v2564_v23 }
 0x238   : > { %3507 = vrsqrt.f32 %v2565_v24 }
 0x23d   : > { %v3502_v33 = vpop.eup %3501 }
 0x23f   : > { %v3504_v37 = vpop.eup %3503 }
 0x240   : > { %v2574_v39 = vcombine.low %v3502_v33, %v3504_v37 }
 0x242   : > { %v2578_v43 = vmul.f32 %v2574_v39, %v3984_v47 }
 0x243   : > { %v3506_v38 = vpop.eup %3505 }
 0x244   : > { %v2602_v50 = vmul.f32 %v2598_v41, %v2578_v43 }
 0x245   : > { %v3508_v44 = vpop.eup %3507 }
 0x246   : > { %v2575_v48 = vcombine.low %v3506_v38, %v3508_v44  ;;  %v2626_v54 = vadd.f32 %v2622_v55, %v2602_v50 }
 0x248   : > { %v2579_v45 = vmul.f32 %v2575_v48, %v3988_v51  ;;  %v2628_v57 = vmax.f32 %v2626_v54, 0.0 }
 0x24a   : > { %v2603_v56 = vmul.f32 %v2599_v52, %v2579_v45  ;;  %2630 = vst [vmem:[%s3614_s29] sm:$0xff] %v2628_v57 }
 0x24c   : > { %v2627_v40 = vadd.f32 %v2623_v53, %v2603_v56 }
 0x24e   : > { %v2629_v58 = vmax.f32 %v2627_v40, 0.0 }
 0x250   : > { %2631 = vst [vmem:[%s3614_s29 + $0x8] sm:$0xff] %v2629_v58 }
 0x251 PF: > { %s14_s19 = sadd.s32 1, %s3547_s19   ;;  %s4030_s15 = smov %s3539_s17 }
 0x252   : > { %p11_p10 = scmp.ge.s32.totalorder %s14_s19, 6   ;;  %s4031_s16 = smov %s3543_s18 }
 0x253   : > { %s4032_s17 = smov %s4035_s20  ;;  %s4033_s18 = smov %s4039_s21 }
 0x254   :  { %13 = sbr.rel (!%p11_p10) target bundleno = 3 (0x3), region = 77 }

// kernel: forward.27
= control target key start
LH: loop header
LB: loop body
LE: loop exit
PB: predicated region body
PF: predicated region fallthrough
CT: control target
= control target key end

     0   :  { %9 = vsyncpa [#allocation3], 0  ;;  %s1107_s0 = inlined_call_operand.vmem [shape: f32[2,4,512], index: 0, kind: input, shape index: {}]   ;;  %s1108_s1 = inlined_call_operand.vmem [shape: bf16[512,10], index: 1, kind: input, shape index: {}]   ;;  %s1109_s2 = inlined_call_operand.vmem [shape: f32[1,10], index: 2, kind: input, shape index: {}]   ;;  %s1110_s3 = inlined_call_operand.vmem [shape: f32[1,10], index: 3, kind: input, shape index: {}]   ;;  %s1111_s4 = inlined_call_operand.hbm [shape: f32[2,1,10], index: 4, kind: output, shape index: {}]  }
   0x1   :  { %11 = vsyncpa [#allocation3 + $0x1], 0  ;;  %s915_s15 = smov 0   ;;  %s917_s16 = smov 0  }
   0x2   :  { %s919_s17 = smov 0   ;;  %s921_s18 = smov 0  }
   0x3 LB: > { %s936_s19 = sadd.s32 4294967295, %s887_s18   ;;  %s666_s20 = sadd.s32 4294967294, %s887_s18   ;;  %s887_s18 = sphi %s921_s18, %s1117_s18   ;;  %s883_s17 = sphi %s919_s17, %s1116_s17   ;;  %s879_s16 = sphi %s917_s16, %s1115_s16   ;;  %s875_s15 = sphi %s915_s15, %s1114_s15  }
   0x4   : > { %s940_s21 = sadd.s32 1, %s887_s18   ;;  %s113_s22 = sadd.s32 1, %s883_s17 }
   0x5   : > { %s110_s23 = ssub.s32 %s887_s18, %s940_s21  ;;  %p123_p0 = scmp.ne.s32.totalorder %s883_s17, %s879_s16 }
   0x6   : > { %p111_p1 = scmp.eq.s32.totalorder %s110_s23, 0  ;;  %p124_p2 = scmp.eq.s32.totalorder %s936_s19, 1 }
   0x7   : > { %p129_p3 = scmp.ne.s32.totalorder %s879_s16, %s875_s15  ;;  %p130_p4 = scmp.eq.s32.totalorder %s666_s20, 1 }
   0x8   : > { %s951_s24 = scalar_select %p111_p1, %s883_s17, %s113_s22  }
   0x9   : > { %p953_p5 = por %p124_p2, %p123_p0  ;;  %p957_p6 = por %p130_p4, %p129_p3 }
   0xa   : > { %p669_p7 = scmp.ge.s32.totalorder %s887_s18, 1  ;;  %p165_p8 = scmp.lt.s32.totalorder %s887_s18, 3 }
   0xc   : > { %p166_p9 = pnand %p669_p7, %p165_p8 }
   0xd   : > { %p190_p10 = scmp.lt.s32.totalorder (!%p166_p9), %s936_s19, 1  ;;  %s188_s28 = sand.u32 (!%p166_p9), 1, %s879_s16  }
   0xe   : > { %169 = sbr.rel (%p166_p9) target bundleno = 574 (0x23e), region = 36  ;;  %s704_s7 = sshll.u32 (!%p166_p9), %s936_s19, 4 }
   0xf   : > { %s189_s8 = scalar_lea.vmem (!%p166_p9), [#allocation2], %s188_s28  ;;  %s609_s12 = scalar_lea.hbm (!%p166_p9), %s1111_s4, %s704_s7 }
  0x10   : > { %s611_s9 = sshll.u32 (!%p166_p9), %s189_s8, 4  ;;  %s599_s14 = scalar_lea.sflag (!%p166_p9), [#allocation3], %s188_s28  ;;  %s612_s9 = int_to_ptr.vmem [resolvable:$true] %s611_s9 }
  0x13   : > { %v791_v0 = vld [vmem:[%s1108_s1 + $0x78] sm:$0xff]   ;;  %v795_v4 = vld [vmem:[%s1108_s1 + $0x70] sm:$0xff]   ;;  %v799_v8 = vld [vmem:[%s1108_s1 + $0x68] sm:$0xff]   ;;  %s191_s13 = scalar_select %p190_p10, %s936_s19, 1  ;;  %vm204_vm0 = vcmask 1043456   ;;  %vm578_vm1 = vcmask 73728  }
  0x14   : > { %v792_v1 = vld [vmem:[%s1108_s1 + $0xf8] sm:$0xff]   ;;  %708 = vmatprep.subr.bf16.mxu0 %v791_v0  ;;  %v796_v5 = vld [vmem:[%s1108_s1 + $0xf0] sm:$0xff]   ;;  %v800_v9 = vld [vmem:[%s1108_s1 + $0xe8] sm:$0xff]  }
  0x15   : > { %v793_v2 = vld [vmem:[%s1108_s1 + $0x38] sm:$0xff]   ;;  %730 = vmatprep.subr.bf16.mxu1 %v792_v1  ;;  %v797_v6 = vld [vmem:[%s1108_s1 + $0x30] sm:$0xff]   ;;  %v801_v10 = vld [vmem:[%s1108_s1 + $0x28] sm:$0xff]   ;;  %s707_s5 = sshll.u32 %s191_s13, 4  ;;  %s889_s13 = smov [#allocation2]  }
  0x16   : > { %v794_v3 = vld [vmem:[%s1108_s1 + $0xb8] sm:$0xff]   ;;  %709 = vmatpush3.bf16.msra.mxu0 %v793_v2  ;;  %v798_v7 = vld [vmem:[%s1108_s1 + $0xb0] sm:$0xff]   ;;  %v802_v11 = vld [vmem:[%s1108_s1 + $0xa8] sm:$0xff]   ;;  %s194_s20 = scalar_lea.vmem %s1107_s0, %s707_s5  ;;  %s831_s22 = sshll.u32 %s889_s13, 4  ;;  %s832_s22 = int_to_ptr.vmem [resolvable:$false] %s831_s22 }
  0x17   : > { %731 = vmatpush3.bf16.msra.mxu1 %v794_v3  ;;  %710 = vmatprep.subr.bf16.mxu0 %v795_v4  ;;  %v803_v12 = vld [vmem:[%s1108_s1 + $0x60] sm:$0xff]   ;;  %v807_v16 = vld [vmem:[%s1108_s1 + $0x58] sm:$0xff]   ;;  %v811_v20 = vld [vmem:[%s1108_s1 + $0x50] sm:$0xff]   ;;  %s833_s19 = scalar_lea.vmem %s832_s22, 32  ;;  %p834_p0 = scmp.lt.s32.totalorder %s612_s9, %s832_s22 }
  0x18   : > { %732 = vmatprep.subr.bf16.mxu1 %v796_v5  ;;  %v804_v13 = vld [vmem:[%s1108_s1 + $0xe0] sm:$0xff]   ;;  %v808_v17 = vld [vmem:[%s1108_s1 + $0xd8] sm:$0xff]   ;;  %v812_v21 = vld [vmem:[%s1108_s1 + $0xd0] sm:$0xff]  }
  0x19   : > { %v805_v14 = vld [vmem:[%s1108_s1 + $0x20] sm:$0xff]   ;;  %v809_v18 = vld [vmem:[%s1108_s1 + $0x18] sm:$0xff]   ;;  %v813_v22 = vld [vmem:[%s1108_s1 + $0x10] sm:$0xff]  }
  0x1a   : > { %711 = vmatpush3.bf16.msra.mxu0 %v797_v6  ;;  %v806_v15 = vld [vmem:[%s1108_s1 + $0xa0] sm:$0xff]   ;;  %v810_v19 = vld [vmem:[%s1108_s1 + $0x98] sm:$0xff]   ;;  %v814_v23 = vld [vmem:[%s1108_s1 + $0x90] sm:$0xff]  }
  0x1b   : > { %733 = vmatpush3.bf16.msra.mxu1 %v798_v7  ;;  %712 = vmatprep.subr.bf16.mxu0 %v799_v8  ;;  %v815_v24 = vld [vmem:[%s1108_s1 + $0x48] sm:$0xff]   ;;  %v819_v28 = vld [vmem:[%s1108_s1 + $0x40] sm:$0xff]  }
  0x1c   : > { %734 = vmatprep.subr.bf16.mxu1 %v800_v9  ;;  %v816_v25 = vld [vmem:[%s1108_s1 + $0xc8] sm:$0xff]   ;;  %v820_v29 = vld [vmem:[%s1108_s1 + $0xc0] sm:$0xff]  }
  0x1d   : > { %v817_v26 = vld [vmem:[%s1108_s1 + $0x8] sm:$0xff]   ;;  %v821_v30 = vld [vmem:[%s1108_s1] sm:$0xff]  }
  0x1e   : > { %713 = vmatpush3.bf16.msra.mxu0 %v801_v10  ;;  %v818_v27 = vld [vmem:[%s1108_s1 + $0x88] sm:$0xff]   ;;  %v822_v31 = vld [vmem:[%s1108_s1 + $0x80] sm:$0xff]  }
  0x1f   : > { %735 = vmatpush3.bf16.msra.mxu1 %v802_v11  ;;  %714 = vmatprep.subr.bf16.mxu0 %v803_v12  ;;  %v196_v32 = vld [vmem:[%s194_s20] sm:$0xff]  ;;  %v197_v33 = vld [vmem:[%s194_s20 + $0x8] sm:$0xff]  ;;  %s827_s20 = scalar_lea.vmem %s612_s9, 16 }
  0x20   : > { %736 = vmatprep.subr.bf16.mxu1 %v804_v13  ;;  %v200_v34 = vcombine.high %v196_v32, %v196_v32  ;;  %v201_v35 = vcombine.high %v197_v33, %v197_v33  ;;  %v205_v36 = vsel %vm204_vm0, %v196_v32, 0.0  ;;  %v219_v37 = vsel %vm204_vm0, %v197_v33, 0.0  ;;  %p828_p11 = scmp.ne.s32.totalorder %s612_s9, %s827_s20  ;;  %p835_p1 = scmp.lt.s32.totalorder %s833_s19, %s827_s20 }
  0x21   : > { %v206_v38 = vrot.slane %v205_v36, 4  ;;  %v220_v39 = vrot.slane %v219_v37, 4 }
  0x22   : > { %715 = vmatpush3.bf16.msra.mxu0 %v805_v14  ;;  %v212_v40 = vsel %vm204_vm0, %v200_v34, 0.0  ;;  %v226_v41 = vsel %vm204_vm0, %v201_v35, 0.0  ;;  %p829_p12 = pnand %p828_p11, %p953_p5  ;;  %p836_p2 = por %p835_p1, %p834_p0 }
  0x23   : > { %737 = vmatpush3.bf16.msra.mxu1 %v806_v15  ;;  %716 = vmatprep.subr.bf16.mxu0 %v807_v16  ;;  %v213_v42 = vrot.slane %v212_v40, 4  ;;  %v227_v43 = vrot.slane %v226_v41, 4  ;;  %v207_v44 = vadd.f32 %v206_v38, %v205_v36  ;;  %v221_v45 = vadd.f32 %v220_v39, %v219_v37 }
  0x24   : > { %738 = vmatprep.subr.bf16.mxu1 %v808_v17  ;;  %p830_p13 = pneg %p829_p12 }
  0x25   : > { %v214_v46 = vadd.f32 %v213_v42, %v212_v40  ;;  %v228_v47 = vadd.f32 %v227_v43, %v226_v41  ;;  %v208_v48 = vrot.slane %v207_v44, 2  ;;  %v222_v49 = vrot.slane %v221_v45, 2 }
  0x26   : > { %717 = vmatpush3.bf16.msra.mxu0 %v809_v18  ;;  %p837_p3 = pnand %p836_p2, %p830_p13 }
  0x27   : > { %739 = vmatpush3.bf16.msra.mxu1 %v810_v19  ;;  %718 = vmatprep.subr.bf16.mxu0 %v811_v20  ;;  %v215_v50 = vrot.slane %v214_v46, 2  ;;  %v229_v51 = vrot.slane %v228_v47, 2  ;;  %v209_v52 = vadd.f32 %v208_v48, %v207_v44  ;;  %v223_v53 = vadd.f32 %v222_v49, %v221_v45 }
  0x28   : > { %740 = vmatprep.subr.bf16.mxu1 %v812_v21 }
  0x29   : > { %v216_v54 = vadd.f32 %v215_v50, %v214_v46  ;;  %v230_v55 = vadd.f32 %v229_v51, %v228_v47  ;;  %v210_v56 = vrot.slane %v209_v52, 1  ;;  %v224_v57 = vrot.slane %v223_v53, 1 }
  0x2a   : > { %719 = vmatpush3.bf16.msra.mxu0 %v813_v22 }
  0x2b   : > { %741 = vmatpush3.bf16.msra.mxu1 %v814_v23  ;;  %720 = vmatprep.subr.bf16.mxu0 %v815_v24  ;;  %v217_v58 = vrot.slane %v216_v54, 1  ;;  %v231_v59 = vrot.slane %v230_v55, 1  ;;  %v211_v60 = vadd.f32 %v210_v56, %v209_v52  ;;  %v225_v61 = vadd.f32 %v224_v57, %v223_v53 }
  0x2c   : > { %742 = vmatprep.subr.bf16.mxu1 %v816_v25 }
  0x2d   : > { %v218_v62 = vadd.f32 %v217_v58, %v216_v54  ;;  %v232_v63 = vadd.f32 %v231_v59, %v230_v55  ;;  %v234_v0 = vmul.f32 0.25, %v211_v60  ;;  %v236_v1 = vmul.f32 0.25, %v225_v61 }
  0x2e   : > { %721 = vmatpush3.bf16.msra.mxu0 %v817_v26 }
  0x2f   : > { %743 = vmatpush3.bf16.msra.mxu1 %v818_v27  ;;  %722 = vmatprep.subr.bf16.mxu0 %v819_v28  ;;  %v235_v2 = vmul.f32 0.25, %v218_v62  ;;  %v237_v3 = vmul.f32 0.25, %v232_v63  ;;  %v238_v4 = vpack.c.bf16 %v234_v0, %v234_v0  ;;  %v240_v5 = vpack.c.bf16 %v236_v1, %v236_v1 }
  0x30   : > { %744 = vmatprep.subr.bf16.mxu1 %v820_v29  ;;  %v593_v29 = vld [vmem:[%s1109_s2] sm:$0x1] }
  0x31   : > { %v239_v6 = vpack.c.bf16 %v235_v2, %v235_v2  ;;  %v241_v7 = vpack.c.bf16 %v237_v3, %v237_v3 }
  0x32   : > { %723 = vmatpush3.bf16.msra.mxu0 %v821_v30 }
  0x33   : > { %745 = vmatpush3.bf16.msra.mxu1 %v822_v31  ;;  %530 = vmatprep.mubr.bf16.mxu0 %v239_v6  ;;  %v595_v31 = vld [vmem:[%s1110_s3] sm:$0x1] }
  0x34   : > { %570 = vmatprep.mubr.bf16.mxu1 %v241_v7 }
  0x35   : > { %531 = vmatmul.mubr.bf16.vlgmr.msra.gmra.mxu0 %v238_v4 }
  0x36   : > { %571 = vmatmul.mubr.bf16.vlgmr.msra.gmra.mxu1 %v240_v5 }
  0xf5   : > { %v724_v8 = vpop.f32.mrf.mxu0 }
  0xf6   : > { %v746_v9 = vpop.f32.mrf.mxu1 }
  0xf7   : > { %v725_v10 = vpop.f32.mrf.mxu0 }
  0xf8   : > { %v747_v11 = vpop.f32.mrf.mxu1  ;;  %v726_v12 = vadd.f32 %v725_v10, %v724_v8 }
  0xf9   : > { %v748_v13 = vadd.f32 %v747_v11, %v746_v9  ;;  %v727_v14 = vpop.f32.mrf.mxu0 }
  0xfa   : > { %v749_v15 = vpop.f32.mrf.mxu1 }
  0xfb   : > { %v573_v16 = vadd.f32 %v748_v13, %v726_v12  ;;  %v728_v17 = vpop.f32.mrf.mxu0 }
  0xfc   : > { %v750_v18 = vpop.f32.mrf.mxu1 }
  0xfd   : > { %v579_v19 = vsel %vm578_vm1, %v573_v16, 0.0 }
  0xfe   : > { %580 = vadd.xlane.f32.xlu0 %v579_v19 }
 0x187   : > { %v581_v20 = vpop.xlane.xlu0 %580 }
 0x188   : > { %v583_v21 = vmul.f32 0.1, %v581_v20 }
 0x18a   : > { %v584_v22 = vsub.f32 %v573_v16, %v583_v21 }
 0x18c   : > { %v585_v23 = vmul.f32 %v584_v22, %v584_v22 }
 0x18e   : > { %v586_v24 = vsel %vm578_vm1, %v585_v23, 0.0 }
 0x18f   : > { %587 = vadd.xlane.f32.xlu0 %v586_v24 }
 0x218   : > { %v588_v25 = vpop.xlane.xlu0 %587 }
 0x219   : > { %v589_v26 = vmul.f32 0.1, %v588_v25 }
 0x21b   : > { %v590_v27 = vadd.f32 1e-05, %v589_v26 }
 0x21d   : > { %825 = vrsqrt.f32 %v590_v27 }
 0x22a   : > { %v826_v28 = vpop.eup %825 }
 0x22b   : > { %v592_v30 = vmul.f32 %v826_v28, %v584_v22 }
 0x22d   : > { %v594_v32 = vmul.f32 %v593_v29, %v592_v30 }
 0x22f   : > { %v596_v33 = vadd.f32 %v595_v31, %v594_v32 }
 0x231   : > { %597 = vst.msk [vmem:[%s189_s8] sm:$0x1] %vm578_vm1, %v596_v33 }
 0x232   : > { %840 = shalt.err (!%p837_p3)
}
 0x233   : > { %s841_s23 = scalar_lea.hbm %s609_s12, 16  ;;  %s845_s29 = scalar_lea.hbm %s1111_s4, 32 }
 0x234   : > { %p842_p4 = scmp.ne.s32.totalorder %s609_s12, %s841_s23  ;;  %p846_p9 = scmp.lt.s32.totalorder %s609_s12, %s1111_s4 }
 0x235   : > { %p847_p10 = scmp.lt.s32.totalorder %s845_s29, %s841_s23 }
 0x236   : > { %p843_p7 = pnand %p842_p4, %p953_p5 }
 0x237   : > { %p848_p11 = por %p847_p10, %p846_p9 }
 0x238   : > { %p844_p8 = pneg %p843_p7 }
 0x23a   : > { %p849_p12 = pnand %p848_p11, %p844_p8 }
 0x23c   : > { %852 = shalt.err (!%p849_p12)
}
 0x23d   : > { %752 = dma.vmem_to_hbm [thread:$0]  (%p953_p5), %s612_s9, 16, %s609_s12, %s599_s14  }
 0x23e PF: > { %p758_p13 = scmp.ge.s32.totalorder %s887_s18, 2  ;;  %s623_s6 = sand.u32 1, %s875_s15  }
 0x23f   : > { %s624_s7 = scalar_lea.sflag [#allocation3], %s623_s6 }
 0x240   : > { %p755_p0 = pnand %p758_p13, %p957_p6 }
 0x242   : > { %p756_p1 = pneg %p755_p0 }
 0x244   : > { %870 = dma.done.wait (%p756_p1), %s624_s7, 16  }
 0x245   : > { %872 = vsyncadd (%p756_p1), %s624_s7, 4294967280  ;;  %p14_p2 = scmp.ge.s32.totalorder %s940_s21, 4   ;;  %s1114_s15 = smov %s879_s16 }
 0x246   : > { %s1115_s16 = smov %s883_s17  ;;  %s1116_s17 = smov %s951_s24 }
 0x247   : > { %s1117_s18 = smov %s940_s21  ;;  %16 = sbr.rel (!%p14_p2) target bundleno = 3 (0x3), region = 71 }
 0x24c   :  { %628 = vsyncpa [#allocation3], 1 }
 0x24d   :  { %630 = vsyncpa [#allocation3 + $0x1], 1 }

// kernel: forward.25
= control target key start
LH: loop header
LB: loop body
LE: loop exit
PB: predicated region body
PF: predicated region fallthrough
CT: control target
= control target key end

     0   :  { %s3577_s15 = smov 0   ;;  %s3579_s16 = smov 0   ;;  %s4025_s0 = inlined_call_operand.vmem [shape: bf16[2,4,4608], index: 0, kind: input, shape index: {}]   ;;  %s4026_s1 = inlined_call_operand.vmem [shape: bf16[4608,512], index: 1, kind: input, shape index: {}]   ;;  %s4027_s2 = inlined_call_operand.vmem [shape: f32[1,512], index: 2, kind: input, shape index: {}]   ;;  %s4028_s3 = inlined_call_operand.vmem [shape: f32[1,512], index: 3, kind: input, shape index: {}]   ;;  %s4029_s4 = inlined_call_operand.vmem [shape: f32[2,4,512], index: 4, kind: output, shape index: {}]  }
   0x1   :  { %s3581_s17 = smov 0   ;;  %s3583_s18 = smov 0  }
   0x2   :  { %s3585_s19 = smov 0  }
   0x3 LB: > { %s23_s20 = sadd.s32 1, %s3539_s17  ;;  %s26_s21 = sadd.s32 1, %s3543_s18  ;;  %s3547_s19 = sphi %s3585_s19, %s14_s19   ;;  %s3543_s18 = sphi %s3583_s18, %s4033_s18   ;;  %s3539_s17 = sphi %s3581_s17, %s4032_s17   ;;  %s3535_s16 = sphi %s3579_s16, %s4031_s16   ;;  %s3531_s15 = sphi %s3577_s15, %s4030_s15  }
   0x4   : > { %p24_p0 = scmp.ge.s32.totalorder %s23_s20, 4  ;;  %p2720_p1 = scmp.ge.s32.totalorder %s3547_s19, 1 }
   0x5   : > { %p193_p2 = scmp.lt.s32.totalorder %s3547_s19, 9 }
   0x6   : > { %s4035_s20 = smov (%p24_p0, %s23_s20), 0  ;;  %s4037_s21 = smov (!%p24_p0, %s26_s21), %s3543_s18 }
   0x7   : > { %p194_p3 = pnand %p2720_p1, %p193_p2  ;;  %p28_p4 = scmp.ge.s32.totalorder %s4037_s21, 2 }
   0x8   : > { %s229_s22 = smul.u32 (!%p194_p3), 9, %s3531_s15  ;;  %p230_p5 = scmp.lt.s32.totalorder (!%p194_p3), %s3535_s16, 1 }
   0x9   : > { %s4039_s21 = smov (%p28_p4, %s4037_s21), 0  ;;  %197 = sbr.rel (%p194_p3) target bundleno = 593 (0x251), region = 36 }
   0xa   : > { %s239_s23 = smul.u32 (!%p194_p3), 144, %s3531_s15  ;;  %p232_p6 = scmp.lt.s32.totalorder (!%p194_p3), %s229_s22, 35 }
   0xb   : > { %p2726_p8 = scmp.ne.s32.totalorder (!%p194_p3), %s3531_s15, 0 }
   0xc   : > { %p240_p7 = scmp.lt.s32.totalorder (!%p194_p3), %s239_s23, 575 }
   0xe   : > { %s4041_s16 = smov (!%p230_p5, %s3535_s16), 1  ;;  %s4043_s22 = smov (!%p232_p6, %s229_s22), 35 }
   0xf   : > { %s3021_s24 = smul.u32 36, %s4041_s16  ;;  %s3020_s25 = sshll.u32 %s4041_s16, 4 }
  0x10   : > { %s4045_s23 = smov (!%p240_p7, %s239_s23), 575  ;;  %s3614_s29 = scalar_lea.vmem %s4029_s4, %s3020_s25 }
  0x11   : > { %s235_s26 = sadd.s32 %s3021_s24, %s4043_s22  ;;  %s3019_s5 = sshll.u32 %s4045_s23, 4 }
  0x12   : > { %s2721_s30 = sshll.u32 %s235_s26, 1  ;;  %s3624_s11 = scalar_lea.vmem %s4026_s1, %s3019_s5 }
  0x13   : > { %s3619_s8 = scalar_lea.vmem %s4025_s0, %s2721_s30  ;;  %255 = sbr.rel (%p2726_p8) target bundleno = 26 (0x1a), region = 40 }
  0x18   : > { %v3549_v0 = vmov 0.0  }
  0x19   : > { %256 = vst [vmem:[#allocation2] sm:$0xff] %v3549_v0  ;;  %257 = vst [vmem:[#allocation2 + $0x8] sm:$0xff] %v3549_v0 }
  0x1a PF: > { %v3065_v1 = vld [vmem:[%s3624_s11 + $0xe4] ss:$16 sps:$4 sm:$0xff]   ;;  %v3069_v3 = vld [vmem:[%s3624_s11 + $0xe0] ss:$16 sps:$4 sm:$0xff]   ;;  %v3550_v37 = vmov 1983009808   ;;  %v558_v39 = vlaneseq }
  0x1b   : > { %v3067_v2 = vld [vmem:[%s3624_s11 + $0x2e4] ss:$16 sps:$4 sm:$0xff]   ;;  %2044 = vmatprep.subr.bf16.mxu0 %v3065_v1  ;;  %v3070_v4 = vld [vmem:[%s3624_s11 + $0x2e0] ss:$16 sps:$4 sm:$0xff]   ;;  %v556_v38 = vunpack.c.l.s4 %v3550_v37  ;;  %p3016_p9 = scmp.ne.s32.totalorder %s3531_s15, 3 }
  0x1c   : > { %2085 = vmatprep.subr.bf16.mxu1 %v3067_v2  ;;  %v3071_v5 = vld [vmem:[%s3624_s11 + $0xc4] ss:$16 sps:$4 sm:$0xff]   ;;  %2045 = vmatpush1.bf16.msra.mxu0 %v3069_v3  ;;  %v3075_v7 = vld [vmem:[%s3624_s11 + $0xc0] ss:$16 sps:$4 sm:$0xff]   ;;  %v3666_v44 = vshrl.u32 %v558_v39, 7  ;;  %v261_v39 = vld [vmem:[%s3619_s8 + $0x8] sm:$0xff] }
  0x1d   : > { %2086 = vmatpush1.bf16.msra.mxu1 %v3070_v4  ;;  %v3073_v6 = vld [vmem:[%s3624_s11 + $0x2c4] ss:$16 sps:$4 sm:$0xff]   ;;  %2046 = vmatprep.subr.bf16.mxu0 %v3071_v5  ;;  %v3076_v8 = vld [vmem:[%s3624_s11 + $0x2c0] ss:$16 sps:$4 sm:$0xff]   ;;  %v557_v43 = vunpack.c.0.s8 %v556_v38 }
  0x1e   : > { %2087 = vmatprep.subr.bf16.mxu1 %v3073_v6  ;;  %v3077_v9 = vld [vmem:[%s3624_s11 + $0xa4] ss:$16 sps:$4 sm:$0xff]   ;;  %v3081_v11 = vld [vmem:[%s3624_s11 + $0xa0] ss:$16 sps:$4 sm:$0xff]  }
  0x1f   : > { %v3079_v10 = vld [vmem:[%s3624_s11 + $0x2a4] ss:$16 sps:$4 sm:$0xff]   ;;  %v3082_v12 = vld [vmem:[%s3624_s11 + $0x2a0] ss:$16 sps:$4 sm:$0xff]   ;;  %v3674_v50 = vsub.s32 %v557_v43, %v3666_v44 }
  0x20   : > { %2047 = vmatpush1.bf16.msra.mxu0 %v3075_v7  ;;  %v3083_v13 = vld [vmem:[%s3624_s11 + $0x84] ss:$16 sps:$4 sm:$0xff]   ;;  %v3087_v15 = vld [vmem:[%s3624_s11 + $0x80] ss:$16 sps:$4 sm:$0xff]  }
  0x21   : > { %2088 = vmatpush1.bf16.msra.mxu1 %v3076_v8  ;;  %2048 = vmatprep.subr.bf16.mxu0 %v3077_v9  ;;  %v3085_v14 = vld [vmem:[%s3624_s11 + $0x284] ss:$16 sps:$4 sm:$0xff]   ;;  %v3088_v16 = vld [vmem:[%s3624_s11 + $0x280] ss:$16 sps:$4 sm:$0xff]  }
  0x22   : > { %2089 = vmatprep.subr.bf16.mxu1 %v3079_v10  ;;  %v3089_v17 = vld [vmem:[%s3624_s11 + $0x64] ss:$16 sps:$4 sm:$0xff]   ;;  %v3093_v19 = vld [vmem:[%s3624_s11 + $0x60] ss:$16 sps:$4 sm:$0xff]  }
  0x23   : > { %v3091_v18 = vld [vmem:[%s3624_s11 + $0x264] ss:$16 sps:$4 sm:$0xff]   ;;  %v3094_v20 = vld [vmem:[%s3624_s11 + $0x260] ss:$16 sps:$4 sm:$0xff]  }
  0x24   : > { %2049 = vmatpush1.bf16.msra.mxu0 %v3081_v11  ;;  %v3095_v21 = vld [vmem:[%s3624_s11 + $0x44] ss:$16 sps:$4 sm:$0xff]   ;;  %v3099_v23 = vld [vmem:[%s3624_s11 + $0x40] ss:$16 sps:$4 sm:$0xff]  }
  0x25   : > { %2090 = vmatpush1.bf16.msra.mxu1 %v3082_v12  ;;  %2050 = vmatprep.subr.bf16.mxu0 %v3083_v13  ;;  %v3097_v22 = vld [vmem:[%s3624_s11 + $0x244] ss:$16 sps:$4 sm:$0xff]   ;;  %v3100_v24 = vld [vmem:[%s3624_s11 + $0x240] ss:$16 sps:$4 sm:$0xff]  }
  0x26   : > { %2091 = vmatprep.subr.bf16.mxu1 %v3085_v14  ;;  %v3101_v25 = vld [vmem:[%s3624_s11 + $0x24] ss:$16 sps:$4 sm:$0xff]   ;;  %v3105_v27 = vld [vmem:[%s3624_s11 + $0x20] ss:$16 sps:$4 sm:$0xff]  }
  0x27   : > { %v3103_v26 = vld [vmem:[%s3624_s11 + $0x224] ss:$16 sps:$4 sm:$0xff]   ;;  %v3106_v28 = vld [vmem:[%s3624_s11 + $0x220] ss:$16 sps:$4 sm:$0xff]  }
  0x28   : > { %2051 = vmatpush1.bf16.msra.mxu0 %v3087_v15  ;;  %v3107_v29 = vld [vmem:[%s3624_s11 + $0x4] ss:$16 sps:$4 sm:$0xff]   ;;  %v3111_v31 = vld [vmem:[%s3624_s11] ss:$16 sps:$4 sm:$0xff]  }
  0x29   : > { %2092 = vmatpush1.bf16.msra.mxu1 %v3088_v16  ;;  %2052 = vmatprep.subr.bf16.mxu0 %v3089_v17  ;;  %v3109_v30 = vld [vmem:[%s3624_s11 + $0x204] ss:$16 sps:$4 sm:$0xff]   ;;  %v3112_v32 = vld [vmem:[%s3624_s11 + $0x200] ss:$16 sps:$4 sm:$0xff]  }
  0x2a   : > { %2093 = vmatprep.subr.bf16.mxu1 %v3091_v18  ;;  %v3113_v33 = vld [vmem:[%s3624_s11 + $0x1e4] ss:$16 sps:$4 sm:$0xff]   ;;  %v3117_v35 = vld [vmem:[%s3624_s11 + $0x1e0] ss:$16 sps:$4 sm:$0xff]  }
  0x2b   : > { %v3115_v34 = vld [vmem:[%s3624_s11 + $0x3e4] ss:$16 sps:$4 sm:$0xff]   ;;  %v3118_v36 = vld [vmem:[%s3624_s11 + $0x3e0] ss:$16 sps:$4 sm:$0xff]  }
  0x2c   : > { %2053 = vmatpush1.bf16.msra.mxu0 %v3093_v19  ;;  %v3119_v40 = vld [vmem:[%s3624_s11 + $0x1c4] ss:$16 sps:$4 sm:$0xff]   ;;  %v3123_v42 = vld [vmem:[%s3624_s11 + $0x1c0] ss:$16 sps:$4 sm:$0xff]  }
  0x2d   : > { %2094 = vmatpush1.bf16.msra.mxu1 %v3094_v20  ;;  %2054 = vmatprep.subr.bf16.mxu0 %v3095_v21  ;;  %v3121_v41 = vld [vmem:[%s3624_s11 + $0x3c4] ss:$16 sps:$4 sm:$0xff]   ;;  %v3124_v45 = vld [vmem:[%s3624_s11 + $0x3c0] ss:$16 sps:$4 sm:$0xff]  }
  0x2e   : > { %2095 = vmatprep.subr.bf16.mxu1 %v3097_v22  ;;  %v3125_v46 = vld [vmem:[%s3624_s11 + $0x1a4] ss:$16 sps:$4 sm:$0xff]   ;;  %v3129_v48 = vld [vmem:[%s3624_s11 + $0x1a0] ss:$16 sps:$4 sm:$0xff]  }
  0x2f   : > { %v3127_v47 = vld [vmem:[%s3624_s11 + $0x3a4] ss:$16 sps:$4 sm:$0xff]   ;;  %v3130_v49 = vld [vmem:[%s3624_s11 + $0x3a0] ss:$16 sps:$4 sm:$0xff]  }
  0x30   : > { %2055 = vmatpush1.bf16.msra.mxu0 %v3099_v23  ;;  %v3131_v51 = vld [vmem:[%s3624_s11 + $0x184] ss:$16 sps:$4 sm:$0xff]   ;;  %v3135_v54 = vld [vmem:[%s3624_s11 + $0x180] ss:$16 sps:$4 sm:$0xff]  }
  0x31   : > { %2096 = vmatpush1.bf16.msra.mxu1 %v3100_v24  ;;  %2056 = vmatprep.subr.bf16.mxu0 %v3101_v25  ;;  %v3133_v52 = vld [vmem:[%s3624_s11 + $0x384] ss:$16 sps:$4 sm:$0xff]   ;;  %v3136_v57 = vld [vmem:[%s3624_s11 + $0x380] ss:$16 sps:$4 sm:$0xff]  }
  0x32   : > { %2097 = vmatprep.subr.bf16.mxu1 %v3103_v26  ;;  %v260_v53 = vld [vmem:[%s3619_s8] sm:$0xff] }
  0x33   : > { %v3681_v55 = vrot.slane %v260_v53, %v3674_v50  ;;  %v554_v56 = vcombine.high %v260_v53, %v260_v53  ;;  %v3137_v58 = vld [vmem:[%s3624_s11 + $0x164] ss:$16 sps:$4 sm:$0xff]   ;;  %v3141_v62 = vld [vmem:[%s3624_s11 + $0x160] ss:$16 sps:$4 sm:$0xff]  }
  0x34   : > { %2057 = vmatpush1.bf16.msra.mxu0 %v3105_v27  ;;  %v3139_v59 = vld [vmem:[%s3624_s11 + $0x364] ss:$16 sps:$4 sm:$0xff]   ;;  %v3142_v0 = vld [vmem:[%s3624_s11 + $0x360] ss:$16 sps:$4 sm:$0xff]  }
  0x35   : > { %2098 = vmatpush1.bf16.msra.mxu1 %v3106_v28  ;;  %2058 = vmatprep.subr.bf16.mxu0 %v3107_v29  ;;  %v3688_v60 = vcombine.high %v3681_v55, %v3681_v55  ;;  %v3691_v61 = vrot.slane %v554_v56, %v3674_v50  ;;  %v3143_v1 = vld [vmem:[%s3624_s11 + $0x144] ss:$16 sps:$4 sm:$0xff]   ;;  %v3147_v3 = vld [vmem:[%s3624_s11 + $0x140] ss:$16 sps:$4 sm:$0xff]  }
  0x36   : > { %2099 = vmatprep.subr.bf16.mxu1 %v3109_v30  ;;  %v3145_v2 = vld [vmem:[%s3624_s11 + $0x344] ss:$16 sps:$4 sm:$0xff]   ;;  %v3148_v4 = vld [vmem:[%s3624_s11 + $0x340] ss:$16 sps:$4 sm:$0xff]  }
  0x37   : > { %2076 = vmatprep.mubr.bf16.mxu0 %v3688_v60  ;;  %v3697_v63 = vcombine.high %v3691_v61, %v3691_v61  ;;  %v3149_v5 = vld [vmem:[%s3624_s11 + $0x124] ss:$16 sps:$4 sm:$0xff]   ;;  %v3153_v7 = vld [vmem:[%s3624_s11 + $0x120] ss:$16 sps:$4 sm:$0xff]  }
  0x38   : > { %2059 = vmatpush1.bf16.msra.mxu0 %v3111_v31  ;;  %v3151_v6 = vld [vmem:[%s3624_s11 + $0x324] ss:$16 sps:$4 sm:$0xff]   ;;  %v3154_v8 = vld [vmem:[%s3624_s11 + $0x320] ss:$16 sps:$4 sm:$0xff]  }
  0x39   : > { %2100 = vmatpush1.bf16.msra.mxu1 %v3112_v32  ;;  %2060 = vmatprep.subr.bf16.mxu0 %v3113_v33  ;;  %v3155_v9 = vld [vmem:[%s3624_s11 + $0x104] ss:$16 sps:$4 sm:$0xff]   ;;  %v3159_v11 = vld [vmem:[%s3624_s11 + $0x100] ss:$16 sps:$4 sm:$0xff]  }
  0x3a   : > { %2101 = vmatprep.subr.bf16.mxu1 %v3115_v34  ;;  %2117 = vmatprep.mubr.bf16.mxu1 %v3697_v63  ;;  %v3157_v10 = vld [vmem:[%s3624_s11 + $0x304] ss:$16 sps:$4 sm:$0xff]   ;;  %v3160_v12 = vld [vmem:[%s3624_s11 + $0x300] ss:$16 sps:$4 sm:$0xff]  }
  0x3b   : > { %v3164_v13 = vld [vmem:[%s3624_s11 + $0x4e4] ss:$16 sps:$4 sm:$0xff]   ;;  %v3162_v15 = vld [vmem:[%s3624_s11 + $0x4e0] ss:$16 sps:$4 sm:$0xff]  }
  0x3c   : > { %2061 = vmatpush2.bf16.msra.mxu0 %v3117_v35  ;;  %v3167_v14 = vld [vmem:[%s3624_s11 + $0x6e4] ss:$16 sps:$4 sm:$0xff]   ;;  %v3165_v16 = vld [vmem:[%s3624_s11 + $0x6e0] ss:$16 sps:$4 sm:$0xff]  }
  0x3d   : > { %2102 = vmatpush2.bf16.msra.mxu1 %v3118_v36  ;;  %2062 = vmatprep.subr.bf16.mxu0 %v3119_v40  ;;  %v3170_v17 = vld [vmem:[%s3624_s11 + $0x4c4] ss:$16 sps:$4 sm:$0xff]   ;;  %v3168_v19 = vld [vmem:[%s3624_s11 + $0x4c0] ss:$16 sps:$4 sm:$0xff]   ;;  %v3743_v40 = vrot.slane %v261_v39, %v3674_v50 }
  0x3e   : > { %2103 = vmatprep.subr.bf16.mxu1 %v3121_v41  ;;  %v3173_v18 = vld [vmem:[%s3624_s11 + $0x6c4] ss:$16 sps:$4 sm:$0xff]   ;;  %v3171_v20 = vld [vmem:[%s3624_s11 + $0x6c0] ss:$16 sps:$4 sm:$0xff]   ;;  %v571_v41 = vcombine.high %v261_v39, %v261_v39 }
  0x3f   : > { %v3176_v21 = vld [vmem:[%s3624_s11 + $0x4a4] ss:$16 sps:$4 sm:$0xff]   ;;  %v3174_v23 = vld [vmem:[%s3624_s11 + $0x4a0] ss:$16 sps:$4 sm:$0xff]  }
  0x40   : > { %2063 = vmatpush2.bf16.msra.mxu0 %v3123_v42  ;;  %v3179_v22 = vld [vmem:[%s3624_s11 + $0x6a4] ss:$16 sps:$4 sm:$0xff]   ;;  %v3177_v24 = vld [vmem:[%s3624_s11 + $0x6a0] ss:$16 sps:$4 sm:$0xff]  }
  0x41   : > { %2104 = vmatpush2.bf16.msra.mxu1 %v3124_v45  ;;  %2064 = vmatprep.subr.bf16.mxu0 %v3125_v46  ;;  %v3182_v25 = vld [vmem:[%s3624_s11 + $0x484] ss:$16 sps:$4 sm:$0xff]   ;;  %v3180_v27 = vld [vmem:[%s3624_s11 + $0x480] ss:$16 sps:$4 sm:$0xff]   ;;  %v3749_v45 = vcombine.high %v3743_v40, %v3743_v40  ;;  %v3752_v46 = vrot.slane %v571_v41, %v3674_v50  ;;  %v3280_v41 = vld [vmem:[%s3624_s11 + $0x88] ss:$16 sps:$4 sm:$0xff]  }
  0x42   : > { %2105 = vmatprep.subr.bf16.mxu1 %v3127_v47  ;;  %v3185_v26 = vld [vmem:[%s3624_s11 + $0x684] ss:$16 sps:$4 sm:$0xff]   ;;  %v3183_v28 = vld [vmem:[%s3624_s11 + $0x680] ss:$16 sps:$4 sm:$0xff]  }
  0x43   : > { %v3188_v29 = vld [vmem:[%s3624_s11 + $0x464] ss:$16 sps:$4 sm:$0xff]   ;;  %v3186_v31 = vld [vmem:[%s3624_s11 + $0x460] ss:$16 sps:$4 sm:$0xff]  }
  0x44   : > { %2065 = vmatpush2.bf16.msra.mxu0 %v3129_v48  ;;  %v3191_v30 = vld [vmem:[%s3624_s11 + $0x664] ss:$16 sps:$4 sm:$0xff]   ;;  %v3189_v32 = vld [vmem:[%s3624_s11 + $0x660] ss:$16 sps:$4 sm:$0xff]  }
  0x45   : > { %2106 = vmatpush2.bf16.msra.mxu1 %v3130_v49  ;;  %2066 = vmatprep.subr.bf16.mxu0 %v3131_v51  ;;  %v3194_v33 = vld [vmem:[%s3624_s11 + $0x444] ss:$16 sps:$4 sm:$0xff]   ;;  %v3192_v35 = vld [vmem:[%s3624_s11 + $0x440] ss:$16 sps:$4 sm:$0xff]   ;;  %v3759_v49 = vcombine.high %v3752_v46, %v3752_v46 }
  0x46   : > { %2107 = vmatprep.subr.bf16.mxu1 %v3133_v52  ;;  %v3197_v34 = vld [vmem:[%s3624_s11 + $0x644] ss:$16 sps:$4 sm:$0xff]   ;;  %v3195_v36 = vld [vmem:[%s3624_s11 + $0x640] ss:$16 sps:$4 sm:$0xff]  }
  0x47   : > { %v3200_v37 = vld [vmem:[%s3624_s11 + $0x424] ss:$16 sps:$4 sm:$0xff]   ;;  %v3198_v42 = vld [vmem:[%s3624_s11 + $0x420] ss:$16 sps:$4 sm:$0xff]  }
  0x48   : > { %2067 = vmatpush2.bf16.msra.mxu0 %v3135_v54  ;;  %v3203_v38 = vld [vmem:[%s3624_s11 + $0x624] ss:$16 sps:$4 sm:$0xff]   ;;  %v3201_v43 = vld [vmem:[%s3624_s11 + $0x620] ss:$16 sps:$4 sm:$0xff]  }
  0x49   : > { %2108 = vmatpush2.bf16.msra.mxu1 %v3136_v57  ;;  %2068 = vmatprep.subr.bf16.mxu0 %v3137_v58  ;;  %v3206_v47 = vld [vmem:[%s3624_s11 + $0x404] ss:$16 sps:$4 sm:$0xff]   ;;  %v3204_v51 = vld [vmem:[%s3624_s11 + $0x400] ss:$16 sps:$4 sm:$0xff]  }
  0x4a   : > { %2109 = vmatprep.subr.bf16.mxu1 %v3139_v59  ;;  %v3209_v48 = vld [vmem:[%s3624_s11 + $0x604] ss:$16 sps:$4 sm:$0xff]   ;;  %v3207_v52 = vld [vmem:[%s3624_s11 + $0x600] ss:$16 sps:$4 sm:$0xff]  }
  0x4b   : > { %v3212_v50 = vld [vmem:[%s3624_s11 + $0x5e4] ss:$16 sps:$4 sm:$0xff]   ;;  %v3210_v54 = vld [vmem:[%s3624_s11 + $0x5e0] ss:$16 sps:$4 sm:$0xff]  }
  0x4c   : > { %2069 = vmatpush2.bf16.msra.mxu0 %v3141_v62  ;;  %v3215_v53 = vld [vmem:[%s3624_s11 + $0x7e4] ss:$16 sps:$4 sm:$0xff]   ;;  %v3213_v56 = vld [vmem:[%s3624_s11 + $0x7e0] ss:$16 sps:$4 sm:$0xff]  }
  0x4d   : > { %2110 = vmatpush2.bf16.msra.mxu1 %v3142_v0  ;;  %2070 = vmatprep.subr.bf16.mxu0 %v3143_v1  ;;  %v3218_v57 = vld [vmem:[%s3624_s11 + $0x5c4] ss:$16 sps:$4 sm:$0xff]   ;;  %v3216_v59 = vld [vmem:[%s3624_s11 + $0x5c0] ss:$16 sps:$4 sm:$0xff]  }
  0x4e   : > { %2111 = vmatprep.subr.bf16.mxu1 %v3145_v2  ;;  %v3221_v58 = vld [vmem:[%s3624_s11 + $0x7c4] ss:$16 sps:$4 sm:$0xff]   ;;  %v3219_v62 = vld [vmem:[%s3624_s11 + $0x7c0] ss:$16 sps:$4 sm:$0xff]  }
  0x4f   : > { %v3224_v0 = vld [vmem:[%s3624_s11 + $0x5a4] ss:$16 sps:$4 sm:$0xff]   ;;  %v3222_v2 = vld [vmem:[%s3624_s11 + $0x5a0] ss:$16 sps:$4 sm:$0xff]  }
  0x50   : > { %2071 = vmatpush2.bf16.msra.mxu0 %v3147_v3  ;;  %v3227_v1 = vld [vmem:[%s3624_s11 + $0x7a4] ss:$16 sps:$4 sm:$0xff]   ;;  %v3225_v3 = vld [vmem:[%s3624_s11 + $0x7a0] ss:$16 sps:$4 sm:$0xff]  }
  0x51   : > { %2112 = vmatpush2.bf16.msra.mxu1 %v3148_v4  ;;  %2072 = vmatprep.subr.bf16.mxu0 %v3149_v5  ;;  %v3230_v4 = vld [vmem:[%s3624_s11 + $0x584] ss:$16 sps:$4 sm:$0xff]   ;;  %v3277_v39 = vld [vmem:[%s3624_s11 + $0x880] ss:$16 sps:$4 sm:$0xff]  }
  0x52   : > { %2113 = vmatprep.subr.bf16.mxu1 %v3151_v6  ;;  %v3233_v5 = vld [vmem:[%s3624_s11 + $0x784] ss:$16 sps:$4 sm:$0xff]   ;;  %v3228_v6 = vld [vmem:[%s3624_s11 + $0x580] ss:$16 sps:$4 sm:$0xff]  }
  0x54   : > { %2073 = vmatpush2.bf16.msra.mxu0 %v3153_v7  ;;  %v3231_v7 = vld [vmem:[%s3624_s11 + $0x780] ss:$16 sps:$4 sm:$0xff]  }
  0x55   : > { %2114 = vmatpush2.bf16.msra.mxu1 %v3154_v8  ;;  %2074 = vmatprep.subr.bf16.mxu0 %v3155_v9  ;;  %v3236_v8 = vld [vmem:[%s3624_s11 + $0x564] ss:$16 sps:$4 sm:$0xff]  }
  0x56   : > { %2115 = vmatprep.subr.bf16.mxu1 %v3157_v10  ;;  %v3239_v9 = vld [vmem:[%s3624_s11 + $0x764] ss:$16 sps:$4 sm:$0xff]   ;;  %v3234_v10 = vld [vmem:[%s3624_s11 + $0x560] ss:$16 sps:$4 sm:$0xff]  }
  0x58   : > { %2075 = vmatpush2.bf16.msra.mxu0 %v3159_v11  ;;  %v3237_v11 = vld [vmem:[%s3624_s11 + $0x760] ss:$16 sps:$4 sm:$0xff]  }
  0x59   : > { %2116 = vmatpush2.bf16.msra.mxu1 %v3160_v12  ;;  %2126 = vmatprep.subr.bf16.mxu0 %v3164_v13  ;;  %v3242_v12 = vld [vmem:[%s3624_s11 + $0x544] ss:$16 sps:$4 sm:$0xff]  }
  0x5a   : > { %2167 = vmatprep.subr.bf16.mxu1 %v3167_v14  ;;  %v3245_v13 = vld [vmem:[%s3624_s11 + $0x744] ss:$16 sps:$4 sm:$0xff]   ;;  %v3240_v14 = vld [vmem:[%s3624_s11 + $0x540] ss:$16 sps:$4 sm:$0xff]  }
  0x5b   : > { %2077 = vmatmul.mubr.bf16.vlgmr.msra.gmra.mxu0 %v3681_v55 }
  0x5c   : > { %2118 = vmatmul.mubr.bf16.vlgmr.msra.gmra.mxu1 %v3691_v61  ;;  %2127 = vmatpush1.bf16.msra.mxu0 %v3162_v15  ;;  %v3243_v15 = vld [vmem:[%s3624_s11 + $0x740] ss:$16 sps:$4 sm:$0xff]  }
  0x5d   : > { %2168 = vmatpush1.bf16.msra.mxu1 %v3165_v16  ;;  %2128 = vmatprep.subr.bf16.mxu0 %v3170_v17  ;;  %v3248_v16 = vld [vmem:[%s3624_s11 + $0x524] ss:$16 sps:$4 sm:$0xff]  }
  0x5e   : > { %2169 = vmatprep.subr.bf16.mxu1 %v3173_v18  ;;  %2158 = vmatprep.mubr.bf16.mxu0 %v3749_v45  ;;  %v3251_v17 = vld [vmem:[%s3624_s11 + $0x724] ss:$16 sps:$4 sm:$0xff]   ;;  %v3246_v18 = vld [vmem:[%s3624_s11 + $0x520] ss:$16 sps:$4 sm:$0xff]  }
  0x5f   : > { %2199 = vmatprep.mubr.bf16.mxu1 %v3759_v49 }
  0x60   : > { %2129 = vmatpush1.bf16.msra.mxu0 %v3168_v19  ;;  %v3249_v19 = vld [vmem:[%s3624_s11 + $0x720] ss:$16 sps:$4 sm:$0xff]  }
  0x61   : > { %2170 = vmatpush1.bf16.msra.mxu1 %v3171_v20  ;;  %2130 = vmatprep.subr.bf16.mxu0 %v3176_v21  ;;  %v3254_v20 = vld [vmem:[%s3624_s11 + $0x504] ss:$16 sps:$4 sm:$0xff]  }
  0x62   : > { %2171 = vmatprep.subr.bf16.mxu1 %v3179_v22  ;;  %v3257_v21 = vld [vmem:[%s3624_s11 + $0x704] ss:$16 sps:$4 sm:$0xff]   ;;  %v3252_v22 = vld [vmem:[%s3624_s11 + $0x500] ss:$16 sps:$4 sm:$0xff]  }
  0x64   : > { %2131 = vmatpush1.bf16.msra.mxu0 %v3174_v23  ;;  %v3255_v23 = vld [vmem:[%s3624_s11 + $0x700] ss:$16 sps:$4 sm:$0xff]  }
  0x65   : > { %2172 = vmatpush1.bf16.msra.mxu1 %v3177_v24  ;;  %2132 = vmatprep.subr.bf16.mxu0 %v3182_v25  ;;  %v3261_v24 = vld [vmem:[%s3624_s11 + $0x8e4] ss:$16 sps:$4 sm:$0xff]   ;;  %v3264_v25 = vld [vmem:[%s3624_s11 + $0xec] ss:$16 sps:$4 sm:$0xff]  }
  0x66   : > { %2173 = vmatprep.subr.bf16.mxu1 %v3185_v26  ;;  %v3259_v26 = vld [vmem:[%s3624_s11 + $0x8e0] ss:$16 sps:$4 sm:$0xff]  }
  0x68   : > { %2133 = vmatpush1.bf16.msra.mxu0 %v3180_v27  ;;  %v3262_v27 = vld [vmem:[%s3624_s11 + $0xe8] ss:$16 sps:$4 sm:$0xff]  }
  0x69   : > { %2174 = vmatpush1.bf16.msra.mxu1 %v3183_v28  ;;  %2134 = vmatprep.subr.bf16.mxu0 %v3188_v29  ;;  %v3267_v28 = vld [vmem:[%s3624_s11 + $0x8c4] ss:$16 sps:$4 sm:$0xff]   ;;  %v3270_v29 = vld [vmem:[%s3624_s11 + $0xcc] ss:$16 sps:$4 sm:$0xff]  }
  0x6a   : > { %2175 = vmatprep.subr.bf16.mxu1 %v3191_v30  ;;  %v3265_v30 = vld [vmem:[%s3624_s11 + $0x8c0] ss:$16 sps:$4 sm:$0xff]  }
  0x6c   : > { %2135 = vmatpush1.bf16.msra.mxu0 %v3186_v31  ;;  %v3268_v31 = vld [vmem:[%s3624_s11 + $0xc8] ss:$16 sps:$4 sm:$0xff]  }
  0x6d   : > { %2176 = vmatpush1.bf16.msra.mxu1 %v3189_v32  ;;  %2136 = vmatprep.subr.bf16.mxu0 %v3194_v33  ;;  %v3273_v32 = vld [vmem:[%s3624_s11 + $0x8a4] ss:$16 sps:$4 sm:$0xff]   ;;  %v3276_v33 = vld [vmem:[%s3624_s11 + $0xac] ss:$16 sps:$4 sm:$0xff]  }
  0x6e   : > { %2177 = vmatprep.subr.bf16.mxu1 %v3197_v34  ;;  %v3551_v34 = vmov 0  }
  0x70   : > { %2137 = vmatpush1.bf16.msra.mxu0 %v3192_v35  ;;  %v3271_v35 = vld [vmem:[%s3624_s11 + $0x8a0] ss:$16 sps:$4 sm:$0xff]  }
  0x71   : > { %2178 = vmatpush1.bf16.msra.mxu1 %v3195_v36  ;;  %2138 = vmatprep.subr.bf16.mxu0 %v3200_v37  ;;  %v3274_v36 = vld [vmem:[%s3624_s11 + $0xa8] ss:$16 sps:$4 sm:$0xff]   ;;  %v3279_v37 = vld [vmem:[%s3624_s11 + $0x884] ss:$16 sps:$4 sm:$0xff]  }
  0x72   : > { %2179 = vmatprep.subr.bf16.mxu1 %v3203_v38  ;;  %v3282_v38 = vld [vmem:[%s3624_s11 + $0x8c] ss:$16 sps:$4 sm:$0xff]  }
  0x74   : > { %2139 = vmatpush1.bf16.msra.mxu0 %v3198_v42  ;;  %v3288_v42 = vld [vmem:[%s3624_s11 + $0x6c] ss:$16 sps:$4 sm:$0xff]  }
  0x75   : > { %2180 = vmatpush1.bf16.msra.mxu1 %v3201_v43  ;;  %2140 = vmatprep.subr.bf16.mxu0 %v3206_v47  ;;  %v3283_v43 = vld [vmem:[%s3624_s11 + $0x860] ss:$16 sps:$4 sm:$0xff]   ;;  %v3286_v47 = vld [vmem:[%s3624_s11 + $0x68] ss:$16 sps:$4 sm:$0xff]  }
  0x76   : > { %2181 = vmatprep.subr.bf16.mxu1 %v3209_v48  ;;  %v3291_v48 = vld [vmem:[%s3624_s11 + $0x844] ss:$16 sps:$4 sm:$0xff]  }
  0x78   : > { %2141 = vmatpush1.bf16.msra.mxu0 %v3204_v51  ;;  %v3294_v51 = vld [vmem:[%s3624_s11 + $0x4c] ss:$16 sps:$4 sm:$0xff]  }
  0x79   : > { %2182 = vmatpush1.bf16.msra.mxu1 %v3207_v52  ;;  %2142 = vmatprep.subr.bf16.mxu0 %v3212_v50  ;;  %v3289_v52 = vld [vmem:[%s3624_s11 + $0x840] ss:$16 sps:$4 sm:$0xff]   ;;  %v3292_v50 = vld [vmem:[%s3624_s11 + $0x48] ss:$16 sps:$4 sm:$0xff]  }
  0x7a   : > { %2183 = vmatprep.subr.bf16.mxu1 %v3215_v53  ;;  %v3297_v53 = vld [vmem:[%s3624_s11 + $0x824] ss:$16 sps:$4 sm:$0xff]  }
  0x7c   : > { %2143 = vmatpush2.bf16.msra.mxu0 %v3210_v54  ;;  %v3300_v54 = vld [vmem:[%s3624_s11 + $0x2c] ss:$16 sps:$4 sm:$0xff]  }
  0x7d   : > { %2184 = vmatpush2.bf16.msra.mxu1 %v3213_v56  ;;  %2144 = vmatprep.subr.bf16.mxu0 %v3218_v57  ;;  %v3295_v56 = vld [vmem:[%s3624_s11 + $0x820] ss:$16 sps:$4 sm:$0xff]   ;;  %v3298_v57 = vld [vmem:[%s3624_s11 + $0x28] ss:$16 sps:$4 sm:$0xff]  }
  0x7e   : > { %2185 = vmatprep.subr.bf16.mxu1 %v3221_v58  ;;  %v3303_v58 = vld [vmem:[%s3624_s11 + $0x804] ss:$16 sps:$4 sm:$0xff]  }
  0x80   : > { %2145 = vmatpush2.bf16.msra.mxu0 %v3216_v59  ;;  %v3306_v59 = vld [vmem:[%s3624_s11 + $0xc] ss:$16 sps:$4 sm:$0xff]  }
  0x81   : > { %2186 = vmatpush2.bf16.msra.mxu1 %v3219_v62  ;;  %2146 = vmatprep.subr.bf16.mxu0 %v3224_v0  ;;  %v3301_v62 = vld [vmem:[%s3624_s11 + $0x800] ss:$16 sps:$4 sm:$0xff]   ;;  %v3304_v0 = vld [vmem:[%s3624_s11 + $0x8] ss:$16 sps:$4 sm:$0xff]  }
  0x82   : > { %2187 = vmatprep.subr.bf16.mxu1 %v3227_v1  ;;  %v3309_v1 = vld [vmem:[%s3624_s11 + $0x1ec] ss:$16 sps:$4 sm:$0xff]  }
  0x84   : > { %2147 = vmatpush2.bf16.msra.mxu0 %v3222_v2  ;;  %v3312_v2 = vld [vmem:[%s3624_s11 + $0x2ec] ss:$16 sps:$4 sm:$0xff]  }
  0x85   : > { %2188 = vmatpush2.bf16.msra.mxu1 %v3225_v3  ;;  %2148 = vmatprep.subr.bf16.mxu0 %v3230_v4  ;;  %v3835_v3 = vld.sshfl [vmem:[%s3619_s8 + $0x10] sm:$0x3 pattern:$0x76325410]  ;;  %v3307_v4 = vld [vmem:[%s3624_s11 + $0x1e8] ss:$16 sps:$4 sm:$0xff]  }
  0x86   : > { %2189 = vmatprep.subr.bf16.mxu1 %v3233_v5  ;;  %v3310_v5 = vld [vmem:[%s3624_s11 + $0x2e8] ss:$16 sps:$4 sm:$0xff]  }
  0x88   : > { %2149 = vmatpush2.bf16.msra.mxu0 %v3228_v6  ;;  %v3315_v6 = vld [vmem:[%s3624_s11 + $0x1cc] ss:$16 sps:$4 sm:$0xff]  }
  0x89   : > { %2190 = vmatpush2.bf16.msra.mxu1 %v3231_v7  ;;  %2150 = vmatprep.subr.bf16.mxu0 %v3236_v8  ;;  %v3318_v7 = vld [vmem:[%s3624_s11 + $0x2cc] ss:$16 sps:$4 sm:$0xff]   ;;  %v3313_v8 = vld [vmem:[%s3624_s11 + $0x1c8] ss:$16 sps:$4 sm:$0xff]  }
  0x8a   : > { %2191 = vmatprep.subr.bf16.mxu1 %v3239_v9  ;;  %v3316_v9 = vld [vmem:[%s3624_s11 + $0x2c8] ss:$16 sps:$4 sm:$0xff]  }
  0x8c   : > { %2151 = vmatpush2.bf16.msra.mxu0 %v3234_v10  ;;  %v3321_v10 = vld [vmem:[%s3624_s11 + $0x1ac] ss:$16 sps:$4 sm:$0xff]  }
  0x8d   : > { %2192 = vmatpush2.bf16.msra.mxu1 %v3237_v11  ;;  %2152 = vmatprep.subr.bf16.mxu0 %v3242_v12  ;;  %v3324_v11 = vld [vmem:[%s3624_s11 + $0x2ac] ss:$16 sps:$4 sm:$0xff]   ;;  %v3319_v12 = vld [vmem:[%s3624_s11 + $0x1a8] ss:$16 sps:$4 sm:$0xff]  }
  0x8e   : > { %2193 = vmatprep.subr.bf16.mxu1 %v3245_v13  ;;  %v3322_v13 = vld [vmem:[%s3624_s11 + $0x2a8] ss:$16 sps:$4 sm:$0xff]  }
  0x90   : > { %2153 = vmatpush2.bf16.msra.mxu0 %v3240_v14  ;;  %v3327_v14 = vld [vmem:[%s3624_s11 + $0x18c] ss:$16 sps:$4 sm:$0xff]  }
  0x91   : > { %2194 = vmatpush2.bf16.msra.mxu1 %v3243_v15  ;;  %2154 = vmatprep.subr.bf16.mxu0 %v3248_v16  ;;  %v3330_v15 = vld [vmem:[%s3624_s11 + $0x28c] ss:$16 sps:$4 sm:$0xff]   ;;  %v3325_v16 = vld [vmem:[%s3624_s11 + $0x188] ss:$16 sps:$4 sm:$0xff]  }
  0x92   : > { %2195 = vmatprep.subr.bf16.mxu1 %v3251_v17  ;;  %v3328_v17 = vld [vmem:[%s3624_s11 + $0x288] ss:$16 sps:$4 sm:$0xff]  }
  0x94   : > { %2155 = vmatpush2.bf16.msra.mxu0 %v3246_v18  ;;  %v3336_v18 = vld [vmem:[%s3624_s11 + $0x26c] ss:$16 sps:$4 sm:$0xff]  }
  0x95   : > { %2196 = vmatpush2.bf16.msra.mxu1 %v3249_v19  ;;  %2156 = vmatprep.subr.bf16.mxu0 %v3254_v20  ;;  %v3331_v19 = vld [vmem:[%s3624_s11 + $0x168] ss:$16 sps:$4 sm:$0xff]  }
  0x96   : > { %2197 = vmatprep.subr.bf16.mxu1 %v3257_v21  ;;  %v3334_v20 = vld [vmem:[%s3624_s11 + $0x268] ss:$16 sps:$4 sm:$0xff]   ;;  %v3339_v21 = vld [vmem:[%s3624_s11 + $0x14c] ss:$16 sps:$4 sm:$0xff]  }
  0x98   : > { %2157 = vmatpush2.bf16.msra.mxu0 %v3252_v22  ;;  %v3342_v22 = vld [vmem:[%s3624_s11 + $0x24c] ss:$16 sps:$4 sm:$0xff]  }
  0x99   : > { %2198 = vmatpush2.bf16.msra.mxu1 %v3255_v23  ;;  %2208 = vmatprep.subr.bf16.mxu0 %v3261_v24  ;;  %v3337_v23 = vld [vmem:[%s3624_s11 + $0x148] ss:$16 sps:$4 sm:$0xff]  }
  0x9a   : > { %2249 = vmatprep.subr.bf16.mxu1 %v3264_v25  ;;  %v3340_v24 = vld [vmem:[%s3624_s11 + $0x248] ss:$16 sps:$4 sm:$0xff]   ;;  %v3345_v25 = vld [vmem:[%s3624_s11 + $0x12c] ss:$16 sps:$4 sm:$0xff]  }
  0x9b   : > { %2159 = vmatmul.mubr.bf16.vlgmr.msra.gmra.mxu0 %v3743_v40 }
  0x9c   : > { %2200 = vmatmul.mubr.bf16.vlgmr.msra.gmra.mxu1 %v3752_v46  ;;  %2209 = vmatpush1.bf16.msra.mxu0 %v3259_v26  ;;  %v3348_v26 = vld [vmem:[%s3624_s11 + $0x22c] ss:$16 sps:$4 sm:$0xff]  }
  0x9d   : > { %2250 = vmatpush1.bf16.msra.mxu1 %v3262_v27  ;;  %2210 = vmatprep.subr.bf16.mxu0 %v3267_v28  ;;  %v3343_v27 = vld [vmem:[%s3624_s11 + $0x128] ss:$16 sps:$4 sm:$0xff]  }
  0x9e   : > { %2251 = vmatprep.subr.bf16.mxu1 %v3270_v29  ;;  %2240 = vmatprep.mubr.bf16.mxu0 %v3551_v34  ;;  %v3346_v28 = vld [vmem:[%s3624_s11 + $0x228] ss:$16 sps:$4 sm:$0xff]   ;;  %v3351_v29 = vld [vmem:[%s3624_s11 + $0x10c] ss:$16 sps:$4 sm:$0xff]  }
  0x9f   : > { %2281 = vmatprep.mubr.bf16.mxu1 %v3688_v60  ;;  %v3285_v60 = vld [vmem:[%s3624_s11 + $0x864] ss:$16 sps:$4 sm:$0xff]  }
  0xa0   : > { %2211 = vmatpush1.bf16.msra.mxu0 %v3265_v30  ;;  %v3354_v30 = vld [vmem:[%s3624_s11 + $0x20c] ss:$16 sps:$4 sm:$0xff]  }
  0xa1   : > { %2252 = vmatpush1.bf16.msra.mxu1 %v3268_v31  ;;  %2212 = vmatprep.subr.bf16.mxu0 %v3273_v32  ;;  %v3349_v31 = vld [vmem:[%s3624_s11 + $0x108] ss:$16 sps:$4 sm:$0xff]  }
  0xa2   : > { %2253 = vmatprep.subr.bf16.mxu1 %v3276_v33  ;;  %v3352_v32 = vld [vmem:[%s3624_s11 + $0x208] ss:$16 sps:$4 sm:$0xff]   ;;  %v3357_v33 = vld [vmem:[%s3624_s11 + $0x3ec] ss:$16 sps:$4 sm:$0xff]  }
  0xa4   : > { %2213 = vmatpush1.bf16.msra.mxu0 %v3271_v35  ;;  %v3360_v35 = vld [vmem:[%s3624_s11 + $0x4ec] ss:$16 sps:$4 sm:$0xff]  }
  0xa5   : > { %2254 = vmatpush1.bf16.msra.mxu1 %v3274_v36  ;;  %2214 = vmatprep.subr.bf16.mxu0 %v3279_v37  ;;  %v3355_v36 = vld [vmem:[%s3624_s11 + $0x3e8] ss:$16 sps:$4 sm:$0xff]  }
  0xa6   : > { %2255 = vmatprep.subr.bf16.mxu1 %v3282_v38  ;;  %v3358_v37 = vld [vmem:[%s3624_s11 + $0x4e8] ss:$16 sps:$4 sm:$0xff]   ;;  %v3363_v38 = vld [vmem:[%s3624_s11 + $0x3cc] ss:$16 sps:$4 sm:$0xff]  }
  0xa8   : > { %2215 = vmatpush1.bf16.msra.mxu0 %v3277_v39  ;;  %v3366_v39 = vld [vmem:[%s3624_s11 + $0x4cc] ss:$16 sps:$4 sm:$0xff]  }
  0xa9   : > { %2256 = vmatpush1.bf16.msra.mxu1 %v3280_v41  ;;  %2216 = vmatprep.subr.bf16.mxu0 %v3285_v60  ;;  %v3361_v41 = vld [vmem:[%s3624_s11 + $0x3c8] ss:$16 sps:$4 sm:$0xff]  }
  0xaa   : > { %2257 = vmatprep.subr.bf16.mxu1 %v3288_v42  ;;  %v3364_v60 = vld [vmem:[%s3624_s11 + $0x4c8] ss:$16 sps:$4 sm:$0xff]   ;;  %v3369_v42 = vld [vmem:[%s3624_s11 + $0x3ac] ss:$16 sps:$4 sm:$0xff]  }
  0xac   : > { %2217 = vmatpush1.bf16.msra.mxu0 %v3283_v43  ;;  %v3372_v43 = vld [vmem:[%s3624_s11 + $0x4ac] ss:$16 sps:$4 sm:$0xff]  }
  0xad   : > { %2258 = vmatpush1.bf16.msra.mxu1 %v3286_v47  ;;  %2218 = vmatprep.subr.bf16.mxu0 %v3291_v48  ;;  %v3367_v47 = vld [vmem:[%s3624_s11 + $0x3a8] ss:$16 sps:$4 sm:$0xff]   ;;  %v3375_v48 = vld [vmem:[%s3624_s11 + $0x38c] ss:$16 sps:$4 sm:$0xff]  }
  0xae   : > { %2259 = vmatprep.subr.bf16.mxu1 %v3294_v51  ;;  %v3378_v51 = vld [vmem:[%s3624_s11 + $0x48c] ss:$16 sps:$4 sm:$0xff]  }
  0xb0   : > { %2219 = vmatpush1.bf16.msra.mxu0 %v3289_v52  ;;  %v3373_v52 = vld [vmem:[%s3624_s11 + $0x388] ss:$16 sps:$4 sm:$0xff]  }
  0xb1   : > { %2260 = vmatpush1.bf16.msra.mxu1 %v3292_v50  ;;  %2220 = vmatprep.subr.bf16.mxu0 %v3297_v53  ;;  %v3376_v50 = vld [vmem:[%s3624_s11 + $0x488] ss:$16 sps:$4 sm:$0xff]   ;;  %v3384_v53 = vld [vmem:[%s3624_s11 + $0x46c] ss:$16 sps:$4 sm:$0xff]  }
  0xb2   : > { %2261 = vmatprep.subr.bf16.mxu1 %v3300_v54  ;;  %v3379_v54 = vld [vmem:[%s3624_s11 + $0x368] ss:$16 sps:$4 sm:$0xff]  }
  0xb4   : > { %2221 = vmatpush1.bf16.msra.mxu0 %v3295_v56  ;;  %v3382_v56 = vld [vmem:[%s3624_s11 + $0x468] ss:$16 sps:$4 sm:$0xff]  }
  0xb5   : > { %2262 = vmatpush1.bf16.msra.mxu1 %v3298_v57  ;;  %2222 = vmatprep.subr.bf16.mxu0 %v3303_v58  ;;  %v3387_v57 = vld [vmem:[%s3624_s11 + $0x34c] ss:$16 sps:$4 sm:$0xff]  }
  0xb6   : > { %2263 = vmatprep.subr.bf16.mxu1 %v3306_v59  ;;  %v3390_v58 = vld [vmem:[%s3624_s11 + $0x44c] ss:$16 sps:$4 sm:$0xff]   ;;  %v3385_v59 = vld [vmem:[%s3624_s11 + $0x348] ss:$16 sps:$4 sm:$0xff]  }
  0xb8   : > { %2223 = vmatpush1.bf16.msra.mxu0 %v3301_v62  ;;  %v3388_v62 = vld [vmem:[%s3624_s11 + $0x448] ss:$16 sps:$4 sm:$0xff]  }
  0xb9   : > { %2264 = vmatpush1.bf16.msra.mxu1 %v3304_v0  ;;  %2290 = vmatprep.subr.bf16.mxu0 %v3312_v2  ;;  %v3393_v0 = vld [vmem:[%s3624_s11 + $0x32c] ss:$16 sps:$4 sm:$0xff]   ;;  %v3391_v2 = vld [vmem:[%s3624_s11 + $0x328] ss:$16 sps:$4 sm:$0xff]  }
  0xba   : > { %2265 = vmatprep.subr.bf16.mxu1 %v3309_v1  ;;  %v3396_v1 = vld [vmem:[%s3624_s11 + $0x42c] ss:$16 sps:$4 sm:$0xff]  }
  0xbb   : > { %2241 = vmatmul.mubr.bf16.vlgmr.msra.gmra.mxu0 %v3835_v3 }
  0xbc   : > { %2291 = vmatpush1.bf16.msra.mxu0 %v3310_v5  ;;  %2322 = vmatprep.mubr.bf16.mxu0 %v3697_v63  ;;  %v3333_v63 = vld [vmem:[%s3624_s11 + $0x16c] ss:$16 sps:$4 sm:$0xff]  }
  0xbd   : > { %2266 = vmatpush2.bf16.msra.mxu1 %v3307_v4  ;;  %2292 = vmatprep.subr.bf16.mxu0 %v3318_v7  ;;  %v3394_v4 = vld [vmem:[%s3624_s11 + $0x428] ss:$16 sps:$4 sm:$0xff]   ;;  %v3399_v5 = vld [vmem:[%s3624_s11 + $0x30c] ss:$16 sps:$4 sm:$0xff]  }
  0xbe   : > { %2267 = vmatprep.subr.bf16.mxu1 %v3315_v6  ;;  %v3402_v6 = vld [vmem:[%s3624_s11 + $0x40c] ss:$16 sps:$4 sm:$0xff]   ;;  %v3397_v7 = vld [vmem:[%s3624_s11 + $0x308] ss:$16 sps:$4 sm:$0xff]  }
  0xc0   : > { %2293 = vmatpush1.bf16.msra.mxu0 %v3316_v9  ;;  %v3405_v9 = vld [vmem:[%s3624_s11 + $0x5ec] ss:$16 sps:$4 sm:$0xff]  }
  0xc1   : > { %2268 = vmatpush2.bf16.msra.mxu1 %v3313_v8  ;;  %2294 = vmatprep.subr.bf16.mxu0 %v3324_v11  ;;  %v3400_v8 = vld [vmem:[%s3624_s11 + $0x408] ss:$16 sps:$4 sm:$0xff]  }
  0xc2   : > { %2269 = vmatprep.subr.bf16.mxu1 %v3321_v10  ;;  %v3408_v10 = vld [vmem:[%s3624_s11 + $0x6ec] ss:$16 sps:$4 sm:$0xff]   ;;  %v3403_v11 = vld [vmem:[%s3624_s11 + $0x5e8] ss:$16 sps:$4 sm:$0xff]  }
  0xc4   : > { %2295 = vmatpush1.bf16.msra.mxu0 %v3322_v13  ;;  %v3411_v13 = vld [vmem:[%s3624_s11 + $0x5cc] ss:$16 sps:$4 sm:$0xff]  }
  0xc5   : > { %2270 = vmatpush2.bf16.msra.mxu1 %v3319_v12  ;;  %2296 = vmatprep.subr.bf16.mxu0 %v3330_v15  ;;  %v3406_v12 = vld [vmem:[%s3624_s11 + $0x6e8] ss:$16 sps:$4 sm:$0xff]  }
  0xc6   : > { %2271 = vmatprep.subr.bf16.mxu1 %v3327_v14  ;;  %v3414_v14 = vld [vmem:[%s3624_s11 + $0x6cc] ss:$16 sps:$4 sm:$0xff]   ;;  %v3409_v15 = vld [vmem:[%s3624_s11 + $0x5c8] ss:$16 sps:$4 sm:$0xff]  }
  0xc8   : > { %2297 = vmatpush1.bf16.msra.mxu0 %v3328_v17  ;;  %v3417_v17 = vld [vmem:[%s3624_s11 + $0x5ac] ss:$16 sps:$4 sm:$0xff]  }
  0xc9   : > { %2272 = vmatpush2.bf16.msra.mxu1 %v3325_v16  ;;  %2298 = vmatprep.subr.bf16.mxu0 %v3336_v18  ;;  %v3412_v16 = vld [vmem:[%s3624_s11 + $0x6c8] ss:$16 sps:$4 sm:$0xff]  }
  0xca   : > { %2273 = vmatprep.subr.bf16.mxu1 %v3333_v63  ;;  %v3420_v63 = vld [vmem:[%s3624_s11 + $0x6ac] ss:$16 sps:$4 sm:$0xff]   ;;  %v3415_v18 = vld [vmem:[%s3624_s11 + $0x5a8] ss:$16 sps:$4 sm:$0xff]  }
  0xcc   : > { %2299 = vmatpush1.bf16.msra.mxu0 %v3334_v20  ;;  %v3426_v20 = vld [vmem:[%s3624_s11 + $0x68c] ss:$16 sps:$4 sm:$0xff]  }
  0xcd   : > { %2274 = vmatpush2.bf16.msra.mxu1 %v3331_v19  ;;  %2300 = vmatprep.subr.bf16.mxu0 %v3342_v22  ;;  %v3423_v19 = vld [vmem:[%s3624_s11 + $0x58c] ss:$16 sps:$4 sm:$0xff]   ;;  %v3424_v22 = vld [vmem:[%s3624_s11 + $0x688] ss:$16 sps:$4 sm:$0xff]  }
  0xce   : > { %2275 = vmatprep.subr.bf16.mxu1 %v3339_v21  ;;  %v3421_v21 = vld [vmem:[%s3624_s11 + $0x588] ss:$16 sps:$4 sm:$0xff]  }
  0xd0   : > { %2301 = vmatpush1.bf16.msra.mxu0 %v3340_v24  ;;  %v3427_v24 = vld [vmem:[%s3624_s11 + $0x568] ss:$16 sps:$4 sm:$0xff]  }
  0xd1   : > { %2276 = vmatpush2.bf16.msra.mxu1 %v3337_v23  ;;  %2302 = vmatprep.subr.bf16.mxu0 %v3348_v26  ;;  %v3432_v23 = vld [vmem:[%s3624_s11 + $0x66c] ss:$16 sps:$4 sm:$0xff]  }
  0xd2   : > { %2277 = vmatprep.subr.bf16.mxu1 %v3345_v25  ;;  %v3430_v25 = vld [vmem:[%s3624_s11 + $0x668] ss:$16 sps:$4 sm:$0xff]   ;;  %v3435_v26 = vld [vmem:[%s3624_s11 + $0x54c] ss:$16 sps:$4 sm:$0xff]  }
  0xd4   : > { %2303 = vmatpush1.bf16.msra.mxu0 %v3346_v28  ;;  %v3433_v28 = vld [vmem:[%s3624_s11 + $0x548] ss:$16 sps:$4 sm:$0xff]  }
  0xd5   : > { %2278 = vmatpush2.bf16.msra.mxu1 %v3343_v27  ;;  %2304 = vmatprep.subr.bf16.mxu0 %v3354_v30  ;;  %v3438_v27 = vld [vmem:[%s3624_s11 + $0x64c] ss:$16 sps:$4 sm:$0xff]  }
  0xd6   : > { %2279 = vmatprep.subr.bf16.mxu1 %v3351_v29  ;;  %v3436_v29 = vld [vmem:[%s3624_s11 + $0x648] ss:$16 sps:$4 sm:$0xff]   ;;  %v3441_v30 = vld [vmem:[%s3624_s11 + $0x52c] ss:$16 sps:$4 sm:$0xff]  }
  0xd8   : > { %2305 = vmatpush1.bf16.msra.mxu0 %v3352_v32  ;;  %v3439_v32 = vld [vmem:[%s3624_s11 + $0x528] ss:$16 sps:$4 sm:$0xff]  }
  0xd9   : > { %2280 = vmatpush2.bf16.msra.mxu1 %v3349_v31  ;;  %2306 = vmatprep.subr.bf16.mxu0 %v3357_v33  ;;  %v3444_v31 = vld [vmem:[%s3624_s11 + $0x62c] ss:$16 sps:$4 sm:$0xff]   ;;  %v3442_v33 = vld [vmem:[%s3624_s11 + $0x628] ss:$16 sps:$4 sm:$0xff]  }
  0xda   : > { %2331 = vmatprep.subr.bf16.mxu1 %v3360_v35  ;;  %v3447_v35 = vld [vmem:[%s3624_s11 + $0x50c] ss:$16 sps:$4 sm:$0xff]  }
  0xdc   : > { %2282 = vmatmul.mubr.bf16.vlgmr.msra.gmra.mxu1 %v3681_v55  ;;  %2307 = vmatpush2.bf16.msra.mxu0 %v3355_v36  ;;  %v3370_v55 = vld [vmem:[%s3624_s11 + $0x4a8] ss:$16 sps:$4 sm:$0xff]   ;;  %v3450_v36 = vld [vmem:[%s3624_s11 + $0x60c] ss:$16 sps:$4 sm:$0xff]  }
  0xdd   : > { %2332 = vmatpush1.bf16.msra.mxu1 %v3358_v37  ;;  %2308 = vmatprep.subr.bf16.mxu0 %v3363_v38  ;;  %v3445_v37 = vld [vmem:[%s3624_s11 + $0x508] ss:$16 sps:$4 sm:$0xff]  }
  0xde   : > { %2333 = vmatprep.subr.bf16.mxu1 %v3366_v39  ;;  %2363 = vmatprep.mubr.bf16.mxu1 %v3749_v45  ;;  %v3381_v45 = vld [vmem:[%s3624_s11 + $0x36c] ss:$16 sps:$4 sm:$0xff]   ;;  %v3448_v38 = vld [vmem:[%s3624_s11 + $0x608] ss:$16 sps:$4 sm:$0xff]  }
  0xdf   : > { %v3453_v39 = vld [vmem:[%s3624_s11 + $0x7ec] ss:$16 sps:$4 sm:$0xff]  }
  0xe0   : > { %2309 = vmatpush2.bf16.msra.mxu0 %v3361_v41  ;;  %v3456_v41 = vld [vmem:[%s3624_s11 + $0x8ec] ss:$16 sps:$4 sm:$0xff]  }
  0xe1   : > { %2334 = vmatpush1.bf16.msra.mxu1 %v3364_v60  ;;  %2310 = vmatprep.subr.bf16.mxu0 %v3369_v42  ;;  %v3451_v60 = vld [vmem:[%s3624_s11 + $0x7e8] ss:$16 sps:$4 sm:$0xff]  }
  0xe2   : > { %2335 = vmatprep.subr.bf16.mxu1 %v3372_v43  ;;  %v3454_v42 = vld [vmem:[%s3624_s11 + $0x8e8] ss:$16 sps:$4 sm:$0xff]   ;;  %v3459_v43 = vld [vmem:[%s3624_s11 + $0x7cc] ss:$16 sps:$4 sm:$0xff]  }
  0xe4   : > { %2311 = vmatpush2.bf16.msra.mxu0 %v3367_v47  ;;  %v3462_v47 = vld [vmem:[%s3624_s11 + $0x8cc] ss:$16 sps:$4 sm:$0xff]  }
  0xe5   : > { %2336 = vmatpush1.bf16.msra.mxu1 %v3370_v55  ;;  %2312 = vmatprep.subr.bf16.mxu0 %v3375_v48 }
  0xe6   : > { %2337 = vmatprep.subr.bf16.mxu1 %v3378_v51 }
  0xe8   : > { %2313 = vmatpush2.bf16.msra.mxu0 %v3373_v52  ;;  %v3457_v52 = vld [vmem:[%s3624_s11 + $0x7c8] ss:$16 sps:$4 sm:$0xff]  }
  0xe9   : > { %2338 = vmatpush1.bf16.msra.mxu1 %v3376_v50  ;;  %2314 = vmatprep.subr.bf16.mxu0 %v3381_v45  ;;  %v3460_v50 = vld [vmem:[%s3624_s11 + $0x8c8] ss:$16 sps:$4 sm:$0xff]  }
  0xea   : > { %2339 = vmatprep.subr.bf16.mxu1 %v3384_v53 }
  0xec   : > { %2315 = vmatpush2.bf16.msra.mxu0 %v3379_v54  ;;  %v3465_v54 = vld [vmem:[%s3624_s11 + $0x7ac] ss:$16 sps:$4 sm:$0xff]  }
  0xed   : > { %2340 = vmatpush1.bf16.msra.mxu1 %v3382_v56  ;;  %2316 = vmatprep.subr.bf16.mxu0 %v3387_v57  ;;  %v3468_v56 = vld [vmem:[%s3624_s11 + $0x8ac] ss:$16 sps:$4 sm:$0xff]  }
  0xee   : > { %2341 = vmatprep.subr.bf16.mxu1 %v3390_v58 }
  0xf0   : > { %2317 = vmatpush2.bf16.msra.mxu0 %v3385_v59  ;;  %v3463_v59 = vld [vmem:[%s3624_s11 + $0x7a8] ss:$16 sps:$4 sm:$0xff]  }
  0xf1   : > { %2342 = vmatpush1.bf16.msra.mxu1 %v3388_v62  ;;  %2318 = vmatprep.subr.bf16.mxu0 %v3393_v0  ;;  %v3466_v62 = vld [vmem:[%s3624_s11 + $0x8a8] ss:$16 sps:$4 sm:$0xff]  }
  0xf2   : > { %2343 = vmatprep.subr.bf16.mxu1 %v3396_v1 }
  0xf4   : > { %2319 = vmatpush2.bf16.msra.mxu0 %v3391_v2  ;;  %v3471_v2 = vld [vmem:[%s3624_s11 + $0x78c] ss:$16 sps:$4 sm:$0xff]  }
  0xf5   : > { %2344 = vmatpush1.bf16.msra.mxu1 %v3394_v4  ;;  %2320 = vmatprep.subr.bf16.mxu0 %v3399_v5  ;;  %v3474_v4 = vld [vmem:[%s3624_s11 + $0x88c] ss:$16 sps:$4 sm:$0xff]   ;;  %v3472_v5 = vld [vmem:[%s3624_s11 + $0x888] ss:$16 sps:$4 sm:$0xff]  }
  0xf6   : > { %2345 = vmatprep.subr.bf16.mxu1 %v3402_v6  ;;  %v3477_v6 = vld [vmem:[%s3624_s11 + $0x76c] ss:$16 sps:$4 sm:$0xff]  }
  0xf8   : > { %2321 = vmatpush2.bf16.msra.mxu0 %v3397_v7  ;;  %v3480_v7 = vld [vmem:[%s3624_s11 + $0x86c] ss:$16 sps:$4 sm:$0xff]  }
  0xf9   : > { %2346 = vmatpush1.bf16.msra.mxu1 %v3400_v8  ;;  %2372 = vmatprep.subr.bf16.mxu0 %v3408_v10  ;;  %v3475_v8 = vld [vmem:[%s3624_s11 + $0x768] ss:$16 sps:$4 sm:$0xff]   ;;  %v3483_v10 = vld [vmem:[%s3624_s11 + $0x74c] ss:$16 sps:$4 sm:$0xff]  }
  0xfa   : > { %2347 = vmatprep.subr.bf16.mxu1 %v3405_v9  ;;  %v3478_v9 = vld [vmem:[%s3624_s11 + $0x868] ss:$16 sps:$4 sm:$0xff]  }
  0xfb   : > { %2323 = vmatmul.mubr.bf16.vlgmr.msra.gmra.mxu0 %v3691_v61  ;;  %v3418_v61 = vld [vmem:[%s3624_s11 + $0x6a8] ss:$16 sps:$4 sm:$0xff]  }
  0xfc   : > { %2373 = vmatpush1.bf16.msra.mxu0 %v3406_v12  ;;  %2404 = vmatprep.mubr.bf16.mxu0 %v3759_v49  ;;  %v3429_v49 = vld [vmem:[%s3624_s11 + $0x56c] ss:$16 sps:$4 sm:$0xff]   ;;  %v3481_v12 = vld [vmem:[%s3624_s11 + $0x748] ss:$16 sps:$4 sm:$0xff]  }
  0xfd   : > { %2348 = vmatpush2.bf16.msra.mxu1 %v3403_v11  ;;  %2374 = vmatprep.subr.bf16.mxu0 %v3414_v14  ;;  %v3486_v11 = vld [vmem:[%s3624_s11 + $0x84c] ss:$16 sps:$4 sm:$0xff]  }
  0xfe   : > { %2349 = vmatprep.subr.bf16.mxu1 %v3411_v13  ;;  %v3484_v13 = vld [vmem:[%s3624_s11 + $0x848] ss:$16 sps:$4 sm:$0xff]   ;;  %v3489_v14 = vld [vmem:[%s3624_s11 + $0x72c] ss:$16 sps:$4 sm:$0xff]  }
 0x100   : > { %2375 = vmatpush1.bf16.msra.mxu0 %v3412_v16  ;;  %v3487_v16 = vld [vmem:[%s3624_s11 + $0x728] ss:$16 sps:$4 sm:$0xff]  }
 0x101   : > { %2350 = vmatpush2.bf16.msra.mxu1 %v3409_v15  ;;  %2376 = vmatprep.subr.bf16.mxu0 %v3420_v63  ;;  %v3492_v15 = vld [vmem:[%s3624_s11 + $0x82c] ss:$16 sps:$4 sm:$0xff]  }
 0x102   : > { %2351 = vmatprep.subr.bf16.mxu1 %v3417_v17  ;;  %v3490_v17 = vld [vmem:[%s3624_s11 + $0x828] ss:$16 sps:$4 sm:$0xff]   ;;  %v3495_v63 = vld [vmem:[%s3624_s11 + $0x70c] ss:$16 sps:$4 sm:$0xff]  }
 0x104   : > { %2377 = vmatpush1.bf16.msra.mxu0 %v3418_v61  ;;  %v3493_v61 = vld [vmem:[%s3624_s11 + $0x708] ss:$16 sps:$4 sm:$0xff]  }
 0x105   : > { %2352 = vmatpush2.bf16.msra.mxu1 %v3415_v18  ;;  %2378 = vmatprep.subr.bf16.mxu0 %v3426_v20  ;;  %v3498_v18 = vld [vmem:[%s3624_s11 + $0x80c] ss:$16 sps:$4 sm:$0xff]  }
 0x106   : > { %2353 = vmatprep.subr.bf16.mxu1 %v3423_v19  ;;  %v3496_v19 = vld [vmem:[%s3624_s11 + $0x808] ss:$16 sps:$4 sm:$0xff]  }
 0x108   : > { %2379 = vmatpush1.bf16.msra.mxu0 %v3424_v22 }
 0x109   : > { %2354 = vmatpush2.bf16.msra.mxu1 %v3421_v21  ;;  %2380 = vmatprep.subr.bf16.mxu0 %v3432_v23 }
 0x10a   : > { %2355 = vmatprep.subr.bf16.mxu1 %v3429_v49 }
 0x10c   : > { %2381 = vmatpush1.bf16.msra.mxu0 %v3430_v25 }
 0x10d   : > { %2356 = vmatpush2.bf16.msra.mxu1 %v3427_v24  ;;  %2382 = vmatprep.subr.bf16.mxu0 %v3438_v27 }
 0x10e   : > { %2357 = vmatprep.subr.bf16.mxu1 %v3435_v26 }
 0x110   : > { %2383 = vmatpush1.bf16.msra.mxu0 %v3436_v29 }
 0x111   : > { %2358 = vmatpush2.bf16.msra.mxu1 %v3433_v28  ;;  %2384 = vmatprep.subr.bf16.mxu0 %v3444_v31 }
 0x112   : > { %2359 = vmatprep.subr.bf16.mxu1 %v3441_v30 }
 0x114   : > { %2385 = vmatpush1.bf16.msra.mxu0 %v3442_v33 }
 0x115   : > { %2360 = vmatpush2.bf16.msra.mxu1 %v3439_v32  ;;  %2386 = vmatprep.subr.bf16.mxu0 %v3450_v36 }
 0x116   : > { %2361 = vmatprep.subr.bf16.mxu1 %v3447_v35  ;;  %v258_v35 = vld [vmem:[#allocation2] sm:$0xff] }
 0x118   : > { %2387 = vmatpush1.bf16.msra.mxu0 %v3448_v38 }
 0x119   : > { %2362 = vmatpush2.bf16.msra.mxu1 %v3445_v37  ;;  %2388 = vmatprep.subr.bf16.mxu0 %v3453_v39 }
 0x11a   : > { %2413 = vmatprep.subr.bf16.mxu1 %v3456_v41 }
 0x11b   : > { %v2078_v55 = vpop.f32.mrf.mxu0 }
 0x11c   : > { %v2119_v48 = vpop.f32.mrf.mxu1  ;;  %2364 = vmatmul.mubr.bf16.vlgmr.msra.gmra.mxu1 %v3743_v40  ;;  %2389 = vmatpush2.bf16.msra.mxu0 %v3451_v60 }
 0x11d   : > { %v3944_v51 = vadd.f32 %v2119_v48, %v2078_v55  ;;  %2414 = vmatpush1.bf16.msra.mxu1 %v3454_v42  ;;  %v2080_v45 = vpop.f32.mrf.mxu0  ;;  %2390 = vmatprep.subr.bf16.mxu0 %v3459_v43 }
 0x11e   : > { %v2121_v53 = vpop.f32.mrf.mxu1  ;;  %2415 = vmatprep.subr.bf16.mxu1 %v3462_v47  ;;  %2445 = vmatprep.mubr.bf16.mxu1 %v3551_v34  ;;  %v3469_v34 = vld [vmem:[%s3624_s11 + $0x788] ss:$16 sps:$4 sm:$0xff]  }
 0x11f   : > { %v3950_v57 = vadd.f32 %v2121_v53, %v2080_v45  ;;  %v2082_v40 = vpop.f32.mrf.mxu0 }
 0x120   : > { %v2123_v58 = vpop.f32.mrf.mxu1  ;;  %2391 = vmatpush2.bf16.msra.mxu0 %v3457_v52 }
 0x121   : > { %2416 = vmatpush1.bf16.msra.mxu1 %v3460_v50  ;;  %v2083_v0 = vpop.f32.mrf.mxu0  ;;  %2392 = vmatprep.subr.bf16.mxu0 %v3465_v54 }
 0x122   : > { %v2124_v1 = vpop.f32.mrf.mxu1  ;;  %2417 = vmatprep.subr.bf16.mxu1 %v3468_v56 }
 0x124   : > { %2393 = vmatpush2.bf16.msra.mxu0 %v3463_v59 }
 0x125   : > { %2418 = vmatpush1.bf16.msra.mxu1 %v3466_v62  ;;  %2394 = vmatprep.subr.bf16.mxu0 %v3471_v2 }
 0x126   : > { %2419 = vmatprep.subr.bf16.mxu1 %v3474_v4 }
 0x128   : > { %2395 = vmatpush2.bf16.msra.mxu0 %v3469_v34 }
 0x129   : > { %2420 = vmatpush1.bf16.msra.mxu1 %v3472_v5  ;;  %2396 = vmatprep.subr.bf16.mxu0 %v3477_v6  ;;  %v259_v6 = vld [vmem:[#allocation2 + $0x8] sm:$0xff] }
 0x12a   : > { %2421 = vmatprep.subr.bf16.mxu1 %v3480_v7 }
 0x12c   : > { %2397 = vmatpush2.bf16.msra.mxu0 %v3475_v8 }
 0x12d   : > { %2422 = vmatpush1.bf16.msra.mxu1 %v3478_v9  ;;  %2398 = vmatprep.subr.bf16.mxu0 %v3483_v10 }
 0x12e   : > { %2423 = vmatprep.subr.bf16.mxu1 %v3486_v11 }
 0x130   : > { %2399 = vmatpush2.bf16.msra.mxu0 %v3481_v12 }
 0x131   : > { %2424 = vmatpush1.bf16.msra.mxu1 %v3484_v13  ;;  %2400 = vmatprep.subr.bf16.mxu0 %v3489_v14 }
 0x132   : > { %2425 = vmatprep.subr.bf16.mxu1 %v3492_v15 }
 0x134   : > { %2401 = vmatpush2.bf16.msra.mxu0 %v3487_v16 }
 0x135   : > { %2426 = vmatpush1.bf16.msra.mxu1 %v3490_v17  ;;  %2402 = vmatprep.subr.bf16.mxu0 %v3495_v63 }
 0x136   : > { %2427 = vmatprep.subr.bf16.mxu1 %v3498_v18 }
 0x138   : > { %2403 = vmatpush2.bf16.msra.mxu0 %v3493_v61 }
 0x139   : > { %2428 = vmatpush1.bf16.msra.mxu1 %v3496_v19 }
 0x13b   : > { %2405 = vmatmul.mubr.bf16.vlgmr.msra.gmra.mxu0 %v3752_v46 }
 0x13c   : > { %2446 = vmatmul.mubr.bf16.vlgmr.msra.gmra.mxu1 %v3835_v3 }
 0x15b   : > { %v2160_v20 = vpop.f32.mrf.mxu0 }
 0x15c   : > { %v2201_v21 = vpop.f32.mrf.mxu1  ;;  %v2161_v27 = vadd.f32 %v2160_v20, %v3944_v51 }
 0x15d   : > { %v2162_v22 = vpop.f32.mrf.mxu0 }
 0x15e   : > { %v2203_v49 = vpop.f32.mrf.mxu1  ;;  %v2163_v28 = vadd.f32 %v2162_v22, %v3950_v57  ;;  %v2202_v30 = vadd.f32 %v2201_v21, %v2161_v27 }
 0x15f   : > { %v2164_v23 = vpop.f32.mrf.mxu0 }
 0x160   : > { %v2205_v24 = vpop.f32.mrf.mxu1  ;;  %v2204_v31 = vadd.f32 %v2203_v49, %v2163_v28 }
 0x161   : > { %v2165_v25 = vpop.f32.mrf.mxu0 }
 0x162   : > { %v2206_v26 = vpop.f32.mrf.mxu1 }
 0x17b   : > { %v2242_v29 = vpop.f32.mrf.mxu0 }
 0x17c   : > { %v2243_v33 = vadd.f32 %v2242_v29, %v2202_v30 }
 0x17d   : > { %v2244_v32 = vpop.f32.mrf.mxu0 }
 0x17e   : > { %v2245_v46 = vadd.f32 %v2244_v32, %v2204_v31 }
 0x17f   : > { %v2246_v3 = vpop.f32.mrf.mxu0 }
 0x180   : > { %v2458_v36 = vcombine.low %v2243_v33, %v2245_v46 }
 0x181   : > { %v2247_v37 = vpop.f32.mrf.mxu0 }
 0x182   : > { %v2462_v38 = vadd.f32 %v2458_v36, %v258_v35 }
 0x184   : > { %2464 = vst [vmem:[#allocation2] sm:$0xff] %v2462_v38 }
 0x19c   : > { %v2283_v39 = vpop.f32.mrf.mxu1 }
 0x19e   : > { %v2285_v41 = vpop.f32.mrf.mxu1 }
 0x1a0   : > { %v2287_v60 = vpop.f32.mrf.mxu1 }
 0x1a2   : > { %v2288_v42 = vpop.f32.mrf.mxu1 }
 0x1bb   : > { %v2324_v43 = vpop.f32.mrf.mxu0 }
 0x1bc   : > { %v2325_v53 = vadd.f32 %v2324_v43, %v2283_v39 }
 0x1bd   : > { %v2326_v47 = vpop.f32.mrf.mxu0 }
 0x1be   : > { %v2327_v54 = vadd.f32 %v2326_v47, %v2285_v41 }
 0x1bf   : > { %v2328_v55 = vpop.f32.mrf.mxu0 }
 0x1c1   : > { %v2329_v48 = vpop.f32.mrf.mxu0 }
 0x1dc   : > { %v2365_v51 = vpop.f32.mrf.mxu1 }
 0x1dd   : > { %v2366_v56 = vadd.f32 %v2365_v51, %v2325_v53 }
 0x1de   : > { %v2367_v52 = vpop.f32.mrf.mxu1 }
 0x1df   : > { %v2368_v58 = vadd.f32 %v2367_v52, %v2327_v54 }
 0x1e0   : > { %v2369_v50 = vpop.f32.mrf.mxu1 }
 0x1e2   : > { %v2370_v45 = vpop.f32.mrf.mxu1 }
 0x1fb   : > { %v2406_v57 = vpop.f32.mrf.mxu0 }
 0x1fc   : > { %v2447_v40 = vpop.f32.mrf.mxu1  ;;  %v2407_v59 = vadd.f32 %v2406_v57, %v2366_v56 }
 0x1fd   : > { %v2408_v62 = vpop.f32.mrf.mxu0 }
 0x1fe   : > { %v2449_v0 = vpop.f32.mrf.mxu1  ;;  %v2409_v1 = vadd.f32 %v2408_v62, %v2368_v58  ;;  %v2448_v34 = vadd.f32 %v2447_v40, %v2407_v59 }
 0x1ff   : > { %v2410_v2 = vpop.f32.mrf.mxu0 }
 0x200   : > { %v2451_v4 = vpop.f32.mrf.mxu1  ;;  %v2450_v5 = vadd.f32 %v2449_v0, %v2409_v1 }
 0x201   : > { %v2411_v7 = vpop.f32.mrf.mxu0 }
 0x202   : > { %v2452_v8 = vpop.f32.mrf.mxu1  ;;  %v2459_v9 = vcombine.low %v2448_v34, %v2450_v5  ;;  %2469 = sbr.rel (%p3016_p9) target bundleno = 593 (0x251), region = 44 }
 0x204   : > { %v2463_v10 = vadd.f32 %v2459_v9, %v259_v6 }
 0x206   : > { %2465 = vst [vmem:[#allocation2 + $0x8] sm:$0xff] %v2463_v10 }
 0x207   : > { %v2470_v11 = vld [vmem:[#allocation2] sm:$0xff]  ;;  %vm2478_vm0 = vcmask 1043456  }
 0x208   : > { %v2474_v12 = vcombine.high %v2470_v11, %v2470_v11  ;;  %v2479_v13 = vsel %vm2478_vm0, %v2470_v11, 0.0 }
 0x209   : > { %v2480_v15 = vrot.slane %v2479_v13, 4 }
 0x20a   : > { %v2486_v16 = vsel %vm2478_vm0, %v2474_v12, 0.0 }
 0x20b   : > { %v2481_v18 = vadd.f32 %v2480_v15, %v2479_v13  ;;  %v2487_v61 = vrot.slane %v2486_v16, 4 }
 0x20d   : > { %v2471_v14 = vld [vmem:[#allocation2 + $0x8] sm:$0xff]  ;;  %v2482_v21 = vrot.slane %v2481_v18, 2  ;;  %v2488_v22 = vadd.f32 %v2487_v61, %v2486_v16 }
 0x20e   : > { %v2475_v17 = vcombine.high %v2471_v14, %v2471_v14  ;;  %v2493_v63 = vsel %vm2478_vm0, %v2471_v14, 0.0 }
 0x20f   : > { %v2494_v19 = vrot.slane %v2493_v63, 4  ;;  %v2483_v24 = vadd.f32 %v2482_v21, %v2481_v18  ;;  %v2489_v25 = vrot.slane %v2488_v22, 2 }
 0x210   : > { %v2500_v20 = vsel %vm2478_vm0, %v2475_v17, 0.0 }
 0x211   : > { %v2495_v49 = vadd.f32 %v2494_v19, %v2493_v63  ;;  %v2501_v23 = vrot.slane %v2500_v20, 4  ;;  %v2484_v28 = vrot.slane %v2483_v24, 1  ;;  %v2490_v29 = vadd.f32 %v2489_v25, %v2488_v22 }
 0x212   : > { %v2584_v25 = vsub.s32 0, %v3666_v44 }
 0x213   : > { %v2496_v26 = vrot.slane %v2495_v49, 2  ;;  %v2502_v27 = vadd.f32 %v2501_v23, %v2500_v20  ;;  %v2485_v32 = vadd.f32 %v2484_v28, %v2483_v24  ;;  %v2491_v33 = vrot.slane %v2490_v29, 1 }
 0x214   : > { %v2592_v28 = vsub.s32 2, %v3666_v44 }
 0x215   : > { %v2497_v30 = vadd.f32 %v2496_v26, %v2495_v49  ;;  %v2503_v31 = vrot.slane %v2502_v27, 2  ;;  %v2492_v3 = vadd.f32 %v2491_v33, %v2490_v29  ;;  %v2508_v36 = vmul.f32 0.25, %v2485_v32 }
 0x216   : > { %v2588_v26 = vsub.s32 1, %v3666_v44  ;;  %v2596_v29 = vsub.s32 3, %v3666_v44 }
 0x217   : > { %v2498_v46 = vrot.slane %v2497_v30, 1  ;;  %v2504_v35 = vadd.f32 %v2503_v31, %v2502_v27  ;;  %v2509_v39 = vmul.f32 0.25, %v2492_v3  ;;  %v2580_v27 = vld [vmem:[%s4027_s2] sm:$0xf] }
 0x218   : > { %v2585_v31 = vrot.slane %v2580_v27, %v2584_v25  ;;  %v2589_v32 = vrot.slane %v2580_v27, %v2588_v26  ;;  %v2593_v3 = vrot.slane %v2580_v27, %v2592_v28 }
 0x219   : > { %v2499_v37 = vadd.f32 %v2498_v46, %v2497_v30  ;;  %v2505_v38 = vrot.slane %v2504_v35, 1  ;;  %v2516_v42 = vcombine.low %v2508_v36, %v2509_v39  ;;  %v2604_v30 = vld [vmem:[%s4028_s3] sm:$0xf]  ;;  %v2597_v36 = vrot.slane %v2580_v27, %v2596_v29 }
 0x21a   : > { %v2609_v46 = vrot.slane %v2604_v30, %v2584_v25 }
 0x21b   : > { %v2506_v41 = vadd.f32 %v2505_v38, %v2504_v35  ;;  %v2510_v60 = vmul.f32 0.25, %v2499_v37  ;;  %v3984_v47 = vsub.f32 %v2470_v11, %v2516_v42  ;;  %v2613_v35 = vrot.slane %v2604_v30, %v2588_v26 }
 0x21c   : > { %v2621_v42 = vrot.slane %v2604_v30, %v2596_v29 }
 0x21d   : > { %v2511_v43 = vmul.f32 0.25, %v2506_v41  ;;  %v2522_v48 = vmul.f32 %v3984_v47, %v3984_v47  ;;  %v2598_v41 = vcombine.low %v2585_v31, %v2589_v32 }
 0x21f   : > { %v2517_v55 = vcombine.low %v2510_v60, %v2511_v43  ;;  %v2526_v52 = vcombine.high %v2522_v48, %v2522_v48  ;;  %v2530_v50 = vsel %vm2478_vm0, %v2522_v48, 0.0  ;;  %v2617_v60 = vrot.slane %v2604_v30, %v2592_v28 }
 0x220   : > { %v2531_v53 = vrot.slane %v2530_v50, 4 }
 0x221   : > { %v3988_v51 = vsub.f32 %v2471_v14, %v2517_v55  ;;  %v2537_v54 = vsel %vm2478_vm0, %v2526_v52, 0.0  ;;  %v2622_v55 = vcombine.low %v2609_v46, %v2613_v35  ;;  %v2599_v52 = vcombine.low %v2593_v3, %v2597_v36 }
 0x222   : > { %v2532_v40 = vadd.f32 %v2531_v53, %v2530_v50  ;;  %v2538_v58 = vrot.slane %v2537_v54, 4  ;;  %v2623_v53 = vcombine.low %v2617_v60, %v2621_v42 }
 0x223   : > { %v2523_v45 = vmul.f32 %v3988_v51, %v3988_v51 }
 0x224   : > { %v2533_v0 = vrot.slane %v2532_v40, 2  ;;  %v2539_v1 = vadd.f32 %v2538_v58, %v2537_v54 }
 0x225   : > { %v2527_v56 = vcombine.high %v2523_v45, %v2523_v45  ;;  %v2544_v57 = vsel %vm2478_vm0, %v2523_v45, 0.0 }
 0x226   : > { %v2545_v59 = vrot.slane %v2544_v57, 4  ;;  %v2534_v34 = vadd.f32 %v2533_v0, %v2532_v40  ;;  %v2540_v5 = vrot.slane %v2539_v1, 2 }
 0x227   : > { %v2551_v62 = vsel %vm2478_vm0, %v2527_v56, 0.0 }
 0x228   : > { %v2546_v2 = vadd.f32 %v2545_v59, %v2544_v57  ;;  %v2552_v4 = vrot.slane %v2551_v62, 4  ;;  %v2535_v8 = vrot.slane %v2534_v34, 1  ;;  %v2541_v9 = vadd.f32 %v2540_v5, %v2539_v1 }
 0x22a   : > { %v2547_v6 = vrot.slane %v2546_v2, 2  ;;  %v2553_v7 = vadd.f32 %v2552_v4, %v2551_v62  ;;  %v2536_v12 = vadd.f32 %v2535_v8, %v2534_v34  ;;  %v2542_v13 = vrot.slane %v2541_v9, 1 }
 0x22c   : > { %v2548_v10 = vadd.f32 %v2547_v6, %v2546_v2  ;;  %v2554_v11 = vrot.slane %v2553_v7, 2  ;;  %v2543_v16 = vadd.f32 %v2542_v13, %v2541_v9  ;;  %v2558_v17 = vmul.f32 0.25, %v2536_v12 }
 0x22e   : > { %v2549_v14 = vrot.slane %v2548_v10, 1  ;;  %v2555_v15 = vadd.f32 %v2554_v11, %v2553_v7  ;;  %v2559_v61 = vmul.f32 0.25, %v2543_v16  ;;  %v2562_v19 = vadd.f32 1e-05, %v2558_v17 }
 0x230   : > { %v2550_v63 = vadd.f32 %v2549_v14, %v2548_v10  ;;  %v2556_v18 = vrot.slane %v2555_v15, 1  ;;  %v2563_v22 = vadd.f32 1e-05, %v2559_v61  ;;  %3501 = vrsqrt.f32 %v2562_v19 }
 0x232   : > { %v2557_v20 = vadd.f32 %v2556_v18, %v2555_v15  ;;  %v2560_v21 = vmul.f32 0.25, %v2550_v63  ;;  %3503 = vrsqrt.f32 %v2563_v22 }
 0x234   : > { %v2561_v49 = vmul.f32 0.25, %v2557_v20  ;;  %v2564_v23 = vadd.f32 1e-05, %v2560_v21 }
 0x236   : > { %v2565_v24 = vadd.f32 1e-05, %v2561_v49  ;;  %3505 = vrsqrt.f32 %v2564_v23 }
 0x238   : > { %3507 = vrsqrt.f32 %v2565_v24 }
 0x23d   : > { %v3502_v33 = vpop.eup %3501 }
 0x23f   : > { %v3504_v37 = vpop.eup %3503 }
 0x240   : > { %v2574_v39 = vcombine.low %v3502_v33, %v3504_v37 }
 0x242   : > { %v2578_v43 = vmul.f32 %v2574_v39, %v3984_v47 }
 0x243   : > { %v3506_v38 = vpop.eup %3505 }
 0x244   : > { %v2602_v50 = vmul.f32 %v2598_v41, %v2578_v43 }
 0x245   : > { %v3508_v44 = vpop.eup %3507 }
 0x246   : > { %v2575_v48 = vcombine.low %v3506_v38, %v3508_v44  ;;  %v2626_v54 = vadd.f32 %v2622_v55, %v2602_v50 }
 0x248   : > { %v2579_v45 = vmul.f32 %v2575_v48, %v3988_v51  ;;  %v2628_v57 = vmax.f32 %v2626_v54, 0.0 }
 0x24a   : > { %v2603_v56 = vmul.f32 %v2599_v52, %v2579_v45  ;;  %2630 = vst [vmem:[%s3614_s29] sm:$0xff] %v2628_v57 }
 0x24c   : > { %v2627_v40 = vadd.f32 %v2623_v53, %v2603_v56 }
 0x24e   : > { %v2629_v58 = vmax.f32 %v2627_v40, 0.0 }
 0x250   : > { %2631 = vst [vmem:[%s3614_s29 + $0x8] sm:$0xff] %v2629_v58 }
 0x251 PF: > { %s14_s19 = sadd.s32 1, %s3547_s19   ;;  %s4030_s15 = smov %s3539_s17 }
 0x252   : > { %p11_p10 = scmp.ge.s32.totalorder %s14_s19, 10   ;;  %s4031_s16 = smov %s3543_s18 }
 0x253   : > { %s4032_s17 = smov %s4035_s20  ;;  %s4033_s18 = smov %s4039_s21 }
 0x254   :  { %13 = sbr.rel (!%p11_p10) target bundleno = 3 (0x3), region = 77 }

</bundles_post_ra>
